<compile_context>
chip_gen: v5e
topology: v5e:2x2
jax: 0.10.0
libtpu: 0.0.40
codegen_flags: <defaults>
</compile_context>

<pallas_src>
import functools

import jax
import jax.numpy as jnp
from jax.experimental import pallas as pl
from jax.experimental.pallas import tpu as pltpu


# --------------------------- generation-aware VMEM ---------------------------
@functools.lru_cache(maxsize=None)
def _vmem_limit_bytes():
    """~3/4 of physical VMEM, capped at 96 MiB (v5e/v6e -> 96 MiB, v7x -> 48 MiB)."""
    cap = 128 * 1024 * 1024
    try:
        info = pltpu.get_tpu_info()
        cap = int(getattr(info, "vmem_capacity_bytes", cap) or cap)
    except Exception:
        pass
    return int(min(cap * 3 // 4, 96 * 1024 * 1024))


def _round_up(x, m):
    return (x + m - 1) // m * m


# ------------------------- shared tiled matmul + bias ------------------------
def _matmul_bias_kernel(x_ref, w_ref, b_ref, o_ref):
    o_ref[...] = (
        jnp.dot(x_ref[...], w_ref[...], preferred_element_type=jnp.float32)
        + b_ref[...]
    ).astype(o_ref.dtype)


def matmul_bias(x, w, b, *, out_dtype=jnp.float32, tm_pref=256, tn_pref=256,
                allow_input_fusion=None):
    """(M, K) @ (K, N) + (1, N) -> (M, N), gridded over M/N tiles, K untiled.

    Both grid axes are "parallel" (feeds both v7x TensorCores); only the
    (tm, K)/(K, tn) tiles are VMEM resident, so large N (real vocab) streams
    from HBM via the built-in double-buffered pipeline.  Non-multiple M/N are
    handled by padding + slicing the output.
    """
    # TODO(synk): for very large K (real ResNet im2col) add a K grid axis with
    # a VMEM accumulator; K is small for every GEMM in this model stand-in.
    M, K = x.shape
    K2, N = w.shape
    assert K == K2 and b.shape == (1, N)

    if M <= tm_pref:
        tm, Mp = M, M
    else:
        tm = tm_pref                      # multiple of 8
        Mp = _round_up(M, tm)
    if N <= tn_pref:
        tn, Np = N, N
    else:
        tn = tn_pref                      # multiple of 128
        Np = _round_up(N, tn)

    if Mp != M:
        x = jnp.pad(x, ((0, Mp - M), (0, 0)))
    if Np != N:
        w = jnp.pad(w, ((0, 0), (0, Np - N)))
        b = jnp.pad(b, ((0, 0), (0, Np - N)))

    out = pl.pallas_call(
        _matmul_bias_kernel,
        out_shape=jax.ShapeDtypeStruct((Mp, Np), out_dtype),
        grid_spec=pltpu.PrefetchScalarGridSpec(
            num_scalar_prefetch=0,
            grid=(Mp // tm, Np // tn),
            in_specs=[
                pl.BlockSpec((tm, K), lambda i, j: (i, 0)),
                pl.BlockSpec((K, tn), lambda i, j: (0, j)),
                pl.BlockSpec((1, tn), lambda i, j: (0, j)),
            ],
            out_specs=pl.BlockSpec((tm, tn), lambda i, j: (i, j)),
        ),
        compiler_params=pltpu.CompilerParams(
            dimension_semantics=("parallel", "parallel"),
            vmem_limit_bytes=_vmem_limit_bytes(),
            allow_input_fusion=allow_input_fusion,
        ),
    )(x, w, b)
    if Mp != M or Np != N:
        out = out[:M, :N]
    return out


# ----------------------------------- Encoder ---------------------------------
# TODO(synk): the frozen ResNet152 backbone of EncoderCNN cannot be reproduced
# in-script; it is replaced by a single stride=kernel "patchify" projection
# (an im2col GEMM) producing features of shape (B, num_pixels, encoder_dim),
# matching EncoderCNN's permute(0,2,3,1).view(B,-1,C) output contract.
def encode(images, proj_w, proj_b, patch):
    B, C, H, W = images.shape
    gh, gw = H // patch, W // patch
    x = jnp.transpose(images, (0, 2, 3, 1))                        # NCHW -> NHWC
    x = x.reshape(B, gh, patch, gw, patch, C)
    x = jnp.transpose(x, (0, 1, 3, 2, 4, 5)).reshape(B * gh * gw, patch * patch * C)
    E = proj_w.shape[1]
    # allow_input_fusion: let XLA fold the transpose/reshape chain into the
    # GEMM operand instead of a separate full-tensor HBM round trip.
    feats = matmul_bias(x.astype(jnp.bfloat16), proj_w, proj_b,
                        allow_input_fusion=[True, False, False])   # (B*P, E) f32
    return feats.reshape(B, gh * gw, E)


# ------------------------ Decoder recurrence kernel --------------------------
def decoder_recurrent_kernel(feat_ref, uhs_ref, embg_ref,
                             Wcat_ref, Wb_ref, Aw_ref,
                             ihwT_ref, ihb_ref, icwT_ref, icb_ref,
                             WctxT_ref,
                             hs_ref, alphas_ref,
                             h_sc, c_sc):
    t = pl.program_id(1)

    feats = feat_ref[...]                                  # (bb, P, E) bf16
    u_hs = uhs_ref[...]                                    # (bb, P, A) bf16
    bb, P, _ = feats.shape
    A = u_hs.shape[2]
    D = h_sc.shape[1]
    Pp = alphas_ref.shape[1]                               # lane-padded P

    # t == 0: init_hidden_state (mean over spatial features -> init_h/init_c)
    @pl.when(t == 0)
    def _():
        mean_f = jnp.mean(feats.astype(jnp.float32), axis=1).astype(jnp.bfloat16)
        h_sc[...] = (jnp.dot(mean_f, ihwT_ref[...],
                             preferred_element_type=jnp.float32) + ihb_ref[...])
        c_sc[...] = (jnp.dot(mean_f, icwT_ref[...],
                             preferred_element_type=jnp.float32) + icb_ref[...])

    h = h_sc[...]                                          # (bb, D) f32
    c = c_sc[...]
    h_bf = h.astype(jnp.bfloat16)

    # Fused h-projection: [W_attn^T | W_hh^T] -> one MXU push per step.
    hproj = jnp.dot(h_bf, Wcat_ref[...], preferred_element_type=jnp.float32)
    w_ah = hproj[:, :A] + Wb_ref[...]                      # (bb, A)
    h_gates = hproj[:, A:]                                 # (bb, 4D)

    # --- Attention (softmax over the P spatial positions) ---
    comb = jnp.tanh(u_hs.astype(jnp.float32) + w_ah[:, None, :])     # (bb, P, A)
    # A-Linear bias omitted: a constant shift cancels exactly in softmax.
    scores = jnp.sum(comb * Aw_ref[...].reshape(1, 1, A), axis=2)    # (bb, P)
    scores = scores - jnp.max(scores, axis=1, keepdims=True)
    ex = jnp.exp(scores)
    alpha = ex / jnp.sum(ex, axis=1, keepdims=True)        # exact softmax (f32)

    # Attention-weighted sum on the MXU: (bb,1,P) @ (bb,P,E) -> (bb,E)
    context = jnp.einsum(
        "bqp,bpe->bqe", alpha.astype(jnp.bfloat16)[:, None, :], feats,
        preferred_element_type=jnp.float32)[:, 0, :]

    # --- LSTMCell (PyTorch gate order i, f, g, o) ---
    # emb @ W_ih_emb + b_ih + b_hh was precomputed outside (embg_ref), so no
    # per-step concat is needed; the h@W_hh half is already in h_gates.
    gates = (embg_ref[...]
             + jnp.dot(context.astype(jnp.bfloat16), WctxT_ref[...],
                       preferred_element_type=jnp.float32)
             + h_gates)
    i_g = jax.nn.sigmoid(gates[:, 0:D])
    f_g = jax.nn.sigmoid(gates[:, D:2 * D])
    g_g = jnp.tanh(gates[:, 2 * D:3 * D])
    o_g = jax.nn.sigmoid(gates[:, 3 * D:4 * D])
    c_new = f_g * c + i_g * g_g
    h_new = o_g * jnp.tanh(c_new)

    h_sc[...] = h_new
    c_sc[...] = c_new

    # vocab projection hoisted out of the loop (single GEMM afterwards).
    hs_ref[...] = h_new.astype(hs_ref.dtype)               # (bb, D) bf16
    if Pp > P:                                             # lane-dense alpha store
        alpha = jnp.concatenate(
            [alpha, jnp.zeros((bb, Pp - P), jnp.float32)], axis=1)
    alphas_ref[...] = alpha


def _pick_batch_block(B):
    # v7x: 2 TensorCores; run an independent half-batch of the serial T loop on
    # each core when that keeps blocks sublane-dense (>=16 rows for bf16).
    if B % 2 == 0 and (B // 2) % 16 == 0:
        return B // 2
    return B


def decode(features, captions, params):
    B, P, E = features.shape
    T = captions.shape[1] - 1
    D = params["W_hhT"].shape[0]
    V = params["fcn_wT"].shape[1]
    Em = params["emb_table"].shape[1]
    A = params["U_wT"].shape[1]
    Pp = _round_up(P, 128)
    bb = _pick_batch_block(B)
    assert B % bb == 0

    # glue: embedding lookup (nn.Embedding)
    embeds = params["emb_table"][captions[:, :T]]          # (B, T, Em)
    embeds_tm = jnp.transpose(embeds, (1, 0, 2))           # (T, B, Em)

    # Hoisted batched GEMM: embedding half of the LSTM input projection with
    # both LSTM biases folded in (loop-invariant).
    emb_gates = matmul_bias(
        embeds_tm.reshape(T * B, Em).astype(jnp.bfloat16),
        params["W_ih_embT"],
        params["b_ih"] + params["b_hh"],
    ).reshape(T, B, 4 * D)

    # Hoisted loop-invariant attention projection U(features), kept bf16 so the
    # recurrence's resident copy is half-sized.
    u_hs = matmul_bias(
        features.reshape(B * P, E).astype(jnp.bfloat16),
        params["U_wT"], params["U_b"], out_dtype=jnp.bfloat16,
    ).reshape(B, P, A)

    feats_bf = features.astype(jnp.bfloat16)               # bf16 VMEM resident
    # Fuse the two per-step h-projections into one weight (loop-invariant prep).
    Wcat = jnp.concatenate([params["W_wT"], params["W_hhT"]], axis=1)  # (D, A+4D)

    # Serial recurrence: attention + LSTMCell only, gridded (batch || , T serial).
    # TODO(synk): dropout applied as identity (eval-mode); training RNG omitted.
    hs_tm_bf, alphas_tm = pl.pallas_call(
        decoder_recurrent_kernel,
        out_shape=(
            jax.ShapeDtypeStruct((T, B, D), jnp.bfloat16),
            jax.ShapeDtypeStruct((T, B, Pp), jnp.float32),
        ),
        grid_spec=pltpu.PrefetchScalarGridSpec(
            num_scalar_prefetch=0,
            grid=(B // bb, T),
            in_specs=[
                pl.BlockSpec((bb, P, E), lambda b, t: (b, 0, 0)),        # feats
                pl.BlockSpec((bb, P, A), lambda b, t: (b, 0, 0)),        # U(feats)
                pl.BlockSpec((None, bb, 4 * D), lambda b, t: (t, b, 0)),  # emb gates
                pl.BlockSpec((D, A + 4 * D), lambda b, t: (0, 0)),       # [W|W_hh]^T
                pl.BlockSpec((1, A), lambda b, t: (0, 0)),               # W bias
                pl.BlockSpec((1, A), lambda b, t: (0, 0)),               # A weight
                pl.BlockSpec((E, D), lambda b, t: (0, 0)),               # init_h W^T
                pl.BlockSpec((1, D), lambda b, t: (0, 0)),               # init_h b
                pl.BlockSpec((E, D), lambda b, t: (0, 0)),               # init_c W^T
                pl.BlockSpec((1, D), lambda b, t: (0, 0)),               # init_c b
                pl.BlockSpec((E, 4 * D), lambda b, t: (0, 0)),           # W_ih_ctx^T
            ],
            out_specs=(
                pl.BlockSpec((None, bb, D), lambda b, t: (t, b, 0)),
                pl.BlockSpec((None, bb, Pp), lambda b, t: (t, b, 0)),
            ),
            scratch_shapes=[
                pltpu.VMEM((bb, D), jnp.float32),   # h carry
                pltpu.VMEM((bb, D), jnp.float32),   # c carry
            ],
        ),
        compiler_params=pltpu.CompilerParams(
            dimension_semantics=("parallel", "arbitrary"),
            vmem_limit_bytes=_vmem_limit_bytes(),
        ),
    )(feats_bf, u_hs, emb_gates, Wcat,
      params["W_b"], params["A_w"],
      params["init_h_wT"], params["init_h_b"],
      params["init_c_wT"], params["init_c_b"],
      params["W_ih_ctxT"])

    # Vocab projection: reorder the SMALL hs tensor (not the huge logits), then
    # one (B*T, D) @ (D, V) GEMM with a full-M tile, gridded only over N.
    hs_bt = jnp.transpose(hs_tm_bf, (1, 0, 2)).reshape(B * T, D)   # bf16
    preds_flat = matmul_bias(hs_bt, params["fcn_wT"], params["fcn_b"],
                             tm_pref=B * T, tn_pref=512)           # (B*T, V) f32
    preds = preds_flat.reshape(B, T, V)
    alphas = jnp.transpose(alphas_tm, (1, 0, 2))[:, :, :P]         # (B, T, P)
    return preds, alphas


def encoder_decoder_forward(images, captions, params, patch):
    features = encode(images, params["proj_w"], params["proj_b"], patch)
    return decode(features, captions, params)


if __name__ == "__main__":
    # Small shapes consistent with the module's forward pass; feature dims are
    # lane-dense (multiples of 128) and batch fills sublanes (>=16 per block).
    B, C, H, W = 32, 3, 32, 32
    patch = 8                       # -> 4x4 = 16 spatial features
    embed_size = 128
    attention_dim = 128
    encoder_dim = 128
    decoder_dim = 128
    vocab = 256                     # TODO(synk): stands in for BERT vocab (30522)
    Tcap = 9                        # captions length -> seq_length = 8

    key = jax.random.PRNGKey(0)
    ks = jax.random.split(key, 24)

    def init(k, shape, dtype=jnp.float32, scale=0.05):
        return (scale * jax.random.normal(k, shape, dtype=jnp.float32)).astype(dtype)

    Em, A, E, D, V = embed_size, attention_dim, encoder_dim, decoder_dim, vocab
    bf = jnp.bfloat16
    params = {
        # encoder stand-in (patch projection conv); matmul weights stored bf16
        "proj_w": init(ks[0], (patch * patch * C, E), bf),
        "proj_b": init(ks[1], (1, E)),
        # embedding
        "emb_table": init(ks[2], (V, Em)),
        # Attention: U(E->A), W(D->A), A(A->1); A-bias dropped (cancels in softmax)
        "U_wT": init(ks[3], (E, A), bf), "U_b": init(ks[4], (1, A)),
        "W_wT": init(ks[5], (D, A), bf), "W_b": init(ks[6], (1, A)),
        "A_w": init(ks[7], (1, A)),
        # init_h / init_c: E -> D
        "init_h_wT": init(ks[9], (E, D), bf),  "init_h_b": init(ks[10], (1, D)),
        "init_c_wT": init(ks[11], (E, D), bf), "init_c_b": init(ks[12], (1, D)),
        # LSTMCell: input Em+E split into embedding/context blocks, hidden D
        "W_ih_embT": init(ks[13], (Em, 4 * D), bf),
        "W_ih_ctxT": init(ks[21], (E, 4 * D), bf),
        "b_ih": init(ks[14], (1, 4 * D)),
        "W_hhT": init(ks[15], (D, 4 * D), bf),
        "b_hh": init(ks[16], (1, 4 * D)),
        # fcn: D -> vocab
        "fcn_wT": init(ks[17], (D, V), bf), "fcn_b": init(ks[18], (1, V)),
    }

    images = jax.random.normal(ks[19], (B, C, H, W), dtype=jnp.float32)
    captions = jax.random.randint(ks[20], (B, Tcap), 0, vocab, dtype=jnp.int32)

    fwd = jax.jit(encoder_decoder_forward, static_argnames=("patch",))
    preds, alphas = fwd(images, captions, params, patch=patch)
    jax.block_until_ready((preds, alphas))

    P = (H // patch) * (W // patch)
    assert preds.shape == (B, Tcap - 1, vocab), preds.shape
    assert alphas.shape == (B, Tcap - 1, P), alphas.shape
    # exact softmax -> rows of alpha sum to 1 (f32 rounding only)
    assert jnp.allclose(jnp.sum(alphas, axis=-1), 1.0, atol=1e-3)
    assert bool(jnp.all(jnp.isfinite(preds)))
    print("KERNEL_OK")
</pallas_src>

<mosaic_0001>
module attributes {stable_mosaic.version = 11 : i64} {
  func.func @_matmul_bias_kernel(%arg0: i32, %arg1: i32, %arg2: memref<256x192xbf16, #tpu.memory_space<vmem>>, %arg3: memref<192x128xbf16, #tpu.memory_space<vmem>>, %arg4: memref<1x128xf32, #tpu.memory_space<vmem>>, %arg5: memref<256x128xf32, #tpu.memory_space<vmem>>) attributes {dimension_semantics = [#tpu.dimension_semantics<parallel>, #tpu.dimension_semantics<parallel>], iteration_bounds = array<i64: 2, 1>, scalar_prefetch = 0 : i64, scratch_operands = 0 : i64, tpu.core_type = #tpu.core_type<tc>, window_params = [{transform_indices = @transform_0, window_bounds = array<i64: 256, 192>}, {transform_indices = @transform_1, window_bounds = array<i64: 192, 128>}, {transform_indices = @transform_2, window_bounds = array<i64: 1, 128>}, {transform_indices = @transform_3, window_bounds = array<i64: 256, 128>}]} {
    %c0 = arith.constant 0 : index
    %c0_0 = arith.constant 0 : index
    %0 = vector.load %arg2[%c0, %c0_0] : memref<256x192xbf16, #tpu.memory_space<vmem>>, vector<256x192xbf16>
    %c0_1 = arith.constant 0 : index
    %c0_2 = arith.constant 0 : index
    %1 = vector.load %arg3[%c0_1, %c0_2] : memref<192x128xbf16, #tpu.memory_space<vmem>>, vector<192x128xbf16>
    %cst = arith.constant dense<0.000000e+00> : vector<256x128xf32>
    %2 = tpu.matmul %0, %1, %cst {dimension_numbers = #tpu.dot_dimension_numbers<[1], [0], [0], [1], [0, 0, 1, 1], [], []>} : vector<256x192xbf16>, vector<192x128xbf16>, vector<256x128xf32> -> vector<256x128xf32>
    %c0_3 = arith.constant 0 : index
    %c0_4 = arith.constant 0 : index
    %3 = vector.load %arg4[%c0_3, %c0_4] : memref<1x128xf32, #tpu.memory_space<vmem>>, vector<1x128xf32>
    %4 = vector.broadcast %3 : vector<1x128xf32> to vector<256x128xf32>
    %5 = arith.addf %2, %4 : vector<256x128xf32>
    %c0_5 = arith.constant 0 : index
    %c0_6 = arith.constant 0 : index
    %6 = vector.load %arg5[%c0_5, %c0_6] : memref<256x128xf32, #tpu.memory_space<vmem>>, vector<256x128xf32>
    tpu.vector_store %arg5[%c0_5, %c0_6], %5 {strides = array<i32>} : memref<256x128xf32, #tpu.memory_space<vmem>>, vector<256x128xf32>,
    return
  }
  func.func @transform_0(%arg0: i32, %arg1: i32) -> (i32, i32) {
    %c0_i32 = arith.constant 0 : i32
    %c0_i32_0 = arith.constant 0 : i32
    return %arg0, %c0_i32 : i32, i32
  }
  func.func @transform_1(%arg0: i32, %arg1: i32) -> (i32, i32) {
    %c0_i32 = arith.constant 0 : i32
    %c0_i32_0 = arith.constant 0 : i32
    return %c0_i32, %arg1 : i32, i32
  }
  func.func @transform_2(%arg0: i32, %arg1: i32) -> (i32, i32) {
    %c0_i32 = arith.constant 0 : i32
    %c0_i32_0 = arith.constant 0 : i32
    return %c0_i32, %arg1 : i32, i32
  }
  func.func @transform_3(%arg0: i32, %arg1: i32) -> (i32, i32) {
    %c0_i32 = arith.constant 0 : i32
    return %arg0, %arg1 : i32, i32
  }
}

module attributes {stable_mosaic.version = 11 : i64} {
  func.func @_matmul_bias_kernel(%arg0: i32, %arg1: i32, %arg2: memref<256x128xbf16, #tpu.memory_space<vmem>>, %arg3: memref<128x128xbf16, #tpu.memory_space<vmem>>, %arg4: memref<1x128xf32, #tpu.memory_space<vmem>>, %arg5: memref<256x128xbf16, #tpu.memory_space<vmem>>) attributes {dimension_semantics = [#tpu.dimension_semantics<parallel>, #tpu.dimension_semantics<parallel>], iteration_bounds = array<i64: 2, 1>, scalar_prefetch = 0 : i64, scratch_operands = 0 : i64, tpu.core_type = #tpu.core_type<tc>, window_params = [{transform_indices = @transform_0, window_bounds = array<i64: 256, 128>}, {transform_indices = @transform_1, window_bounds = array<i64: 128, 128>}, {transform_indices = @transform_2, window_bounds = array<i64: 1, 128>}, {transform_indices = @transform_3, window_bounds = array<i64: 256, 128>}]} {
    %c0 = arith.constant 0 : index
    %c0_0 = arith.constant 0 : index
    %0 = vector.load %arg2[%c0, %c0_0] : memref<256x128xbf16, #tpu.memory_space<vmem>>, vector<256x128xbf16>
    %c0_1 = arith.constant 0 : index
    %c0_2 = arith.constant 0 : index
    %1 = vector.load %arg3[%c0_1, %c0_2] : memref<128x128xbf16, #tpu.memory_space<vmem>>, vector<128x128xbf16>
    %cst = arith.constant dense<0.000000e+00> : vector<256x128xf32>
    %2 = tpu.matmul %0, %1, %cst {dimension_numbers = #tpu.dot_dimension_numbers<[1], [0], [0], [1], [0, 0, 1, 1], [], []>} : vector<256x128xbf16>, vector<128x128xbf16>, vector<256x128xf32> -> vector<256x128xf32>
    %c0_3 = arith.constant 0 : index
    %c0_4 = arith.constant 0 : index
    %3 = vector.load %arg4[%c0_3, %c0_4] : memref<1x128xf32, #tpu.memory_space<vmem>>, vector<1x128xf32>
    %4 = vector.broadcast %3 : vector<1x128xf32> to vector<256x128xf32>
    %5 = arith.addf %2, %4 : vector<256x128xf32>
    %6 = arith.truncf %5 : vector<256x128xf32> to vector<256x128xbf16>
    %c0_5 = arith.constant 0 : index
    %c0_6 = arith.constant 0 : index
    %7 = vector.load %arg5[%c0_5, %c0_6] : memref<256x128xbf16, #tpu.memory_space<vmem>>, vector<256x128xbf16>
    tpu.vector_store %arg5[%c0_5, %c0_6], %6 {strides = array<i32>} : memref<256x128xbf16, #tpu.memory_space<vmem>>, vector<256x128xbf16>,
    return
  }
  func.func @transform_0(%arg0: i32, %arg1: i32) -> (i32, i32) {
    %c0_i32 = arith.constant 0 : i32
    %c0_i32_0 = arith.constant 0 : i32
    return %arg0, %c0_i32 : i32, i32
  }
  func.func @transform_1(%arg0: i32, %arg1: i32) -> (i32, i32) {
    %c0_i32 = arith.constant 0 : i32
    %c0_i32_0 = arith.constant 0 : i32
    return %c0_i32, %arg1 : i32, i32
  }
  func.func @transform_2(%arg0: i32, %arg1: i32) -> (i32, i32) {
    %c0_i32 = arith.constant 0 : i32
    %c0_i32_0 = arith.constant 0 : i32
    return %c0_i32, %arg1 : i32, i32
  }
  func.func @transform_3(%arg0: i32, %arg1: i32) -> (i32, i32) {
    %c0_i32 = arith.constant 0 : i32
    return %arg0, %arg1 : i32, i32
  }
}

module attributes {stable_mosaic.version = 11 : i64} {
  func.func @_matmul_bias_kernel(%arg0: i32, %arg1: i32, %arg2: memref<256x128xbf16, #tpu.memory_space<vmem>>, %arg3: memref<128x256xbf16, #tpu.memory_space<vmem>>, %arg4: memref<1x256xf32, #tpu.memory_space<vmem>>, %arg5: memref<256x256xf32, #tpu.memory_space<vmem>>) attributes {dimension_semantics = [#tpu.dimension_semantics<parallel>, #tpu.dimension_semantics<parallel>], iteration_bounds = array<i64: 1, 2>, scalar_prefetch = 0 : i64, scratch_operands = 0 : i64, tpu.core_type = #tpu.core_type<tc>, window_params = [{transform_indices = @transform_0, window_bounds = array<i64: 256, 128>}, {transform_indices = @transform_1, window_bounds = array<i64: 128, 256>}, {transform_indices = @transform_2, window_bounds = array<i64: 1, 256>}, {transform_indices = @transform_3, window_bounds = array<i64: 256, 256>}]} {
    %c0 = arith.constant 0 : index
    %c0_0 = arith.constant 0 : index
    %0 = vector.load %arg2[%c0, %c0_0] : memref<256x128xbf16, #tpu.memory_space<vmem>>, vector<256x128xbf16>
    %c0_1 = arith.constant 0 : index
    %c0_2 = arith.constant 0 : index
    %1 = vector.load %arg3[%c0_1, %c0_2] : memref<128x256xbf16, #tpu.memory_space<vmem>>, vector<128x256xbf16>
    %cst = arith.constant dense<0.000000e+00> : vector<256x256xf32>
    %2 = tpu.matmul %0, %1, %cst {dimension_numbers = #tpu.dot_dimension_numbers<[1], [0], [0], [1], [0, 0, 1, 1], [], []>} : vector<256x128xbf16>, vector<128x256xbf16>, vector<256x256xf32> -> vector<256x256xf32>
    %c0_3 = arith.constant 0 : index
    %c0_4 = arith.constant 0 : index
    %3 = vector.load %arg4[%c0_3, %c0_4] : memref<1x256xf32, #tpu.memory_space<vmem>>, vector<1x256xf32>
    %4 = vector.broadcast %3 : vector<1x256xf32> to vector<256x256xf32>
    %5 = arith.addf %2, %4 : vector<256x256xf32>
    %c0_5 = arith.constant 0 : index
    %c0_6 = arith.constant 0 : index
    %6 = vector.load %arg5[%c0_5, %c0_6] : memref<256x256xf32, #tpu.memory_space<vmem>>, vector<256x256xf32>
    tpu.vector_store %arg5[%c0_5, %c0_6], %5 {strides = array<i32>} : memref<256x256xf32, #tpu.memory_space<vmem>>, vector<256x256xf32>,
    return
  }
  func.func @transform_0(%arg0: i32, %arg1: i32) -> (i32, i32) {
    %c0_i32 = arith.constant 0 : i32
    %c0_i32_0 = arith.constant 0 : i32
    return %arg0, %c0_i32 : i32, i32
  }
  func.func @transform_1(%arg0: i32, %arg1: i32) -> (i32, i32) {
    %c0_i32 = arith.constant 0 : i32
    %c0_i32_0 = arith.constant 0 : i32
    return %c0_i32, %arg1 : i32, i32
  }
  func.func @transform_2(%arg0: i32, %arg1: i32) -> (i32, i32) {
    %c0_i32 = arith.constant 0 : i32
    %c0_i32_0 = arith.constant 0 : i32
    return %c0_i32, %arg1 : i32, i32
  }
  func.func @transform_3(%arg0: i32, %arg1: i32) -> (i32, i32) {
    %c0_i32 = arith.constant 0 : i32
    return %arg0, %arg1 : i32, i32
  }
}

module attributes {stable_mosaic.version = 11 : i64} {
  func.func @decoder_recurrent_kernel(%arg0: i32, %arg1: i32, %arg2: memref<16x16x128xbf16, #tpu.memory_space<vmem>>, %arg3: memref<16x16x128xbf16, #tpu.memory_space<vmem>>, %arg4: memref<1x16x512xf32, #tpu.memory_space<vmem>>, %arg5: memref<128x640xbf16, #tpu.memory_space<vmem>>, %arg6: memref<1x128xf32, #tpu.memory_space<vmem>>, %arg7: memref<1x128xf32, #tpu.memory_space<vmem>>, %arg8: memref<128x128xbf16, #tpu.memory_space<vmem>>, %arg9: memref<1x128xf32, #tpu.memory_space<vmem>>, %arg10: memref<128x128xbf16, #tpu.memory_space<vmem>>, %arg11: memref<1x128xf32, #tpu.memory_space<vmem>>, %arg12: memref<128x512xbf16, #tpu.memory_space<vmem>>, %arg13: memref<1x16x128xbf16, #tpu.memory_space<vmem>>, %arg14: memref<1x16x128xf32, #tpu.memory_space<vmem>>, %arg15: memref<16x128xf32, #tpu.memory_space<vmem>>, %arg16: memref<16x128xf32, #tpu.memory_space<vmem>>) attributes {dimension_semantics = [#tpu.dimension_semantics<parallel>, #tpu.dimension_semantics<arbitrary>], iteration_bounds = array<i64: 2, 8>, scalar_prefetch = 0 : i64, scratch_operands = 2 : i64, tpu.core_type = #tpu.core_type<tc>, window_params = [{transform_indices = @transform_0, window_bounds = array<i64: 16, 16, 128>}, {transform_indices = @transform_1, window_bounds = array<i64: 16, 16, 128>}, {transform_indices = @transform_2, window_bounds = array<i64: 1, 16, 512>}, {pipeline_mode = #tpu.pipeline_mode<synchronous>, transform_indices = @transform_3, window_bounds = array<i64: 128, 640>}, {pipeline_mode = #tpu.pipeline_mode<synchronous>, transform_indices = @transform_4, window_bounds = array<i64: 1, 128>}, {pipeline_mode = #tpu.pipeline_mode<synchronous>, transform_indices = @transform_5, window_bounds = array<i64: 1, 128>}, {pipeline_mode = #tpu.pipeline_mode<synchronous>, transform_indices = @transform_6, window_bounds = array<i64: 128, 128>}, {pipeline_mode = #tpu.pipeline_mode<synchronous>, transform_indices = @transform_7, window_bounds = array<i64: 1, 128>}, {pipeline_mode = #tpu.pipeline_mode<synchronous>, transform_indices = @transform_8, window_bounds = array<i64: 128, 128>}, {pipeline_mode = #tpu.pipeline_mode<synchronous>, transform_indices = @transform_9, window_bounds = array<i64: 1, 128>}, {pipeline_mode = #tpu.pipeline_mode<synchronous>, transform_indices = @transform_10, window_bounds = array<i64: 128, 512>}, {transform_indices = @transform_11, window_bounds = array<i64: 1, 16, 128>}, {transform_indices = @transform_12, window_bounds = array<i64: 1, 16, 128>}]} {
    %c0 = arith.constant 0 : index
    %c0_0 = arith.constant 0 : index
    %c0_1 = arith.constant 0 : index
    %0 = vector.load %arg2[%c0, %c0_0, %c0_1] : memref<16x16x128xbf16, #tpu.memory_space<vmem>>, vector<16x16x128xbf16>
    %c0_2 = arith.constant 0 : index
    %c0_3 = arith.constant 0 : index
    %c0_4 = arith.constant 0 : index
    %1 = vector.load %arg3[%c0_2, %c0_3, %c0_4] : memref<16x16x128xbf16, #tpu.memory_space<vmem>>, vector<16x16x128xbf16>
    %c0_i32 = arith.constant 0 : i32
    %2 = arith.cmpi eq, %arg1, %c0_i32 : i32
    %3 = arith.extui %2 : i1 to i32
    %c0_i32_5 = arith.constant 0 : i32
    %4 = arith.cmpi ne, %3, %c0_i32_5 : i32
    scf.if %4 {
      %81 = arith.extf %0 : vector<16x16x128xbf16> to vector<16x16x128xf32>
      %cst_40 = arith.constant dense<0.000000e+00> : vector<16x128xf32>
      %82 = vector.multi_reduction <add>, %81, %cst_40 [1] : vector<16x16x128xf32> to vector<16x128xf32>
      %cst_41 = arith.constant 1.600000e+01 : f32
      %83 = vector.broadcast %cst_41 : f32 to vector<16x128xf32>
      %84 = arith.divf %82, %83 : vector<16x128xf32>
      %85 = arith.truncf %84 : vector<16x128xf32> to vector<16x128xbf16>
      %c0_42 = arith.constant 0 : index
      %c0_43 = arith.constant 0 : index
      %86 = vector.load %arg8[%c0_42, %c0_43] : memref<128x128xbf16, #tpu.memory_space<vmem>>, vector<128x128xbf16>
      %cst_44 = arith.constant dense<0.000000e+00> : vector<16x128xf32>
      %87 = tpu.matmul %85, %86, %cst_44 {dimension_numbers = #tpu.dot_dimension_numbers<[1], [0], [0], [1], [0, 0, 1, 1], [], []>} : vector<16x128xbf16>, vector<128x128xbf16>, vector<16x128xf32> -> vector<16x128xf32>
      %c0_45 = arith.constant 0 : index
      %c0_46 = arith.constant 0 : index
      %88 = vector.load %arg9[%c0_45, %c0_46] : memref<1x128xf32, #tpu.memory_space<vmem>>, vector<1x128xf32>
      %89 = vector.broadcast %88 : vector<1x128xf32> to vector<16x128xf32>
      %90 = arith.addf %87, %89 : vector<16x128xf32>
      %c0_47 = arith.constant 0 : index
      %c0_48 = arith.constant 0 : index
      %91 = vector.load %arg15[%c0_47, %c0_48] : memref<16x128xf32, #tpu.memory_space<vmem>>, vector<16x128xf32>
      tpu.vector_store %arg15[%c0_47, %c0_48], %90 {strides = array<i32>} : memref<16x128xf32, #tpu.memory_space<vmem>>, vector<16x128xf32>,
      %c0_49 = arith.constant 0 : index
      %c0_50 = arith.constant 0 : index
      %92 = vector.load %arg10[%c0_49, %c0_50] : memref<128x128xbf16, #tpu.memory_space<vmem>>, vector<128x128xbf16>
      %cst_51 = arith.constant dense<0.000000e+00> : vector<16x128xf32>
      %93 = tpu.matmul %85, %92, %cst_51 {dimension_numbers = #tpu.dot_dimension_numbers<[1], [0], [0], [1], [0, 0, 1, 1], [], []>} : vector<16x128xbf16>, vector<128x128xbf16>, vector<16x128xf32> -> vector<16x128xf32>
      %c0_52 = arith.constant 0 : index
      %c0_53 = arith.constant 0 : index
      %94 = vector.load %arg11[%c0_52, %c0_53] : memref<1x128xf32, #tpu.memory_space<vmem>>, vector<1x128xf32>
      %95 = vector.broadcast %94 : vector<1x128xf32> to vector<16x128xf32>
      %96 = arith.addf %93, %95 : vector<16x128xf32>
      %c0_54 = arith.constant 0 : index
      %c0_55 = arith.constant 0 : index
      %97 = vector.load %arg16[%c0_54, %c0_55] : memref<16x128xf32, #tpu.memory_space<vmem>>, vector<16x128xf32>
      tpu.vector_store %arg16[%c0_54, %c0_55], %96 {strides = array<i32>} : memref<16x128xf32, #tpu.memory_space<vmem>>, vector<16x128xf32>,
    } else {
    }
    %c0_6 = arith.constant 0 : index
    %c0_7 = arith.constant 0 : index
    %5 = vector.load %arg15[%c0_6, %c0_7] : memref<16x128xf32, #tpu.memory_space<vmem>>, vector<16x128xf32>
    %c0_8 = arith.constant 0 : index
    %c0_9 = arith.constant 0 : index
    %6 = vector.load %arg16[%c0_8, %c0_9] : memref<16x128xf32, #tpu.memory_space<vmem>>, vector<16x128xf32>
    %7 = arith.truncf %5 : vector<16x128xf32> to vector<16x128xbf16>
    %c0_10 = arith.constant 0 : index
    %c0_11 = arith.constant 0 : index
    %8 = vector.load %arg5[%c0_10, %c0_11] : memref<128x640xbf16, #tpu.memory_space<vmem>>, vector<128x640xbf16>
    %cst = arith.constant dense<0.000000e+00> : vector<16x640xf32>
    %9 = tpu.matmul %7, %8, %cst {dimension_numbers = #tpu.dot_dimension_numbers<[1], [0], [0], [1], [0, 0, 1, 1], [], []>} : vector<16x128xbf16>, vector<128x640xbf16>, vector<16x640xf32> -> vector<16x640xf32>
    %10 = vector.extract_strided_slice %9 {offsets = [0, 0], sizes = [16, 128], strides = [1, 1]} : vector<16x640xf32> to vector<16x128xf32>
    %c0_12 = arith.constant 0 : index
    %c0_13 = arith.constant 0 : index
    %11 = vector.load %arg6[%c0_12, %c0_13] : memref<1x128xf32, #tpu.memory_space<vmem>>, vector<1x128xf32>
    %12 = vector.broadcast %11 : vector<1x128xf32> to vector<16x128xf32>
    %13 = arith.addf %10, %12 : vector<16x128xf32>
    %14 = vector.extract_strided_slice %9 {offsets = [0, 128], sizes = [16, 512], strides = [1, 1]} : vector<16x640xf32> to vector<16x512xf32>
    %15 = arith.extf %1 : vector<16x16x128xbf16> to vector<16x16x128xf32>
    %16 = vector.shape_cast %13 : vector<16x128xf32> to vector<16x1x128xf32>
    %17 = vector.broadcast %16 : vector<16x1x128xf32> to vector<16x16x128xf32>
    %18 = arith.addf %15, %17 : vector<16x16x128xf32>
    %19 = math.tanh %18 : vector<16x16x128xf32>
    %c0_14 = arith.constant 0 : index
    %c0_15 = arith.constant 0 : index
    %20 = vector.load %arg7[%c0_14, %c0_15] : memref<1x128xf32, #tpu.memory_space<vmem>>, vector<1x128xf32>
    %21 = vector.shape_cast %20 : vector<1x128xf32> to vector<1x1x128xf32>
    %22 = vector.broadcast %21 : vector<1x1x128xf32> to vector<16x16x128xf32>
    %23 = arith.mulf %19, %22 : vector<16x16x128xf32>
    %cst_16 = arith.constant dense<0.000000e+00> : vector<16x16xf32>
    %24 = vector.multi_reduction <add>, %23, %cst_16 [2] : vector<16x16x128xf32> to vector<16x16xf32>
    %cst_17 = arith.constant dense<0xFF800000> : vector<16xf32>
    %25 = vector.multi_reduction <maximumf>, %24, %cst_17 [1] : vector<16x16xf32> to vector<16xf32>
    %26 = vector.shape_cast %25 : vector<16xf32> to vector<16x1xf32>
    %27 = vector.broadcast %26 : vector<16x1xf32> to vector<16x16xf32>
    %28 = arith.subf %24, %27 : vector<16x16xf32>
    %29 = math.exp %28 : vector<16x16xf32>
    %cst_18 = arith.constant dense<0.000000e+00> : vector<16xf32>
    %30 = vector.multi_reduction <add>, %29, %cst_18 [1] : vector<16x16xf32> to vector<16xf32>
    %31 = vector.shape_cast %30 : vector<16xf32> to vector<16x1xf32>
    %32 = vector.broadcast %31 : vector<16x1xf32> to vector<16x16xf32>
    %33 = arith.divf %29, %32 : vector<16x16xf32>
    %34 = arith.truncf %33 : vector<16x16xf32> to vector<16x16xbf16>
    %35 = vector.shape_cast %34 : vector<16x16xbf16> to vector<16x1x16xbf16>
    "tpu.trace_start"() <{level = 10 : i32, message = "bqp,bpe->bqe"}> : () -> ()
    %cst_19 = arith.constant dense<0.000000e+00> : vector<16x1x128xf32>
    %36 = tpu.matmul %35, %0, %cst_19 {dimension_numbers = #tpu.dot_dimension_numbers<[2], [1], [1], [2], [0, 0, 0, 1, 1, 2], [0], [0]>} : vector<16x1x16xbf16>, vector<16x16x128xbf16>, vector<16x1x128xf32> -> vector<16x1x128xf32>
    "tpu.trace_stop"() : () -> ()
    %37 = vector.shape_cast %36 : vector<16x1x128xf32> to vector<16x128xf32>
    %c0_20 = arith.constant 0 : index
    %c0_21 = arith.constant 0 : index
    %c0_22 = arith.constant 0 : index
    %38 = vector.load %arg4[%c0_20, %c0_21, %c0_22] : memref<1x16x512xf32, #tpu.memory_space<vmem>>, vector<1x16x512xf32>
    %39 = vector.shape_cast %38 : vector<1x16x512xf32> to vector<16x512xf32>
    %40 = arith.truncf %37 : vector<16x128xf32> to vector<16x128xbf16>
    %c0_23 = arith.constant 0 : index
    %c0_24 = arith.constant 0 : index
    %41 = vector.load %arg12[%c0_23, %c0_24] : memref<128x512xbf16, #tpu.memory_space<vmem>>, vector<128x512xbf16>
    %cst_25 = arith.constant dense<0.000000e+00> : vector<16x512xf32>
    %42 = tpu.matmul %40, %41, %cst_25 {dimension_numbers = #tpu.dot_dimension_numbers<[1], [0], [0], [1], [0, 0, 1, 1], [], []>} : vector<16x128xbf16>, vector<128x512xbf16>, vector<16x512xf32> -> vector<16x512xf32>
    %43 = arith.addf %39, %42 : vector<16x512xf32>
    %44 = arith.addf %43, %14 : vector<16x512xf32>
    %45 = vector.extract_strided_slice %44 {offsets = [0, 0], sizes = [16, 128], strides = [1, 1]} : vector<16x512xf32> to vector<16x128xf32>
    %46 = arith.negf %45 : vector<16x128xf32>
    %47 = math.exp %46 : vector<16x128xf32>
    %cst_26 = arith.constant 1.000000e+00 : f32
    %48 = vector.broadcast %cst_26 : f32 to vector<16x128xf32>
    %49 = arith.addf %48, %47 : vector<16x128xf32>
    %50 = arith.divf %48, %49 : vector<16x128xf32>
    %51 = vector.extract_strided_slice %44 {offsets = [0, 128], sizes = [16, 128], strides = [1, 1]} : vector<16x512xf32> to vector<16x128xf32>
    %52 = arith.negf %51 : vector<16x128xf32>
    %53 = math.exp %52 : vector<16x128xf32>
    %cst_27 = arith.constant 1.000000e+00 : f32
    %54 = vector.broadcast %cst_27 : f32 to vector<16x128xf32>
    %55 = arith.addf %54, %53 : vector<16x128xf32>
    %56 = arith.divf %54, %55 : vector<16x128xf32>
    %57 = vector.extract_strided_slice %44 {offsets = [0, 256], sizes = [16, 128], strides = [1, 1]} : vector<16x512xf32> to vector<16x128xf32>
    %58 = math.tanh %57 : vector<16x128xf32>
    %59 = vector.extract_strided_slice %44 {offsets = [0, 384], sizes = [16, 128], strides = [1, 1]} : vector<16x512xf32> to vector<16x128xf32>
    %60 = arith.negf %59 : vector<16x128xf32>
    %61 = math.exp %60 : vector<16x128xf32>
    %cst_28 = arith.constant 1.000000e+00 : f32
    %62 = vector.broadcast %cst_28 : f32 to vector<16x128xf32>
    %63 = arith.addf %62, %61 : vector<16x128xf32>
    %64 = arith.divf %62, %63 : vector<16x128xf32>
    %65 = arith.mulf %56, %6 : vector<16x128xf32>
    %66 = arith.mulf %50, %58 : vector<16x128xf32>
    %67 = arith.addf %65, %66 : vector<16x128xf32>
    %68 = math.tanh %67 : vector<16x128xf32>
    %69 = arith.mulf %64, %68 : vector<16x128xf32>
    %c0_29 = arith.constant 0 : index
    %c0_30 = arith.constant 0 : index
    %70 = vector.load %arg15[%c0_29, %c0_30] : memref<16x128xf32, #tpu.memory_space<vmem>>, vector<16x128xf32>
    tpu.vector_store %arg15[%c0_29, %c0_30], %69 {strides = array<i32>} : memref<16x128xf32, #tpu.memory_space<vmem>>, vector<16x128xf32>,
    %c0_31 = arith.constant 0 : index
    %c0_32 = arith.constant 0 : index
    %71 = vector.load %arg16[%c0_31, %c0_32] : memref<16x128xf32, #tpu.memory_space<vmem>>, vector<16x128xf32>
    tpu.vector_store %arg16[%c0_31, %c0_32], %67 {strides = array<i32>} : memref<16x128xf32, #tpu.memory_space<vmem>>, vector<16x128xf32>,
    %72 = arith.truncf %69 : vector<16x128xf32> to vector<16x128xbf16>
    %c0_33 = arith.constant 0 : index
    %c0_34 = arith.constant 0 : index
    %c0_35 = arith.constant 0 : index
    %73 = vector.load %arg13[%c0_33, %c0_34, %c0_35] : memref<1x16x128xbf16, #tpu.memory_space<vmem>>, vector<1x16x128xbf16>
    %74 = vector.shape_cast %73 : vector<1x16x128xbf16> to vector<16x128xbf16>
    %75 = vector.shape_cast %72 : vector<16x128xbf16> to vector<1x16x128xbf16>
    tpu.vector_store %arg13[%c0_33, %c0_34, %c0_35], %75 {strides = array<i32>} : memref<1x16x128xbf16, #tpu.memory_space<vmem>>, vector<1x16x128xbf16>,
    %cst_36 = arith.constant 0.000000e+00 : f32
    %76 = vector.broadcast %cst_36 : f32 to vector<16x112xf32>
    %77 = tpu.concatenate %33, %76 in 1 : vector<16x16xf32>, vector<16x112xf32> -> vector<16x128xf32>
    %c0_37 = arith.constant 0 : index
    %c0_38 = arith.constant 0 : index
    %c0_39 = arith.constant 0 : index
    %78 = vector.load %arg14[%c0_37, %c0_38, %c0_39] : memref<1x16x128xf32, #tpu.memory_space<vmem>>, vector<1x16x128xf32>
    %79 = vector.shape_cast %78 : vector<1x16x128xf32> to vector<16x128xf32>
    %80 = vector.shape_cast %77 : vector<16x128xf32> to vector<1x16x128xf32>
    tpu.vector_store %arg14[%c0_37, %c0_38, %c0_39], %80 {strides = array<i32>} : memref<1x16x128xf32, #tpu.memory_space<vmem>>, vector<1x16x128xf32>,
    return
  }
  func.func @transform_0(%arg0: i32, %arg1: i32) -> (i32, i32, i32) {
    %c0_i32 = arith.constant 0 : i32
    %c0_i32_0 = arith.constant 0 : i32
    %c0_i32_1 = arith.constant 0 : i32
    return %arg0, %c0_i32, %c0_i32_0 : i32, i32, i32
  }
  func.func @transform_1(%arg0: i32, %arg1: i32) -> (i32, i32, i32) {
    %c0_i32 = arith.constant 0 : i32
    %c0_i32_0 = arith.constant 0 : i32
    %c0_i32_1 = arith.constant 0 : i32
    return %arg0, %c0_i32, %c0_i32_0 : i32, i32, i32
  }
  func.func @transform_2(%arg0: i32, %arg1: i32) -> (i32, i32, i32) {
    %c0_i32 = arith.constant 0 : i32
    %c0_i32_0 = arith.constant 0 : i32
    return %arg1, %arg0, %c0_i32 : i32, i32, i32
  }
  func.func @transform_3(%arg0: i32, %arg1: i32) -> (i32, i32) {
    %c0_i32 = arith.constant 0 : i32
    %c0_i32_0 = arith.constant 0 : i32
    %c0_i32_1 = arith.constant 0 : i32
    return %c0_i32, %c0_i32_0 : i32, i32
  }
  func.func @transform_4(%arg0: i32, %arg1: i32) -> (i32, i32) {
    %c0_i32 = arith.constant 0 : i32
    %c0_i32_0 = arith.constant 0 : i32
    %c0_i32_1 = arith.constant 0 : i32
    return %c0_i32, %c0_i32_0 : i32, i32
  }
  func.func @transform_5(%arg0: i32, %arg1: i32) -> (i32, i32) {
    %c0_i32 = arith.constant 0 : i32
    %c0_i32_0 = arith.constant 0 : i32
    %c0_i32_1 = arith.constant 0 : i32
    return %c0_i32, %c0_i32_0 : i32, i32
  }
  func.func @transform_6(%arg0: i32, %arg1: i32) -> (i32, i32) {
    %c0_i32 = arith.constant 0 : i32
    %c0_i32_0 = arith.constant 0 : i32
    %c0_i32_1 = arith.constant 0 : i32
    return %c0_i32, %c0_i32_0 : i32, i32
  }
  func.func @transform_7(%arg0: i32, %arg1: i32) -> (i32, i32) {
    %c0_i32 = arith.constant 0 : i32
    %c0_i32_0 = arith.constant 0 : i32
    %c0_i32_1 = arith.constant 0 : i32
    return %c0_i32, %c0_i32_0 : i32, i32
  }
  func.func @transform_8(%arg0: i32, %arg1: i32) -> (i32, i32) {
    %c0_i32 = arith.constant 0 : i32
    %c0_i32_0 = arith.constant 0 : i32
    %c0_i32_1 = arith.constant 0 : i32
    return %c0_i32, %c0_i32_0 : i32, i32
  }
  func.func @transform_9(%arg0: i32, %arg1: i32) -> (i32, i32) {
    %c0_i32 = arith.constant 0 : i32
    %c0_i32_0 = arith.constant 0 : i32
    %c0_i32_1 = arith.constant 0 : i32
    return %c0_i32, %c0_i32_0 : i32, i32
  }
  func.func @transform_10(%arg0: i32, %arg1: i32) -> (i32, i32) {
    %c0_i32 = arith.constant 0 : i32
    %c0_i32_0 = arith.constant 0 : i32
    %c0_i32_1 = arith.constant 0 : i32
    return %c0_i32, %c0_i32_0 : i32, i32
  }
  func.func @transform_11(%arg0: i32, %arg1: i32) -> (i32, i32, i32) {
    %c0_i32 = arith.constant 0 : i32
    %c0_i32_0 = arith.constant 0 : i32
    return %arg1, %arg0, %c0_i32 : i32, i32, i32
  }
  func.func @transform_12(%arg0: i32, %arg1: i32) -> (i32, i32, i32) {
    %c0_i32 = arith.constant 0 : i32
    %c0_i32_0 = arith.constant 0 : i32
    return %arg1, %arg0, %c0_i32 : i32, i32, i32
  }
}

module attributes {stable_mosaic.version = 11 : i64} {
  func.func @_matmul_bias_kernel(%arg0: i32, %arg1: i32, %arg2: memref<256x128xbf16, #tpu.memory_space<vmem>>, %arg3: memref<128x256xbf16, #tpu.memory_space<vmem>>, %arg4: memref<1x256xf32, #tpu.memory_space<vmem>>, %arg5: memref<256x256xf32, #tpu.memory_space<vmem>>) attributes {dimension_semantics = [#tpu.dimension_semantics<parallel>, #tpu.dimension_semantics<parallel>], iteration_bounds = array<i64: 1, 1>, scalar_prefetch = 0 : i64, scratch_operands = 0 : i64, tpu.core_type = #tpu.core_type<tc>, window_params = [{transform_indices = @transform_0, window_bounds = array<i64: 256, 128>}, {transform_indices = @transform_1, window_bounds = array<i64: 128, 256>}, {transform_indices = @transform_2, window_bounds = array<i64: 1, 256>}, {transform_indices = @transform_3, window_bounds = array<i64: 256, 256>}]} {
    %c0 = arith.constant 0 : index
    %c0_0 = arith.constant 0 : index
    %0 = vector.load %arg2[%c0, %c0_0] : memref<256x128xbf16, #tpu.memory_space<vmem>>, vector<256x128xbf16>
    %c0_1 = arith.constant 0 : index
    %c0_2 = arith.constant 0 : index
    %1 = vector.load %arg3[%c0_1, %c0_2] : memref<128x256xbf16, #tpu.memory_space<vmem>>, vector<128x256xbf16>
    %cst = arith.constant dense<0.000000e+00> : vector<256x256xf32>
    %2 = tpu.matmul %0, %1, %cst {dimension_numbers = #tpu.dot_dimension_numbers<[1], [0], [0], [1], [0, 0, 1, 1], [], []>} : vector<256x128xbf16>, vector<128x256xbf16>, vector<256x256xf32> -> vector<256x256xf32>
    %c0_3 = arith.constant 0 : index
    %c0_4 = arith.constant 0 : index
    %3 = vector.load %arg4[%c0_3, %c0_4] : memref<1x256xf32, #tpu.memory_space<vmem>>, vector<1x256xf32>
    %4 = vector.broadcast %3 : vector<1x256xf32> to vector<256x256xf32>
    %5 = arith.addf %2, %4 : vector<256x256xf32>
    %c0_5 = arith.constant 0 : index
    %c0_6 = arith.constant 0 : index
    %6 = vector.load %arg5[%c0_5, %c0_6] : memref<256x256xf32, #tpu.memory_space<vmem>>, vector<256x256xf32>
    tpu.vector_store %arg5[%c0_5, %c0_6], %5 {strides = array<i32>} : memref<256x256xf32, #tpu.memory_space<vmem>>, vector<256x256xf32>,
    return
  }
  func.func @transform_0(%arg0: i32, %arg1: i32) -> (i32, i32) {
    %c0_i32 = arith.constant 0 : i32
    %c0_i32_0 = arith.constant 0 : i32
    return %arg0, %c0_i32 : i32, i32
  }
  func.func @transform_1(%arg0: i32, %arg1: i32) -> (i32, i32) {
    %c0_i32 = arith.constant 0 : i32
    %c0_i32_0 = arith.constant 0 : i32
    return %c0_i32, %arg1 : i32, i32
  }
  func.func @transform_2(%arg0: i32, %arg1: i32) -> (i32, i32) {
    %c0_i32 = arith.constant 0 : i32
    %c0_i32_0 = arith.constant 0 : i32
    return %c0_i32, %arg1 : i32, i32
  }
  func.func @transform_3(%arg0: i32, %arg1: i32) -> (i32, i32) {
    %c0_i32 = arith.constant 0 : i32
    return %arg0, %arg1 : i32, i32
  }
}

</mosaic_0001>

<bundles_post_ra>
// kernel: encoder_decoder_forward.5
= control target key start
LH: loop header
LB: loop body
LE: loop exit
PB: predicated region body
PF: predicated region fallthrough
CT: control target
= control target key end

     0   :  { %s1198_s12 = smov 0   ;;  %s1200_s13 = smov 0   ;;  %s1433_s0 = inlined_call_operand.vmem [shape: bf16[512,192], index: 0, kind: input, shape index: {}]   ;;  %s1434_s1 = inlined_call_operand.vmem [shape: bf16[192,128], index: 1, kind: input, shape index: {}]   ;;  %s1435_s2 = inlined_call_operand.vmem [shape: f32[1,128], index: 2, kind: input, shape index: {}]   ;;  %s1436_s3 = inlined_call_operand.vmem [shape: f32[512,128], index: 3, kind: output, shape index: {}]  }
   0x1   :  { %s1202_s14 = smov 0  }
   0x2 LB: > { %s25_s15 = sadd.s32 1, %s1172_s13  ;;  %p872_p0 = scmp.ge.s32.totalorder %s1176_s14, 1  ;;  %s1176_s14 = sphi %s1202_s14, %s13_s14   ;;  %s1172_s13 = sphi %s1200_s13, %s1438_s13   ;;  %s1168_s12 = sphi %s1198_s12, %s1437_s12  }
   0x3   : > { %p27_p1 = scmp.ge.s32.totalorder %s25_s15, 2  ;;  %p170_p2 = scmp.lt.s32.totalorder %s1176_s14, 3 }
   0x5   : > { %s1440_s15 = smov (%p27_p1, %s25_s15), 0  ;;  %p171_p3 = pnand %p872_p0, %p170_p2 }
   0x6   : > { %s873_s20 = sshll.u32 (!%p171_p3), %s1168_s12, 5 }
   0x7   : > { %174 = sbr.rel (%p171_p3) target bundleno = 302 (0x12e), region = 32  ;;  %p206_p4 = scmp.lt.s32.totalorder (!%p171_p3), %s873_s20, 63 }
   0xc   : > { %v1112_v0 = vld [vmem:[%s1434_s1 + $0x38] sm:$0xff]  ;;  %v1111_v2 = vld [vmem:[%s1434_s1 + $0x30] sm:$0xff]  ;;  %s1442_s20 = smov (!%p206_p4, %s873_s20), 63  ;;  %v1110_v4 = vld [vmem:[%s1434_s1 + $0x28] sm:$0xff]  ;;  %vm505_vm0 = vcmask 523264  }
   0xd   : > { %v1116_v1 = vld [vmem:[%s1434_s1 + $0x58] sm:$0xff]  ;;  %554 = vmatpush.bf16.msra.mxu0 %v1112_v0  ;;  %1117 = vmatpush.bf16.msra.mxu2 %v1112_v0  ;;  %v1115_v3 = vld [vmem:[%s1434_s1 + $0x50] sm:$0xff]  ;;  %s1072_s25 = sshll.u32 %s1442_s20, 3  ;;  %v1114_v5 = vld [vmem:[%s1434_s1 + $0x48] sm:$0xff] }
   0xe   : > { %647 = vmatpush.bf16.msra.mxu1 %v1116_v1  ;;  %1125 = vmatpush.bf16.msra.mxu3 %v1116_v1  ;;  %s1242_s5 = scalar_lea.vmem %s1433_s0, %s1072_s25  ;;  %v1109_v6 = vld [vmem:[%s1434_s1 + $0x20] sm:$0xff]  ;;  %v1108_v13 = vld [vmem:[%s1434_s1 + $0x18] sm:$0xff]  ;;  %v1107_v15 = vld [vmem:[%s1434_s1 + $0x10] sm:$0xff]  ;;  %s1353_s27 = scalar_lea.vmem %s1436_s3, %s1072_s25 }
   0xf   : > { %v1113_v7 = vld [vmem:[%s1434_s1 + $0x40] sm:$0xff]  ;;  %v882_v9 = vld [vmem:[%s1242_s5 + $0x8] sm:$0xf0]  ;;  %v1091_v10 = vld [vmem:[%s1242_s5 + $0x94] sm:$0xf] }
  0x10   : > { %v1073_v8 = vld [vmem:[%s1242_s5 + $0x4] sm:$0xf]  ;;  %v954_v11 = vld [vmem:[%s1242_s5 + $0x98] sm:$0xf0]  ;;  %v1106_v16 = vld [vmem:[%s1434_s1 + $0x8] sm:$0xff] }
  0x11   : > { %555 = vmatpush.bf16.msra.mxu0 %v1111_v2  ;;  %1118 = vmatpush.bf16.msra.mxu2 %v1111_v2  ;;  %v885_v12 = vor.u32 %v1073_v8, %v882_v9  ;;  %v957_v14 = vor.u32 %v1091_v10, %v954_v11  ;;  %v1105_v17 = vld [vmem:[%s1434_s1] sm:$0xff]  ;;  %v1074_v19 = vld [vmem:[%s1242_s5 + $0x4] sm:$0xf0]  ;;  %v1075_v22 = vld [vmem:[%s1242_s5 + $0x14] sm:$0xf] }
  0x12   : > { %648 = vmatpush.bf16.msra.mxu1 %v1115_v3  ;;  %1126 = vmatpush.bf16.msra.mxu3 %v1115_v3  ;;  %v880_v18 = vld [vmem:[%s1242_s5] sm:$0xf]  ;;  %v1090_v21 = vld [vmem:[%s1242_s5 + $0x84] sm:$0xf0]  ;;  %v890_v23 = vld [vmem:[%s1242_s5 + $0x18] sm:$0xf0] }
  0x13   : > { %v944_v20 = vld [vmem:[%s1242_s5 + $0x80] sm:$0xf]  ;;  %v1093_v24 = vld [vmem:[%s1242_s5 + $0xa4] sm:$0xf]  ;;  %v962_v25 = vld [vmem:[%s1242_s5 + $0xa8] sm:$0xf0]  ;;  %v881_v26 = vor.u32 %v1074_v19, %v880_v18  ;;  %v893_v28 = vor.u32 %v1075_v22, %v890_v23 }
  0x14   : > { %v945_v27 = vor.u32 %v1090_v21, %v944_v20  ;;  %v965_v29 = vor.u32 %v1093_v24, %v962_v25  ;;  %v888_v30 = vld [vmem:[%s1242_s5 + $0x10] sm:$0xf]  ;;  %v1076_v31 = vld [vmem:[%s1242_s5 + $0x14] sm:$0xf0]  ;;  %v1077_v34 = vld [vmem:[%s1242_s5 + $0x24] sm:$0xf] }
  0x15   : > { %556 = vmatpush.bf16.msra.mxu0 %v1110_v4  ;;  %1119 = vmatpush.bf16.msra.mxu2 %v1110_v4  ;;  %v952_v32 = vld [vmem:[%s1242_s5 + $0x90] sm:$0xf]  ;;  %v1092_v33 = vld [vmem:[%s1242_s5 + $0x94] sm:$0xf0]  ;;  %v898_v35 = vld [vmem:[%s1242_s5 + $0x28] sm:$0xf0]  ;;  %v889_v38 = vor.u32 %v1076_v31, %v888_v30 }
  0x16   : > { %649 = vmatpush.bf16.msra.mxu1 %v1114_v5  ;;  %1127 = vmatpush.bf16.msra.mxu3 %v1114_v5  ;;  %v1095_v36 = vld [vmem:[%s1242_s5 + $0xb4] sm:$0xf]  ;;  %v970_v37 = vld [vmem:[%s1242_s5 + $0xb8] sm:$0xf0]  ;;  %v953_v39 = vor.u32 %v1092_v33, %v952_v32  ;;  %v901_v40 = vor.u32 %v1077_v34, %v898_v35  ;;  %v896_v42 = vld [vmem:[%s1242_s5 + $0x20] sm:$0xf] }
  0x17   : > { %v973_v41 = vor.u32 %v1095_v36, %v970_v37  ;;  %v1078_v43 = vld [vmem:[%s1242_s5 + $0x24] sm:$0xf0]  ;;  %v960_v44 = vld [vmem:[%s1242_s5 + $0xa0] sm:$0xf]  ;;  %v1079_v46 = vld [vmem:[%s1242_s5 + $0x34] sm:$0xf] }
  0x18   : > { %v1094_v45 = vld [vmem:[%s1242_s5 + $0xa4] sm:$0xf0]  ;;  %v906_v47 = vld [vmem:[%s1242_s5 + $0x38] sm:$0xf0]  ;;  %v1097_v48 = vld [vmem:[%s1242_s5 + $0xc4] sm:$0xf]  ;;  %v897_v50 = vor.u32 %v1078_v43, %v896_v42 }
  0x19   : > { %557 = vmatpush.bf16.msra.mxu0 %v1109_v6  ;;  %1120 = vmatpush.bf16.msra.mxu2 %v1109_v6  ;;  %v978_v49 = vld [vmem:[%s1242_s5 + $0xc8] sm:$0xf0]  ;;  %v961_v51 = vor.u32 %v1094_v45, %v960_v44  ;;  %v909_v52 = vor.u32 %v1079_v46, %v906_v47  ;;  %v904_v54 = vld [vmem:[%s1242_s5 + $0x30] sm:$0xf]  ;;  %v1080_v55 = vld [vmem:[%s1242_s5 + $0x34] sm:$0xf0] }
  0x1a   : > { %650 = vmatpush.bf16.msra.mxu1 %v1113_v7  ;;  %1128 = vmatpush.bf16.msra.mxu3 %v1113_v7  ;;  %v981_v53 = vor.u32 %v1097_v48, %v978_v49  ;;  %v968_v56 = vld [vmem:[%s1242_s5 + $0xb0] sm:$0xf]  ;;  %v1096_v57 = vld [vmem:[%s1242_s5 + $0xb4] sm:$0xf0]  ;;  %v1081_v58 = vld [vmem:[%s1242_s5 + $0x44] sm:$0xf]  ;;  %v905_v62 = vor.u32 %v1080_v55, %v904_v54 }
  0x1b   : > { %v914_v59 = vld [vmem:[%s1242_s5 + $0x48] sm:$0xf0]  ;;  %v1099_v60 = vld [vmem:[%s1242_s5 + $0xd4] sm:$0xf]  ;;  %v986_v61 = vld [vmem:[%s1242_s5 + $0xd8] sm:$0xf0]  ;;  %v969_v63 = vor.u32 %v1096_v57, %v968_v56 }
  0x1c   : > { %v917_v0 = vor.u32 %v1081_v58, %v914_v59  ;;  %v989_v1 = vor.u32 %v1099_v60, %v986_v61  ;;  %v912_v2 = vld [vmem:[%s1242_s5 + $0x40] sm:$0xf]  ;;  %v1082_v3 = vld [vmem:[%s1242_s5 + $0x44] sm:$0xf0]  ;;  %v1083_v6 = vld [vmem:[%s1242_s5 + $0x54] sm:$0xf] }
  0x1d   : > { %1054 = vmatmul.msk.bf16.vlgmr.msra.gmra.mxu1 %vm505_vm0, %v885_v12  ;;  %558 = vmatpush.bf16.msra.mxu0 %v1108_v13  ;;  %v976_v4 = vld [vmem:[%s1242_s5 + $0xc0] sm:$0xf]  ;;  %v1098_v5 = vld [vmem:[%s1242_s5 + $0xc4] sm:$0xf0]  ;;  %v922_v7 = vld [vmem:[%s1242_s5 + $0x58] sm:$0xf0]  ;;  %v913_v10 = vor.u32 %v1082_v3, %v912_v2 }
  0x1e   : > { %1121 = vmatpush.bf16.msra.mxu2 %v1108_v13  ;;  %1063 = vmatmul.msk.bf16.vlgmr.msra.gmra.mxu3 %vm505_vm0, %v957_v14  ;;  %v1101_v8 = vld [vmem:[%s1242_s5 + $0xe4] sm:$0xf]  ;;  %v994_v9 = vld [vmem:[%s1242_s5 + $0xe8] sm:$0xf0]  ;;  %v977_v11 = vor.u32 %v1098_v5, %v976_v4  ;;  %v925_v12 = vor.u32 %v1083_v6, %v922_v7  ;;  %v920_v14 = vld [vmem:[%s1242_s5 + $0x50] sm:$0xf] }
  0x1f   : > { %v997_v13 = vor.u32 %v1101_v8, %v994_v9  ;;  %v1085_v18 = vld [vmem:[%s1242_s5 + $0x64] sm:$0xf]  ;;  %v930_v19 = vld [vmem:[%s1242_s5 + $0x68] sm:$0xf0]  ;;  %v1103_v20 = vld [vmem:[%s1242_s5 + $0xf4] sm:$0xf] }
  0x20   : > { %v1002_v21 = vld [vmem:[%s1242_s5 + $0xf8] sm:$0xf0]  ;;  %v933_v24 = vor.u32 %v1085_v18, %v930_v19  ;;  %v1087_v30 = vld [vmem:[%s1242_s5 + $0x74] sm:$0xf]  ;;  %v936_v35 = vld [vmem:[%s1242_s5 + $0x70] sm:$0xf] }
  0x21   : > { %559 = vmatpush.bf16.msra.mxu0 %v1107_v15  ;;  %v1005_v25 = vor.u32 %v1103_v20, %v1002_v21  ;;  %v938_v31 = vld [vmem:[%s1242_s5 + $0x78] sm:$0xf0]  ;;  %v1088_v36 = vld [vmem:[%s1242_s5 + $0x74] sm:$0xf0]  ;;  %v1000_v37 = vld [vmem:[%s1242_s5 + $0xf0] sm:$0xf] }
  0x22   : > { %1122 = vmatpush.bf16.msra.mxu2 %v1107_v15  ;;  %v1084_v15 = vld [vmem:[%s1242_s5 + $0x54] sm:$0xf0]  ;;  %v941_v34 = vor.u32 %v1087_v30, %v938_v31  ;;  %v1345_v46 = vld [vmem:[%s1435_s2] ss:$0 sm:$0xff] }
  0x23   : > { %v921_v22 = vor.u32 %v1084_v15, %v920_v14 }
  0x25   : > { %560 = vmatpush.bf16.msra.mxu0 %v1106_v16 }
  0x26   : > { %1123 = vmatpush.bf16.msra.mxu2 %v1106_v16  ;;  %v984_v16 = vld [vmem:[%s1242_s5 + $0xd0] sm:$0xf] }
  0x29   : > { %561 = vmatpush.bf16.msra.mxu0 %v1105_v17 }
  0x2a   : > { %1124 = vmatpush.bf16.msra.mxu2 %v1105_v17  ;;  %v1100_v17 = vld [vmem:[%s1242_s5 + $0xd4] sm:$0xf0] }
  0x2b   : > { %v985_v23 = vor.u32 %v1100_v17, %v984_v16 }
  0x2c   : > { %562 = vmatmul.bf16.vlgmr.msra.gmra.mxu0 %v881_v26  ;;  %v928_v26 = vld [vmem:[%s1242_s5 + $0x60] sm:$0xf] }
  0x2d   : > { %602 = vmatmul.bf16.vlgmr.msra.gmra.mxu2 %v945_v27  ;;  %1055 = vmatmul.msk.bf16.gmra.mxu1 %vm505_vm0, %v893_v28  ;;  %v1086_v27 = vld [vmem:[%s1242_s5 + $0x64] sm:$0xf0]  ;;  %v992_v28 = vld [vmem:[%s1242_s5 + $0xe0] sm:$0xf] }
  0x2e   : > { %1064 = vmatmul.msk.bf16.gmra.mxu3 %vm505_vm0, %v965_v29  ;;  %v1102_v29 = vld [vmem:[%s1242_s5 + $0xe4] sm:$0xf0]  ;;  %v929_v32 = vor.u32 %v1086_v27, %v928_v26 }
  0x2f   : > { %v993_v33 = vor.u32 %v1102_v29, %v992_v28 }
  0x3c   : > { %567 = vmatmul.bf16.gmra.mxu0 %v889_v38  ;;  %v1104_v38 = vld [vmem:[%s1242_s5 + $0xf4] sm:$0xf0] }
  0x3d   : > { %607 = vmatmul.bf16.gmra.mxu2 %v953_v39  ;;  %1056 = vmatmul.msk.bf16.gmra.mxu1 %vm505_vm0, %v901_v40  ;;  %v1089_v39 = vld [vmem:[%s1242_s5 + $0x84] sm:$0xf]  ;;  %v946_v40 = vld [vmem:[%s1242_s5 + $0x88] sm:$0xf0]  ;;  %v1001_v42 = vor.u32 %v1104_v38, %v1000_v37 }
  0x3e   : > { %1065 = vmatmul.msk.bf16.gmra.mxu3 %vm505_vm0, %v973_v41  ;;  %v937_v41 = vor.u32 %v1088_v36, %v936_v35  ;;  %v949_v43 = vor.u32 %v1089_v39, %v946_v40 }
  0x4c   : > { %572 = vmatmul.bf16.gmra.mxu0 %v897_v50 }
  0x4d   : > { %612 = vmatmul.bf16.gmra.mxu2 %v961_v51  ;;  %1057 = vmatmul.msk.bf16.gmra.mxu1 %vm505_vm0, %v909_v52 }
  0x4e   : > { %1066 = vmatmul.msk.bf16.gmra.mxu3 %vm505_vm0, %v981_v53 }
  0x5c   : > { %577 = vmatmul.bf16.gmra.mxu0 %v905_v62 }
  0x5d   : > { %617 = vmatmul.bf16.gmra.mxu2 %v969_v63  ;;  %1058 = vmatmul.msk.bf16.gmra.mxu1 %vm505_vm0, %v917_v0 }
  0x5e   : > { %1067 = vmatmul.msk.bf16.gmra.mxu3 %vm505_vm0, %v989_v1 }
  0x6c   : > { %582 = vmatmul.bf16.gmra.mxu0 %v913_v10 }
  0x6d   : > { %622 = vmatmul.bf16.gmra.mxu2 %v977_v11  ;;  %1059 = vmatmul.msk.bf16.gmra.mxu1 %vm505_vm0, %v925_v12 }
  0x6e   : > { %1068 = vmatmul.msk.bf16.gmra.mxu3 %vm505_vm0, %v997_v13 }
  0x7c   : > { %587 = vmatmul.bf16.gmra.mxu0 %v921_v22 }
  0x7d   : > { %627 = vmatmul.bf16.gmra.mxu2 %v985_v23  ;;  %1060 = vmatmul.msk.bf16.gmra.mxu1 %vm505_vm0, %v933_v24 }
  0x7e   : > { %1069 = vmatmul.msk.bf16.gmra.mxu3 %vm505_vm0, %v1005_v25 }
  0x8c   : > { %592 = vmatmul.bf16.gmra.mxu0 %v929_v32 }
  0x8d   : > { %632 = vmatmul.bf16.gmra.mxu2 %v993_v33  ;;  %1061 = vmatmul.msk.bf16.gmra.mxu1 %vm505_vm0, %v941_v34 }
  0x9a   : > { %v652_v44 = vpop.f32.mrf.mxu1 }
  0x9c   : > { %597 = vmatmul.bf16.gmra.mxu0 %v937_v41 }
  0x9d   : > { %637 = vmatmul.bf16.gmra.mxu2 %v1001_v42  ;;  %1062 = vmatmul.msk.bf16.gmra.mxu1 %vm505_vm0, %v949_v43 }
  0xa1   : > { %v697_v47 = vpop.f32.mrf.mxu3 }
  0xa2   : > { %v654_v45 = vpop.f32.mrf.mxu1 }
  0xa9   : > { %v563_v48 = vpop.f32.mrf.mxu0  ;;  %v699_v56 = vpop.f32.mrf.mxu3 }
  0xaa   : > { %v564_v49 = vadd.f32 %v1345_v46, %v563_v48  ;;  %v657_v50 = vpop.f32.mrf.mxu1 }
  0xac   : > { %v653_v51 = vadd.f32 %v652_v44, %v564_v49 }
  0xae   : > { %732 = vst [vmem:[%s1353_s27] sm:$0xff] %v653_v51 }
  0xb0   : > { %v1356_v52 = vpop.f32.mrf.mxu2 }
  0xb1   : > { %v565_v53 = vpop.f32.mrf.mxu0  ;;  %v702_v63 = vpop.f32.mrf.mxu3 }
  0xb2   : > { %v566_v54 = vadd.f32 %v1345_v46, %v565_v53  ;;  %v659_v55 = vpop.f32.mrf.mxu1 }
  0xb4   : > { %v655_v57 = vadd.f32 %v654_v45, %v566_v54 }
  0xb6   : > { %733 = vst [vmem:[%s1353_s27 + $0x8] sm:$0xff] %v655_v57 }
  0xb8   : > { %v1360_v58 = vpop.f32.mrf.mxu2 }
  0xb9   : > { %v568_v59 = vpop.f32.mrf.mxu0  ;;  %v704_v7 = vpop.f32.mrf.mxu3 }
  0xba   : > { %v569_v60 = vadd.f32 %v1345_v46, %v568_v59  ;;  %v662_v61 = vpop.f32.mrf.mxu1 }
  0xbc   : > { %v658_v62 = vadd.f32 %v657_v50, %v569_v60 }
  0xbe   : > { %734 = vst [vmem:[%s1353_s27 + $0x10] sm:$0xff] %v658_v62 }
  0xc0   : > { %v608_v0 = vpop.f32.mrf.mxu2 }
  0xc1   : > { %v609_v1 = vadd.f32 %v1345_v46, %v608_v0  ;;  %v570_v2 = vpop.f32.mrf.mxu0  ;;  %v707_v16 = vpop.f32.mrf.mxu3 }
  0xc2   : > { %v571_v3 = vadd.f32 %v1345_v46, %v570_v2  ;;  %v664_v4 = vpop.f32.mrf.mxu1 }
  0xc3   : > { %v698_v5 = vadd.f32 %v697_v47, %v609_v1 }
  0xc4   : > { %v660_v6 = vadd.f32 %v659_v55, %v571_v3 }
  0xc5   : > { %750 = vst [vmem:[%s1353_s27 + $0x90] sm:$0xff] %v698_v5 }
  0xc6   : > { %735 = vst [vmem:[%s1353_s27 + $0x18] sm:$0xff] %v660_v6 }
  0xc8   : > { %v610_v8 = vpop.f32.mrf.mxu2 }
  0xc9   : > { %v611_v9 = vadd.f32 %v1345_v46, %v610_v8  ;;  %v573_v10 = vpop.f32.mrf.mxu0  ;;  %v709_v28 = vpop.f32.mrf.mxu3 }
  0xca   : > { %v574_v11 = vadd.f32 %v1345_v46, %v573_v10  ;;  %v667_v12 = vpop.f32.mrf.mxu1 }
  0xcb   : > { %v700_v13 = vadd.f32 %v699_v56, %v611_v9 }
  0xcc   : > { %v663_v14 = vadd.f32 %v662_v61, %v574_v11 }
  0xcd   : > { %751 = vst [vmem:[%s1353_s27 + $0x98] sm:$0xff] %v700_v13 }
  0xce   : > { %736 = vst [vmem:[%s1353_s27 + $0x20] sm:$0xff] %v663_v14 }
  0xd0   : > { %v613_v15 = vpop.f32.mrf.mxu2 }
  0xd1   : > { %v614_v17 = vadd.f32 %v1345_v46, %v613_v15  ;;  %v575_v18 = vpop.f32.mrf.mxu0  ;;  %v712_v38 = vpop.f32.mrf.mxu3 }
  0xd2   : > { %v576_v19 = vadd.f32 %v1345_v46, %v575_v18  ;;  %v669_v20 = vpop.f32.mrf.mxu1 }
  0xd3   : > { %v703_v21 = vadd.f32 %v702_v63, %v614_v17 }
  0xd4   : > { %v665_v22 = vadd.f32 %v664_v4, %v576_v19 }
  0xd5   : > { %752 = vst [vmem:[%s1353_s27 + $0xa0] sm:$0xff] %v703_v21 }
  0xd6   : > { %737 = vst [vmem:[%s1353_s27 + $0x28] sm:$0xff] %v665_v22 }
  0xd8   : > { %v615_v23 = vpop.f32.mrf.mxu2 }
  0xd9   : > { %v616_v24 = vadd.f32 %v1345_v46, %v615_v23  ;;  %v578_v25 = vpop.f32.mrf.mxu0  ;;  %v714_v47 = vpop.f32.mrf.mxu3 }
  0xda   : > { %v579_v26 = vadd.f32 %v1345_v46, %v578_v25  ;;  %v672_v27 = vpop.f32.mrf.mxu1 }
  0xdb   : > { %v705_v29 = vadd.f32 %v704_v7, %v616_v24 }
  0xdc   : > { %v668_v30 = vadd.f32 %v667_v12, %v579_v26  ;;  %v604_v26 = vadd.f32 %v1345_v46, %v1356_v52  ;;  %v606_v52 = vadd.f32 %v1345_v46, %v1360_v58 }
  0xdd   : > { %753 = vst [vmem:[%s1353_s27 + $0xa8] sm:$0xff] %v705_v29 }
  0xde   : > { %738 = vst [vmem:[%s1353_s27 + $0x30] sm:$0xff] %v668_v30 }
  0xe0   : > { %v618_v31 = vpop.f32.mrf.mxu2 }
  0xe1   : > { %v619_v32 = vadd.f32 %v1345_v46, %v618_v31  ;;  %v580_v33 = vpop.f32.mrf.mxu0  ;;  %v717_v57 = vpop.f32.mrf.mxu3 }
  0xe2   : > { %v581_v34 = vadd.f32 %v1345_v46, %v580_v33  ;;  %v674_v35 = vpop.f32.mrf.mxu1 }
  0xe3   : > { %v708_v36 = vadd.f32 %v707_v16, %v619_v32 }
  0xe4   : > { %v670_v37 = vadd.f32 %v669_v20, %v581_v34 }
  0xe5   : > { %754 = vst [vmem:[%s1353_s27 + $0xb0] sm:$0xff] %v708_v36 }
  0xe6   : > { %739 = vst [vmem:[%s1353_s27 + $0x38] sm:$0xff] %v670_v37 }
  0xe8   : > { %v620_v39 = vpop.f32.mrf.mxu2 }
  0xe9   : > { %v621_v40 = vadd.f32 %v1345_v46, %v620_v39  ;;  %v583_v41 = vpop.f32.mrf.mxu0  ;;  %v719_v6 = vpop.f32.mrf.mxu3 }
  0xea   : > { %v584_v42 = vadd.f32 %v1345_v46, %v583_v41  ;;  %v677_v43 = vpop.f32.mrf.mxu1 }
  0xeb   : > { %v710_v44 = vadd.f32 %v709_v28, %v621_v40 }
  0xec   : > { %v673_v45 = vadd.f32 %v672_v27, %v584_v42 }
  0xed   : > { %755 = vst [vmem:[%s1353_s27 + $0xb8] sm:$0xff] %v710_v44 }
  0xee   : > { %740 = vst [vmem:[%s1353_s27 + $0x40] sm:$0xff] %v673_v45 }
  0xf0   : > { %v623_v48 = vpop.f32.mrf.mxu2 }
  0xf1   : > { %v624_v49 = vadd.f32 %v1345_v46, %v623_v48  ;;  %v585_v50 = vpop.f32.mrf.mxu0  ;;  %v722_v16 = vpop.f32.mrf.mxu3 }
  0xf2   : > { %v586_v51 = vadd.f32 %v1345_v46, %v585_v50  ;;  %v679_v53 = vpop.f32.mrf.mxu1 }
  0xf3   : > { %v713_v54 = vadd.f32 %v712_v38, %v624_v49 }
  0xf4   : > { %v675_v55 = vadd.f32 %v674_v35, %v586_v51 }
  0xf5   : > { %756 = vst [vmem:[%s1353_s27 + $0xc0] sm:$0xff] %v713_v54 }
  0xf6   : > { %741 = vst [vmem:[%s1353_s27 + $0x48] sm:$0xff] %v675_v55 }
  0xf8   : > { %v625_v56 = vpop.f32.mrf.mxu2 }
  0xf9   : > { %v626_v59 = vadd.f32 %v1345_v46, %v625_v56  ;;  %v588_v60 = vpop.f32.mrf.mxu0  ;;  %v724_v24 = vpop.f32.mrf.mxu3 }
  0xfa   : > { %v589_v61 = vadd.f32 %v1345_v46, %v588_v60  ;;  %v682_v62 = vpop.f32.mrf.mxu1 }
  0xfb   : > { %v715_v63 = vadd.f32 %v714_v47, %v626_v59 }
  0xfc   : > { %v678_v0 = vadd.f32 %v677_v43, %v589_v61 }
  0xfd   : > { %757 = vst [vmem:[%s1353_s27 + $0xc8] sm:$0xff] %v715_v63 }
  0xfe   : > { %742 = vst [vmem:[%s1353_s27 + $0x50] sm:$0xff] %v678_v0 }
 0x100   : > { %v628_v1 = vpop.f32.mrf.mxu2 }
 0x101   : > { %v629_v2 = vadd.f32 %v1345_v46, %v628_v1  ;;  %v590_v3 = vpop.f32.mrf.mxu0  ;;  %v727_v34 = vpop.f32.mrf.mxu3 }
 0x102   : > { %v591_v4 = vadd.f32 %v1345_v46, %v590_v3  ;;  %v684_v5 = vpop.f32.mrf.mxu1 }
 0x103   : > { %v718_v7 = vadd.f32 %v717_v57, %v629_v2 }
 0x104   : > { %v680_v8 = vadd.f32 %v679_v53, %v591_v4 }
 0x105   : > { %758 = vst [vmem:[%s1353_s27 + $0xd0] sm:$0xff] %v718_v7 }
 0x106   : > { %743 = vst [vmem:[%s1353_s27 + $0x58] sm:$0xff] %v680_v8 }
 0x108   : > { %v630_v9 = vpop.f32.mrf.mxu2 }
 0x109   : > { %v631_v10 = vadd.f32 %v1345_v46, %v630_v9  ;;  %v593_v11 = vpop.f32.mrf.mxu0  ;;  %v729_v45 = vpop.f32.mrf.mxu3 }
 0x10a   : > { %v594_v12 = vadd.f32 %v1345_v46, %v593_v11  ;;  %v687_v13 = vpop.f32.mrf.mxu1 }
 0x10b   : > { %v720_v14 = vadd.f32 %v719_v6, %v631_v10 }
 0x10c   : > { %v683_v15 = vadd.f32 %v682_v62, %v594_v12 }
 0x10d   : > { %759 = vst [vmem:[%s1353_s27 + $0xd8] sm:$0xff] %v720_v14 }
 0x10e   : > { %744 = vst [vmem:[%s1353_s27 + $0x60] sm:$0xff] %v683_v15 }
 0x110   : > { %v633_v17 = vpop.f32.mrf.mxu2 }
 0x111   : > { %v634_v18 = vadd.f32 %v1345_v46, %v633_v17  ;;  %v595_v19 = vpop.f32.mrf.mxu0 }
 0x112   : > { %v596_v20 = vadd.f32 %v1345_v46, %v595_v19  ;;  %v689_v21 = vpop.f32.mrf.mxu1 }
 0x113   : > { %v723_v22 = vadd.f32 %v722_v16, %v634_v18 }
 0x114   : > { %v685_v23 = vadd.f32 %v684_v5, %v596_v20 }
 0x115   : > { %760 = vst [vmem:[%s1353_s27 + $0xe0] sm:$0xff] %v723_v22 }
 0x116   : > { %745 = vst [vmem:[%s1353_s27 + $0x68] sm:$0xff] %v685_v23 }
 0x118   : > { %v635_v25 = vpop.f32.mrf.mxu2 }
 0x119   : > { %v636_v27 = vadd.f32 %v1345_v46, %v635_v25  ;;  %v598_v28 = vpop.f32.mrf.mxu0 }
 0x11a   : > { %v599_v29 = vadd.f32 %v1345_v46, %v598_v28  ;;  %v692_v30 = vpop.f32.mrf.mxu1 }
 0x11b   : > { %v725_v31 = vadd.f32 %v724_v24, %v636_v27  ;;  %v693_v32 = vadd.f32 %v692_v30, %v604_v26 }
 0x11c   : > { %v688_v33 = vadd.f32 %v687_v13, %v599_v29 }
 0x11d   : > { %761 = vst [vmem:[%s1353_s27 + $0xe8] sm:$0xff] %v725_v31 }
 0x11e   : > { %746 = vst [vmem:[%s1353_s27 + $0x70] sm:$0xff] %v688_v33 }
 0x11f   : > { %748 = vst [vmem:[%s1353_s27 + $0x80] sm:$0xff] %v693_v32 }
 0x120   : > { %v638_v35 = vpop.f32.mrf.mxu2 }
 0x121   : > { %v639_v36 = vadd.f32 %v1345_v46, %v638_v35  ;;  %v600_v37 = vpop.f32.mrf.mxu0 }
 0x122   : > { %v601_v38 = vadd.f32 %v1345_v46, %v600_v37  ;;  %v694_v39 = vpop.f32.mrf.mxu1 }
 0x123   : > { %v728_v40 = vadd.f32 %v727_v34, %v639_v36  ;;  %v695_v41 = vadd.f32 %v694_v39, %v606_v52 }
 0x124   : > { %v690_v42 = vadd.f32 %v689_v21, %v601_v38 }
 0x125   : > { %762 = vst [vmem:[%s1353_s27 + $0xf0] sm:$0xff] %v728_v40 }
 0x126   : > { %747 = vst [vmem:[%s1353_s27 + $0x78] sm:$0xff] %v690_v42 }
 0x127   : > { %749 = vst [vmem:[%s1353_s27 + $0x88] sm:$0xff] %v695_v41 }
 0x128   : > { %v640_v43 = vpop.f32.mrf.mxu2 }
 0x129   : > { %v641_v44 = vadd.f32 %v1345_v46, %v640_v43 }
 0x12b   : > { %v730_v47 = vadd.f32 %v729_v45, %v641_v44 }
 0x12d   : > { %763 = vst [vmem:[%s1353_s27 + $0xf8] sm:$0xff] %v730_v47 }
 0x12e PF: > { %s13_s14 = sadd.s32 1, %s1176_s14   ;;  %s1437_s12 = smov %s1172_s13 }
 0x12f   : > { %p10_p5 = scmp.ge.s32.totalorder %s13_s14, 4   ;;  %s1438_s13 = smov %s1440_s15 }
 0x131   :  { %12 = sbr.rel (!%p10_p5) target bundleno = 2 (0x2), region = 68 }

// kernel: encoder_decoder_forward.7
= control target key start
LH: loop header
LB: loop body
LE: loop exit
PB: predicated region body
PF: predicated region fallthrough
CT: control target
= control target key end

     0   :  { %s997_s12 = smov 0   ;;  %s999_s13 = smov 0   ;;  %s1137_s0 = inlined_call_operand.vmem [shape: bf16[512,128], index: 0, kind: input, shape index: {}]   ;;  %s1138_s1 = inlined_call_operand.vmem [shape: bf16[128,128], index: 1, kind: input, shape index: {}]   ;;  %s1139_s2 = inlined_call_operand.vmem [shape: f32[1,128], index: 2, kind: input, shape index: {}]   ;;  %s1140_s3 = inlined_call_operand.vmem [shape: bf16[512,128], index: 3, kind: output, shape index: {}]  }
   0x1   :  { %s1001_s14 = smov 0  }
   0x2 LB: > { %s25_s15 = sadd.s32 1, %s971_s13  ;;  %p682_p0 = scmp.ge.s32.totalorder %s975_s14, 1  ;;  %s975_s14 = sphi %s1001_s14, %s13_s14   ;;  %s971_s13 = sphi %s999_s13, %s1142_s13   ;;  %s967_s12 = sphi %s997_s12, %s1141_s12  }
   0x3   : > { %p27_p1 = scmp.ge.s32.totalorder %s25_s15, 2  ;;  %p169_p2 = scmp.lt.s32.totalorder %s975_s14, 3 }
   0x5   : > { %s1144_s15 = smov (%p27_p1, %s25_s15), 0  ;;  %p170_p3 = pnand %p682_p0, %p169_p2 }
   0x6   : > { %s683_s24 = sshll.u32 (!%p170_p3), %s967_s12, 5 }
   0x7   : > { %173 = sbr.rel (%p170_p3) target bundleno = 239 (0xef), region = 32  ;;  %p204_p4 = scmp.lt.s32.totalorder (!%p170_p3), %s683_s24, 63 }
   0xc   : > { %v808_v0 = vld [vmem:[%s1138_s1 + $0x38] sm:$0xff]  ;;  %v807_v1 = vld [vmem:[%s1138_s1 + $0x30] sm:$0xff]  ;;  %v806_v2 = vld [vmem:[%s1138_s1 + $0x28] sm:$0xff]  ;;  %s1146_s24 = smov (!%p204_p4, %s683_s24), 63 }
   0xd   : > { %421 = vmatpush.bf16.msra.mxu0 %v808_v0  ;;  %904 = vmatpush.bf16.msra.mxu1 %v808_v0  ;;  %v805_v3 = vld [vmem:[%s1138_s1 + $0x20] sm:$0xff]  ;;  %v804_v4 = vld [vmem:[%s1138_s1 + $0x18] sm:$0xff]  ;;  %v803_v5 = vld [vmem:[%s1138_s1 + $0x10] sm:$0xff]  ;;  %s684_s4 = sshll.u32 %s1146_s24, 2 }
   0xe   : > { %905 = vmatpush.bf16.msra.mxu2 %v808_v0  ;;  %906 = vmatpush.bf16.msra.mxu3 %v808_v0  ;;  %v802_v6 = vld [vmem:[%s1138_s1 + $0x8] sm:$0xff]  ;;  %v801_v7 = vld [vmem:[%s1138_s1] sm:$0xff]  ;;  %s1050_s9 = scalar_lea.vmem %s1137_s0, %s684_s4  ;;  %s1082_s17 = scalar_lea.vmem %s1140_s3, %s684_s4 }
   0xf   : > { %v785_v8 = vld [vmem:[%s1050_s9] sm:$0xff]  ;;  %v786_v12 = vld [vmem:[%s1050_s9 + $0x8] sm:$0xff]  ;;  %v787_v16 = vld [vmem:[%s1050_s9 + $0x10] sm:$0xff] }
  0x10   : > { %v789_v9 = vld [vmem:[%s1050_s9 + $0x20] sm:$0xff]  ;;  %v790_v13 = vld [vmem:[%s1050_s9 + $0x28] sm:$0xff]  ;;  %v791_v17 = vld [vmem:[%s1050_s9 + $0x30] sm:$0xff] }
  0x11   : > { %422 = vmatpush.bf16.msra.mxu0 %v807_v1  ;;  %907 = vmatpush.bf16.msra.mxu1 %v807_v1  ;;  %v793_v10 = vld [vmem:[%s1050_s9 + $0x40] sm:$0xff]  ;;  %v794_v14 = vld [vmem:[%s1050_s9 + $0x48] sm:$0xff]  ;;  %v795_v18 = vld [vmem:[%s1050_s9 + $0x50] sm:$0xff] }
  0x12   : > { %908 = vmatpush.bf16.msra.mxu2 %v807_v1  ;;  %909 = vmatpush.bf16.msra.mxu3 %v807_v1  ;;  %v797_v11 = vld [vmem:[%s1050_s9 + $0x60] sm:$0xff]  ;;  %v798_v15 = vld [vmem:[%s1050_s9 + $0x68] sm:$0xff]  ;;  %v799_v19 = vld [vmem:[%s1050_s9 + $0x70] sm:$0xff] }
  0x13   : > { %v788_v20 = vld [vmem:[%s1050_s9 + $0x18] sm:$0xff]  ;;  %v1071_v26 = vld [vmem:[%s1139_s2] ss:$0 sm:$0xff] }
  0x14   : > { %v792_v21 = vld [vmem:[%s1050_s9 + $0x38] sm:$0xff] }
  0x15   : > { %423 = vmatpush.bf16.msra.mxu0 %v806_v2  ;;  %910 = vmatpush.bf16.msra.mxu1 %v806_v2  ;;  %v796_v22 = vld [vmem:[%s1050_s9 + $0x58] sm:$0xff] }
  0x16   : > { %911 = vmatpush.bf16.msra.mxu2 %v806_v2  ;;  %912 = vmatpush.bf16.msra.mxu3 %v806_v2  ;;  %v800_v23 = vld [vmem:[%s1050_s9 + $0x78] sm:$0xff] }
  0x19   : > { %424 = vmatpush.bf16.msra.mxu0 %v805_v3  ;;  %913 = vmatpush.bf16.msra.mxu1 %v805_v3 }
  0x1a   : > { %914 = vmatpush.bf16.msra.mxu2 %v805_v3  ;;  %915 = vmatpush.bf16.msra.mxu3 %v805_v3 }
  0x1d   : > { %425 = vmatpush.bf16.msra.mxu0 %v804_v4  ;;  %916 = vmatpush.bf16.msra.mxu1 %v804_v4 }
  0x1e   : > { %917 = vmatpush.bf16.msra.mxu2 %v804_v4  ;;  %918 = vmatpush.bf16.msra.mxu3 %v804_v4 }
  0x21   : > { %426 = vmatpush.bf16.msra.mxu0 %v803_v5  ;;  %919 = vmatpush.bf16.msra.mxu1 %v803_v5 }
  0x22   : > { %920 = vmatpush.bf16.msra.mxu2 %v803_v5  ;;  %921 = vmatpush.bf16.msra.mxu3 %v803_v5 }
  0x25   : > { %427 = vmatpush.bf16.msra.mxu0 %v802_v6  ;;  %922 = vmatpush.bf16.msra.mxu1 %v802_v6 }
  0x26   : > { %923 = vmatpush.bf16.msra.mxu2 %v802_v6  ;;  %924 = vmatpush.bf16.msra.mxu3 %v802_v6 }
  0x29   : > { %428 = vmatpush.bf16.msra.mxu0 %v801_v7  ;;  %925 = vmatpush.bf16.msra.mxu1 %v801_v7 }
  0x2a   : > { %926 = vmatpush.bf16.msra.mxu2 %v801_v7  ;;  %927 = vmatpush.bf16.msra.mxu3 %v801_v7 }
  0x2c   : > { %429 = vmatmul.bf16.vlgmr.msra.gmra.mxu0 %v785_v8  ;;  %449 = vmatmul.bf16.vlgmr.msra.gmra.mxu1 %v789_v9 }
  0x2d   : > { %469 = vmatmul.bf16.vlgmr.msra.gmra.mxu2 %v793_v10  ;;  %489 = vmatmul.bf16.vlgmr.msra.gmra.mxu3 %v797_v11 }
  0x3c   : > { %434 = vmatmul.bf16.gmra.mxu0 %v786_v12  ;;  %454 = vmatmul.bf16.gmra.mxu1 %v790_v13 }
  0x3d   : > { %474 = vmatmul.bf16.gmra.mxu2 %v794_v14  ;;  %494 = vmatmul.bf16.gmra.mxu3 %v798_v15 }
  0x4c   : > { %439 = vmatmul.bf16.gmra.mxu0 %v787_v16  ;;  %459 = vmatmul.bf16.gmra.mxu1 %v791_v17 }
  0x4d   : > { %479 = vmatmul.bf16.gmra.mxu2 %v795_v18  ;;  %499 = vmatmul.bf16.gmra.mxu3 %v799_v19 }
  0x5c   : > { %444 = vmatmul.bf16.gmra.mxu0 %v788_v20  ;;  %464 = vmatmul.bf16.gmra.mxu1 %v792_v21 }
  0x5d   : > { %484 = vmatmul.bf16.gmra.mxu2 %v796_v22  ;;  %504 = vmatmul.bf16.gmra.mxu3 %v800_v23 }
  0xa9   : > { %v430_v24 = vpop.f32.mrf.mxu0  ;;  %v450_v25 = vpop.f32.mrf.mxu1 }
  0xaa   : > { %v431_v31 = vadd.f32 %v1071_v26, %v430_v24  ;;  %v451_v32 = vadd.f32 %v1071_v26, %v450_v25 }
  0xb0   : > { %v470_v27 = vpop.f32.mrf.mxu2  ;;  %v490_v28 = vpop.f32.mrf.mxu3 }
  0xb1   : > { %v432_v29 = vpop.f32.mrf.mxu0  ;;  %v452_v30 = vpop.f32.mrf.mxu1  ;;  %v471_v39 = vadd.f32 %v1071_v26, %v470_v27  ;;  %v491_v40 = vadd.f32 %v1071_v26, %v490_v28 }
  0xb2   : > { %v433_v33 = vadd.f32 %v1071_v26, %v432_v29  ;;  %v453_v34 = vadd.f32 %v1071_v26, %v452_v30 }
  0xb4   : > { %v812_v35 = vpack.c.bf16 %v433_v33, %v431_v31  ;;  %v832_v36 = vpack.c.bf16 %v453_v34, %v451_v32 }
  0xb6   : > { %813 = vst [vmem:[%s1082_s17] sm:$0xff] %v812_v35  }
  0xb7   : > { %892 = vst [vmem:[%s1082_s17 + $0x20] sm:$0xff] %v832_v36  }
  0xb8   : > { %v472_v37 = vpop.f32.mrf.mxu2  ;;  %v492_v38 = vpop.f32.mrf.mxu3 }
  0xb9   : > { %v473_v41 = vadd.f32 %v1071_v26, %v472_v37  ;;  %v493_v42 = vadd.f32 %v1071_v26, %v492_v38  ;;  %v435_v43 = vpop.f32.mrf.mxu0  ;;  %v455_v44 = vpop.f32.mrf.mxu1 }
  0xba   : > { %v436_v51 = vadd.f32 %v1071_v26, %v435_v43  ;;  %v456_v52 = vadd.f32 %v1071_v26, %v455_v44 }
  0xbb   : > { %v852_v45 = vpack.c.bf16 %v473_v41, %v471_v39  ;;  %v872_v46 = vpack.c.bf16 %v493_v42, %v491_v40 }
  0xbd   : > { %896 = vst [vmem:[%s1082_s17 + $0x40] sm:$0xff] %v852_v45  }
  0xbe   : > { %900 = vst [vmem:[%s1082_s17 + $0x60] sm:$0xff] %v872_v46  }
  0xc0   : > { %v475_v47 = vpop.f32.mrf.mxu2  ;;  %v495_v48 = vpop.f32.mrf.mxu3 }
  0xc1   : > { %v437_v49 = vpop.f32.mrf.mxu0  ;;  %v457_v50 = vpop.f32.mrf.mxu1  ;;  %v476_v59 = vadd.f32 %v1071_v26, %v475_v47  ;;  %v496_v60 = vadd.f32 %v1071_v26, %v495_v48 }
  0xc2   : > { %v438_v53 = vadd.f32 %v1071_v26, %v437_v49  ;;  %v458_v54 = vadd.f32 %v1071_v26, %v457_v50 }
  0xc4   : > { %v817_v55 = vpack.c.bf16 %v438_v53, %v436_v51  ;;  %v837_v56 = vpack.c.bf16 %v458_v54, %v456_v52 }
  0xc6   : > { %889 = vst [vmem:[%s1082_s17 + $0x8] sm:$0xff] %v817_v55  }
  0xc7   : > { %893 = vst [vmem:[%s1082_s17 + $0x28] sm:$0xff] %v837_v56  }
  0xc8   : > { %v477_v57 = vpop.f32.mrf.mxu2  ;;  %v497_v58 = vpop.f32.mrf.mxu3 }
  0xc9   : > { %v478_v61 = vadd.f32 %v1071_v26, %v477_v57  ;;  %v498_v62 = vadd.f32 %v1071_v26, %v497_v58  ;;  %v440_v63 = vpop.f32.mrf.mxu0  ;;  %v460_v0 = vpop.f32.mrf.mxu1 }
  0xca   : > { %v441_v7 = vadd.f32 %v1071_v26, %v440_v63  ;;  %v461_v8 = vadd.f32 %v1071_v26, %v460_v0 }
  0xcb   : > { %v857_v1 = vpack.c.bf16 %v478_v61, %v476_v59  ;;  %v877_v2 = vpack.c.bf16 %v498_v62, %v496_v60 }
  0xcd   : > { %897 = vst [vmem:[%s1082_s17 + $0x48] sm:$0xff] %v857_v1  }
  0xce   : > { %901 = vst [vmem:[%s1082_s17 + $0x68] sm:$0xff] %v877_v2  }
  0xd0   : > { %v480_v3 = vpop.f32.mrf.mxu2  ;;  %v500_v4 = vpop.f32.mrf.mxu3 }
  0xd1   : > { %v442_v5 = vpop.f32.mrf.mxu0  ;;  %v462_v6 = vpop.f32.mrf.mxu1  ;;  %v481_v15 = vadd.f32 %v1071_v26, %v480_v3  ;;  %v501_v16 = vadd.f32 %v1071_v26, %v500_v4 }
  0xd2   : > { %v443_v9 = vadd.f32 %v1071_v26, %v442_v5  ;;  %v463_v10 = vadd.f32 %v1071_v26, %v462_v6 }
  0xd4   : > { %v822_v11 = vpack.c.bf16 %v443_v9, %v441_v7  ;;  %v842_v12 = vpack.c.bf16 %v463_v10, %v461_v8 }
  0xd6   : > { %890 = vst [vmem:[%s1082_s17 + $0x10] sm:$0xff] %v822_v11  }
  0xd7   : > { %894 = vst [vmem:[%s1082_s17 + $0x30] sm:$0xff] %v842_v12  }
  0xd8   : > { %v482_v13 = vpop.f32.mrf.mxu2  ;;  %v502_v14 = vpop.f32.mrf.mxu3 }
  0xd9   : > { %v483_v17 = vadd.f32 %v1071_v26, %v482_v13  ;;  %v503_v18 = vadd.f32 %v1071_v26, %v502_v14  ;;  %v445_v19 = vpop.f32.mrf.mxu0  ;;  %v465_v20 = vpop.f32.mrf.mxu1 }
  0xda   : > { %v446_v28 = vadd.f32 %v1071_v26, %v445_v19  ;;  %v466_v29 = vadd.f32 %v1071_v26, %v465_v20 }
  0xdb   : > { %v862_v21 = vpack.c.bf16 %v483_v17, %v481_v15  ;;  %v882_v22 = vpack.c.bf16 %v503_v18, %v501_v16 }
  0xdd   : > { %898 = vst [vmem:[%s1082_s17 + $0x50] sm:$0xff] %v862_v21  }
  0xde   : > { %902 = vst [vmem:[%s1082_s17 + $0x70] sm:$0xff] %v882_v22  }
  0xe0   : > { %v485_v23 = vpop.f32.mrf.mxu2  ;;  %v505_v24 = vpop.f32.mrf.mxu3 }
  0xe1   : > { %v447_v25 = vpop.f32.mrf.mxu0  ;;  %v467_v27 = vpop.f32.mrf.mxu1  ;;  %v486_v36 = vadd.f32 %v1071_v26, %v485_v23  ;;  %v506_v37 = vadd.f32 %v1071_v26, %v505_v24 }
  0xe2   : > { %v448_v30 = vadd.f32 %v1071_v26, %v447_v25  ;;  %v468_v31 = vadd.f32 %v1071_v26, %v467_v27 }
  0xe4   : > { %v827_v32 = vpack.c.bf16 %v448_v30, %v446_v28  ;;  %v847_v33 = vpack.c.bf16 %v468_v31, %v466_v29 }
  0xe6   : > { %891 = vst [vmem:[%s1082_s17 + $0x18] sm:$0xff] %v827_v32  }
  0xe7   : > { %895 = vst [vmem:[%s1082_s17 + $0x38] sm:$0xff] %v847_v33  }
  0xe8   : > { %v487_v34 = vpop.f32.mrf.mxu2  ;;  %v507_v35 = vpop.f32.mrf.mxu3 }
  0xe9   : > { %v488_v38 = vadd.f32 %v1071_v26, %v487_v34  ;;  %v508_v39 = vadd.f32 %v1071_v26, %v507_v35 }
  0xeb   : > { %v867_v40 = vpack.c.bf16 %v488_v38, %v486_v36  ;;  %v887_v41 = vpack.c.bf16 %v508_v39, %v506_v37 }
  0xed   : > { %899 = vst [vmem:[%s1082_s17 + $0x58] sm:$0xff] %v867_v40  }
  0xee   : > { %903 = vst [vmem:[%s1082_s17 + $0x78] sm:$0xff] %v887_v41  }
  0xef PF: > { %s13_s14 = sadd.s32 1, %s975_s14   ;;  %s1141_s12 = smov %s971_s13 }
  0xf0   : > { %p10_p5 = scmp.ge.s32.totalorder %s13_s14, 4   ;;  %s1142_s13 = smov %s1144_s15 }
  0xf2   :  { %12 = sbr.rel (!%p10_p5) target bundleno = 2 (0x2), region = 68 }

// kernel: encoder_decoder_forward.6
= control target key start
LH: loop header
LB: loop body
LE: loop exit
PB: predicated region body
PF: predicated region fallthrough
CT: control target
= control target key end

     0   :  { %s1334_s12 = smov 0   ;;  %s1336_s13 = smov 0   ;;  %s1778_s0 = inlined_call_operand.vmem [shape: bf16[256,128], index: 0, kind: input, shape index: {}]   ;;  %s1779_s1 = inlined_call_operand.vmem [shape: bf16[128,512], index: 1, kind: input, shape index: {}]   ;;  %s1780_s2 = inlined_call_operand.vmem [shape: f32[1,512], index: 2, kind: input, shape index: {}]   ;;  %s1781_s3 = inlined_call_operand.vmem [shape: f32[256,512], index: 3, kind: output, shape index: {}]  }
   0x1   :  { %s1338_s14 = smov 0   ;;  %s1340_s15 = smov 0  }
   0x2   :  { %s1342_s16 = smov 0  }
   0x3 LB: > { %s22_s17 = sadd.s32 1, %s1308_s15  ;;  %s1039_s18 = sadd.s32 4294967295, %s1312_s16   ;;  %s1312_s16 = sphi %s1342_s16, %s13_s16   ;;  %s1308_s15 = sphi %s1340_s15, %s1786_s15   ;;  %s1304_s14 = sphi %s1338_s14, %s1785_s14   ;;  %s1300_s13 = sphi %s1336_s13, %s1784_s13   ;;  %s1296_s12 = sphi %s1334_s12, %s1783_s12  }
   0x4   : > { %p23_p0 = scmp.ge.s32.totalorder %s22_s17, 2  ;;  %p65_p1 = scmp.ne.s32.totalorder %s1300_s13, %s1296_s12 }
   0x5   : > { %p66_p2 = scmp.eq.s32.totalorder %s1312_s16, 0  ;;  %p123_p4 = scmp.eq.s32.totalorder %s1039_s18, 1 }
   0x6   : > { %s1788_s17 = smov (%p23_p0, %s22_s17), 0  ;;  %s58_s20 = sadd.s32 1, %s1300_s13 }
   0x7   : > { %p67_p3 = por %p66_p2, %p65_p1  ;;  %s55_s19 = ssub.s32 %s1308_s15, %s1788_s17 }
   0x8   : > { %p56_p5 = scmp.eq.s32.totalorder %s55_s19, 0  ;;  %p1369_p6 = por %p123_p4, %p65_p1 }
   0x9   : > { %p1043_p7 = scmp.ge.s32.totalorder %s1312_s16, 2 }
   0xa   : > { %s1374_s22 = scalar_select %p56_p5, %s1300_s13, %s58_s20  }
   0xb   : > { %154 = sbr.rel (%p1043_p7) target bundleno = 36 (0x24), region = 20 }
  0x10   : > { %157 = sbr.rel (!%p67_p3) target bundleno = 36 (0x24), region = 24  ;;  %s159_s23 = sand.u32 (%p67_p3), 1, %s1300_s13  }
  0x11   : > { %s1184_s24 = sshll.u32 (%p67_p3), %s1308_s15, 3  ;;  %s1044_s25 = sshll.u32 (%p67_p3), %s159_s23, 7 }
  0x12   : > { %s1382_s28 = scalar_lea.vmem (%p67_p3), %s1779_s1, %s1184_s24  ;;  %s161_s29 = scalar_lea.vmem (%p67_p3), [#allocation2], %s1044_s25 }
  0x13   : > { %v223_v0 = vld [vmem:[%s1382_s28] sm:$0xff] (%p67_p3)  ;;  %v225_v1 = vld [vmem:[%s1382_s28 + $0x10] sm:$0xff] (%p67_p3) }
  0x14   : > { %v227_v2 = vld [vmem:[%s1382_s28 + $0x20] sm:$0xff] (%p67_p3)  ;;  %224 = vst [vmem:[%s161_s29] sm:$0xff] (%p67_p3), %v223_v0  ;;  %v229_v3 = vld [vmem:[%s1382_s28 + $0x30] sm:$0xff] (%p67_p3) }
  0x15   : > { %226 = vst [vmem:[%s161_s29 + $0x8] sm:$0xff] %v225_v1  ;;  %v231_v4 = vld [vmem:[%s1382_s28 + $0x40] sm:$0xff]  ;;  %v233_v5 = vld [vmem:[%s1382_s28 + $0x50] sm:$0xff] }
  0x16   : > { %228 = vst [vmem:[%s161_s29 + $0x10] sm:$0xff] %v227_v2  ;;  %v235_v6 = vld [vmem:[%s1382_s28 + $0x60] sm:$0xff]  ;;  %v237_v7 = vld [vmem:[%s1382_s28 + $0x70] sm:$0xff] }
  0x17   : > { %230 = vst [vmem:[%s161_s29 + $0x18] sm:$0xff] %v229_v3  ;;  %v239_v8 = vld [vmem:[%s1382_s28 + $0x80] sm:$0xff]  ;;  %v241_v9 = vld [vmem:[%s1382_s28 + $0x90] sm:$0xff] }
  0x18   : > { %232 = vst [vmem:[%s161_s29 + $0x20] sm:$0xff] %v231_v4  ;;  %v243_v10 = vld [vmem:[%s1382_s28 + $0xa0] sm:$0xff]  ;;  %v245_v11 = vld [vmem:[%s1382_s28 + $0xb0] sm:$0xff] }
  0x19   : > { %234 = vst [vmem:[%s161_s29 + $0x28] sm:$0xff] %v233_v5  ;;  %v247_v12 = vld [vmem:[%s1382_s28 + $0xc0] sm:$0xff]  ;;  %v249_v13 = vld [vmem:[%s1382_s28 + $0xd0] sm:$0xff] }
  0x1a   : > { %236 = vst [vmem:[%s161_s29 + $0x30] sm:$0xff] %v235_v6  ;;  %v251_v14 = vld [vmem:[%s1382_s28 + $0xe0] sm:$0xff]  ;;  %v253_v15 = vld [vmem:[%s1382_s28 + $0xf0] sm:$0xff] }
  0x1b   : > { %238 = vst [vmem:[%s161_s29 + $0x38] sm:$0xff] %v237_v7 }
  0x1c   : > { %240 = vst [vmem:[%s161_s29 + $0x40] sm:$0xff] %v239_v8 }
  0x1d   : > { %242 = vst [vmem:[%s161_s29 + $0x48] sm:$0xff] %v241_v9 }
  0x1e   : > { %244 = vst [vmem:[%s161_s29 + $0x50] sm:$0xff] %v243_v10 }
  0x1f   : > { %246 = vst [vmem:[%s161_s29 + $0x58] sm:$0xff] %v245_v11 }
  0x20   : > { %248 = vst [vmem:[%s161_s29 + $0x60] sm:$0xff] %v247_v12 }
  0x21   : > { %250 = vst [vmem:[%s161_s29 + $0x68] sm:$0xff] %v249_v13 }
  0x22   : > { %252 = vst [vmem:[%s161_s29 + $0x70] sm:$0xff] %v251_v14 }
  0x23   : > { %254 = vst [vmem:[%s161_s29 + $0x78] sm:$0xff] %v253_v15 }
  0x24 PF: > { %p1047_p8 = scmp.ge.s32.totalorder %s1312_s16, 1  ;;  %p267_p9 = scmp.lt.s32.totalorder %s1312_s16, 3 }
  0x26   : > { %p268_p10 = pnand %p1047_p8, %p267_p9 }
  0x27   : > { %s274_s30 = sand.u32 (!%p268_p10), 1, %s1296_s12   ;;  %s1050_s24 = sshll.u32 (!%p268_p10), %s1304_s14, 1 }
  0x28   : > { %271 = sbr.rel (%p268_p10) target bundleno = 368 (0x170), region = 66  ;;  %s1048_s4 = sshll.u32 (!%p268_p10), %s274_s30, 7 }
  0x29   : > { %s1405_s5 = scalar_lea.vmem (!%p268_p10), [#allocation2], %s1048_s4  ;;  %p313_p11 = scmp.lt.s32.totalorder (!%p268_p10), %s1050_s24, 3 }
  0x2a   : > { %s1049_s6 = sshll.u32 (!%p268_p10), %s274_s30, 9 }
  0x2b   : > { %s1499_s7 = scalar_lea.vmem (!%p268_p10), [#allocation3], %s1049_s6 }
  0x2d   : > { %v1173_v16 = vld [vmem:[%s1405_s5 + $0x70] sm:$0xf]  ;;  %v1216_v17 = vld [vmem:[%s1405_s5 + $0x74] sm:$0xf0]  ;;  %v1215_v18 = vld [vmem:[%s1405_s5 + $0x74] sm:$0xf] }
  0x2e   : > { %v1174_v19 = vor.u32 %v1216_v17, %v1173_v16  ;;  %v1175_v20 = vld [vmem:[%s1405_s5 + $0x78] sm:$0xf0]  ;;  %v1165_v21 = vld [vmem:[%s1405_s5 + $0x60] sm:$0xf]  ;;  %v1214_v22 = vld [vmem:[%s1405_s5 + $0x64] sm:$0xf0] }
  0x2f   : > { %v1178_v23 = vor.u32 %v1215_v18, %v1175_v20  ;;  %v1213_v24 = vld [vmem:[%s1405_s5 + $0x64] sm:$0xf]  ;;  %v1167_v25 = vld [vmem:[%s1405_s5 + $0x68] sm:$0xf0]  ;;  %v1166_v26 = vor.u32 %v1214_v22, %v1165_v21  ;;  %v1157_v28 = vld [vmem:[%s1405_s5 + $0x50] sm:$0xf] }
  0x30   : > { %549 = vmatpush.bf16.msra.mxu0 %v1174_v19  ;;  %1218 = vmatpush.bf16.msra.mxu2 %v1174_v19  ;;  %v1170_v27 = vor.u32 %v1213_v24, %v1167_v25  ;;  %v1212_v29 = vld [vmem:[%s1405_s5 + $0x54] sm:$0xf0]  ;;  %v1211_v30 = vld [vmem:[%s1405_s5 + $0x54] sm:$0xf]  ;;  %v1159_v31 = vld [vmem:[%s1405_s5 + $0x58] sm:$0xf0] }
  0x31   : > { %638 = vmatpush.bf16.msra.mxu1 %v1178_v23  ;;  %1226 = vmatpush.bf16.msra.mxu3 %v1178_v23  ;;  %v1158_v32 = vor.u32 %v1212_v29, %v1157_v28  ;;  %v1162_v33 = vor.u32 %v1211_v30, %v1159_v31  ;;  %v1149_v34 = vld [vmem:[%s1405_s5 + $0x40] sm:$0xf]  ;;  %v1210_v35 = vld [vmem:[%s1405_s5 + $0x44] sm:$0xf0]  ;;  %v1209_v36 = vld [vmem:[%s1405_s5 + $0x44] sm:$0xf] }
  0x32   : > { %v1151_v37 = vld [vmem:[%s1405_s5 + $0x48] sm:$0xf0]  ;;  %v1150_v38 = vor.u32 %v1210_v35, %v1149_v34  ;;  %v1141_v40 = vld [vmem:[%s1405_s5 + $0x30] sm:$0xf]  ;;  %v1208_v41 = vld [vmem:[%s1405_s5 + $0x34] sm:$0xf0] }
  0x33   : > { %v1154_v39 = vor.u32 %v1209_v36, %v1151_v37  ;;  %v1207_v42 = vld [vmem:[%s1405_s5 + $0x34] sm:$0xf]  ;;  %v1143_v43 = vld [vmem:[%s1405_s5 + $0x38] sm:$0xf0]  ;;  %v1142_v44 = vor.u32 %v1208_v41, %v1141_v40  ;;  %v1133_v46 = vld [vmem:[%s1405_s5 + $0x20] sm:$0xf] }
  0x34   : > { %550 = vmatpush.bf16.msra.mxu0 %v1166_v26  ;;  %1219 = vmatpush.bf16.msra.mxu2 %v1166_v26  ;;  %v1146_v45 = vor.u32 %v1207_v42, %v1143_v43  ;;  %v1206_v47 = vld [vmem:[%s1405_s5 + $0x24] sm:$0xf0]  ;;  %v1205_v48 = vld [vmem:[%s1405_s5 + $0x24] sm:$0xf]  ;;  %v1135_v49 = vld [vmem:[%s1405_s5 + $0x28] sm:$0xf0] }
  0x35   : > { %639 = vmatpush.bf16.msra.mxu1 %v1170_v27  ;;  %1227 = vmatpush.bf16.msra.mxu3 %v1170_v27  ;;  %v1134_v50 = vor.u32 %v1206_v47, %v1133_v46  ;;  %v1138_v51 = vor.u32 %v1205_v48, %v1135_v49  ;;  %v1125_v52 = vld [vmem:[%s1405_s5 + $0x10] sm:$0xf]  ;;  %v1204_v53 = vld [vmem:[%s1405_s5 + $0x14] sm:$0xf0]  ;;  %v1203_v54 = vld [vmem:[%s1405_s5 + $0x14] sm:$0xf] }
  0x36   : > { %v1127_v55 = vld [vmem:[%s1405_s5 + $0x18] sm:$0xf0]  ;;  %v1126_v56 = vor.u32 %v1204_v53, %v1125_v52  ;;  %v1117_v58 = vld [vmem:[%s1405_s5] sm:$0xf]  ;;  %v1202_v59 = vld [vmem:[%s1405_s5 + $0x4] sm:$0xf0] }
  0x37   : > { %v1130_v57 = vor.u32 %v1203_v54, %v1127_v55  ;;  %v1201_v60 = vld [vmem:[%s1405_s5 + $0x4] sm:$0xf]  ;;  %v1119_v61 = vld [vmem:[%s1405_s5 + $0x8] sm:$0xf0]  ;;  %v1118_v62 = vor.u32 %v1202_v59, %v1117_v58  ;;  %v1187_v4 = vld [vmem:[%s1778_s0 + $0x10] sm:$0xff]  ;;  %s1790_s24 = smov (!%p313_p11, %s1050_s24), 3 }
  0x38   : > { %551 = vmatpush.bf16.msra.mxu0 %v1158_v32  ;;  %1220 = vmatpush.bf16.msra.mxu2 %v1158_v32  ;;  %v1122_v63 = vor.u32 %v1201_v60, %v1119_v61  ;;  %v1185_v0 = vld [vmem:[%s1778_s0] sm:$0xff]  ;;  %v1186_v2 = vld [vmem:[%s1778_s0 + $0x8] sm:$0xff]  ;;  %v1195_v5 = vld [vmem:[%s1778_s0 + $0x50] sm:$0xff]  ;;  %s315_s5 = scalar_lea.vmem %s1780_s2, %s1790_s24  ;;  %s1217_s12 = sshll.u32 (%p1369_p6), %s1304_s14, 4 }
  0x39   : > { %640 = vmatpush.bf16.msra.mxu1 %v1162_v33  ;;  %1228 = vmatpush.bf16.msra.mxu3 %v1162_v33  ;;  %v1193_v1 = vld [vmem:[%s1778_s0 + $0x40] sm:$0xff]  ;;  %v1194_v3 = vld [vmem:[%s1778_s0 + $0x48] sm:$0xff]  ;;  %v1188_v6 = vld [vmem:[%s1778_s0 + $0x18] sm:$0xff]  ;;  %s1635_s9 = scalar_lea.vmem (%p1369_p6), %s1781_s3, %s1217_s12 }
  0x3a   : > { %v1196_v7 = vld [vmem:[%s1778_s0 + $0x58] sm:$0xff]  ;;  %v1189_v8 = vld [vmem:[%s1778_s0 + $0x20] sm:$0xff]  ;;  %v1190_v10 = vld [vmem:[%s1778_s0 + $0x28] sm:$0xff] }
  0x3b   : > { %v1197_v9 = vld [vmem:[%s1778_s0 + $0x60] sm:$0xff]  ;;  %v1198_v11 = vld [vmem:[%s1778_s0 + $0x68] sm:$0xff]  ;;  %v1191_v12 = vld [vmem:[%s1778_s0 + $0x30] sm:$0xff] }
  0x3c   : > { %552 = vmatpush.bf16.msra.mxu0 %v1150_v38  ;;  %1221 = vmatpush.bf16.msra.mxu2 %v1150_v38  ;;  %v1199_v13 = vld [vmem:[%s1778_s0 + $0x70] sm:$0xff]  ;;  %v1192_v14 = vld [vmem:[%s1778_s0 + $0x38] sm:$0xff]  ;;  %v367_v16 = vld [vmem:[%s315_s5] sm:$0x3] }
  0x3d   : > { %641 = vmatpush.bf16.msra.mxu1 %v1154_v39  ;;  %1229 = vmatpush.bf16.msra.mxu3 %v1154_v39  ;;  %v1200_v15 = vld [vmem:[%s1778_s0 + $0x78] sm:$0xff]  ;;  %v1493_v17 = vperm.slane %v367_v16, 0  ;;  %v1495_v18 = vperm.slane %v367_v16, 1 }
  0x40   : > { %553 = vmatpush.bf16.msra.mxu0 %v1142_v44  ;;  %1222 = vmatpush.bf16.msra.mxu2 %v1142_v44 }
  0x41   : > { %642 = vmatpush.bf16.msra.mxu1 %v1146_v45  ;;  %1230 = vmatpush.bf16.msra.mxu3 %v1146_v45 }
  0x44   : > { %554 = vmatpush.bf16.msra.mxu0 %v1134_v50  ;;  %1223 = vmatpush.bf16.msra.mxu2 %v1134_v50 }
  0x45   : > { %643 = vmatpush.bf16.msra.mxu1 %v1138_v51  ;;  %1231 = vmatpush.bf16.msra.mxu3 %v1138_v51 }
  0x48   : > { %555 = vmatpush.bf16.msra.mxu0 %v1126_v56  ;;  %1224 = vmatpush.bf16.msra.mxu2 %v1126_v56 }
  0x49   : > { %644 = vmatpush.bf16.msra.mxu1 %v1130_v57  ;;  %1232 = vmatpush.bf16.msra.mxu3 %v1130_v57 }
  0x4c   : > { %556 = vmatpush.bf16.msra.mxu0 %v1118_v62  ;;  %1225 = vmatpush.bf16.msra.mxu2 %v1118_v62 }
  0x4d   : > { %645 = vmatpush.bf16.msra.mxu1 %v1122_v63  ;;  %1233 = vmatpush.bf16.msra.mxu3 %v1122_v63 }
  0x4f   : > { %557 = vmatmul.bf16.vlgmr.msra.gmra.mxu0 %v1185_v0  ;;  %597 = vmatmul.bf16.vlgmr.msra.gmra.mxu2 %v1193_v1 }
  0x50   : > { %646 = vmatmul.bf16.vlgmr.msra.gmra.mxu1 %v1185_v0  ;;  %686 = vmatmul.bf16.vlgmr.msra.gmra.mxu3 %v1193_v1 }
  0x5f   : > { %562 = vmatmul.bf16.gmra.mxu0 %v1186_v2  ;;  %602 = vmatmul.bf16.gmra.mxu2 %v1194_v3 }
  0x60   : > { %651 = vmatmul.bf16.gmra.mxu1 %v1186_v2  ;;  %691 = vmatmul.bf16.gmra.mxu3 %v1194_v3 }
  0x6f   : > { %567 = vmatmul.bf16.gmra.mxu0 %v1187_v4  ;;  %607 = vmatmul.bf16.gmra.mxu2 %v1195_v5 }
  0x70   : > { %656 = vmatmul.bf16.gmra.mxu1 %v1187_v4  ;;  %696 = vmatmul.bf16.gmra.mxu3 %v1195_v5 }
  0x7f   : > { %572 = vmatmul.bf16.gmra.mxu0 %v1188_v6  ;;  %612 = vmatmul.bf16.gmra.mxu2 %v1196_v7 }
  0x80   : > { %661 = vmatmul.bf16.gmra.mxu1 %v1188_v6  ;;  %701 = vmatmul.bf16.gmra.mxu3 %v1196_v7 }
  0x8f   : > { %577 = vmatmul.bf16.gmra.mxu0 %v1189_v8  ;;  %617 = vmatmul.bf16.gmra.mxu2 %v1197_v9 }
  0x90   : > { %666 = vmatmul.bf16.gmra.mxu1 %v1189_v8  ;;  %706 = vmatmul.bf16.gmra.mxu3 %v1197_v9 }
  0x9f   : > { %582 = vmatmul.bf16.gmra.mxu0 %v1190_v10  ;;  %622 = vmatmul.bf16.gmra.mxu2 %v1198_v11 }
  0xa0   : > { %671 = vmatmul.bf16.gmra.mxu1 %v1190_v10  ;;  %711 = vmatmul.bf16.gmra.mxu3 %v1198_v11 }
  0xaf   : > { %587 = vmatmul.bf16.gmra.mxu0 %v1191_v12  ;;  %627 = vmatmul.bf16.gmra.mxu2 %v1199_v13 }
  0xb0   : > { %676 = vmatmul.bf16.gmra.mxu1 %v1191_v12  ;;  %716 = vmatmul.bf16.gmra.mxu3 %v1199_v13 }
  0xbf   : > { %592 = vmatmul.bf16.gmra.mxu0 %v1192_v14  ;;  %632 = vmatmul.bf16.gmra.mxu2 %v1200_v15 }
  0xc0   : > { %681 = vmatmul.bf16.gmra.mxu1 %v1192_v14  ;;  %721 = vmatmul.bf16.gmra.mxu3 %v1200_v15 }
  0xcc   : > { %v558_v19 = vpop.f32.mrf.mxu0 }
  0xcd   : > { %v559_v20 = vadd.f32 %v558_v19, %v1493_v17  ;;  %v647_v21 = vpop.f32.mrf.mxu1 }
  0xce   : > { %v648_v22 = vadd.f32 %v647_v21, %v1495_v18 }
  0xcf   : > { %727 = vst [vmem:[%s1499_s7] sm:$0xff] %v559_v20 }
  0xd0   : > { %728 = vst [vmem:[%s1499_s7 + $0x8] sm:$0xff] %v648_v22 }
  0xd2   : > { %v598_v23 = vpop.f32.mrf.mxu2 }
  0xd3   : > { %v599_v24 = vadd.f32 %v598_v23, %v1493_v17  ;;  %v687_v25 = vpop.f32.mrf.mxu3 }
  0xd4   : > { %v688_v26 = vadd.f32 %v687_v25, %v1495_v18  ;;  %v560_v27 = vpop.f32.mrf.mxu0 }
  0xd5   : > { %759 = vst [vmem:[%s1499_s7 + $0x100] sm:$0xff] %v599_v24  ;;  %v561_v28 = vadd.f32 %v560_v27, %v1493_v17  ;;  %v649_v29 = vpop.f32.mrf.mxu1 }
  0xd6   : > { %760 = vst [vmem:[%s1499_s7 + $0x108] sm:$0xff] %v688_v26  ;;  %v650_v30 = vadd.f32 %v649_v29, %v1495_v18 }
  0xd7   : > { %729 = vst [vmem:[%s1499_s7 + $0x10] sm:$0xff] %v561_v28 }
  0xd8   : > { %730 = vst [vmem:[%s1499_s7 + $0x18] sm:$0xff] %v650_v30 }
  0xda   : > { %v600_v31 = vpop.f32.mrf.mxu2 }
  0xdb   : > { %v601_v32 = vadd.f32 %v600_v31, %v1493_v17  ;;  %v689_v33 = vpop.f32.mrf.mxu3 }
  0xdc   : > { %v690_v34 = vadd.f32 %v689_v33, %v1495_v18  ;;  %v563_v35 = vpop.f32.mrf.mxu0 }
  0xdd   : > { %761 = vst [vmem:[%s1499_s7 + $0x110] sm:$0xff] %v601_v32  ;;  %v564_v36 = vadd.f32 %v563_v35, %v1493_v17  ;;  %v652_v37 = vpop.f32.mrf.mxu1 }
  0xde   : > { %762 = vst [vmem:[%s1499_s7 + $0x118] sm:$0xff] %v690_v34  ;;  %v653_v38 = vadd.f32 %v652_v37, %v1495_v18 }
  0xdf   : > { %731 = vst [vmem:[%s1499_s7 + $0x20] sm:$0xff] %v564_v36 }
  0xe0   : > { %732 = vst [vmem:[%s1499_s7 + $0x28] sm:$0xff] %v653_v38 }
  0xe2   : > { %v603_v39 = vpop.f32.mrf.mxu2 }
  0xe3   : > { %v604_v40 = vadd.f32 %v603_v39, %v1493_v17  ;;  %v692_v41 = vpop.f32.mrf.mxu3 }
  0xe4   : > { %v693_v42 = vadd.f32 %v692_v41, %v1495_v18  ;;  %v565_v43 = vpop.f32.mrf.mxu0 }
  0xe5   : > { %763 = vst [vmem:[%s1499_s7 + $0x120] sm:$0xff] %v604_v40  ;;  %v566_v44 = vadd.f32 %v565_v43, %v1493_v17  ;;  %v654_v45 = vpop.f32.mrf.mxu1 }
  0xe6   : > { %764 = vst [vmem:[%s1499_s7 + $0x128] sm:$0xff] %v693_v42  ;;  %v655_v46 = vadd.f32 %v654_v45, %v1495_v18 }
  0xe7   : > { %733 = vst [vmem:[%s1499_s7 + $0x30] sm:$0xff] %v566_v44 }
  0xe8   : > { %734 = vst [vmem:[%s1499_s7 + $0x38] sm:$0xff] %v655_v46 }
  0xea   : > { %v605_v47 = vpop.f32.mrf.mxu2 }
  0xeb   : > { %v606_v48 = vadd.f32 %v605_v47, %v1493_v17  ;;  %v694_v49 = vpop.f32.mrf.mxu3 }
  0xec   : > { %v695_v50 = vadd.f32 %v694_v49, %v1495_v18  ;;  %v568_v51 = vpop.f32.mrf.mxu0 }
  0xed   : > { %765 = vst [vmem:[%s1499_s7 + $0x130] sm:$0xff] %v606_v48  ;;  %v569_v52 = vadd.f32 %v568_v51, %v1493_v17  ;;  %v657_v53 = vpop.f32.mrf.mxu1 }
  0xee   : > { %766 = vst [vmem:[%s1499_s7 + $0x138] sm:$0xff] %v695_v50  ;;  %v658_v54 = vadd.f32 %v657_v53, %v1495_v18 }
  0xef   : > { %735 = vst [vmem:[%s1499_s7 + $0x40] sm:$0xff] %v569_v52 }
  0xf0   : > { %736 = vst [vmem:[%s1499_s7 + $0x48] sm:$0xff] %v658_v54 }
  0xf2   : > { %v608_v55 = vpop.f32.mrf.mxu2 }
  0xf3   : > { %v609_v56 = vadd.f32 %v608_v55, %v1493_v17  ;;  %v697_v57 = vpop.f32.mrf.mxu3 }
  0xf4   : > { %v698_v58 = vadd.f32 %v697_v57, %v1495_v18  ;;  %v570_v59 = vpop.f32.mrf.mxu0 }
  0xf5   : > { %767 = vst [vmem:[%s1499_s7 + $0x140] sm:$0xff] %v609_v56  ;;  %v571_v60 = vadd.f32 %v570_v59, %v1493_v17  ;;  %v659_v61 = vpop.f32.mrf.mxu1 }
  0xf6   : > { %768 = vst [vmem:[%s1499_s7 + $0x148] sm:$0xff] %v698_v58  ;;  %v660_v62 = vadd.f32 %v659_v61, %v1495_v18 }
  0xf7   : > { %737 = vst [vmem:[%s1499_s7 + $0x50] sm:$0xff] %v571_v60 }
  0xf8   : > { %738 = vst [vmem:[%s1499_s7 + $0x58] sm:$0xff] %v660_v62 }
  0xfa   : > { %v610_v63 = vpop.f32.mrf.mxu2 }
  0xfb   : > { %v611_v0 = vadd.f32 %v610_v63, %v1493_v17  ;;  %v699_v1 = vpop.f32.mrf.mxu3 }
  0xfc   : > { %v700_v2 = vadd.f32 %v699_v1, %v1495_v18  ;;  %v573_v3 = vpop.f32.mrf.mxu0 }
  0xfd   : > { %769 = vst [vmem:[%s1499_s7 + $0x150] sm:$0xff] %v611_v0  ;;  %v574_v4 = vadd.f32 %v573_v3, %v1493_v17  ;;  %v662_v5 = vpop.f32.mrf.mxu1 }
  0xfe   : > { %770 = vst [vmem:[%s1499_s7 + $0x158] sm:$0xff] %v700_v2  ;;  %v663_v6 = vadd.f32 %v662_v5, %v1495_v18 }
  0xff   : > { %739 = vst [vmem:[%s1499_s7 + $0x60] sm:$0xff] %v574_v4 }
 0x100   : > { %740 = vst [vmem:[%s1499_s7 + $0x68] sm:$0xff] %v663_v6 }
 0x102   : > { %v613_v7 = vpop.f32.mrf.mxu2 }
 0x103   : > { %v614_v8 = vadd.f32 %v613_v7, %v1493_v17  ;;  %v702_v9 = vpop.f32.mrf.mxu3 }
 0x104   : > { %v703_v10 = vadd.f32 %v702_v9, %v1495_v18  ;;  %v575_v11 = vpop.f32.mrf.mxu0 }
 0x105   : > { %771 = vst [vmem:[%s1499_s7 + $0x160] sm:$0xff] %v614_v8  ;;  %v576_v12 = vadd.f32 %v575_v11, %v1493_v17  ;;  %v664_v13 = vpop.f32.mrf.mxu1 }
 0x106   : > { %772 = vst [vmem:[%s1499_s7 + $0x168] sm:$0xff] %v703_v10  ;;  %v665_v14 = vadd.f32 %v664_v13, %v1495_v18 }
 0x107   : > { %741 = vst [vmem:[%s1499_s7 + $0x70] sm:$0xff] %v576_v12 }
 0x108   : > { %742 = vst [vmem:[%s1499_s7 + $0x78] sm:$0xff] %v665_v14 }
 0x10a   : > { %v615_v15 = vpop.f32.mrf.mxu2 }
 0x10b   : > { %v616_v16 = vadd.f32 %v615_v15, %v1493_v17  ;;  %v704_v19 = vpop.f32.mrf.mxu3 }
 0x10c   : > { %v705_v20 = vadd.f32 %v704_v19, %v1495_v18  ;;  %v578_v21 = vpop.f32.mrf.mxu0 }
 0x10d   : > { %773 = vst [vmem:[%s1499_s7 + $0x170] sm:$0xff] %v616_v16  ;;  %v579_v22 = vadd.f32 %v578_v21, %v1493_v17  ;;  %v667_v23 = vpop.f32.mrf.mxu1 }
 0x10e   : > { %774 = vst [vmem:[%s1499_s7 + $0x178] sm:$0xff] %v705_v20  ;;  %v668_v24 = vadd.f32 %v667_v23, %v1495_v18  ;;  %v818_v23 = vld [vmem:[%s1499_s7 + $0x8] sm:$0xff] (%p1369_p6) }
 0x10f   : > { %743 = vst [vmem:[%s1499_s7 + $0x80] sm:$0xff] %v579_v22 }
 0x110   : > { %744 = vst [vmem:[%s1499_s7 + $0x88] sm:$0xff] %v668_v24  ;;  %v822_v24 = vld [vmem:[%s1499_s7 + $0x18] sm:$0xff] (%p1369_p6) }
 0x111   : > { %819 = vst [vmem:[%s1635_s9 + $0x8] sm:$0xff] (%p1369_p6), %v818_v23 }
 0x112   : > { %v618_v25 = vpop.f32.mrf.mxu2  ;;  %823 = vst [vmem:[%s1635_s9 + $0x28] sm:$0xff] (%p1369_p6), %v822_v24 }
 0x113   : > { %v619_v26 = vadd.f32 %v618_v25, %v1493_v17  ;;  %v707_v27 = vpop.f32.mrf.mxu3  ;;  %v824_v25 = vld [vmem:[%s1499_s7 + $0x20] sm:$0xff] (%p1369_p6) }
 0x114   : > { %v708_v28 = vadd.f32 %v707_v27, %v1495_v18  ;;  %v580_v29 = vpop.f32.mrf.mxu0  ;;  %v828_v27 = vld [vmem:[%s1499_s7 + $0x30] sm:$0xff] (%p1369_p6)  ;;  %825 = vst [vmem:[%s1635_s9 + $0x40] sm:$0xff] (%p1369_p6), %v824_v25 }
 0x115   : > { %775 = vst [vmem:[%s1499_s7 + $0x180] sm:$0xff] %v619_v26  ;;  %v581_v30 = vadd.f32 %v580_v29, %v1493_v17  ;;  %v669_v31 = vpop.f32.mrf.mxu1  ;;  %v826_v26 = vld [vmem:[%s1499_s7 + $0x28] sm:$0xff] (%p1369_p6)  ;;  %v832_v29 = vld [vmem:[%s1499_s7 + $0x40] sm:$0xff] (%p1369_p6) }
 0x116   : > { %776 = vst [vmem:[%s1499_s7 + $0x188] sm:$0xff] %v708_v28  ;;  %v670_v32 = vadd.f32 %v669_v31, %v1495_v18  ;;  %v830_v28 = vld [vmem:[%s1499_s7 + $0x38] sm:$0xff] (%p1369_p6)  ;;  %v836_v31 = vld [vmem:[%s1499_s7 + $0x50] sm:$0xff] (%p1369_p6) }
 0x117   : > { %745 = vst [vmem:[%s1499_s7 + $0x90] sm:$0xff] %v581_v30  ;;  %v834_v30 = vld [vmem:[%s1499_s7 + $0x48] sm:$0xff] (%p1369_p6) }
 0x118   : > { %746 = vst [vmem:[%s1499_s7 + $0x98] sm:$0xff] %v670_v32  ;;  %v838_v32 = vld [vmem:[%s1499_s7 + $0x58] sm:$0xff] (%p1369_p6) }
 0x119   : > { %827 = vst [vmem:[%s1635_s9 + $0x48] sm:$0xff] (%p1369_p6), %v826_v26 }
 0x11a   : > { %v620_v33 = vpop.f32.mrf.mxu2  ;;  %829 = vst [vmem:[%s1635_s9 + $0x60] sm:$0xff] (%p1369_p6), %v828_v27 }
 0x11b   : > { %v621_v34 = vadd.f32 %v620_v33, %v1493_v17  ;;  %v709_v35 = vpop.f32.mrf.mxu3  ;;  %831 = vst [vmem:[%s1635_s9 + $0x68] sm:$0xff] (%p1369_p6), %v830_v28  ;;  %v840_v33 = vld [vmem:[%s1499_s7 + $0x60] sm:$0xff] (%p1369_p6) }
 0x11c   : > { %v710_v36 = vadd.f32 %v709_v35, %v1495_v18  ;;  %v583_v37 = vpop.f32.mrf.mxu0  ;;  %833 = vst [vmem:[%s1635_s9 + $0x80] sm:$0xff] (%p1369_p6), %v832_v29  ;;  %v844_v35 = vld [vmem:[%s1499_s7 + $0x70] sm:$0xff] (%p1369_p6) }
 0x11d   : > { %777 = vst [vmem:[%s1499_s7 + $0x190] sm:$0xff] %v621_v34  ;;  %v584_v38 = vadd.f32 %v583_v37, %v1493_v17  ;;  %v672_v39 = vpop.f32.mrf.mxu1  ;;  %v842_v34 = vld [vmem:[%s1499_s7 + $0x68] sm:$0xff] (%p1369_p6)  ;;  %v848_v37 = vld [vmem:[%s1499_s7 + $0x80] sm:$0xff] (%p1369_p6) }
 0x11e   : > { %778 = vst [vmem:[%s1499_s7 + $0x198] sm:$0xff] %v710_v36  ;;  %v673_v40 = vadd.f32 %v672_v39, %v1495_v18  ;;  %v846_v36 = vld [vmem:[%s1499_s7 + $0x78] sm:$0xff] (%p1369_p6)  ;;  %v852_v39 = vld [vmem:[%s1499_s7 + $0x90] sm:$0xff] (%p1369_p6) }
 0x11f   : > { %747 = vst [vmem:[%s1499_s7 + $0xa0] sm:$0xff] %v584_v38  ;;  %v850_v38 = vld [vmem:[%s1499_s7 + $0x88] sm:$0xff] (%p1369_p6) }
 0x120   : > { %748 = vst [vmem:[%s1499_s7 + $0xa8] sm:$0xff] %v673_v40  ;;  %v854_v40 = vld [vmem:[%s1499_s7 + $0x98] sm:$0xff] (%p1369_p6) }
 0x121   : > { %835 = vst [vmem:[%s1635_s9 + $0x88] sm:$0xff] (%p1369_p6), %v834_v30 }
 0x122   : > { %v623_v41 = vpop.f32.mrf.mxu2  ;;  %837 = vst [vmem:[%s1635_s9 + $0xa0] sm:$0xff] (%p1369_p6), %v836_v31 }
 0x123   : > { %v624_v42 = vadd.f32 %v623_v41, %v1493_v17  ;;  %v712_v43 = vpop.f32.mrf.mxu3  ;;  %839 = vst [vmem:[%s1635_s9 + $0xa8] sm:$0xff] (%p1369_p6), %v838_v32 }
 0x124   : > { %v713_v44 = vadd.f32 %v712_v43, %v1495_v18  ;;  %v585_v45 = vpop.f32.mrf.mxu0  ;;  %841 = vst [vmem:[%s1635_s9 + $0xc0] sm:$0xff] (%p1369_p6), %v840_v33 }
 0x125   : > { %779 = vst [vmem:[%s1499_s7 + $0x1a0] sm:$0xff] %v624_v42  ;;  %v586_v46 = vadd.f32 %v585_v45, %v1493_v17  ;;  %v674_v47 = vpop.f32.mrf.mxu1 }
 0x126   : > { %780 = vst [vmem:[%s1499_s7 + $0x1a8] sm:$0xff] %v713_v44  ;;  %v675_v48 = vadd.f32 %v674_v47, %v1495_v18  ;;  %v856_v41 = vld [vmem:[%s1499_s7 + $0xa0] sm:$0xff] (%p1369_p6) }
 0x127   : > { %749 = vst [vmem:[%s1499_s7 + $0xb0] sm:$0xff] %v586_v46  ;;  %v858_v42 = vld [vmem:[%s1499_s7 + $0xa8] sm:$0xff] (%p1369_p6) }
 0x128   : > { %750 = vst [vmem:[%s1499_s7 + $0xb8] sm:$0xff] %v675_v48 }
 0x129   : > { %843 = vst [vmem:[%s1635_s9 + $0xc8] sm:$0xff] (%p1369_p6), %v842_v34 }
 0x12a   : > { %v625_v49 = vpop.f32.mrf.mxu2  ;;  %845 = vst [vmem:[%s1635_s9 + $0xe0] sm:$0xff] (%p1369_p6), %v844_v35 }
 0x12b   : > { %v626_v50 = vadd.f32 %v625_v49, %v1493_v17  ;;  %v714_v51 = vpop.f32.mrf.mxu3  ;;  %847 = vst [vmem:[%s1635_s9 + $0xe8] sm:$0xff] (%p1369_p6), %v846_v36 }
 0x12c   : > { %v715_v52 = vadd.f32 %v714_v51, %v1495_v18  ;;  %v588_v53 = vpop.f32.mrf.mxu0  ;;  %849 = vst [vmem:[%s1635_s9 + $0x100] sm:$0xff] (%p1369_p6), %v848_v37 }
 0x12d   : > { %781 = vst [vmem:[%s1499_s7 + $0x1b0] sm:$0xff] %v626_v50  ;;  %v589_v54 = vadd.f32 %v588_v53, %v1493_v17  ;;  %v677_v55 = vpop.f32.mrf.mxu1  ;;  %v880_v53 = vld [vmem:[%s1499_s7 + $0x100] sm:$0xff] (%p1369_p6) }
 0x12e   : > { %782 = vst [vmem:[%s1499_s7 + $0x1b8] sm:$0xff] %v715_v52  ;;  %v678_v56 = vadd.f32 %v677_v55, %v1495_v18  ;;  %v860_v43 = vld [vmem:[%s1499_s7 + $0xb0] sm:$0xff] (%p1369_p6) }
 0x12f   : > { %751 = vst [vmem:[%s1499_s7 + $0xc0] sm:$0xff] %v589_v54  ;;  %v862_v44 = vld [vmem:[%s1499_s7 + $0xb8] sm:$0xff] (%p1369_p6)  ;;  %v882_v54 = vld [vmem:[%s1499_s7 + $0x108] sm:$0xff] (%p1369_p6)  ;;  %v884_v55 = vld [vmem:[%s1499_s7 + $0x110] sm:$0xff] (%p1369_p6) }
 0x130   : > { %752 = vst [vmem:[%s1499_s7 + $0xc8] sm:$0xff] %v678_v56  ;;  %v886_v56 = vld [vmem:[%s1499_s7 + $0x118] sm:$0xff] (%p1369_p6) }
 0x131   : > { %851 = vst [vmem:[%s1635_s9 + $0x108] sm:$0xff] (%p1369_p6), %v850_v38 }
 0x132   : > { %v628_v57 = vpop.f32.mrf.mxu2  ;;  %853 = vst [vmem:[%s1635_s9 + $0x120] sm:$0xff] (%p1369_p6), %v852_v39 }
 0x133   : > { %v629_v58 = vadd.f32 %v628_v57, %v1493_v17  ;;  %v717_v59 = vpop.f32.mrf.mxu3  ;;  %855 = vst [vmem:[%s1635_s9 + $0x128] sm:$0xff] (%p1369_p6), %v854_v40  ;;  %v888_v57 = vld [vmem:[%s1499_s7 + $0x120] sm:$0xff] (%p1369_p6) }
 0x134   : > { %v718_v60 = vadd.f32 %v717_v59, %v1495_v18  ;;  %v590_v61 = vpop.f32.mrf.mxu0  ;;  %857 = vst [vmem:[%s1635_s9 + $0x140] sm:$0xff] (%p1369_p6), %v856_v41  ;;  %v892_v59 = vld [vmem:[%s1499_s7 + $0x130] sm:$0xff] (%p1369_p6) }
 0x135   : > { %783 = vst [vmem:[%s1499_s7 + $0x1c0] sm:$0xff] %v629_v58  ;;  %v591_v62 = vadd.f32 %v590_v61, %v1493_v17  ;;  %v679_v63 = vpop.f32.mrf.mxu1  ;;  %v890_v58 = vld [vmem:[%s1499_s7 + $0x128] sm:$0xff] (%p1369_p6)  ;;  %v896_v61 = vld [vmem:[%s1499_s7 + $0x140] sm:$0xff] (%p1369_p6) }
 0x136   : > { %784 = vst [vmem:[%s1499_s7 + $0x1c8] sm:$0xff] %v718_v60  ;;  %v680_v0 = vadd.f32 %v679_v63, %v1495_v18  ;;  %v864_v45 = vld [vmem:[%s1499_s7 + $0xc0] sm:$0xff] (%p1369_p6)  ;;  %v894_v60 = vld [vmem:[%s1499_s7 + $0x138] sm:$0xff] (%p1369_p6)  ;;  %v900_v63 = vld [vmem:[%s1499_s7 + $0x150] sm:$0xff] (%p1369_p6) }
 0x137   : > { %753 = vst [vmem:[%s1499_s7 + $0xd0] sm:$0xff] %v591_v62  ;;  %v866_v46 = vld [vmem:[%s1499_s7 + $0xc8] sm:$0xff] (%p1369_p6) }
 0x138   : > { %754 = vst [vmem:[%s1499_s7 + $0xd8] sm:$0xff] %v680_v0  ;;  %v898_v62 = vld [vmem:[%s1499_s7 + $0x148] sm:$0xff] (%p1369_p6)  ;;  %v902_v0 = vld [vmem:[%s1499_s7 + $0x158] sm:$0xff] (%p1369_p6) }
 0x139   : > { %859 = vst [vmem:[%s1635_s9 + $0x148] sm:$0xff] (%p1369_p6), %v858_v42 }
 0x13a   : > { %v630_v1 = vpop.f32.mrf.mxu2  ;;  %861 = vst [vmem:[%s1635_s9 + $0x160] sm:$0xff] (%p1369_p6), %v860_v43 }
 0x13b   : > { %v631_v2 = vadd.f32 %v630_v1, %v1493_v17  ;;  %v719_v3 = vpop.f32.mrf.mxu3  ;;  %863 = vst [vmem:[%s1635_s9 + $0x168] sm:$0xff] (%p1369_p6), %v862_v44  ;;  %v904_v1 = vld [vmem:[%s1499_s7 + $0x160] sm:$0xff] (%p1369_p6) }
 0x13c   : > { %v720_v4 = vadd.f32 %v719_v3, %v1495_v18  ;;  %v593_v5 = vpop.f32.mrf.mxu0  ;;  %865 = vst [vmem:[%s1635_s9 + $0x180] sm:$0xff] (%p1369_p6), %v864_v45  ;;  %v908_v3 = vld [vmem:[%s1499_s7 + $0x170] sm:$0xff] (%p1369_p6) }
 0x13d   : > { %785 = vst [vmem:[%s1499_s7 + $0x1d0] sm:$0xff] %v631_v2  ;;  %v594_v6 = vadd.f32 %v593_v5, %v1493_v17  ;;  %v682_v7 = vpop.f32.mrf.mxu1  ;;  %v906_v2 = vld [vmem:[%s1499_s7 + $0x168] sm:$0xff] (%p1369_p6)  ;;  %v912_v5 = vld [vmem:[%s1499_s7 + $0x180] sm:$0xff] (%p1369_p6) }
 0x13e   : > { %786 = vst [vmem:[%s1499_s7 + $0x1d8] sm:$0xff] %v720_v4  ;;  %v683_v8 = vadd.f32 %v682_v7, %v1495_v18  ;;  %v868_v47 = vld [vmem:[%s1499_s7 + $0xd0] sm:$0xff] (%p1369_p6)  ;;  %v910_v4 = vld [vmem:[%s1499_s7 + $0x178] sm:$0xff] (%p1369_p6) }
 0x13f   : > { %755 = vst [vmem:[%s1499_s7 + $0xe0] sm:$0xff] %v594_v6  ;;  %v870_v48 = vld [vmem:[%s1499_s7 + $0xd8] sm:$0xff] (%p1369_p6)  ;;  %v914_v6 = vld [vmem:[%s1499_s7 + $0x188] sm:$0xff] (%p1369_p6)  ;;  %v916_v7 = vld [vmem:[%s1499_s7 + $0x190] sm:$0xff] (%p1369_p6) }
 0x140   : > { %756 = vst [vmem:[%s1499_s7 + $0xe8] sm:$0xff] %v683_v8  ;;  %v918_v8 = vld [vmem:[%s1499_s7 + $0x198] sm:$0xff] (%p1369_p6) }
 0x141   : > { %867 = vst [vmem:[%s1635_s9 + $0x188] sm:$0xff] (%p1369_p6), %v866_v46 }
 0x142   : > { %v633_v9 = vpop.f32.mrf.mxu2  ;;  %869 = vst [vmem:[%s1635_s9 + $0x1a0] sm:$0xff] (%p1369_p6), %v868_v47 }
 0x143   : > { %v634_v10 = vadd.f32 %v633_v9, %v1493_v17  ;;  %v722_v11 = vpop.f32.mrf.mxu3  ;;  %871 = vst [vmem:[%s1635_s9 + $0x1a8] sm:$0xff] (%p1369_p6), %v870_v48  ;;  %v920_v9 = vld [vmem:[%s1499_s7 + $0x1a0] sm:$0xff] (%p1369_p6) }
 0x144   : > { %v723_v12 = vadd.f32 %v722_v11, %v1495_v18  ;;  %v595_v13 = vpop.f32.mrf.mxu0  ;;  %881 = vst [vmem:[%s1635_s9 + $0x200] sm:$0xff] (%p1369_p6), %v880_v53  ;;  %v924_v11 = vld [vmem:[%s1499_s7 + $0x1b0] sm:$0xff] (%p1369_p6) }
 0x145   : > { %787 = vst [vmem:[%s1499_s7 + $0x1e0] sm:$0xff] %v634_v10  ;;  %v596_v14 = vadd.f32 %v595_v13, %v1493_v17  ;;  %v684_v15 = vpop.f32.mrf.mxu1  ;;  %v922_v10 = vld [vmem:[%s1499_s7 + $0x1a8] sm:$0xff] (%p1369_p6)  ;;  %v928_v13 = vld [vmem:[%s1499_s7 + $0x1c0] sm:$0xff] (%p1369_p6) }
 0x146   : > { %788 = vst [vmem:[%s1499_s7 + $0x1e8] sm:$0xff] %v723_v12  ;;  %v685_v16 = vadd.f32 %v684_v15, %v1495_v18  ;;  %v872_v49 = vld [vmem:[%s1499_s7 + $0xe0] sm:$0xff] (%p1369_p6)  ;;  %v926_v12 = vld [vmem:[%s1499_s7 + $0x1b8] sm:$0xff] (%p1369_p6)  ;;  %v932_v15 = vld [vmem:[%s1499_s7 + $0x1d0] sm:$0xff] (%p1369_p6) }
 0x147   : > { %757 = vst [vmem:[%s1499_s7 + $0xf0] sm:$0xff] %v596_v14  ;;  %v874_v50 = vld [vmem:[%s1499_s7 + $0xe8] sm:$0xff] (%p1369_p6) }
 0x148   : > { %758 = vst [vmem:[%s1499_s7 + $0xf8] sm:$0xff] %v685_v16  ;;  %v930_v14 = vld [vmem:[%s1499_s7 + $0x1c8] sm:$0xff] (%p1369_p6)  ;;  %v934_v16 = vld [vmem:[%s1499_s7 + $0x1d8] sm:$0xff] (%p1369_p6) }
 0x149   : > { %873 = vst [vmem:[%s1635_s9 + $0x1c0] sm:$0xff] (%p1369_p6), %v872_v49 }
 0x14a   : > { %v635_v19 = vpop.f32.mrf.mxu2  ;;  %797 = sbr.rel (!%p1369_p6) target bundleno = 368 (0x170), region = 74  ;;  %875 = vst [vmem:[%s1635_s9 + $0x1c8] sm:$0xff] (%p1369_p6), %v874_v50 }
 0x14b   : > { %v636_v20 = vadd.f32 %v635_v19, %v1493_v17  ;;  %v724_v21 = vpop.f32.mrf.mxu3  ;;  %v816_v17 = vld [vmem:[%s1499_s7] sm:$0xff] (%p1369_p6)  ;;  %883 = vst [vmem:[%s1635_s9 + $0x208] sm:$0xff] (%p1369_p6), %v882_v54 }
 0x14c   : > { %v725_v22 = vadd.f32 %v724_v21, %v1495_v18  ;;  %v820_v18 = vld [vmem:[%s1499_s7 + $0x10] sm:$0xff] (%p1369_p6)  ;;  %817 = vst [vmem:[%s1635_s9] sm:$0xff] (%p1369_p6), %v816_v17  ;;  %v936_v19 = vld [vmem:[%s1499_s7 + $0x1e0] sm:$0xff] (%p1369_p6) }
 0x14d   : > { %789 = vst [vmem:[%s1499_s7 + $0x1f0] sm:$0xff] %v636_v20  ;;  %v938_v20 = vld [vmem:[%s1499_s7 + $0x1e8] sm:$0xff] (%p1369_p6) }
 0x14e   : > { %790 = vst [vmem:[%s1499_s7 + $0x1f8] sm:$0xff] %v725_v22  ;;  %v876_v51 = vld [vmem:[%s1499_s7 + $0xf0] sm:$0xff] (%p1369_p6) }
 0x14f   : > { %821 = vst [vmem:[%s1635_s9 + $0x20] sm:$0xff] %v820_v18  ;;  %v878_v52 = vld [vmem:[%s1499_s7 + $0xf8] sm:$0xff] }
 0x150   : > { %877 = vst [vmem:[%s1635_s9 + $0x1e0] sm:$0xff] %v876_v51 }
 0x151   : > { %879 = vst [vmem:[%s1635_s9 + $0x1e8] sm:$0xff] %v878_v52 }
 0x152   : > { %885 = vst [vmem:[%s1635_s9 + $0x220] sm:$0xff] %v884_v55 }
 0x153   : > { %887 = vst [vmem:[%s1635_s9 + $0x228] sm:$0xff] %v886_v56 }
 0x154   : > { %889 = vst [vmem:[%s1635_s9 + $0x240] sm:$0xff] %v888_v57  ;;  %v940_v21 = vld [vmem:[%s1499_s7 + $0x1f0] sm:$0xff] }
 0x155   : > { %891 = vst [vmem:[%s1635_s9 + $0x248] sm:$0xff] %v890_v58  ;;  %v942_v22 = vld [vmem:[%s1499_s7 + $0x1f8] sm:$0xff] }
 0x156   : > { %893 = vst [vmem:[%s1635_s9 + $0x260] sm:$0xff] %v892_v59 }
 0x157   : > { %895 = vst [vmem:[%s1635_s9 + $0x268] sm:$0xff] %v894_v60 }
 0x158   : > { %897 = vst [vmem:[%s1635_s9 + $0x280] sm:$0xff] %v896_v61 }
 0x159   : > { %899 = vst [vmem:[%s1635_s9 + $0x288] sm:$0xff] %v898_v62 }
 0x15a   : > { %901 = vst [vmem:[%s1635_s9 + $0x2a0] sm:$0xff] %v900_v63 }
 0x15b   : > { %903 = vst [vmem:[%s1635_s9 + $0x2a8] sm:$0xff] %v902_v0 }
 0x15c   : > { %905 = vst [vmem:[%s1635_s9 + $0x2c0] sm:$0xff] %v904_v1 }
 0x15d   : > { %907 = vst [vmem:[%s1635_s9 + $0x2c8] sm:$0xff] %v906_v2 }
 0x15e   : > { %909 = vst [vmem:[%s1635_s9 + $0x2e0] sm:$0xff] %v908_v3 }
 0x15f   : > { %911 = vst [vmem:[%s1635_s9 + $0x2e8] sm:$0xff] %v910_v4 }
 0x160   : > { %913 = vst [vmem:[%s1635_s9 + $0x300] sm:$0xff] %v912_v5 }
 0x161   : > { %915 = vst [vmem:[%s1635_s9 + $0x308] sm:$0xff] %v914_v6 }
 0x162   : > { %917 = vst [vmem:[%s1635_s9 + $0x320] sm:$0xff] %v916_v7 }
 0x163   : > { %919 = vst [vmem:[%s1635_s9 + $0x328] sm:$0xff] %v918_v8 }
 0x164   : > { %921 = vst [vmem:[%s1635_s9 + $0x340] sm:$0xff] %v920_v9 }
 0x165   : > { %923 = vst [vmem:[%s1635_s9 + $0x348] sm:$0xff] %v922_v10 }
 0x166   : > { %925 = vst [vmem:[%s1635_s9 + $0x360] sm:$0xff] %v924_v11 }
 0x167   : > { %927 = vst [vmem:[%s1635_s9 + $0x368] sm:$0xff] %v926_v12 }
 0x168   : > { %929 = vst [vmem:[%s1635_s9 + $0x380] sm:$0xff] %v928_v13 }
 0x169   : > { %931 = vst [vmem:[%s1635_s9 + $0x388] sm:$0xff] %v930_v14 }
 0x16a   : > { %933 = vst [vmem:[%s1635_s9 + $0x3a0] sm:$0xff] %v932_v15 }
 0x16b   : > { %935 = vst [vmem:[%s1635_s9 + $0x3a8] sm:$0xff] %v934_v16 }
 0x16c   : > { %937 = vst [vmem:[%s1635_s9 + $0x3c0] sm:$0xff] %v936_v19 }
 0x16d   : > { %939 = vst [vmem:[%s1635_s9 + $0x3c8] sm:$0xff] %v938_v20 }
 0x16e   : > { %941 = vst [vmem:[%s1635_s9 + $0x3e0] sm:$0xff] %v940_v21 }
 0x16f   : > { %943 = vst [vmem:[%s1635_s9 + $0x3e8] sm:$0xff] %v942_v22 }
 0x170 PF: > { %s13_s16 = sadd.s32 1, %s1312_s16   ;;  %s1783_s12 = smov %s1300_s13 }
 0x171   : > { %p10_p12 = scmp.ge.s32.totalorder %s13_s16, 4   ;;  %s1784_s13 = smov %s1374_s22 }
 0x172   : > { %s1785_s14 = smov %s1308_s15  ;;  %s1786_s15 = smov %s1788_s17 }
 0x173   :  { %12 = sbr.rel (!%p10_p12) target bundleno = 3 (0x3), region = 134 }

// kernel: encoder_decoder_forward.9
= control target key start
LH: loop header
LB: loop body
LE: loop exit
PB: predicated region body
PF: predicated region fallthrough
CT: control target
= control target key end

     0   :  { %s951_s0 = inlined_call_operand.vmem [shape: bf16[256,128], index: 0, kind: input, shape index: {}]   ;;  %s952_s1 = inlined_call_operand.vmem [shape: bf16[128,256], index: 1, kind: input, shape index: {}]   ;;  %s953_s2 = inlined_call_operand.vmem [shape: f32[1,256], index: 2, kind: input, shape index: {}]   ;;  %s954_s3 = inlined_call_operand.hbm [shape: f32[256,256], index: 3, kind: output, shape index: {}]  }
   0x1   :  { %v627_v0 = vld [vmem:[%s952_s1 + $0x70] sm:$0xf]  ;;  %v664_v1 = vld [vmem:[%s952_s1 + $0x74] sm:$0xf0]  ;;  %v663_v2 = vld [vmem:[%s952_s1 + $0x74] sm:$0xf] }
   0x2   :  { %v628_v3 = vor.u32 %v664_v1, %v627_v0  ;;  %v629_v4 = vld [vmem:[%s952_s1 + $0x78] sm:$0xf0]  ;;  %v619_v5 = vld [vmem:[%s952_s1 + $0x60] sm:$0xf]  ;;  %v662_v6 = vld [vmem:[%s952_s1 + $0x64] sm:$0xf0] }
   0x3   :  { %v632_v7 = vor.u32 %v663_v2, %v629_v4  ;;  %v661_v8 = vld [vmem:[%s952_s1 + $0x64] sm:$0xf]  ;;  %v621_v9 = vld [vmem:[%s952_s1 + $0x68] sm:$0xf0]  ;;  %v620_v10 = vor.u32 %v662_v6, %v619_v5  ;;  %v611_v12 = vld [vmem:[%s952_s1 + $0x50] sm:$0xf] }
   0x4   :  { %245 = vmatpush.bf16.msra.mxu0 %v628_v3  ;;  %665 = vmatpush.bf16.msra.mxu2 %v628_v3  ;;  %v624_v11 = vor.u32 %v661_v8, %v621_v9  ;;  %v660_v13 = vld [vmem:[%s952_s1 + $0x54] sm:$0xf0]  ;;  %v659_v14 = vld [vmem:[%s952_s1 + $0x54] sm:$0xf]  ;;  %v613_v15 = vld [vmem:[%s952_s1 + $0x58] sm:$0xf0] }
   0x5   :  { %334 = vmatpush.bf16.msra.mxu1 %v632_v7  ;;  %673 = vmatpush.bf16.msra.mxu3 %v632_v7  ;;  %v612_v16 = vor.u32 %v660_v13, %v611_v12  ;;  %v616_v17 = vor.u32 %v659_v14, %v613_v15  ;;  %v603_v18 = vld [vmem:[%s952_s1 + $0x40] sm:$0xf]  ;;  %v658_v19 = vld [vmem:[%s952_s1 + $0x44] sm:$0xf0]  ;;  %v657_v20 = vld [vmem:[%s952_s1 + $0x44] sm:$0xf] }
   0x6   :  { %v605_v21 = vld [vmem:[%s952_s1 + $0x48] sm:$0xf0]  ;;  %v604_v22 = vor.u32 %v658_v19, %v603_v18 }
   0x8   :  { %246 = vmatpush.bf16.msra.mxu0 %v620_v10  ;;  %666 = vmatpush.bf16.msra.mxu2 %v620_v10 }
   0x9   :  { %335 = vmatpush.bf16.msra.mxu1 %v624_v11  ;;  %674 = vmatpush.bf16.msra.mxu3 %v624_v11 }
   0xc   :  { %247 = vmatpush.bf16.msra.mxu0 %v612_v16  ;;  %667 = vmatpush.bf16.msra.mxu2 %v612_v16 }
   0xd   :  { %8 = vsyncpa [#allocation3], 0  ;;  %336 = vmatpush.bf16.msra.mxu1 %v616_v17  ;;  %675 = vmatpush.bf16.msra.mxu3 %v616_v17  ;;  %v608_v23 = vor.u32 %v657_v20, %v605_v21  ;;  %v595_v24 = vld [vmem:[%s952_s1 + $0x30] sm:$0xf]  ;;  %v656_v25 = vld [vmem:[%s952_s1 + $0x34] sm:$0xf0] }
   0xe   :  { %v655_v26 = vld [vmem:[%s952_s1 + $0x34] sm:$0xf]  ;;  %v597_v27 = vld [vmem:[%s952_s1 + $0x38] sm:$0xf0]  ;;  %v596_v28 = vor.u32 %v656_v25, %v595_v24  ;;  %v587_v30 = vld [vmem:[%s952_s1 + $0x20] sm:$0xf] }
   0xf   :  { %v600_v29 = vor.u32 %v655_v26, %v597_v27  ;;  %v654_v31 = vld [vmem:[%s952_s1 + $0x24] sm:$0xf0]  ;;  %v653_v32 = vld [vmem:[%s952_s1 + $0x24] sm:$0xf]  ;;  %v589_v33 = vld [vmem:[%s952_s1 + $0x28] sm:$0xf0] }
  0x10   :  { %248 = vmatpush.bf16.msra.mxu0 %v604_v22  ;;  %668 = vmatpush.bf16.msra.mxu2 %v604_v22  ;;  %v588_v34 = vor.u32 %v654_v31, %v587_v30  ;;  %v592_v35 = vor.u32 %v653_v32, %v589_v33  ;;  %v579_v36 = vld [vmem:[%s952_s1 + $0x10] sm:$0xf]  ;;  %v652_v37 = vld [vmem:[%s952_s1 + $0x14] sm:$0xf0]  ;;  %v651_v38 = vld [vmem:[%s952_s1 + $0x14] sm:$0xf] }
  0x11   :  { %337 = vmatpush.bf16.msra.mxu1 %v608_v23  ;;  %676 = vmatpush.bf16.msra.mxu3 %v608_v23  ;;  %v581_v39 = vld [vmem:[%s952_s1 + $0x18] sm:$0xf0]  ;;  %v580_v40 = vor.u32 %v652_v37, %v579_v36  ;;  %v571_v42 = vld [vmem:[%s952_s1] sm:$0xf]  ;;  %v650_v43 = vld [vmem:[%s952_s1 + $0x4] sm:$0xf0] }
  0x12   :  { %v584_v41 = vor.u32 %v651_v38, %v581_v39  ;;  %v649_v44 = vld [vmem:[%s952_s1 + $0x4] sm:$0xf]  ;;  %v573_v45 = vld [vmem:[%s952_s1 + $0x8] sm:$0xf0]  ;;  %v572_v46 = vor.u32 %v650_v43, %v571_v42  ;;  %v635_v52 = vld [vmem:[%s951_s0 + $0x10] sm:$0xff]  ;;  %s493_s29 = sshll.u32 %s954_s3, 4  ;;  %s494_s29 = int_to_ptr.hbm [resolvable:$true] %s493_s29 }
  0x13   :  { %v576_v47 = vor.u32 %v649_v44, %v573_v45  ;;  %v633_v48 = vld [vmem:[%s951_s0] sm:$0xff]  ;;  %v634_v50 = vld [vmem:[%s951_s0 + $0x8] sm:$0xff]  ;;  %v643_v53 = vld [vmem:[%s951_s0 + $0x50] sm:$0xff]  ;;  %s711_s30 = smov 256   ;;  %s712_s4 = smov 16  }
  0x14   :  { %249 = vmatpush.bf16.msra.mxu0 %v596_v28  ;;  %669 = vmatpush.bf16.msra.mxu2 %v596_v28  ;;  %v641_v49 = vld [vmem:[%s951_s0 + $0x40] sm:$0xff]  ;;  %v642_v51 = vld [vmem:[%s951_s0 + $0x48] sm:$0xff]  ;;  %v636_v54 = vld [vmem:[%s951_s0 + $0x18] sm:$0xff] }
  0x15   :  { %338 = vmatpush.bf16.msra.mxu1 %v600_v29  ;;  %677 = vmatpush.bf16.msra.mxu3 %v600_v29  ;;  %v644_v55 = vld [vmem:[%s951_s0 + $0x58] sm:$0xff]  ;;  %v637_v56 = vld [vmem:[%s951_s0 + $0x20] sm:$0xff]  ;;  %v638_v58 = vld [vmem:[%s951_s0 + $0x28] sm:$0xff] }
  0x16   :  { %v645_v57 = vld [vmem:[%s951_s0 + $0x60] sm:$0xff]  ;;  %v646_v59 = vld [vmem:[%s951_s0 + $0x68] sm:$0xff]  ;;  %v639_v60 = vld [vmem:[%s951_s0 + $0x30] sm:$0xff] }
  0x17   :  { %v647_v61 = vld [vmem:[%s951_s0 + $0x70] sm:$0xff]  ;;  %v640_v62 = vld [vmem:[%s951_s0 + $0x38] sm:$0xff]  ;;  %v63_v0 = vld [vmem:[%s953_s2] sm:$0x3] }
  0x18   :  { %250 = vmatpush.bf16.msra.mxu0 %v588_v34  ;;  %670 = vmatpush.bf16.msra.mxu2 %v588_v34  ;;  %v648_v63 = vld [vmem:[%s951_s0 + $0x78] sm:$0xff]  ;;  %v880_v1 = vperm.slane %v63_v0, 0  ;;  %v882_v2 = vperm.slane %v63_v0, 1  ;;  %s710_s0 = smov [#allocation2]  }
  0x19   :  { %339 = vmatpush.bf16.msra.mxu1 %v592_v35  ;;  %678 = vmatpush.bf16.msra.mxu3 %v592_v35  ;;  %s491_s2 = sshll.u32 %s710_s0, 4  ;;  %s492_s2 = int_to_ptr.vmem [resolvable:$true] %s491_s2 }
  0x1c   :  { %251 = vmatpush.bf16.msra.mxu0 %v580_v40  ;;  %671 = vmatpush.bf16.msra.mxu2 %v580_v40 }
  0x1d   :  { %340 = vmatpush.bf16.msra.mxu1 %v584_v41  ;;  %679 = vmatpush.bf16.msra.mxu3 %v584_v41 }
  0x20   :  { %252 = vmatpush.bf16.msra.mxu0 %v572_v46  ;;  %672 = vmatpush.bf16.msra.mxu2 %v572_v46 }
  0x21   :  { %341 = vmatpush.bf16.msra.mxu1 %v576_v47  ;;  %680 = vmatpush.bf16.msra.mxu3 %v576_v47 }
  0x23   :  { %253 = vmatmul.bf16.vlgmr.msra.gmra.mxu0 %v633_v48  ;;  %293 = vmatmul.bf16.vlgmr.msra.gmra.mxu2 %v641_v49 }
  0x24   :  { %342 = vmatmul.bf16.vlgmr.msra.gmra.mxu1 %v633_v48  ;;  %382 = vmatmul.bf16.vlgmr.msra.gmra.mxu3 %v641_v49 }
  0x33   :  { %258 = vmatmul.bf16.gmra.mxu0 %v634_v50  ;;  %298 = vmatmul.bf16.gmra.mxu2 %v642_v51 }
  0x34   :  { %347 = vmatmul.bf16.gmra.mxu1 %v634_v50  ;;  %387 = vmatmul.bf16.gmra.mxu3 %v642_v51 }
  0x43   :  { %263 = vmatmul.bf16.gmra.mxu0 %v635_v52  ;;  %303 = vmatmul.bf16.gmra.mxu2 %v643_v53 }
  0x44   :  { %352 = vmatmul.bf16.gmra.mxu1 %v635_v52  ;;  %392 = vmatmul.bf16.gmra.mxu3 %v643_v53 }
  0x53   :  { %268 = vmatmul.bf16.gmra.mxu0 %v636_v54  ;;  %308 = vmatmul.bf16.gmra.mxu2 %v644_v55 }
  0x54   :  { %357 = vmatmul.bf16.gmra.mxu1 %v636_v54  ;;  %397 = vmatmul.bf16.gmra.mxu3 %v644_v55 }
  0x63   :  { %273 = vmatmul.bf16.gmra.mxu0 %v637_v56  ;;  %313 = vmatmul.bf16.gmra.mxu2 %v645_v57 }
  0x64   :  { %362 = vmatmul.bf16.gmra.mxu1 %v637_v56  ;;  %402 = vmatmul.bf16.gmra.mxu3 %v645_v57 }
  0x73   :  { %278 = vmatmul.bf16.gmra.mxu0 %v638_v58  ;;  %318 = vmatmul.bf16.gmra.mxu2 %v646_v59 }
  0x74   :  { %367 = vmatmul.bf16.gmra.mxu1 %v638_v58  ;;  %407 = vmatmul.bf16.gmra.mxu3 %v646_v59 }
  0x83   :  { %283 = vmatmul.bf16.gmra.mxu0 %v639_v60  ;;  %323 = vmatmul.bf16.gmra.mxu2 %v647_v61 }
  0x84   :  { %372 = vmatmul.bf16.gmra.mxu1 %v639_v60  ;;  %412 = vmatmul.bf16.gmra.mxu3 %v647_v61 }
  0x93   :  { %288 = vmatmul.bf16.gmra.mxu0 %v640_v62  ;;  %328 = vmatmul.bf16.gmra.mxu2 %v648_v63 }
  0x94   :  { %377 = vmatmul.bf16.gmra.mxu1 %v640_v62  ;;  %417 = vmatmul.bf16.gmra.mxu3 %v648_v63 }
  0xa0   :  { %v254_v3 = vpop.f32.mrf.mxu0 }
  0xa1   :  { %v255_v4 = vadd.f32 %v254_v3, %v880_v1  ;;  %v343_v5 = vpop.f32.mrf.mxu1 }
  0xa2   :  { %v344_v6 = vadd.f32 %v343_v5, %v882_v2 }
  0xa3   :  { %423 = vst [vmem:[#allocation2] sm:$0xff] %v255_v4 }
  0xa4   :  { %424 = vst [vmem:[#allocation2 + $0x8] sm:$0xff] %v344_v6 }
  0xa6   :  { %v294_v7 = vpop.f32.mrf.mxu2 }
  0xa7   :  { %v295_v8 = vadd.f32 %v294_v7, %v880_v1  ;;  %v383_v9 = vpop.f32.mrf.mxu3 }
  0xa8   :  { %v384_v10 = vadd.f32 %v383_v9, %v882_v2  ;;  %v256_v11 = vpop.f32.mrf.mxu0 }
  0xa9   :  { %455 = vst [vmem:[#allocation2 + $0x100] sm:$0xff] %v295_v8  ;;  %v257_v12 = vadd.f32 %v256_v11, %v880_v1  ;;  %v345_v13 = vpop.f32.mrf.mxu1 }
  0xaa   :  { %456 = vst [vmem:[#allocation2 + $0x108] sm:$0xff] %v384_v10  ;;  %v346_v14 = vadd.f32 %v345_v13, %v882_v2 }
  0xab   :  { %425 = vst [vmem:[#allocation2 + $0x10] sm:$0xff] %v257_v12 }
  0xac   :  { %426 = vst [vmem:[#allocation2 + $0x18] sm:$0xff] %v346_v14 }
  0xae   :  { %v296_v15 = vpop.f32.mrf.mxu2 }
  0xaf   :  { %v297_v16 = vadd.f32 %v296_v15, %v880_v1  ;;  %v385_v17 = vpop.f32.mrf.mxu3 }
  0xb0   :  { %v386_v18 = vadd.f32 %v385_v17, %v882_v2  ;;  %v259_v19 = vpop.f32.mrf.mxu0 }
  0xb1   :  { %457 = vst [vmem:[#allocation2 + $0x110] sm:$0xff] %v297_v16  ;;  %v260_v20 = vadd.f32 %v259_v19, %v880_v1  ;;  %v348_v21 = vpop.f32.mrf.mxu1 }
  0xb2   :  { %458 = vst [vmem:[#allocation2 + $0x118] sm:$0xff] %v386_v18  ;;  %v349_v22 = vadd.f32 %v348_v21, %v882_v2 }
  0xb3   :  { %427 = vst [vmem:[#allocation2 + $0x20] sm:$0xff] %v260_v20 }
  0xb4   :  { %428 = vst [vmem:[#allocation2 + $0x28] sm:$0xff] %v349_v22 }
  0xb6   :  { %v299_v23 = vpop.f32.mrf.mxu2 }
  0xb7   :  { %v300_v24 = vadd.f32 %v299_v23, %v880_v1  ;;  %v388_v25 = vpop.f32.mrf.mxu3 }
  0xb8   :  { %v389_v26 = vadd.f32 %v388_v25, %v882_v2  ;;  %v261_v27 = vpop.f32.mrf.mxu0 }
  0xb9   :  { %459 = vst [vmem:[#allocation2 + $0x120] sm:$0xff] %v300_v24  ;;  %v262_v28 = vadd.f32 %v261_v27, %v880_v1  ;;  %v350_v29 = vpop.f32.mrf.mxu1 }
  0xba   :  { %460 = vst [vmem:[#allocation2 + $0x128] sm:$0xff] %v389_v26  ;;  %v351_v30 = vadd.f32 %v350_v29, %v882_v2 }
  0xbb   :  { %429 = vst [vmem:[#allocation2 + $0x30] sm:$0xff] %v262_v28 }
  0xbc   :  { %430 = vst [vmem:[#allocation2 + $0x38] sm:$0xff] %v351_v30 }
  0xbe   :  { %v301_v31 = vpop.f32.mrf.mxu2 }
  0xbf   :  { %v302_v32 = vadd.f32 %v301_v31, %v880_v1  ;;  %v390_v33 = vpop.f32.mrf.mxu3 }
  0xc0   :  { %v391_v34 = vadd.f32 %v390_v33, %v882_v2  ;;  %v264_v35 = vpop.f32.mrf.mxu0 }
  0xc1   :  { %461 = vst [vmem:[#allocation2 + $0x130] sm:$0xff] %v302_v32  ;;  %v265_v36 = vadd.f32 %v264_v35, %v880_v1  ;;  %v353_v37 = vpop.f32.mrf.mxu1 }
  0xc2   :  { %462 = vst [vmem:[#allocation2 + $0x138] sm:$0xff] %v391_v34  ;;  %v354_v38 = vadd.f32 %v353_v37, %v882_v2 }
  0xc3   :  { %431 = vst [vmem:[#allocation2 + $0x40] sm:$0xff] %v265_v36 }
  0xc4   :  { %432 = vst [vmem:[#allocation2 + $0x48] sm:$0xff] %v354_v38 }
  0xc6   :  { %v304_v39 = vpop.f32.mrf.mxu2 }
  0xc7   :  { %v305_v40 = vadd.f32 %v304_v39, %v880_v1  ;;  %v393_v41 = vpop.f32.mrf.mxu3 }
  0xc8   :  { %v394_v42 = vadd.f32 %v393_v41, %v882_v2  ;;  %v266_v43 = vpop.f32.mrf.mxu0 }
  0xc9   :  { %463 = vst [vmem:[#allocation2 + $0x140] sm:$0xff] %v305_v40  ;;  %v267_v44 = vadd.f32 %v266_v43, %v880_v1  ;;  %v355_v45 = vpop.f32.mrf.mxu1 }
  0xca   :  { %464 = vst [vmem:[#allocation2 + $0x148] sm:$0xff] %v394_v42  ;;  %v356_v46 = vadd.f32 %v355_v45, %v882_v2 }
  0xcb   :  { %433 = vst [vmem:[#allocation2 + $0x50] sm:$0xff] %v267_v44 }
  0xcc   :  { %434 = vst [vmem:[#allocation2 + $0x58] sm:$0xff] %v356_v46 }
  0xce   :  { %v306_v47 = vpop.f32.mrf.mxu2 }
  0xcf   :  { %v307_v48 = vadd.f32 %v306_v47, %v880_v1  ;;  %v395_v49 = vpop.f32.mrf.mxu3 }
  0xd0   :  { %v396_v50 = vadd.f32 %v395_v49, %v882_v2  ;;  %v269_v51 = vpop.f32.mrf.mxu0 }
  0xd1   :  { %465 = vst [vmem:[#allocation2 + $0x150] sm:$0xff] %v307_v48  ;;  %v270_v52 = vadd.f32 %v269_v51, %v880_v1  ;;  %v358_v53 = vpop.f32.mrf.mxu1 }
  0xd2   :  { %466 = vst [vmem:[#allocation2 + $0x158] sm:$0xff] %v396_v50  ;;  %v359_v54 = vadd.f32 %v358_v53, %v882_v2 }
  0xd3   :  { %435 = vst [vmem:[#allocation2 + $0x60] sm:$0xff] %v270_v52 }
  0xd4   :  { %436 = vst [vmem:[#allocation2 + $0x68] sm:$0xff] %v359_v54 }
  0xd6   :  { %v309_v55 = vpop.f32.mrf.mxu2 }
  0xd7   :  { %v310_v56 = vadd.f32 %v309_v55, %v880_v1  ;;  %v398_v57 = vpop.f32.mrf.mxu3 }
  0xd8   :  { %v399_v58 = vadd.f32 %v398_v57, %v882_v2  ;;  %v271_v59 = vpop.f32.mrf.mxu0 }
  0xd9   :  { %467 = vst [vmem:[#allocation2 + $0x160] sm:$0xff] %v310_v56  ;;  %v272_v60 = vadd.f32 %v271_v59, %v880_v1  ;;  %v360_v61 = vpop.f32.mrf.mxu1 }
  0xda   :  { %468 = vst [vmem:[#allocation2 + $0x168] sm:$0xff] %v399_v58  ;;  %v361_v62 = vadd.f32 %v360_v61, %v882_v2 }
  0xdb   :  { %437 = vst [vmem:[#allocation2 + $0x70] sm:$0xff] %v272_v60 }
  0xdc   :  { %438 = vst [vmem:[#allocation2 + $0x78] sm:$0xff] %v361_v62 }
  0xde   :  { %v311_v63 = vpop.f32.mrf.mxu2 }
  0xdf   :  { %v312_v0 = vadd.f32 %v311_v63, %v880_v1  ;;  %v400_v3 = vpop.f32.mrf.mxu3 }
  0xe0   :  { %v401_v4 = vadd.f32 %v400_v3, %v882_v2  ;;  %v274_v5 = vpop.f32.mrf.mxu0 }
  0xe1   :  { %469 = vst [vmem:[#allocation2 + $0x170] sm:$0xff] %v312_v0  ;;  %v275_v6 = vadd.f32 %v274_v5, %v880_v1  ;;  %v363_v7 = vpop.f32.mrf.mxu1 }
  0xe2   :  { %470 = vst [vmem:[#allocation2 + $0x178] sm:$0xff] %v401_v4  ;;  %v364_v8 = vadd.f32 %v363_v7, %v882_v2 }
  0xe3   :  { %439 = vst [vmem:[#allocation2 + $0x80] sm:$0xff] %v275_v6 }
  0xe4   :  { %440 = vst [vmem:[#allocation2 + $0x88] sm:$0xff] %v364_v8 }
  0xe6   :  { %v314_v9 = vpop.f32.mrf.mxu2 }
  0xe7   :  { %v315_v10 = vadd.f32 %v314_v9, %v880_v1  ;;  %v403_v11 = vpop.f32.mrf.mxu3 }
  0xe8   :  { %v404_v12 = vadd.f32 %v403_v11, %v882_v2  ;;  %v276_v13 = vpop.f32.mrf.mxu0 }
  0xe9   :  { %471 = vst [vmem:[#allocation2 + $0x180] sm:$0xff] %v315_v10  ;;  %v277_v14 = vadd.f32 %v276_v13, %v880_v1  ;;  %v365_v15 = vpop.f32.mrf.mxu1 }
  0xea   :  { %472 = vst [vmem:[#allocation2 + $0x188] sm:$0xff] %v404_v12  ;;  %v366_v16 = vadd.f32 %v365_v15, %v882_v2 }
  0xeb   :  { %441 = vst [vmem:[#allocation2 + $0x90] sm:$0xff] %v277_v14 }
  0xec   :  { %442 = vst [vmem:[#allocation2 + $0x98] sm:$0xff] %v366_v16 }
  0xee   :  { %v316_v17 = vpop.f32.mrf.mxu2 }
  0xef   :  { %v317_v18 = vadd.f32 %v316_v17, %v880_v1  ;;  %v405_v19 = vpop.f32.mrf.mxu3 }
  0xf0   :  { %v406_v20 = vadd.f32 %v405_v19, %v882_v2  ;;  %v279_v21 = vpop.f32.mrf.mxu0 }
  0xf1   :  { %473 = vst [vmem:[#allocation2 + $0x190] sm:$0xff] %v317_v18  ;;  %v280_v22 = vadd.f32 %v279_v21, %v880_v1  ;;  %v368_v23 = vpop.f32.mrf.mxu1 }
  0xf2   :  { %474 = vst [vmem:[#allocation2 + $0x198] sm:$0xff] %v406_v20  ;;  %v369_v24 = vadd.f32 %v368_v23, %v882_v2 }
  0xf3   :  { %443 = vst [vmem:[#allocation2 + $0xa0] sm:$0xff] %v280_v22 }
  0xf4   :  { %444 = vst [vmem:[#allocation2 + $0xa8] sm:$0xff] %v369_v24 }
  0xf6   :  { %v319_v25 = vpop.f32.mrf.mxu2 }
  0xf7   :  { %v320_v26 = vadd.f32 %v319_v25, %v880_v1  ;;  %v408_v27 = vpop.f32.mrf.mxu3 }
  0xf8   :  { %v409_v28 = vadd.f32 %v408_v27, %v882_v2  ;;  %v281_v29 = vpop.f32.mrf.mxu0 }
  0xf9   :  { %475 = vst [vmem:[#allocation2 + $0x1a0] sm:$0xff] %v320_v26  ;;  %v282_v30 = vadd.f32 %v281_v29, %v880_v1  ;;  %v370_v31 = vpop.f32.mrf.mxu1 }
  0xfa   :  { %476 = vst [vmem:[#allocation2 + $0x1a8] sm:$0xff] %v409_v28  ;;  %v371_v32 = vadd.f32 %v370_v31, %v882_v2 }
  0xfb   :  { %445 = vst [vmem:[#allocation2 + $0xb0] sm:$0xff] %v282_v30 }
  0xfc   :  { %446 = vst [vmem:[#allocation2 + $0xb8] sm:$0xff] %v371_v32 }
  0xfe   :  { %v321_v33 = vpop.f32.mrf.mxu2 }
  0xff   :  { %v322_v34 = vadd.f32 %v321_v33, %v880_v1  ;;  %v410_v35 = vpop.f32.mrf.mxu3 }
 0x100   :  { %v411_v36 = vadd.f32 %v410_v35, %v882_v2  ;;  %v284_v37 = vpop.f32.mrf.mxu0 }
 0x101   :  { %477 = vst [vmem:[#allocation2 + $0x1b0] sm:$0xff] %v322_v34  ;;  %v285_v38 = vadd.f32 %v284_v37, %v880_v1  ;;  %v373_v39 = vpop.f32.mrf.mxu1 }
 0x102   :  { %478 = vst [vmem:[#allocation2 + $0x1b8] sm:$0xff] %v411_v36  ;;  %v374_v40 = vadd.f32 %v373_v39, %v882_v2 }
 0x103   :  { %447 = vst [vmem:[#allocation2 + $0xc0] sm:$0xff] %v285_v38 }
 0x104   :  { %448 = vst [vmem:[#allocation2 + $0xc8] sm:$0xff] %v374_v40 }
 0x106   :  { %v324_v41 = vpop.f32.mrf.mxu2 }
 0x107   :  { %v325_v42 = vadd.f32 %v324_v41, %v880_v1  ;;  %v413_v43 = vpop.f32.mrf.mxu3 }
 0x108   :  { %v414_v44 = vadd.f32 %v413_v43, %v882_v2  ;;  %v286_v45 = vpop.f32.mrf.mxu0 }
 0x109   :  { %479 = vst [vmem:[#allocation2 + $0x1c0] sm:$0xff] %v325_v42  ;;  %v287_v46 = vadd.f32 %v286_v45, %v880_v1  ;;  %v375_v47 = vpop.f32.mrf.mxu1 }
 0x10a   :  { %480 = vst [vmem:[#allocation2 + $0x1c8] sm:$0xff] %v414_v44  ;;  %v376_v48 = vadd.f32 %v375_v47, %v882_v2 }
 0x10b   :  { %449 = vst [vmem:[#allocation2 + $0xd0] sm:$0xff] %v287_v46 }
 0x10c   :  { %450 = vst [vmem:[#allocation2 + $0xd8] sm:$0xff] %v376_v48 }
 0x10e   :  { %v326_v49 = vpop.f32.mrf.mxu2 }
 0x10f   :  { %v327_v50 = vadd.f32 %v326_v49, %v880_v1  ;;  %v415_v51 = vpop.f32.mrf.mxu3 }
 0x110   :  { %v416_v52 = vadd.f32 %v415_v51, %v882_v2  ;;  %v289_v53 = vpop.f32.mrf.mxu0 }
 0x111   :  { %481 = vst [vmem:[#allocation2 + $0x1d0] sm:$0xff] %v327_v50  ;;  %v290_v54 = vadd.f32 %v289_v53, %v880_v1  ;;  %v378_v55 = vpop.f32.mrf.mxu1 }
 0x112   :  { %482 = vst [vmem:[#allocation2 + $0x1d8] sm:$0xff] %v416_v52  ;;  %v379_v56 = vadd.f32 %v378_v55, %v882_v2 }
 0x113   :  { %451 = vst [vmem:[#allocation2 + $0xe0] sm:$0xff] %v290_v54 }
 0x114   :  { %452 = vst [vmem:[#allocation2 + $0xe8] sm:$0xff] %v379_v56 }
 0x116   :  { %v329_v57 = vpop.f32.mrf.mxu2 }
 0x117   :  { %v330_v58 = vadd.f32 %v329_v57, %v880_v1  ;;  %v418_v59 = vpop.f32.mrf.mxu3 }
 0x118   :  { %v419_v60 = vadd.f32 %v418_v59, %v882_v2  ;;  %v291_v61 = vpop.f32.mrf.mxu0 }
 0x119   :  { %483 = vst [vmem:[#allocation2 + $0x1e0] sm:$0xff] %v330_v58  ;;  %v292_v62 = vadd.f32 %v291_v61, %v880_v1  ;;  %v380_v63 = vpop.f32.mrf.mxu1 }
 0x11a   :  { %484 = vst [vmem:[#allocation2 + $0x1e8] sm:$0xff] %v419_v60  ;;  %v381_v0 = vadd.f32 %v380_v63, %v882_v2 }
 0x11b   :  { %453 = vst [vmem:[#allocation2 + $0xf0] sm:$0xff] %v292_v62 }
 0x11c   :  { %454 = vst [vmem:[#allocation2 + $0xf8] sm:$0xff] %v381_v0 }
 0x11e   :  { %v331_v3 = vpop.f32.mrf.mxu2 }
 0x11f   :  { %v332_v4 = vadd.f32 %v331_v3, %v880_v1  ;;  %v420_v5 = vpop.f32.mrf.mxu3 }
 0x120   :  { %v421_v6 = vadd.f32 %v420_v5, %v882_v2 }
 0x121   :  { %485 = vst [vmem:[#allocation2 + $0x1f0] sm:$0xff] %v332_v4 }
 0x122   :  { %486 = vst [vmem:[#allocation2 + $0x1f8] sm:$0xff] %v421_v6 }
 0x123   :  { %499 = dma.vmem_to_hbm [thread:$0]  %s492_s2, 8192, %s494_s29, [#allocation3], %s711_s30, %s711_s30, %s712_s4  }
 0x124   :  { %708 = dma.done.wait [#allocation3], 8192  }
 0x125   :  { %709 = vsyncadd [#allocation3], 4294959104 }
 0x126   :  { %504 = vsyncpa [#allocation3], 1 }

// kernel: encoder_decoder_forward.8
= control target key start
LH: loop header
LB: loop body
LE: loop exit
PB: predicated region body
PF: predicated region fallthrough
CT: control target
= control target key end

     0   :  { %s4855_s21 = smov 0   ;;  %s4857_s22 = smov 0   ;;  %s7010_s0 = inlined_call_operand.vmem [shape: bf16[32,16,128], index: 0, kind: input, shape index: {}]   ;;  %s7011_s1 = inlined_call_operand.vmem [shape: bf16[32,16,128], index: 1, kind: input, shape index: {}]   ;;  %s7012_s2 = inlined_call_operand.vmem [shape: f32[8,32,512], index: 2, kind: input, shape index: {}]   ;;  %s7013_s3 = inlined_call_operand.vmem [shape: bf16[128,640], index: 3, kind: input, shape index: {}]   ;;  %s7014_s4 = inlined_call_operand.vmem [shape: f32[1,128], index: 4, kind: input, shape index: {}]   ;;  %s7015_s5 = inlined_call_operand.vmem [shape: f32[1,128], index: 5, kind: input, shape index: {}]   ;;  %s7016_s6 = inlined_call_operand.vmem [shape: bf16[128,128], index: 6, kind: input, shape index: {}]   ;;  %s7017_s7 = inlined_call_operand.vmem [shape: f32[1,128], index: 7, kind: input, shape index: {}]   ;;  %s7018_s8 = inlined_call_operand.vmem [shape: bf16[128,128], index: 8, kind: input, shape index: {}]   ;;  %s7019_s9 = inlined_call_operand.vmem [shape: f32[1,128], index: 9, kind: input, shape index: {}]   ;;  %s7020_s10 = inlined_call_operand.vmem [shape: bf16[128,512], index: 10, kind: input, shape index: {}]   ;;  %s7021_s11 = inlined_call_operand.vmem [shape: bf16[8,32,128], index: 11, kind: output, shape index: {0}]   ;;  %s7022_s12 = inlined_call_operand.vmem [shape: f32[8,32,128], index: 12, kind: output, shape index: {1}]  }
   0x1   :  { %s4859_s23 = smov 0   ;;  %s4861_s24 = smov 0  }
   0x2   :  { %s4863_s25 = smov 0  }
   0x3 LB: > { %s32_s26 = sadd.s32 1, %s4778_s23  ;;  %s35_s27 = sadd.s32 1, %s4782_s24  ;;  %s4786_s25 = sphi %s4863_s25, %s23_s25   ;;  %s4782_s24 = sphi %s4861_s24, %s7280_s24   ;;  %s4778_s23 = sphi %s4859_s23, %s7279_s23   ;;  %s4774_s22 = sphi %s4857_s22, %s7278_s22   ;;  %s4770_s21 = sphi %s4855_s21, %s7277_s21  }
   0x4   : > { %p33_p0 = scmp.ge.s32.totalorder %s32_s26, 8  ;;  %p3825_p1 = scmp.ge.s32.totalorder %s4786_s25, 1 }
   0x5   : > { %p413_p2 = scmp.lt.s32.totalorder %s4786_s25, 17 }
   0x6   : > { %s7282_s26 = smov (%p33_p0, %s32_s26), 0  ;;  %s7284_s27 = smov (!%p33_p0, %s35_s27), %s4782_s24 }
   0x7   : > { %p414_p3 = pnand %p3825_p1, %p413_p2  ;;  %p37_p4 = scmp.ge.s32.totalorder %s7284_s27, 2 }
   0x9   : > { %s7286_s27 = smov (%p37_p4, %s7284_s27), 0  ;;  %417 = sbr.rel (%p414_p3) target bundleno = 1571 (0x623), region = 64 }
   0xe   : > { %s3826_s28 = sshll.u32 %s4774_s22, 4  ;;  %s3832_s29 = sshll.u32 %s4774_s22, 1 }
   0xf   : > { %p486_p5 = scmp.lt.s32.totalorder %s3826_s28, 31  ;;  %p500_p6 = scmp.lt.s32.totalorder %s4770_s21, 7 }
  0x10   : > { %p502_p7 = scmp.lt.s32.totalorder %s3832_s29, 3  ;;  %p3842_p8 = scmp.ne.s32.totalorder %s4770_s21, 0 }
  0x11   : > { %s7288_s28 = smov (!%p486_p5, %s3826_s28), 31 }
  0x12   : > { %s501_s30 = scalar_select %p500_p6, %s4770_s21, 7 }
  0x13   : > { %s7023_s13 = sshll.u32 %s7288_s28, 3  ;;  %s7290_s29 = smov (!%p502_p7, %s3832_s29), 3 }
  0x14   : > { %s4897_s16 = scalar_lea.vmem %s7010_s0, %s7023_s13  ;;  %s3834_s17 = sshll.u32 %s501_s30, 4 }
  0x15   : > { %v4900_v0 = vld [vmem:[%s4897_s16] sm:$0xff]   ;;  %s3837_s18 = sshll.u32 %s501_s30, 2  ;;  %v4909_v3 = vld [vmem:[%s4897_s16 + $0x8] sm:$0xff]   ;;  %v4915_v5 = vld [vmem:[%s4897_s16 + $0x10] sm:$0xff]   ;;  %s3833_s19 = sshll.u32 %s7290_s29, 2 }
  0x16   : > { %v4903_v1 = vld [vmem:[%s4897_s16] sm:$0xf]  ;;  %v4906_v2 = vld [vmem:[%s4897_s16] sm:$0xf0]  ;;  %v4912_v4 = vld [vmem:[%s4897_s16 + $0x8] sm:$0xf]  ;;  %s516_s20 = sadd.s32 %s3837_s18, %s7290_s29  ;;  %s506_s22 = sadd.s32 %s3834_s17, %s3833_s19 }
  0x17   : > { %7048 = vst [vmem:[#allocation4_spill] sm:$0xff] %v4903_v1  ;;  %v4918_v6 = vld [vmem:[%s4897_s16 + $0x8] sm:$0xf0]  ;;  %v4921_v7 = vld [vmem:[%s4897_s16 + $0x10] sm:$0xf]  ;;  %v4924_v8 = vld [vmem:[%s4897_s16 + $0x18] sm:$0xff]  }
  0x18   : > { %7049 = vst [vmem:[#allocation5_spill] sm:$0xff] %v4906_v2  ;;  %s3838_s30 = sshll.u32 %s516_s20, 2  ;;  %v4927_v9 = vld [vmem:[%s4897_s16 + $0x10] sm:$0xf0]  ;;  %v4930_v10 = vld [vmem:[%s4897_s16 + $0x18] sm:$0xf] }
  0x19   : > { %7050 = vst [vmem:[#allocation6_spill] sm:$0xff] %v4912_v4  ;;  %v4933_v11 = vld [vmem:[%s4897_s16 + $0x20] sm:$0xff]   ;;  %s3835_s29 = sshll.u32 %s506_s22, 3  ;;  %s4938_s18 = scalar_lea.vmem %s7021_s11, %s3838_s30  ;;  %v4941_v12 = vld [vmem:[%s4897_s16 + $0x18] sm:$0xf0]  ;;  %v4947_v14 = vld [vmem:[%s4897_s16 + $0x28] sm:$0xff]  }
  0x1a   : > { %7051 = vst [vmem:[#allocation7_spill] sm:$0xff] %v4918_v6  ;;  %v4944_v13 = vld [vmem:[%s4897_s16 + $0x20] sm:$0xf]  ;;  %s4952_s22 = scalar_lea.vmem %s7012_s2, %s3835_s29  ;;  %s3841_s14 = sshll.u32 %s516_s20, 3  ;;  %v4955_v15 = vld [vmem:[%s4897_s16 + $0x20] sm:$0xf0] }
  0x1b   : > { %7052 = vst [vmem:[#allocation8_spill] sm:$0xff] %v4921_v7  ;;  %v4958_v16 = vld [vmem:[%s4897_s16 + $0x28] sm:$0xf]  ;;  %v4961_v17 = vld [vmem:[%s4897_s16 + $0x30] sm:$0xff]   ;;  %s4966_s13 = scalar_lea.vmem %s7022_s12, %s3841_s14  ;;  %v4969_v18 = vld [vmem:[%s4897_s16 + $0x28] sm:$0xf0] }
  0x1c   : > { %7053 = vst [vmem:[#allocation9_spill] sm:$0xff] %v4927_v9  ;;  %v4972_v19 = vld [vmem:[%s4897_s16 + $0x30] sm:$0xf]  ;;  %v4975_v20 = vld [vmem:[%s4897_s16 + $0x30] sm:$0xf0]  ;;  %v4978_v21 = vld [vmem:[%s4897_s16 + $0x38] sm:$0xff]  }
  0x1d   : > { %7054 = vst [vmem:[#allocation10_spill] sm:$0xff] %v4930_v10  ;;  %v4981_v22 = vld [vmem:[%s4897_s16 + $0x38] sm:$0xf]  ;;  %v4984_v23 = vld [vmem:[%s4897_s16 + $0x38] sm:$0xf0]  ;;  %v4987_v24 = vld [vmem:[%s4897_s16 + $0x40] sm:$0xff]  }
  0x1e   : > { %7055 = vst [vmem:[#allocation11_spill] sm:$0xff] %v4941_v12  ;;  %v4990_v25 = vld [vmem:[%s4897_s16 + $0x40] sm:$0xf]  ;;  %v4993_v26 = vld [vmem:[%s4897_s16 + $0x40] sm:$0xf0]  ;;  %v4996_v27 = vld [vmem:[%s4897_s16 + $0x48] sm:$0xff]  }
  0x1f   : > { %7056 = vst [vmem:[#allocation12_spill] sm:$0xff] %v4944_v13  ;;  %v4999_v28 = vld [vmem:[%s4897_s16 + $0x48] sm:$0xf]  ;;  %v5002_v29 = vld [vmem:[%s4897_s16 + $0x48] sm:$0xf0]  ;;  %v5005_v30 = vld [vmem:[%s4897_s16 + $0x50] sm:$0xff]  }
  0x20   : > { %7057 = vst [vmem:[#allocation13_spill] sm:$0xff] %v4955_v15  ;;  %v5008_v31 = vld [vmem:[%s4897_s16 + $0x50] sm:$0xf]  ;;  %v5011_v32 = vld [vmem:[%s4897_s16 + $0x50] sm:$0xf0]  ;;  %v5014_v33 = vld [vmem:[%s4897_s16 + $0x58] sm:$0xff]  }
  0x21   : > { %7058 = vst [vmem:[#allocation14_spill] sm:$0xff] %v4958_v16  ;;  %v5017_v34 = vld [vmem:[%s4897_s16 + $0x58] sm:$0xf]  ;;  %v5020_v35 = vld [vmem:[%s4897_s16 + $0x58] sm:$0xf0]  ;;  %v5023_v36 = vld [vmem:[%s4897_s16 + $0x60] sm:$0xff]  }
  0x22   : > { %7059 = vst [vmem:[#allocation15_spill] sm:$0xff] %v4969_v18  ;;  %v5026_v37 = vld [vmem:[%s4897_s16 + $0x60] sm:$0xf]  ;;  %v5029_v38 = vld [vmem:[%s4897_s16 + $0x60] sm:$0xf0]  ;;  %s7074_s20 = sshll.u32 %s7288_s28, 3 }
  0x23   : > { %7060 = vst [vmem:[#allocation16_spill] sm:$0xff] %v4972_v19  ;;  %s5036_s19 = scalar_lea.vmem %s7011_s1, %s7074_s20  ;;  %v5039_v39 = vld [vmem:[%s4897_s16 + $0x68] sm:$0xff]   ;;  %v5048_v42 = vld [vmem:[%s4897_s16 + $0x70] sm:$0xff]   ;;  %v5057_v45 = vld [vmem:[%s4897_s16 + $0x78] sm:$0xff]  }
  0x24   : > { %7061 = vst [vmem:[#allocation17_spill] sm:$0xff] %v4975_v20  ;;  %v5042_v40 = vld [vmem:[%s4897_s16 + $0x68] sm:$0xf]  ;;  %v5045_v41 = vld [vmem:[%s4897_s16 + $0x68] sm:$0xf0]  ;;  %v5066_v48 = vld [vmem:[%s5036_s19] sm:$0xff]  }
  0x25   : > { %7062 = vst [vmem:[#allocation18_spill] sm:$0xff] %v4981_v22  ;;  %v5051_v43 = vld [vmem:[%s4897_s16 + $0x70] sm:$0xf]  ;;  %v5054_v44 = vld [vmem:[%s4897_s16 + $0x70] sm:$0xf0]  ;;  %v5069_v49 = vld [vmem:[%s5036_s19 + $0x8] sm:$0xff]  }
  0x26   : > { %7063 = vst [vmem:[#allocation19_spill] sm:$0xff] %v4984_v23  ;;  %v5060_v46 = vld [vmem:[%s4897_s16 + $0x78] sm:$0xf]  ;;  %v5063_v47 = vld [vmem:[%s4897_s16 + $0x78] sm:$0xf0]  ;;  %v5072_v50 = vld [vmem:[%s5036_s19 + $0x10] sm:$0xff]  }
  0x27   : > { %7064 = vst [vmem:[#allocation20_spill] sm:$0xff] %v4990_v25  ;;  %v5079_v55 = vld [vmem:[%s5036_s19 + $0x18] sm:$0xff]   ;;  %v5082_v56 = vld [vmem:[%s5036_s19 + $0x20] sm:$0xff]   ;;  %v5085_v57 = vld [vmem:[%s5036_s19 + $0x28] sm:$0xff]  }
  0x28   : > { %7065 = vst [vmem:[#allocation21_spill] sm:$0xff] %v4993_v26  ;;  %v5092_v62 = vld [vmem:[%s5036_s19 + $0x30] sm:$0xff]   ;;  %v5095_v63 = vld [vmem:[%s5036_s19 + $0x38] sm:$0xff]   ;;  %v5098_v54 = vld [vmem:[%s5036_s19 + $0x40] sm:$0xff]  }
  0x29   : > { %7066 = vst [vmem:[#allocation22_spill] sm:$0xff] %v4999_v28  ;;  %v5105_v59 = vld [vmem:[%s5036_s19 + $0x48] sm:$0xff]   ;;  %v5108_v61 = vld [vmem:[%s5036_s19 + $0x50] sm:$0xff]   ;;  %v5111_v51 = vld [vmem:[%s5036_s19 + $0x58] sm:$0xff]  }
  0x2a   : > { %7067 = vst [vmem:[#allocation23_spill] sm:$0xff] %v5002_v29  ;;  %v5121_v58 = vld [vmem:[%s5036_s19 + $0x68] sm:$0xff]  }
  0x2b   : > { %7068 = vst [vmem:[#allocation24_spill] sm:$0xff] %v5008_v31 }
  0x2c   : > { %7069 = vst [vmem:[#allocation25_spill] sm:$0xff] %v5011_v32 }
  0x2d   : > { %7070 = vst [vmem:[#allocation26_spill] sm:$0xff] %v5017_v34 }
  0x2e   : > { %7071 = vst [vmem:[#allocation27_spill] sm:$0xff] %v5020_v35 }
  0x2f   : > { %7072 = vst [vmem:[#allocation28_spill] sm:$0xff] %v5026_v37 }
  0x30   : > { %7073 = vst [vmem:[#allocation29_spill] sm:$0xff] %v5029_v38  ;;  %v5128_v38 = vld [vmem:[%s5036_s19 + $0x70] sm:$0xff]  }
  0x31   : > { %7075 = vst [vmem:[#allocation30_spill] sm:$0xff] %v5042_v40 }
  0x32   : > { %7076 = vst [vmem:[#allocation31_spill] sm:$0xff] %v5045_v41  ;;  %598 = sbr.rel (%p3842_p8) target bundleno = 256 (0x100), region = 68 }
  0x33   : > { %7077 = vst [vmem:[#allocation32_spill] sm:$0xff] %v5051_v43 }
  0x34   : > { %7078 = vst [vmem:[#allocation33_spill] sm:$0xff] %v5054_v44  ;;  %v5118_v44 = vld [vmem:[%s5036_s19 + $0x60] sm:$0xff]  }
  0x35   : > { %7079 = vst [vmem:[#allocation34_spill] sm:$0xff] %v5060_v46 }
  0x36   : > { %7080 = vst [vmem:[#allocation35_spill] sm:$0xff] %v5063_v47  ;;  %v5131_v47 = vld [vmem:[%s5036_s19 + $0x78] sm:$0xff]  }
  0x37   : > { %v4340_v60 = vld [vmem:[%s7016_s6 + $0x38] sm:$0xff]  ;;  %v4339_v35 = vld [vmem:[%s7016_s6 + $0x30] sm:$0xff]  ;;  %v4338_v46 = vld [vmem:[%s7016_s6 + $0x28] sm:$0xff]  ;;  %v601_v40 = vunpack.c.l.bf16 %v4909_v3  ;;  %v602_v41 = vunpack.c.h.bf16 %v4909_v3  ;;  %v603_v52 = vunpack.c.l.bf16 %v4915_v5  ;;  %v606_v37 = vunpack.c.h.bf16 %v4924_v8 }
  0x38   : > { %v4348_v43 = vld [vmem:[%s7018_s8 + $0x38] sm:$0xff]  ;;  %905 = vmatpush.bf16.msra.mxu0 %v4340_v60  ;;  %v4347_v53 = vld [vmem:[%s7018_s8 + $0x30] sm:$0xff]  ;;  %v4346_v34 = vld [vmem:[%s7018_s8 + $0x28] sm:$0xff]  ;;  %v607_v32 = vunpack.c.l.bf16 %v4933_v11  ;;  %v608_v31 = vunpack.c.h.bf16 %v4933_v11  ;;  %v609_v29 = vunpack.c.l.bf16 %v4947_v14  ;;  %v611_v28 = vunpack.c.l.bf16 %v4961_v17 }
  0x39   : > { %989 = vmatpush.bf16.msra.mxu1 %v4348_v43  ;;  %v4337_v43 = vld [vmem:[%s7016_s6 + $0x20] sm:$0xff]  ;;  %v612_v3 = vunpack.c.h.bf16 %v4961_v17  ;;  %v613_v11 = vunpack.c.l.bf16 %v4978_v21  ;;  %v614_v26 = vunpack.c.h.bf16 %v4978_v21  ;;  %v616_v25 = vunpack.c.h.bf16 %v4987_v24 }
  0x3a   : > { %v4345_v60 = vld [vmem:[%s7018_s8 + $0x20] sm:$0xff]  ;;  %v617_v17 = vunpack.c.l.bf16 %v4996_v27  ;;  %v620_v23 = vunpack.c.h.bf16 %v5005_v30  ;;  %v621_v22 = vunpack.c.l.bf16 %v5014_v33  ;;  %v622_v20 = vunpack.c.h.bf16 %v5014_v33 }
  0x3b   : > { %v638_v15 = vadd.f32 %v602_v41, %v601_v40  ;;  %v623_v21 = vunpack.c.l.bf16 %v5023_v36  ;;  %v659_v16 = vadd.f32 %v608_v31, %v607_v32  ;;  %v625_v33 = vunpack.c.l.bf16 %v5039_v39 }
  0x3c   : > { %906 = vmatpush.bf16.msra.mxu0 %v4339_v35  ;;  %v4336_v35 = vld [vmem:[%s7016_s6 + $0x18] sm:$0xff]  ;;  %v626_v40 = vunpack.c.h.bf16 %v5039_v39  ;;  %v627_v41 = vunpack.c.l.bf16 %v5048_v42  ;;  %v628_v31 = vunpack.c.h.bf16 %v5048_v42  ;;  %v4333_v39 = vld [vmem:[%s7016_s6] sm:$0xff]  ;;  %v708_v42 = vadd.f32 %v622_v20, %v621_v22 }
  0x3d   : > { %990 = vmatpush.bf16.msra.mxu1 %v4347_v53  ;;  %v4344_v53 = vld [vmem:[%s7018_s8 + $0x18] sm:$0xff]  ;;  %vm834_vm1 = vcmask 1041409   ;;  %vm836_vm2 = vcmask 1042434   ;;  %vm838_vm3 = vcmask 1043459   ;;  %vm840_vm4 = vcmask 1044484  }
  0x3e   : > { %vm842_vm5 = vcmask 1045509   ;;  %vm844_vm6 = vcmask 1046534   ;;  %vm846_vm7 = vcmask 1047559  }
  0x40   : > { %907 = vmatpush.bf16.msra.mxu0 %v4338_v46  ;;  %v600_v46 = vunpack.c.h.bf16 %v4900_v0 }
  0x41   : > { %991 = vmatpush.bf16.msra.mxu1 %v4346_v34  ;;  %v599_v34 = vunpack.c.l.bf16 %v4900_v0  ;;  %v610_v0 = vunpack.c.h.bf16 %v4947_v14  ;;  %v615_v14 = vunpack.c.l.bf16 %v4987_v24  ;;  %v4334_v24 = vld [vmem:[%s7016_s6 + $0x8] sm:$0xff] }
  0x43   : > { %v631_v19 = vadd.f32 %v600_v46, %v599_v34  ;;  %v666_v32 = vadd.f32 %v610_v0, %v609_v29  ;;  %v629_v34 = vunpack.c.l.bf16 %v5057_v45  ;;  %v630_v46 = vunpack.c.h.bf16 %v5057_v45 }
  0x44   : > { %908 = vmatpush.bf16.msra.mxu0 %v4337_v43  ;;  %v604_v43 = vunpack.c.h.bf16 %v4915_v5  ;;  %v4335_v5 = vld [vmem:[%s7016_s6 + $0x10] sm:$0xff]  ;;  %v687_v12 = vadd.f32 %v616_v25, %v615_v14  ;;  %v722_v25 = vadd.f32 %v626_v40, %v625_v33  ;;  %v729_v14 = vadd.f32 %v628_v31, %v627_v41 }
  0x45   : > { %992 = vmatpush.bf16.msra.mxu1 %v4345_v60  ;;  %v605_v60 = vunpack.c.l.bf16 %v4924_v8  ;;  %v4343_v8 = vld [vmem:[%s7018_s8 + $0x10] sm:$0xff]  ;;  %v667_v45 = vrot.slane %v666_v32, 4  ;;  %v736_v6 = vadd.f32 %v630_v46, %v629_v34 }
  0x46   : > { %v645_v13 = vadd.f32 %v604_v43, %v603_v52  ;;  %v680_v52 = vadd.f32 %v614_v26, %v613_v11  ;;  %v632_v43 = vrot.slane %v631_v19, 4  ;;  %v4341_v26 = vld [vmem:[%s7018_s8] sm:$0xff]  ;;  %v688_v4 = vrot.slane %v687_v12, 4 }
  0x47   : > { %v652_v18 = vadd.f32 %v606_v37, %v605_v60  ;;  %v673_v37 = vadd.f32 %v612_v3, %v611_v28  ;;  %v639_v60 = vrot.slane %v638_v15, 4 }
  0x48   : > { %909 = vmatpush.bf16.msra.mxu0 %v4336_v35  ;;  %v618_v35 = vunpack.c.h.bf16 %v4996_v27  ;;  %v4342_v27 = vld [vmem:[%s7018_s8 + $0x8] sm:$0xff]  ;;  %v681_v3 = vrot.slane %v680_v52, 4  ;;  %v633_v10 = vadd.f32 %v632_v43, %v631_v19  ;;  %v723_v19 = vrot.slane %v722_v25, 4 }
  0x49   : > { %993 = vmatpush.bf16.msra.mxu1 %v4344_v53  ;;  %v619_v53 = vunpack.c.l.bf16 %v5005_v30  ;;  %v624_v30 = vunpack.c.h.bf16 %v5023_v36  ;;  %v660_v36 = vrot.slane %v659_v16, 4  ;;  %v674_v0 = vrot.slane %v673_v37, 4 }
  0x4a   : > { %v694_v28 = vadd.f32 %v618_v35, %v617_v17  ;;  %v640_v9 = vadd.f32 %v639_v60, %v638_v15  ;;  %v709_v17 = vrot.slane %v708_v42, 4  ;;  %v682_v22 = vadd.f32 %v681_v3, %v680_v52 }
  0x4b   : > { %v701_v29 = vadd.f32 %v620_v23, %v619_v53  ;;  %v715_v11 = vadd.f32 %v624_v30, %v623_v21  ;;  %v661_v7 = vadd.f32 %v660_v36, %v659_v16  ;;  %v668_v23 = vadd.f32 %v667_v45, %v666_v32 }
  0x4c   : > { %910 = vmatpush.bf16.msra.mxu0 %v4335_v5  ;;  %v646_v5 = vrot.slane %v645_v13, 4  ;;  %v695_v2 = vrot.slane %v694_v28, 4  ;;  %v675_v20 = vadd.f32 %v674_v0, %v673_v37  ;;  %v634_v53 = vrot.slane %v633_v10, 2 }
  0x4d   : > { %994 = vmatpush.bf16.msra.mxu1 %v4343_v8  ;;  %v653_v8 = vrot.slane %v652_v18, 4  ;;  %v702_v1 = vrot.slane %v701_v29, 4  ;;  %v716_v35 = vrot.slane %v715_v11, 4  ;;  %v641_v21 = vrot.slane %v640_v9, 2 }
  0x4e   : > { %v730_v15 = vrot.slane %v729_v14, 4  ;;  %v696_v16 = vadd.f32 %v695_v2, %v694_v28  ;;  %v710_v41 = vadd.f32 %v709_v17, %v708_v42  ;;  %v662_v31 = vrot.slane %v661_v7, 2 }
  0x4f   : > { %v703_v40 = vadd.f32 %v702_v1, %v701_v29  ;;  %v669_v34 = vrot.slane %v668_v23, 2  ;;  %v676_v46 = vrot.slane %v675_v20, 2  ;;  %v717_v43 = vadd.f32 %v716_v35, %v715_v11 }
  0x50   : > { %911 = vmatpush.bf16.msra.mxu0 %v4334_v24  ;;  %v647_v24 = vadd.f32 %v646_v5, %v645_v13  ;;  %v737_v13 = vrot.slane %v736_v6, 4  ;;  %v683_v60 = vrot.slane %v682_v22, 2  ;;  %v724_v32 = vadd.f32 %v723_v19, %v722_v25 }
  0x51   : > { %995 = vmatpush.bf16.msra.mxu1 %v4342_v27  ;;  %v654_v27 = vadd.f32 %v653_v8, %v652_v18  ;;  %v689_v18 = vadd.f32 %v688_v4, %v687_v12  ;;  %v731_v37 = vadd.f32 %v730_v15, %v729_v14  ;;  %v4788_v52 = vmov 16.0  }
  0x52   : > { %v648_v30 = vrot.slane %v647_v24, 2  ;;  %4549 = vrcp.f32 %v4788_v52  ;;  %v635_v5 = vadd.f32 %v634_v53, %v633_v10  ;;  %v642_v8 = vadd.f32 %v641_v21, %v640_v9 }
  0x53   : > { %v655_v33 = vrot.slane %v654_v27, 2  ;;  %v697_v45 = vrot.slane %v696_v16, 2  ;;  %v704_v0 = vrot.slane %v703_v40, 2  ;;  %v711_v4 = vrot.slane %v710_v41, 2 }
  0x54   : > { %912 = vmatpush.bf16.msra.mxu0 %v4333_v39  ;;  %v649_v36 = vadd.f32 %v648_v30, %v647_v24  ;;  %v738_v39 = vadd.f32 %v737_v13, %v736_v6  ;;  %v663_v1 = vadd.f32 %v662_v31, %v661_v7  ;;  %v670_v12 = vadd.f32 %v669_v34, %v668_v23 }
  0x55   : > { %996 = vmatpush.bf16.msra.mxu1 %v4341_v26  ;;  %v690_v26 = vrot.slane %v689_v18, 2  ;;  %v656_v2 = vadd.f32 %v655_v33, %v654_v27  ;;  %v718_v28 = vrot.slane %v717_v43, 2  ;;  %v677_v29 = vadd.f32 %v676_v46, %v675_v20 }
  0x56   : > { %v684_v42 = vadd.f32 %v683_v60, %v682_v22  ;;  %v725_v3 = vrot.slane %v724_v32, 2  ;;  %v732_v11 = vrot.slane %v731_v37, 2  ;;  %v636_v25 = vrot.slane %v635_v5, 1 }
  0x57   : > { %v643_v14 = vrot.slane %v642_v8, 1  ;;  %v650_v17 = vrot.slane %v649_v36, 1  ;;  %v739_v35 = vrot.slane %v738_v39, 2  ;;  %v691_v9 = vadd.f32 %v690_v26, %v689_v18 }
  0x58   : > { %v4550_v10 = vpop.eup %4549  ;;  %v698_v24 = vadd.f32 %v697_v45, %v696_v16  ;;  %v705_v6 = vadd.f32 %v704_v0, %v703_v40  ;;  %v712_v53 = vadd.f32 %v711_v4, %v710_v41  ;;  %v657_v21 = vrot.slane %v656_v2, 1 }
  0x59   : > { %v664_v19 = vrot.slane %v663_v1, 1  ;;  %v719_v15 = vadd.f32 %v718_v28, %v717_v43  ;;  %v744_v27 = vmul.f32 16.0, %v4550_v10  ;;  %v671_v7 = vrot.slane %v670_v12, 1 }
  0x5a   : > { %v678_v23 = vrot.slane %v677_v29, 1  ;;  %v726_v30 = vadd.f32 %v725_v3, %v724_v32  ;;  %v733_v20 = vadd.f32 %v732_v11, %v731_v37  ;;  %v637_v22 = vadd.f32 %v636_v25, %v635_v5 }
  0x5b   : > { %v685_v33 = vrot.slane %v684_v42, 1  ;;  %v740_v13 = vadd.f32 %v739_v35, %v738_v39  ;;  %v745_v31 = vsub.f32 1.0, %v744_v27  ;;  %v692_v34 = vrot.slane %v691_v9, 1 }
  0x5c   : > { %v699_v46 = vrot.slane %v698_v24, 1  ;;  %v706_v60 = vrot.slane %v705_v6, 1  ;;  %v713_v52 = vrot.slane %v712_v53, 1  ;;  %v644_v18 = vadd.f32 %v643_v14, %v642_v8 }
  0x5d   : > { %v651_v16 = vadd.f32 %v650_v17, %v649_v36  ;;  %v720_v40 = vrot.slane %v719_v15, 1  ;;  %v746_v41 = vmul.f32 %v4550_v10, %v745_v31  ;;  %v658_v26 = vadd.f32 %v657_v21, %v656_v2 }
  0x5e   : > { %v727_v45 = vrot.slane %v726_v30, 1  ;;  %v734_v43 = vrot.slane %v733_v20, 1  ;;  %vm748_vm0 = vweird.f32 %v4550_v10  ;;  %v665_v0 = vadd.f32 %v664_v19, %v663_v1 }
  0x5f   : > { %v672_v4 = vadd.f32 %v671_v7, %v670_v12  ;;  %v741_v32 = vrot.slane %v740_v13, 1  ;;  %v747_v37 = vadd.f32 %v4550_v10, %v746_v41  ;;  %v693_v5 = vadd.f32 %v692_v34, %v691_v9 }
  0x60   : > { %v700_v28 = vadd.f32 %v699_v46, %v698_v24  ;;  %v707_v39 = vadd.f32 %v706_v60, %v705_v6  ;;  %v714_v3 = vadd.f32 %v713_v52, %v712_v53  ;;  %v679_v11 = vadd.f32 %v678_v23, %v677_v29 }
  0x61   : > { %v686_v25 = vadd.f32 %v685_v33, %v684_v42  ;;  %v721_v35 = vadd.f32 %v720_v40, %v719_v15  ;;  %v749_v27 = vsel %vm748_vm0, %v4550_v10, %v747_v37  ;;  %v728_v8 = vadd.f32 %v727_v45, %v726_v30 }
  0x62   : > { %v735_v36 = vadd.f32 %v734_v43, %v733_v20  ;;  %v750_v14 = vmul.f32 %v749_v27, %v637_v22  ;;  %v751_v17 = vmul.f32 %v749_v27, %v644_v18  ;;  %v742_v2 = vadd.f32 %v741_v32, %v740_v13 }
  0x63   : > { %v752_v21 = vmul.f32 %v749_v27, %v651_v16  ;;  %v753_v31 = vmul.f32 %v749_v27, %v658_v26  ;;  %v758_v1 = vmul.f32 %v749_v27, %v693_v5  ;;  %v759_v12 = vmul.f32 %v749_v27, %v700_v28 }
  0x64   : > { %v760_v19 = vmul.f32 %v749_v27, %v707_v39  ;;  %v761_v7 = vmul.f32 %v749_v27, %v714_v3  ;;  %v754_v9 = vmul.f32 %v749_v27, %v665_v0  ;;  %v755_v24 = vmul.f32 %v749_v27, %v672_v4 }
  0x65   : > { %v756_v6 = vmul.f32 %v749_v27, %v679_v11  ;;  %v762_v29 = vmul.f32 %v749_v27, %v721_v35  ;;  %v757_v42 = vmul.f32 %v749_v27, %v686_v25  ;;  %v763_v10 = vmul.f32 %v749_v27, %v728_v8 }
  0x66   : > { %v766_v53 = vpack.c.bf16 %v750_v14, %v750_v14  ;;  %v767_v15 = vpack.c.bf16 %v751_v17, %v751_v17  ;;  %v764_v23 = vmul.f32 %v749_v27, %v735_v36  ;;  %v765_v30 = vmul.f32 %v749_v27, %v742_v2 }
  0x67   : > { %v768_v20 = vpack.c.bf16 %v752_v21, %v752_v21  ;;  %v769_v22 = vpack.c.bf16 %v753_v31, %v753_v31  ;;  %v774_v33 = vpack.c.bf16 %v758_v1, %v758_v1  ;;  %v775_v13 = vpack.c.bf16 %v759_v12, %v759_v12 }
  0x68   : > { %v776_v34 = vpack.c.bf16 %v760_v19, %v760_v19  ;;  %v777_v46 = vpack.c.bf16 %v761_v7, %v761_v7  ;;  %v770_v60 = vpack.c.bf16 %v754_v9, %v754_v9  ;;  %v771_v52 = vpack.c.bf16 %v755_v24, %v755_v24 }
  0x69   : > { %v772_v18 = vpack.c.bf16 %v756_v6, %v756_v6  ;;  %v778_v16 = vpack.c.bf16 %v762_v29, %v762_v29  ;;  %v773_v40 = vpack.c.bf16 %v757_v42, %v757_v42  ;;  %v779_v41 = vpack.c.bf16 %v763_v10, %v763_v10 }
  0x6a   : > { %v818_v26 = vunpack.c.l.b16 %v766_v53  ;;  %v819_v45 = vunpack.c.l.b16 %v767_v15  ;;  %v780_v43 = vpack.c.bf16 %v764_v23, %v764_v23  ;;  %v781_v0 = vpack.c.bf16 %v765_v30, %v765_v30  ;;  %v4547_v15 = vld [vmem:[%s7017_s7] ss:$0 sm:$0xff] }
  0x6b   : > { %v820_v4 = vunpack.c.l.b16 %v768_v20  ;;  %v821_v32 = vunpack.c.l.b16 %v769_v22  ;;  %v826_v37 = vunpack.c.l.b16 %v774_v33  ;;  %v827_v5 = vunpack.c.l.b16 %v775_v13  ;;  %v4548_v23 = vld [vmem:[%s7019_s9] ss:$0 sm:$0xff] }
  0x6c   : > { %v828_v28 = vunpack.c.l.b16 %v776_v34  ;;  %v829_v39 = vunpack.c.l.b16 %v777_v46  ;;  %v822_v3 = vunpack.c.l.b16 %v770_v60  ;;  %v830_v11 = vunpack.c.l.b16 %v778_v16 }
  0x6d   : > { %v823_v25 = vunpack.c.l.b16 %v771_v52  ;;  %v831_v35 = vunpack.c.l.b16 %v779_v41  ;;  %v835_v27 = vsel %vm834_vm1, %v819_v45, %v818_v26  ;;  %v848_v8 = vsel %vm834_vm1, %v827_v5, %v826_v37 }
  0x6e   : > { %v824_v36 = vunpack.c.l.b16 %v772_v18  ;;  %v832_v14 = vunpack.c.l.b16 %v780_v43  ;;  %v837_v17 = vsel %vm836_vm2, %v820_v4, %v835_v27  ;;  %v849_v2 = vsel %vm836_vm2, %v828_v28, %v848_v8 }
  0x6f   : > { %v825_v21 = vunpack.c.l.b16 %v773_v40  ;;  %v833_v31 = vunpack.c.l.b16 %v781_v0  ;;  %v839_v1 = vsel %vm838_vm3, %v821_v32, %v837_v17  ;;  %v850_v12 = vsel %vm838_vm3, %v829_v39, %v849_v2 }
  0x70   : > { %v841_v19 = vsel %vm840_vm4, %v822_v3, %v839_v1  ;;  %v851_v7 = vsel %vm840_vm4, %v830_v11, %v850_v12 }
  0x71   : > { %v843_v9 = vsel %vm842_vm5, %v823_v25, %v841_v19  ;;  %v852_v24 = vsel %vm842_vm5, %v831_v35, %v851_v7 }
  0x72   : > { %v845_v6 = vsel %vm844_vm6, %v824_v36, %v843_v9  ;;  %v853_v29 = vsel %vm844_vm6, %v832_v14, %v852_v24 }
  0x73   : > { %v847_v42 = vsel %vm846_vm7, %v825_v21, %v845_v6  ;;  %v854_v10 = vsel %vm846_vm7, %v833_v31, %v853_v29 }
  0x74   : > { %v855_v53 = vpack.c.b16 %v854_v10, %v847_v42 }
  0x76   : > { %913 = vmatmul.bf16.vlgmr.msra.gmra.mxu0 %v855_v53  ;;  %997 = vmatmul.bf16.vlgmr.msra.gmra.mxu1 %v855_v53 }
  0xf3   : > { %v914_v30 = vpop.f32.mrf.mxu0  ;;  %v998_v20 = vpop.f32.mrf.mxu1 }
  0xf4   : > { %v915_v22 = vadd.f32 %v4547_v15, %v914_v30  ;;  %v999_v33 = vadd.f32 %v4548_v23, %v998_v20 }
  0xf6   : > { %919 = vst [vmem:[#allocation2] sm:$0xff] %v915_v22 }
  0xf7   : > { %1003 = vst [vmem:[#allocation3 + $0x8] sm:$0xff] %v999_v33 }
  0xfb   : > { %v916_v13 = vpop.f32.mrf.mxu0  ;;  %v1000_v34 = vpop.f32.mrf.mxu1 }
  0xfc   : > { %v917_v46 = vadd.f32 %v4547_v15, %v916_v13  ;;  %v1001_v60 = vadd.f32 %v4548_v23, %v1000_v34 }
  0xfe   : > { %920 = vst [vmem:[#allocation2 + $0x8] sm:$0xff] %v917_v46 }
  0xff   : > { %1004 = vst [vmem:[#allocation3] sm:$0xff] %v1001_v60 }
 0x100 PF: > { %v4049_v52 = vld [vmem:[%s7013_s3 + $0x118] sm:$0xf]  ;;  %v4386_v18 = vld [vmem:[%s7013_s3 + $0x128] sm:$0xf0]  ;;  %v4029_v16 = vld [vmem:[%s7013_s3 + $0xf0] sm:$0xf]  ;;  %v7082_v6 = vunpack.c.l.bf16 %v5066_v48  ;;  %v7083_v53 = vunpack.c.l.bf16 %v5072_v50  ;;  %v7084_v23 = vunpack.c.l.bf16 %v5069_v49  ;;  %v7085_v20 = vunpack.c.h.bf16 %v5066_v48 }
 0x101   : > { %v4050_v40 = vor.u32 %v4386_v18, %v4049_v52  ;;  %v4381_v41 = vld [vmem:[%s7013_s3 + $0x100] sm:$0xf0]  ;;  %v4009_v45 = vld [vmem:[%s7013_s3 + $0xc8] sm:$0xf]  ;;  %v4376_v43 = vld [vmem:[%s7013_s3 + $0xd8] sm:$0xf0]  ;;  %v7086_v34 = vunpack.c.h.bf16 %v5072_v50  ;;  %v7087_v52 = vunpack.c.h.bf16 %v5069_v49 }
 0x102   : > { %v4030_v26 = vor.u32 %v4381_v41, %v4029_v16  ;;  %v4010_v0 = vor.u32 %v4376_v43, %v4009_v45  ;;  %v3989_v4 = vld [vmem:[%s7013_s3 + $0xa0] sm:$0xf]  ;;  %v4371_v32 = vld [vmem:[%s7013_s3 + $0xb0] sm:$0xf0]  ;;  %v3969_v5 = vld [vmem:[%s7013_s3 + $0x78] sm:$0xf] }
 0x103   : > { %1266 = vmatpush.bf16.msra.mxu0 %v4050_v40  ;;  %v3990_v37 = vor.u32 %v4371_v32, %v3989_v4  ;;  %v4366_v28 = vld [vmem:[%s7013_s3 + $0x88] sm:$0xf0]  ;;  %v3949_v3 = vld [vmem:[%s7013_s3 + $0x50] sm:$0xf]  ;;  %v4361_v11 = vld [vmem:[%s7013_s3 + $0x60] sm:$0xf0]  ;;  %v7089_v32 = vunpack.c.l.bf16 %v5082_v56 }
 0x104   : > { %v3970_v39 = vor.u32 %v4366_v28, %v3969_v5  ;;  %v3950_v25 = vor.u32 %v4361_v11, %v3949_v3  ;;  %v3929_v35 = vld [vmem:[%s7013_s3 + $0x28] sm:$0xf]  ;;  %v4356_v27 = vld [vmem:[%s7013_s3 + $0x38] sm:$0xf0]  ;;  %v3909_v36 = vld [vmem:[%s7013_s3] sm:$0xf]  ;;  %v7090_v28 = vunpack.c.h.bf16 %v5079_v55 }
 0x105   : > { %v3930_v8 = vor.u32 %v4356_v27, %v3929_v35  ;;  %v4351_v14 = vld [vmem:[%s7013_s3 + $0x10] sm:$0xf0]  ;;  %v1005_v2 = vld [vmem:[#allocation2] sm:$0xff]  ;;  %v1006_v21 = vld [vmem:[#allocation2 + $0x8] sm:$0xff]  ;;  %vm7045_vm8 = vcmask 130112   ;;  %vm7037_vm9 = vcmask 1041409  }
 0x106   : > { %v3910_v17 = vor.u32 %v4351_v14, %v3909_v36  ;;  %v5292_v31 = vpack.c.bf16 %v1006_v21, %v1005_v2  ;;  %v5298_v1 = vld [vmem:[%s7014_s4] ss:$0 sm:$0xff]  ;;  %v7091_v36 = vunpack.c.h.bf16 %v5082_v56  ;;  %v7092_v2 = vunpack.c.h.bf16 %v5085_v57 }
 0x107   : > { %1267 = vmatpush.bf16.msra.mxu0 %v4030_v26  ;;  %v5312_v13 = vld [vmem:[%s7015_s5] ss:$0 sm:$0xff]  ;;  %vm7036_vm10 = vcmask 1042434   ;;  %vm7034_vm11 = vcmask 1043459   ;;  %vm7033_vm12 = vcmask 1044484   ;;  %vm7030_vm13 = vcmask 1045509  }
 0x108   : > { %7081 = vst [vmem:[#allocation36_spill] sm:$0xff] %v5292_v31  ;;  %vm7027_vm14 = vcmask 1046534   ;;  %vm7024_vm15 = vcmask 1047559   ;;  %vm7043_vm0 = vcmask 130048  }
 0x10b   : > { %1268 = vmatpush.bf16.msra.mxu0 %v4010_v0  ;;  %v7088_v0 = vunpack.c.l.bf16 %v5079_v55 }
 0x10f   : > { %1269 = vmatpush.bf16.msra.mxu0 %v3990_v37 }
 0x113   : > { %1270 = vmatpush.bf16.msra.mxu0 %v3970_v39 }
 0x117   : > { %1271 = vmatpush.bf16.msra.mxu0 %v3950_v25 }
 0x11b   : > { %1272 = vmatpush.bf16.msra.mxu0 %v3930_v8 }
 0x11f   : > { %1273 = vmatpush.bf16.msra.mxu0 %v3910_v17 }
 0x122   : > { %1274 = vmatmul.bf16.vlgmr.msra.gmra.mxu0 %v5292_v31 }
 0x19f   : > { %v1275_v12 = vpop.f32.mrf.mxu0 }
 0x1a0   : > { %v1340_v19 = vadd.f32 %v5298_v1, %v1275_v12 }
 0x1a2   : > { %v1390_v7 = vperm.slane %v1340_v19, 0  ;;  %v1377_v9 = vrot.slane %v1340_v19, 2  ;;  %v1376_v24 = vrot.slane %v1340_v19, 1  ;;  %v1378_v33 = vrot.slane %v1340_v19, 3 }
 0x1a3   : > { %v1379_v60 = vrot.slane %v1340_v19, 4  ;;  %v1380_v5 = vrot.slane %v1340_v19, 5  ;;  %v1381_v17 = vrot.slane %v1340_v19, 6  ;;  %v1382_v12 = vrot.slane %v1340_v19, 7 }
 0x1a4   : > { %v1422_v29 = vadd.f32 %v7082_v6, %v1390_v7  ;;  %v1392_v42 = vperm.slane %v1377_v9, 0  ;;  %v1391_v10 = vperm.slane %v1376_v24, 0  ;;  %v1423_v22 = vadd.f32 %v7085_v20, %v1390_v7 }
 0x1a5   : > { %v1393_v40 = vperm.slane %v1378_v33, 0  ;;  %v1394_v26 = vperm.slane %v1379_v60, 0  ;;  %v1395_v35 = vperm.slane %v1380_v5, 0  ;;  %v7093_v7 = vunpack.c.l.bf16 %v5085_v57 }
 0x1a6   : > { %4556 = vtanh.f32 %v1422_v29  ;;  %v1426_v15 = vadd.f32 %v7083_v53, %v1392_v42  ;;  %v1424_v30 = vadd.f32 %v7084_v23, %v1391_v10  ;;  %v1427_v46 = vadd.f32 %v7086_v34, %v1392_v42 }
 0x1a7   : > { %v1425_v18 = vadd.f32 %v7087_v52, %v1391_v10  ;;  %v1428_v4 = vadd.f32 %v7088_v0, %v1393_v40  ;;  %v1430_v37 = vadd.f32 %v7089_v32, %v1394_v26  ;;  %v1429_v39 = vadd.f32 %v7090_v28, %v1393_v40  ;;  %v1277_v10 = vpop.f32.mrf.mxu0 }
 0x1a8   : > { %4558 = vtanh.f32 %v1426_v15  ;;  %v1431_v14 = vadd.f32 %v7091_v36, %v1394_v26  ;;  %v1433_v21 = vadd.f32 %v7092_v2, %v1395_v35  ;;  %v1432_v9 = vadd.f32 %v7093_v7, %v1395_v35 }
 0x1a9   : > { %4560 = vtanh.f32 %v1424_v30  ;;  %v1396_v6 = vperm.slane %v1381_v17, 0  ;;  %v1397_v56 = vperm.slane %v1382_v12, 0  ;;  %v7094_v19 = vunpack.c.l.bf16 %v5092_v62 }
 0x1aa   : > { %4562 = vtanh.f32 %v1423_v22  ;;  %v5342_v30 = vadd.f32 %v5298_v1, %v1277_v10  ;;  %v7095_v20 = vunpack.c.l.bf16 %v5095_v63  ;;  %v7096_v33 = vunpack.c.h.bf16 %v5092_v62 }
 0x1ab   : > { %4564 = vtanh.f32 %v1427_v46  ;;  %v1434_v23 = vadd.f32 %v7094_v19, %v1396_v6  ;;  %v7097_v40 = vunpack.c.h.bf16 %v5095_v63  ;;  %v7098_v26 = vunpack.c.h.bf16 %v5098_v54 }
 0x1ac   : > { %v4557_v16 = vpop.eup %4556  ;;  %4566 = vtanh.f32 %v1425_v18  ;;  %v1436_v22 = vadd.f32 %v7095_v20, %v1397_v56  ;;  %v1435_v34 = vadd.f32 %v7096_v33, %v1396_v6  ;;  %v1398_v18 = vperm.slane %v5342_v30, 0 }
 0x1ad   : > { %v1490_v48 = vmul.f32 %v4557_v16, %v5312_v13  ;;  %4568 = vtanh.f32 %v1428_v4  ;;  %v1383_v62 = vrot.slane %v5342_v30, 1  ;;  %v1385_v35 = vrot.slane %v5342_v30, 3 }
 0x1ae   : > { %v4559_v41 = vpop.eup %4558  ;;  %4570 = vtanh.f32 %v1430_v37  ;;  %v7103_v12 = vunpack.c.h.bf16 %v5108_v61  ;;  %v7106_v20 = vunpack.c.l.bf16 %v5118_v44  ;;  %v7107_v33 = vunpack.c.l.bf16 %v5121_v58 }
 0x1af   : > { %v4561_v45 = vpop.eup %4560  ;;  %1522 = vadd.xlane.f32.xlu0 %v1490_v48  ;;  %v1494_v43 = vmul.f32 %v4559_v41, %v5312_v13  ;;  %4572 = vtanh.f32 %v1429_v39  ;;  %v1437_v48 = vadd.f32 %v7097_v40, %v1397_v56  ;;  %v7100_v39 = vunpack.c.l.bf16 %v5105_v59 }
 0x1b0   : > { %v1492_v50 = vmul.f32 %v4561_v45, %v5312_v13  ;;  %v4563_v49 = vpop.eup %4562  ;;  %4574 = vtanh.f32 %v1431_v14  ;;  %v1439_v45 = vadd.f32 %v7098_v26, %v1398_v18 }
 0x1b1   : > { %1530 = vadd.xlane.f32.xlu2 %v1494_v43  ;;  %v4565_v3 = vpop.eup %4564  ;;  %v1491_v25 = vmul.f32 %v4563_v49, %v5312_v13  ;;  %4576 = vtanh.f32 %v1433_v21  ;;  %v1384_v43 = vrot.slane %v5342_v30, 2  ;;  %v1399_v49 = vperm.slane %v1383_v62, 0 }
 0x1b2   : > { %1526 = vadd.xlane.f32.xlu1 %v1492_v50  ;;  %v4567_v11 = vpop.eup %4566  ;;  %v1495_v27 = vmul.f32 %v4565_v3, %v5312_v13  ;;  %4578 = vtanh.f32 %v1432_v9  ;;  %v7099_v50 = vunpack.c.l.bf16 %v5098_v54  ;;  %v1386_v9 = vrot.slane %v5342_v30, 4 }
 0x1b3   : > { %v1493_v8 = vmul.f32 %v4567_v11, %v5312_v13  ;;  %v4569_v55 = vpop.eup %4568  ;;  %4580 = vtanh.f32 %v1434_v23  ;;  %v1400_v37 = vperm.slane %v1384_v43, 0  ;;  %v1440_v3 = vadd.f32 %v7100_v39, %v1399_v49 }
 0x1b4   : > { %v4571_v24 = vpop.eup %4570  ;;  %v1496_v42 = vmul.f32 %v4569_v55, %v5312_v13  ;;  %4582 = vtanh.f32 %v1436_v22  ;;  %v1438_v0 = vadd.f32 %v7099_v50, %v1398_v18  ;;  %v7101_v11 = vunpack.c.l.bf16 %v5108_v61 }
 0x1b5   : > { %v4573_v29 = vpop.eup %4572  ;;  %v1498_v53 = vmul.f32 %v4571_v24, %v5312_v13  ;;  %4584 = vtanh.f32 %v1435_v34  ;;  %v1401_v55 = vperm.slane %v1385_v35, 0  ;;  %v1443_v7 = vadd.f32 %v7103_v12, %v1400_v37 }
 0x1b6   : > { %v1497_v15 = vmul.f32 %v4573_v29, %v5312_v13  ;;  %v4575_v57 = vpop.eup %4574  ;;  %4586 = vtanh.f32 %v1437_v48  ;;  %v7104_v24 = vunpack.c.h.bf16 %v5111_v51  ;;  %v1387_v29 = vrot.slane %v5342_v30, 5 }
 0x1b7   : > { %1524 = vadd.xlane.f32.xlu0 %v1491_v25  ;;  %v4577_v46 = vpop.eup %4576  ;;  %v1499_v52 = vmul.f32 %v4575_v57, %v5312_v13  ;;  %4588 = vtanh.f32 %v1439_v45  ;;  %v1442_v25 = vadd.f32 %v7101_v11, %v1400_v37  ;;  %v1389_v45 = vrot.slane %v5342_v30, 7 }
 0x1b8   : > { %v4579_v60 = vpop.eup %4578  ;;  %v1501_v16 = vmul.f32 %v4577_v46, %v5312_v13  ;;  %4590 = vtanh.f32 %v1438_v0  ;;  %v1445_v6 = vadd.f32 %v7104_v24, %v1401_v55  ;;  %v1403_v19 = vperm.slane %v1387_v29, 0 }
 0x1b9   : > { %1532 = vadd.xlane.f32.xlu2 %v1495_v27  ;;  %v1500_v1 = vmul.f32 %v4579_v60, %v5312_v13  ;;  %v4581_v41 = vpop.eup %4580  ;;  %v7102_v27 = vunpack.c.h.bf16 %v5105_v59  ;;  %4592 = vtanh.f32 %v1440_v3  ;;  %v1388_v46 = vrot.slane %v5342_v30, 6 }
 0x1ba   : > { %1528 = vadd.xlane.f32.xlu1 %v1493_v8  ;;  %v4583_v4 = vpop.eup %4582  ;;  %v1502_v63 = vmul.f32 %v4581_v41, %v5312_v13  ;;  %4594 = vtanh.f32 %v1442_v25  ;;  %v1448_v34 = vadd.f32 %v7107_v33, %v1403_v19  ;;  %v7108_v60 = vunpack.c.h.bf16 %v5118_v44 }
 0x1bb   : > { %v4585_v32 = vpop.eup %4584  ;;  %v1504_v5 = vmul.f32 %v4583_v4, %v5312_v13  ;;  %v1441_v8 = vadd.f32 %v7102_v27, %v1399_v49  ;;  %v1404_v40 = vperm.slane %v1388_v46, 0  ;;  %v7109_v41 = vunpack.c.h.bf16 %v5121_v58 }
 0x1bc   : > { %v1503_v28 = vmul.f32 %v4585_v32, %v5312_v13  ;;  %v4587_v54 = vpop.eup %4586  ;;  %v7110_v43 = vunpack.c.h.bf16 %v5128_v38  ;;  %v7111_v0 = vunpack.c.l.bf16 %v5128_v38  ;;  %v1405_v32 = vperm.slane %v1389_v45, 0 }
 0x1bd   : > { %v4589_v36 = vpop.eup %4588  ;;  %v1505_v17 = vmul.f32 %v4587_v54, %v5312_v13  ;;  %4596 = vtanh.f32 %v1441_v8  ;;  %v1449_v26 = vadd.f32 %v7109_v41, %v1403_v19  ;;  %v7113_v38 = vunpack.c.h.bf16 %v5131_v47 }
 0x1be   : > { %v4591_v14 = vpop.eup %4590  ;;  %v1507_v2 = vmul.f32 %v4589_v36, %v5312_v13  ;;  %4598 = vtanh.f32 %v1443_v7  ;;  %v1451_v50 = vadd.f32 %v7110_v43, %v1404_v40  ;;  %v1450_v4 = vadd.f32 %v7111_v0, %v1404_v40 }
 0x1bf   : > { %1534 = vadd.xlane.f32.xlu0 %v1496_v42  ;;  %v1506_v21 = vmul.f32 %v4591_v14, %v5312_v13  ;;  %v4593_v59 = vpop.eup %4592  ;;  %v7105_v42 = vunpack.c.l.bf16 %v5111_v51  ;;  %4600 = vtanh.f32 %v1445_v6  ;;  %v1453_v3 = vadd.f32 %v7113_v38, %v1405_v32 }
 0x1c0   : > { %v4595_v10 = vpop.eup %4594  ;;  %v1508_v61 = vmul.f32 %v4593_v59, %v5312_v13  ;;  %v1618_v24 = vlaneseq }
 0x1c1   : > { %1538 = vadd.xlane.f32.xlu2 %v1498_v53  ;;  %v1444_v56 = vadd.f32 %v7105_v42, %v1401_v55  ;;  %v1402_v53 = vperm.slane %v1386_v9, 0  ;;  %v1510_v23 = vmul.f32 %v4595_v10, %v5312_v13 }
 0x1c2   : > { %1536 = vadd.xlane.f32.xlu1 %v1497_v15 }
 0x1c3   : > { %v4597_v15 = vpop.eup %4596  ;;  %4602 = vtanh.f32 %v1444_v56  ;;  %v1446_v22 = vadd.f32 %v7106_v20, %v1402_v53 }
 0x1c4   : > { %v1509_v57 = vmul.f32 %v4597_v15, %v5312_v13  ;;  %v4599_v51 = vpop.eup %4598 }
 0x1c5   : > { %v4601_v18 = vpop.eup %4600  ;;  %4604 = vtanh.f32 %v1446_v22 }
 0x1c6   : > { %4606 = vtanh.f32 %v1448_v34  ;;  %v1513_v48 = vmul.f32 %v4601_v18, %v5312_v13 }
 0x1c7   : > { %1540 = vadd.xlane.f32.xlu0 %v1499_v52  ;;  %v1447_v52 = vadd.f32 %v7108_v60, %v1402_v53 }
 0x1c9   : > { %1544 = vadd.xlane.f32.xlu2 %v1501_v16  ;;  %v4603_v16 = vpop.eup %4602  ;;  %4608 = vtanh.f32 %v1447_v52 }
 0x1ca   : > { %1542 = vadd.xlane.f32.xlu1 %v1500_v1  ;;  %v1511_v1 = vmul.f32 %v4599_v51, %v5312_v13  ;;  %v1512_v62 = vmul.f32 %v4603_v16, %v5312_v13  ;;  %4610 = vtanh.f32 %v1449_v26 }
 0x1cb   : > { %v4605_v44 = vpop.eup %4604  ;;  %4612 = vtanh.f32 %v1451_v50 }
 0x1cc   : > { %v4607_v49 = vpop.eup %4606  ;;  %v1514_v37 = vmul.f32 %v4605_v44, %v5312_v13  ;;  %4614 = vtanh.f32 %v1450_v4 }
 0x1cd   : > { %v1516_v58 = vmul.f32 %v4607_v49, %v5312_v13 }
 0x1cf   : > { %1546 = vadd.xlane.f32.xlu0 %v1502_v63  ;;  %v4609_v63 = vpop.eup %4608 }
 0x1d0   : > { %v1515_v30 = vmul.f32 %v4609_v63, %v5312_v13  ;;  %v4611_v39 = vpop.eup %4610 }
 0x1d1   : > { %1550 = vadd.xlane.f32.xlu2 %v1504_v5  ;;  %v7112_v5 = vunpack.c.l.bf16 %v5131_v47  ;;  %v4613_v54 = vpop.eup %4612  ;;  %v1517_v25 = vmul.f32 %v4611_v39, %v5312_v13 }
 0x1d2   : > { %1548 = vadd.xlane.f32.xlu1 %v1503_v28  ;;  %v4615_v11 = vpop.eup %4614  ;;  %v1519_v35 = vmul.f32 %v4613_v54, %v5312_v13 }
 0x1d3   : > { %v1452_v28 = vadd.f32 %v7112_v5, %v1405_v32  ;;  %v1518_v27 = vmul.f32 %v4615_v11, %v5312_v13 }
 0x1d5   : > { %4616 = vtanh.f32 %v1452_v28 }
 0x1d6   : > { %4618 = vtanh.f32 %v1453_v3 }
 0x1d7   : > { %1552 = vadd.xlane.f32.xlu0 %v1505_v17 }
 0x1d9   : > { %1556 = vadd.xlane.f32.xlu2 %v1507_v2 }
 0x1da   : > { %1554 = vadd.xlane.f32.xlu1 %v1506_v21 }
 0x1db   : > { %v4617_v8 = vpop.eup %4616 }
 0x1dc   : > { %v4619_v36 = vpop.eup %4618  ;;  %v1520_v14 = vmul.f32 %v4617_v8, %v5312_v13 }
 0x1dd   : > { %v1521_v47 = vmul.f32 %v4619_v36, %v5312_v13  ;;  %v5431_v13 = vand.u32 127, %v1618_v24 }
 0x1df   : > { %1558 = vadd.xlane.f32.xlu0 %v1508_v61  ;;  %7114 = vst [vmem:[#allocation37_spill] sm:$0xff] %v5431_v13  ;;  %v5436_v42 = vadd.s32 4294967288, %v5431_v13 }
 0x1e1   : > { %1562 = vadd.xlane.f32.xlu2 %v1510_v23  ;;  %7115 = vst [vmem:[#allocation38_spill] sm:$0xff] %v5436_v42 }
 0x1e2   : > { %1560 = vadd.xlane.f32.xlu1 %v1509_v57 }
 0x1e7   : > { %1564 = vadd.xlane.f32.xlu0 %v1511_v1 }
 0x1e9   : > { %1568 = vadd.xlane.f32.xlu2 %v1513_v48 }
 0x1ea   : > { %1566 = vadd.xlane.f32.xlu1 %v1512_v62 }
 0x1ef   : > { %1570 = vadd.xlane.f32.xlu0 %v1514_v37 }
 0x1f1   : > { %1574 = vadd.xlane.f32.xlu2 %v1516_v58 }
 0x1f2   : > { %1572 = vadd.xlane.f32.xlu1 %v1515_v30 }
 0x1f7   : > { %1576 = vadd.xlane.f32.xlu0 %v1517_v25 }
 0x1f9   : > { %1580 = vadd.xlane.f32.xlu2 %v1519_v35 }
 0x1fa   : > { %1578 = vadd.xlane.f32.xlu1 %v1518_v27 }
 0x1ff   : > { %1582 = vadd.xlane.f32.xlu0 %v1520_v14 }
 0x202   : > { %1584 = vadd.xlane.f32.xlu1 %v1521_v47 }
 0x222   : > { %v5413_v17 = vpop.xlane.xlu0 %1522 }
 0x223   : > { %v1620_v23 = vperm.slane %v5413_v17, %v5431_v13 }
 0x224   : > { %v5415_v55 = vpop.xlane.xlu2 %1530 }
 0x225   : > { %v5417_v2 = vpop.xlane.xlu1 %1526  ;;  %v1628_v22 = vperm.slane %v5415_v55, %v5431_v13 }
 0x226   : > { %v1625_v15 = vperm.slane %v5417_v2, %v5431_v13 }
 0x22a   : > { %v5419_v21 = vpop.xlane.xlu0 %1524 }
 0x22b   : > { %v1622_v61 = vperm.slane %v5419_v21, %v5436_v42 }
 0x22c   : > { %v5421_v12 = vpop.xlane.xlu2 %1532 }
 0x22d   : > { %v5423_v7 = vpop.xlane.xlu1 %1528  ;;  %v1629_v19 = vperm.slane %v5421_v12, %v5436_v42  ;;  %v1624_v34 = vsel %vm7045_vm8, %v1622_v61, %v1620_v23 }
 0x22e   : > { %v1626_v10 = vperm.slane %v5423_v7, %v5436_v42 }
 0x22f   : > { %v1630_v60 = vsel %vm7045_vm8, %v1629_v19, %v1628_v22 }
 0x230   : > { %v1627_v57 = vsel %vm7045_vm8, %v1626_v10, %v1625_v15 }
 0x231   : > { %v1671_v52 = vsel %vm7037_vm9, %v1627_v57, %v1624_v34 }
 0x232   : > { %v5425_v9 = vpop.xlane.xlu0 %1534  ;;  %v1673_v45 = vsel %vm7036_vm10, %v1630_v60, %v1671_v52 }
 0x233   : > { %v1631_v46 = vperm.slane %v5425_v9, %v5431_v13 }
 0x234   : > { %v5427_v59 = vpop.xlane.xlu2 %1538 }
 0x235   : > { %v5429_v6 = vpop.xlane.xlu1 %1536  ;;  %v1634_v18 = vperm.slane %v5427_v59, %v5431_v13 }
 0x236   : > { %v1632_v20 = vperm.slane %v5429_v6, %v5436_v42 }
 0x238   : > { %v1633_v1 = vsel %vm7045_vm8, %v1632_v20, %v1631_v46 }
 0x239   : > { %v1675_v44 = vsel %vm7034_vm11, %v1633_v1, %v1673_v45 }
 0x23a   : > { %v5433_v29 = vpop.xlane.xlu0 %1540 }
 0x23b   : > { %v1635_v51 = vperm.slane %v5433_v29, %v5436_v42 }
 0x23c   : > { %v5438_v56 = vpop.xlane.xlu2 %1544 }
 0x23d   : > { %v5442_v53 = vpop.xlane.xlu1 %1542  ;;  %v1638_v40 = vperm.slane %v5438_v56, %v5436_v42  ;;  %v1636_v41 = vsel %vm7045_vm8, %v1635_v51, %v1634_v18 }
 0x23e   : > { %v1637_v48 = vperm.slane %v5442_v53, %v5431_v13  ;;  %v1677_v0 = vsel %vm7033_vm12, %v1636_v41, %v1675_v44 }
 0x240   : > { %v1639_v50 = vsel %vm7045_vm8, %v1638_v40, %v1637_v48 }
 0x241   : > { %v1679_v58 = vsel %vm7030_vm13, %v1639_v50, %v1677_v0 }
 0x242   : > { %v5459_v33 = vpop.xlane.xlu0 %1546 }
 0x243   : > { %v1640_v43 = vperm.slane %v5459_v33, %v5431_v13 }
 0x244   : > { %v5468_v16 = vpop.xlane.xlu2 %1550 }
 0x245   : > { %v5475_v62 = vpop.xlane.xlu1 %1548  ;;  %v1643_v32 = vperm.slane %v5468_v16, %v5431_v13 }
 0x246   : > { %v1641_v26 = vperm.slane %v5475_v62, %v5436_v42 }
 0x248   : > { %v1642_v49 = vsel %vm7045_vm8, %v1641_v26, %v1640_v43 }
 0x249   : > { %v1681_v28 = vsel %vm7027_vm14, %v1642_v49, %v1679_v58 }
 0x24a   : > { %v5486_v4 = vpop.xlane.xlu0 %1552 }
 0x24b   : > { %v1644_v63 = vperm.slane %v5486_v4, %v5436_v42 }
 0x24c   : > { %v5493_v37 = vpop.xlane.xlu2 %1556 }
 0x24d   : > { %v5496_v30 = vpop.xlane.xlu1 %1554  ;;  %v1645_v5 = vsel %vm7045_vm8, %v1644_v63, %v1643_v32  ;;  %v1647_v10 = vperm.slane %v5493_v37, %v5436_v42 }
 0x24e   : > { %v1683_v39 = vsel %vm7024_vm15, %v1645_v5, %v1681_v28  ;;  %v1646_v15 = vperm.slane %v5496_v30, %v5431_v13 }
 0x24f   : > { %v1694_v38 = vsel %vm7043_vm0, %v1683_v39, -inf }
 0x250   : > { %1695 = vmax.xlane.f32.xlu2 %v1694_v38  ;;  %v1648_v60 = vsel %vm7045_vm8, %v1647_v10, %v1646_v15  ;;  %v4789_v15 = vmov 0  }
 0x251   : > { %4553 = vset.pattern.permute.xlu0 %v4789_v15  ;;  %4552 = vset.pattern.permute.xlu2 %v4789_v15 }
 0x252   : > { %v5502_v3 = vpop.xlane.xlu0 %1558  ;;  %4551 = vset.pattern.permute.xlu1 %v4789_v15 }
 0x253   : > { %v1649_v61 = vperm.slane %v5502_v3, %v5431_v13 }
 0x254   : > { %v5504_v54 = vpop.xlane.xlu2 %1562 }
 0x255   : > { %v5506_v11 = vpop.xlane.xlu1 %1560  ;;  %v1652_v23 = vperm.slane %v5504_v54, %v5431_v13 }
 0x256   : > { %v1650_v47 = vperm.slane %v5506_v11, %v5436_v42 }
 0x258   : > { %v1651_v57 = vsel %vm7045_vm8, %v1650_v47, %v1649_v61 }
 0x259   : > { %v1684_v1 = vsel %vm7037_vm9, %v1651_v57, %v1648_v60 }
 0x25a   : > { %v5508_v25 = vpop.xlane.xlu0 %1564 }
 0x25b   : > { %v1653_v24 = vperm.slane %v5508_v25, %v5436_v42 }
 0x25c   : > { %v5510_v35 = vpop.xlane.xlu2 %1568 }
 0x25d   : > { %v5512_v27 = vpop.xlane.xlu1 %1566  ;;  %v1656_v20 = vperm.slane %v5510_v35, %v5436_v42  ;;  %v1654_v51 = vsel %vm7045_vm8, %v1653_v24, %v1652_v23 }
 0x25e   : > { %v1655_v22 = vperm.slane %v5512_v27, %v5431_v13  ;;  %v1685_v48 = vsel %vm7036_vm10, %v1654_v51, %v1684_v1 }
 0x260   : > { %v1657_v41 = vsel %vm7045_vm8, %v1656_v20, %v1655_v22 }
 0x261   : > { %v1686_v0 = vsel %vm7034_vm11, %v1657_v41, %v1685_v48 }
 0x262   : > { %v5514_v8 = vpop.xlane.xlu0 %1570 }
 0x263   : > { %v1658_v40 = vperm.slane %v5514_v8, %v5431_v13 }
 0x264   : > { %v5516_v36 = vpop.xlane.xlu2 %1574 }
 0x265   : > { %v5518_v14 = vpop.xlane.xlu1 %1572  ;;  %v1661_v26 = vperm.slane %v5516_v36, %v5431_v13 }
 0x266   : > { %v1659_v34 = vperm.slane %v5518_v14, %v5436_v42 }
 0x268   : > { %v1660_v45 = vsel %vm7045_vm8, %v1659_v34, %v1658_v40 }
 0x269   : > { %v1687_v32 = vsel %vm7033_vm12, %v1660_v45, %v1686_v0 }
 0x26a   : > { %v5530_v19 = vpop.xlane.xlu0 %1576 }
 0x26b   : > { %v1662_v52 = vperm.slane %v5530_v19, %v5436_v42 }
 0x26c   : > { %v5547_v18 = vpop.xlane.xlu2 %1580 }
 0x26d   : > { %v5542_v46 = vpop.xlane.xlu1 %1578  ;;  %v1665_v44 = vperm.slane %v5547_v18, %v5436_v42  ;;  %v1663_v50 = vsel %vm7045_vm8, %v1662_v52, %v1661_v26 }
 0x26e   : > { %v1664_v43 = vperm.slane %v5542_v46, %v5431_v13  ;;  %v1688_v5 = vsel %vm7030_vm13, %v1663_v50, %v1687_v32 }
 0x270   : > { %v1666_v58 = vsel %vm7045_vm8, %v1665_v44, %v1664_v43 }
 0x271   : > { %v1689_v47 = vsel %vm7027_vm14, %v1666_v58, %v1688_v5 }
 0x272   : > { %v5563_v49 = vpop.xlane.xlu0 %1582 }
 0x273   : > { %v1667_v28 = vperm.slane %v5563_v49, %v5431_v13 }
 0x275   : > { %v5566_v63 = vpop.xlane.xlu1 %1584 }
 0x276   : > { %v1668_v39 = vperm.slane %v5566_v63, %v5436_v42 }
 0x278   : > { %v1669_v38 = vsel %vm7045_vm8, %v1668_v39, %v1667_v28 }
 0x279   : > { %v1690_v24 = vsel %vm7024_vm15, %v1669_v38, %v1689_v47 }
 0x27a   : > { %v1697_v10 = vsel %vm7043_vm0, %v1690_v24, -inf }
 0x27b   : > { %1698 = vmax.xlane.f32.xlu0 %v1697_v10 }
 0x2c3   : > { %v5578_v61 = vpop.xlane.xlu2 %1695 }
 0x2c4   : > { %v1702_v23 = vperm.slane %v5578_v61, 0  ;;  %v1703_v57 = vperm.slane %v5578_v61, 1  ;;  %v1704_v34 = vperm.slane %v5578_v61, 2  ;;  %v1706_v60 = vperm.slane %v5578_v61, 4 }
 0x2c5   : > { %v1708_v43 = vperm.slane %v5578_v61, 6  ;;  %v1709_v39 = vperm.slane %v5578_v61, 7  ;;  %v1707_v10 = vperm.slane %v5578_v61, 5 }
 0x2c6   : > { %v1735_v20 = vsub.f32 %v5419_v21, %v1702_v23  ;;  %v1734_v22 = vsub.f32 %v5413_v17, %v1702_v23  ;;  %v1736_v51 = vsub.f32 %v5417_v2, %v1703_v57  ;;  %v1737_v48 = vsub.f32 %v5423_v7, %v1703_v57 }
 0x2c7   : > { %v1738_v41 = vsub.f32 %v5415_v55, %v1704_v34  ;;  %v1743_v21 = vsub.f32 %v5433_v29, %v1706_v60  ;;  %v1705_v2 = vperm.slane %v5578_v61, 3  ;;  %v1739_v55 = vsub.f32 %v5421_v12, %v1704_v34 }
 0x2c8   : > { %v1768_v52 = vmul.f32 1.442695, %v1735_v20  ;;  %v1766_v1 = vmul.f32 1.442695, %v1734_v22  ;;  %v1770_v40 = vmul.f32 1.442695, %v1736_v51  ;;  %v1746_v0 = vsub.f32 %v5459_v33, %v1708_v43 }
 0x2c9   : > { %v1772_v26 = vmul.f32 1.442695, %v1737_v48  ;;  %v1774_v17 = vmul.f32 1.442695, %v1738_v41  ;;  %v1784_v44 = vmul.f32 1.442695, %v1743_v21  ;;  %v1740_v29 = vsub.f32 %v5425_v9, %v1705_v2 }
 0x2ca   : > { %4620 = vpow2.f32 %v1768_v52  ;;  %v1776_v32 = vmul.f32 1.442695, %v1739_v55  ;;  %v1790_v28 = vmul.f32 1.442695, %v1746_v0  ;;  %v1741_v9 = vsub.f32 %v5429_v6, %v1705_v2 }
 0x2cb   : > { %4622 = vpow2.f32 %v1766_v1  ;;  %v1778_v58 = vmul.f32 1.442695, %v1740_v29  ;;  %v1742_v33 = vsub.f32 %v5427_v59, %v1706_v60  ;;  %v1749_v47 = vsub.f32 %v5486_v4, %v1709_v39 }
 0x2cc   : > { %4624 = vpow2.f32 %v1770_v40  ;;  %v1780_v24 = vmul.f32 1.442695, %v1741_v9  ;;  %v1744_v59 = vsub.f32 %v5442_v53, %v1707_v10  ;;  %v1745_v4 = vsub.f32 %v5438_v56, %v1707_v10 }
 0x2cd   : > { %4626 = vpow2.f32 %v1772_v26  ;;  %v1782_v15 = vmul.f32 1.442695, %v1742_v33  ;;  %v1796_v57 = vmul.f32 1.442695, %v1749_v47  ;;  %v1747_v53 = vsub.f32 %v5475_v62, %v1708_v43 }
 0x2ce   : > { %4628 = vpow2.f32 %v1774_v17  ;;  %v1786_v61 = vmul.f32 1.442695, %v1744_v59  ;;  %v1788_v22 = vmul.f32 1.442695, %v1745_v4  ;;  %v1748_v56 = vsub.f32 %v5468_v16, %v1709_v39 }
 0x2cf   : > { %4630 = vpow2.f32 %v1784_v44  ;;  %v1792_v1 = vmul.f32 1.442695, %v1747_v53 }
 0x2d0   : > { %v5591_v45 = vpop.eup %4620  ;;  %4632 = vpow2.f32 %v1776_v32  ;;  %v1794_v40 = vmul.f32 1.442695, %v1748_v56 }
 0x2d1   : > { %v5594_v50 = vpop.eup %4622  ;;  %1866 = vperm.xlu2 %4552, %v5591_v45   ;;  %4634 = vpow2.f32 %v1778_v58 }
 0x2d2   : > { %v5597_v7 = vpop.eup %4624  ;;  %1863 = vperm.xlu1 %4551, %v5594_v50   ;;  %4636 = vpow2.f32 %v1790_v28 }
 0x2d3   : > { %1869 = vperm.xlu0 %4553, %v5597_v7   ;;  %v5604_v5 = vpop.eup %4626  ;;  %4638 = vpow2.f32 %v1780_v24 }
 0x2d4   : > { %v5607_v38 = vpop.eup %4628  ;;  %4640 = vpow2.f32 %v1782_v15 }
 0x2d5   : > { %v5610_v12 = vpop.eup %4630  ;;  %4642 = vpow2.f32 %v1796_v57 }
 0x2d6   : > { %v5618_v23 = vpop.eup %4632  ;;  %4644 = vpow2.f32 %v1786_v61 }
 0x2d7   : > { %v5620_v20 = vpop.eup %4634  ;;  %4646 = vpow2.f32 %v1788_v22 }
 0x2d8   : > { %v5623_v6 = vpop.eup %4636  ;;  %4648 = vpow2.f32 %v1792_v1 }
 0x2d9   : > { %1872 = vperm.xlu2 %4552, %v5604_v5   ;;  %v5629_v51 = vpop.eup %4638  ;;  %4650 = vpow2.f32 %v1794_v40 }
 0x2da   : > { %1875 = vperm.xlu1 %4551, %v5607_v38   ;;  %v5631_v34 = vpop.eup %4640 }
 0x2db   : > { %1890 = vperm.xlu0 %4553, %v5610_v12   ;;  %v5634_v60 = vpop.eup %4642 }
 0x2dc   : > { %7116 = vst [vmem:[#allocation39_spill] sm:$0xff] %v5634_v60  ;;  %v5644_v21 = vpop.eup %4644 }
 0x2dd   : > { %v5646_v26 = vpop.eup %4646 }
 0x2de   : > { %v5655_v0 = vpop.eup %4648 }
 0x2df   : > { %v5657_v32 = vpop.eup %4650 }
 0x2e1   : > { %1878 = vperm.xlu2 %4552, %v5618_v23  }
 0x2e2   : > { %1881 = vperm.xlu1 %4551, %v5620_v20  }
 0x2e3   : > { %1899 = vperm.xlu0 %4553, %v5623_v6  }
 0x2e9   : > { %1884 = vperm.xlu2 %4552, %v5629_v51  }
 0x2ea   : > { %1887 = vperm.xlu1 %4551, %v5631_v34  }
 0x2eb   : > { %1908 = vperm.xlu0 %4553, %v5634_v60  }
 0x2ee   : > { %v5640_v52 = vpop.xlane.xlu0 %1698 }
 0x2ef   : > { %v1711_v48 = vperm.slane %v5640_v52, 1  ;;  %v1710_v41 = vperm.slane %v5640_v52, 0  ;;  %v1712_v17 = vperm.slane %v5640_v52, 2  ;;  %v1714_v58 = vperm.slane %v5640_v52, 4 }
 0x2f0   : > { %v1713_v9 = vperm.slane %v5640_v52, 3  ;;  %v1715_v10 = vperm.slane %v5640_v52, 5 }
 0x2f1   : > { %1893 = vperm.xlu2 %4552, %v5644_v21   ;;  %v1752_v62 = vsub.f32 %v5502_v3, %v1711_v48  ;;  %v1750_v16 = vsub.f32 %v5496_v30, %v1710_v41  ;;  %v1751_v44 = vsub.f32 %v5493_v37, %v1710_v41  ;;  %v1755_v43 = vsub.f32 %v5508_v25, %v1712_v17 }
 0x2f2   : > { %1896 = vperm.xlu1 %4551, %v5646_v26   ;;  %v1753_v30 = vsub.f32 %v5506_v11, %v1711_v48  ;;  %v1754_v25 = vsub.f32 %v5504_v54, %v1712_v17  ;;  %v1758_v28 = vsub.f32 %v5514_v8, %v1714_v58  ;;  %v1756_v54 = vsub.f32 %v5512_v27, %v1713_v9 }
 0x2f3   : > { %v1802_v2 = vmul.f32 1.442695, %v1752_v62  ;;  %v1798_v55 = vmul.f32 1.442695, %v1750_v16  ;;  %v1800_v29 = vmul.f32 1.442695, %v1751_v44  ;;  %v1757_v8 = vsub.f32 %v5510_v35, %v1713_v9 }
 0x2f4   : > { %v1808_v3 = vmul.f32 1.442695, %v1755_v43  ;;  %v1804_v39 = vmul.f32 1.442695, %v1753_v30  ;;  %v1806_v33 = vmul.f32 1.442695, %v1754_v25  ;;  %v1761_v57 = vsub.f32 %v5530_v19, %v1715_v10 }
 0x2f5   : > { %4652 = vpow2.f32 %v1802_v2  ;;  %v1814_v11 = vmul.f32 1.442695, %v1758_v28  ;;  %v1810_v59 = vmul.f32 1.442695, %v1756_v54  ;;  %v1812_v4 = vmul.f32 1.442695, %v1757_v8 }
 0x2f6   : > { %4654 = vpow2.f32 %v1798_v55  ;;  %v1820_v53 = vmul.f32 1.442695, %v1761_v57  ;;  %v1717_v27 = vperm.slane %v5640_v52, 7  ;;  %v1759_v35 = vsub.f32 %v5518_v14, %v1714_v58 }
 0x2f7   : > { %4656 = vpow2.f32 %v1800_v29  ;;  %v1760_v19 = vsub.f32 %v5516_v36, %v1715_v10  ;;  %v1716_v48 = vperm.slane %v5640_v52, 6 }
 0x2f8   : > { %4658 = vpow2.f32 %v1808_v3  ;;  %v1764_v1 = vsub.f32 %v5563_v49, %v1717_v27  ;;  %v1816_v40 = vmul.f32 1.442695, %v1759_v35 }
 0x2f9   : > { %1902 = vperm.xlu2 %4552, %v5655_v0   ;;  %4660 = vpow2.f32 %v1804_v39  ;;  %v1818_v41 = vmul.f32 1.442695, %v1760_v19  ;;  %v1762_v36 = vsub.f32 %v5542_v46, %v1716_v48  ;;  %v1763_v49 = vsub.f32 %v5547_v18, %v1716_v48 }
 0x2fa   : > { %1905 = vperm.xlu1 %4551, %v5657_v32   ;;  %4662 = vpow2.f32 %v1806_v33  ;;  %v1826_v14 = vmul.f32 1.442695, %v1764_v1  ;;  %v1765_v46 = vsub.f32 %v5566_v63, %v1717_v27 }
 0x2fb   : > { %v5663_v37 = vpop.eup %4652  ;;  %4664 = vpow2.f32 %v1814_v11  ;;  %v1822_v52 = vmul.f32 1.442695, %v1762_v36  ;;  %v1824_v2 = vmul.f32 1.442695, %v1763_v49 }
 0x2fc   : > { %7117 = vst [vmem:[#allocation40_spill] sm:$0xff] %v5663_v37  ;;  %1917 = vperm.xlu0 %4553, %v5663_v37   ;;  %v5669_v47 = vpop.eup %4654  ;;  %4666 = vpow2.f32 %v1810_v59  ;;  %v1828_v18 = vmul.f32 1.442695, %v1765_v46 }
 0x2fd   : > { %v5671_v24 = vpop.eup %4656  ;;  %4668 = vpow2.f32 %v1812_v4 }
 0x2fe   : > { %v5677_v15 = vpop.eup %4658  ;;  %4670 = vpow2.f32 %v1820_v53 }
 0x2ff   : > { %7118 = vst [vmem:[#allocation41_spill] sm:$0xff] %v5677_v15  ;;  %v5682_v61 = vpop.eup %4660  ;;  %4672 = vpow2.f32 %v1816_v40 }
 0x300   : > { %v5684_v22 = vpop.eup %4662  ;;  %4674 = vpow2.f32 %v1818_v41 }
 0x301   : > { %1911 = vperm.xlu2 %4552, %v5669_v47   ;;  %v5690_v56 = vpop.eup %4664  ;;  %4676 = vpow2.f32 %v1826_v14 }
 0x302   : > { %1914 = vperm.xlu1 %4551, %v5671_v24   ;;  %7119 = vst [vmem:[#allocation42_spill] sm:$0xff] %v5690_v56  ;;  %v5696_v62 = vpop.eup %4666  ;;  %4678 = vpow2.f32 %v1822_v52 }
 0x303   : > { %v5698_v17 = vpop.eup %4668  ;;  %4680 = vpow2.f32 %v1824_v2 }
 0x304   : > { %1926 = vperm.xlu0 %4553, %v5677_v15   ;;  %v5703_v16 = vpop.eup %4670  ;;  %4682 = vpow2.f32 %v1828_v18 }
 0x305   : > { %7120 = vst [vmem:[#allocation43_spill] sm:$0xff] %v5703_v16  ;;  %v5707_v44 = vpop.eup %4672 }
 0x306   : > { %v5709_v43 = vpop.eup %4674 }
 0x307   : > { %v5714_v55 = vpop.eup %4676 }
 0x308   : > { %7121 = vst [vmem:[#allocation44_spill] sm:$0xff] %v5714_v55  ;;  %v5717_v29 = vpop.eup %4678 }
 0x309   : > { %1920 = vperm.xlu2 %4552, %v5682_v61   ;;  %7122 = vst [vmem:[#allocation45_spill] sm:$0xff] %v5717_v29  ;;  %v5719_v3 = vpop.eup %4680 }
 0x30a   : > { %1923 = vperm.xlu1 %4551, %v5684_v22   ;;  %7123 = vst [vmem:[#allocation46_spill] sm:$0xff] %v5719_v3  ;;  %v5723_v58 = vpop.eup %4682 }
 0x30b   : > { %7124 = vst [vmem:[#allocation47_spill] sm:$0xff] %v5723_v58 }
 0x30c   : > { %1935 = vperm.xlu0 %4553, %v5690_v56  }
 0x311   : > { %1929 = vperm.xlu2 %4552, %v5696_v62  }
 0x312   : > { %1932 = vperm.xlu1 %4551, %v5698_v17  }
 0x314   : > { %1944 = vperm.xlu0 %4553, %v5703_v16  }
 0x319   : > { %1938 = vperm.xlu2 %4552, %v5707_v44  }
 0x31a   : > { %1941 = vperm.xlu1 %4551, %v5709_v43  }
 0x31c   : > { %1953 = vperm.xlu0 %4553, %v5714_v55  }
 0x321   : > { %1947 = vperm.xlu2 %4552, %v5717_v29  }
 0x322   : > { %1950 = vperm.xlu1 %4551, %v5719_v3  }
 0x329   : > { %1956 = vperm.xlu2 %4552, %v5723_v58  }
 0x32b   : > { %v1867_v63 = vpop.permute.xlu2 %1866 }
 0x32c   : > { %v1959_v19 = vperm.slane %v1867_v63, %v5436_v42 }
 0x333   : > { %v1873_v30 = vpop.permute.xlu2 %1872 }
 0x334   : > { %v1962_v1 = vperm.slane %v1873_v30, %v5436_v42 }
 0x33b   : > { %v1879_v25 = vpop.permute.xlu2 %1878 }
 0x33c   : > { %v1965_v48 = vperm.slane %v1879_v25, %v5436_v42 }
 0x343   : > { %v1885_v28 = vpop.permute.xlu2 %1884 }
 0x344   : > { %v1864_v39 = vpop.permute.xlu1 %1863  ;;  %v1968_v36 = vperm.slane %v1885_v28, %v5436_v42 }
 0x345   : > { %v1870_v9 = vpop.permute.xlu0 %1869  ;;  %v1958_v4 = vperm.slane %v1864_v39, %v5431_v13 }
 0x346   : > { %v1961_v53 = vperm.slane %v1870_v9, %v5431_v13 }
 0x347   : > { %v1960_v49 = vsel %vm7045_vm8, %v1959_v19, %v1958_v4 }
 0x348   : > { %v1963_v52 = vsel %vm7045_vm8, %v1962_v1, %v1961_v53 }
 0x349   : > { %v2006_v39 = vsel %vm7037_vm9, %v1963_v52, %v1960_v49 }
 0x34b   : > { %v1894_v11 = vpop.permute.xlu2 %1893 }
 0x34c   : > { %v1876_v33 = vpop.permute.xlu1 %1875  ;;  %v1973_v30 = vperm.slane %v1894_v11, %v5431_v13 }
 0x34d   : > { %v1891_v10 = vpop.permute.xlu0 %1890  ;;  %v1964_v35 = vperm.slane %v1876_v33, %v5431_v13 }
 0x34e   : > { %v1971_v18 = vperm.slane %v1891_v10, %v5436_v42 }
 0x34f   : > { %v1966_v46 = vsel %vm7045_vm8, %v1965_v48, %v1964_v35 }
 0x350   : > { %v2007_v28 = vsel %vm7036_vm10, %v1966_v46, %v2006_v39 }
 0x353   : > { %v1903_v8 = vpop.permute.xlu2 %1902 }
 0x354   : > { %v1882_v54 = vpop.permute.xlu1 %1881 }
 0x355   : > { %v1900_v57 = vpop.permute.xlu0 %1899  ;;  %v1967_v40 = vperm.slane %v1882_v54, %v5431_v13  ;;  %v1977_v54 = vperm.slane %v1903_v8, %v5436_v42 }
 0x356   : > { %v1976_v4 = vperm.slane %v1900_v57, %v5431_v13 }
 0x357   : > { %v1969_v25 = vsel %vm7045_vm8, %v1968_v36, %v1967_v40 }
 0x358   : > { %v1978_v40 = vsel %vm7045_vm8, %v1977_v54, %v1976_v4 }
 0x35b   : > { %v1912_v27 = vpop.permute.xlu2 %1911 }
 0x35c   : > { %v1888_v59 = vpop.permute.xlu1 %1887 }
 0x35d   : > { %v1970_v41 = vperm.slane %v1888_v59, %v5431_v13  ;;  %v1909_v63 = vpop.permute.xlu0 %1908  ;;  %v2008_v59 = vsel %vm7034_vm11, %v1969_v25, %v2007_v28  ;;  %v1982_v28 = vperm.slane %v1912_v27, %v5431_v13 }
 0x35e   : > { %v1980_v19 = vperm.slane %v1909_v63, %v5436_v42 }
 0x35f   : > { %v1972_v9 = vsel %vm7045_vm8, %v1971_v18, %v1970_v41 }
 0x360   : > { %v2009_v10 = vsel %vm7033_vm12, %v1972_v9, %v2008_v59 }
 0x363   : > { %v1921_v53 = vpop.permute.xlu2 %1920 }
 0x364   : > { %v1897_v14 = vpop.permute.xlu1 %1896 }
 0x365   : > { %v1974_v2 = vperm.slane %v1897_v14, %v5436_v42 }
 0x367   : > { %v1975_v33 = vsel %vm7045_vm8, %v1974_v2, %v1973_v30 }
 0x368   : > { %v2010_v35 = vsel %vm7030_vm13, %v1975_v33, %v2009_v10  ;;  %v1986_v10 = vperm.slane %v1921_v53, %v5436_v42 }
 0x369   : > { %v2011_v8 = vsel %vm7027_vm14, %v1978_v40, %v2010_v35 }
 0x36b   : > { %v1930_v49 = vpop.permute.xlu2 %1929 }
 0x36c   : > { %v1906_v11 = vpop.permute.xlu1 %1905 }
 0x36d   : > { %v1979_v1 = vperm.slane %v1906_v11, %v5431_v13  ;;  %v1991_v11 = vperm.slane %v1930_v49, %v5431_v13 }
 0x36e   : > { %v1918_v48 = vpop.permute.xlu0 %1917 }
 0x36f   : > { %v1981_v41 = vsel %vm7045_vm8, %v1980_v19, %v1979_v1  ;;  %v1985_v33 = vperm.slane %v1918_v48, %v5431_v13 }
 0x370   : > { %v2012_v14 = vsel %vm7024_vm15, %v1981_v41, %v2011_v8 }
 0x371   : > { %v2022_v57 = vsel %vm7043_vm0, %v2012_v14, 0.0  ;;  %v1987_v1 = vsel %vm7045_vm8, %v1986_v10, %v1985_v33 }
 0x372   : > { %2023 = vadd.xlane.f32.xlu1 %v2022_v57 }
 0x373   : > { %v1939_v18 = vpop.permute.xlu2 %1938 }
 0x374   : > { %v1915_v36 = vpop.permute.xlu1 %1914  ;;  %v1995_v57 = vperm.slane %v1939_v18, %v5436_v42 }
 0x375   : > { %v1983_v39 = vperm.slane %v1915_v36, %v5436_v42 }
 0x376   : > { %v1927_v52 = vpop.permute.xlu0 %1926 }
 0x377   : > { %v1989_v4 = vperm.slane %v1927_v52, %v5436_v42  ;;  %v1984_v35 = vsel %vm7045_vm8, %v1983_v39, %v1982_v28 }
 0x378   : > { %v2013_v48 = vsel %vm7037_vm9, %v1987_v1, %v1984_v35 }
 0x37b   : > { %v1948_v25 = vpop.permute.xlu2 %1947 }
 0x37c   : > { %v1924_v2 = vpop.permute.xlu1 %1923  ;;  %v2000_v39 = vperm.slane %v1948_v25, %v5431_v13 }
 0x37d   : > { %v1988_v9 = vperm.slane %v1924_v2, %v5431_v13 }
 0x37e   : > { %v1936_v46 = vpop.permute.xlu0 %1935 }
 0x37f   : > { %v1990_v19 = vsel %vm7045_vm8, %v1989_v4, %v1988_v9  ;;  %v1994_v41 = vperm.slane %v1936_v46, %v5431_v13 }
 0x380   : > { %v2014_v14 = vsel %vm7036_vm10, %v1990_v19, %v2013_v48 }
 0x381   : > { %v1996_v9 = vsel %vm7045_vm8, %v1995_v57, %v1994_v41 }
 0x383   : > { %v1957_v49 = vpop.permute.xlu2 %1956 }
 0x384   : > { %v1933_v63 = vpop.permute.xlu1 %1932  ;;  %v2004_v28 = vperm.slane %v1957_v49, %v5436_v42 }
 0x385   : > { %v1992_v54 = vperm.slane %v1933_v63, %v5436_v42 }
 0x386   : > { %v1945_v30 = vpop.permute.xlu0 %1944 }
 0x387   : > { %v1993_v40 = vsel %vm7045_vm8, %v1992_v54, %v1991_v11  ;;  %v1998_v53 = vperm.slane %v1945_v30, %v5436_v42 }
 0x388   : > { %v2015_v36 = vsel %vm7034_vm11, %v1993_v40, %v2014_v14 }
 0x389   : > { %v2016_v30 = vsel %vm7033_vm12, %v1996_v9, %v2015_v36 }
 0x38c   : > { %v1942_v59 = vpop.permute.xlu1 %1941 }
 0x38d   : > { %v1997_v27 = vperm.slane %v1942_v59, %v5431_v13 }
 0x38e   : > { %v1954_v8 = vpop.permute.xlu0 %1953 }
 0x38f   : > { %v1999_v52 = vsel %vm7045_vm8, %v1998_v53, %v1997_v27  ;;  %v2003_v2 = vperm.slane %v1954_v8, %v5431_v13 }
 0x390   : > { %v2017_v33 = vsel %vm7030_vm13, %v1999_v52, %v2016_v30 }
 0x391   : > { %v2005_v54 = vsel %vm7045_vm8, %v2004_v28, %v2003_v2 }
 0x394   : > { %v1951_v63 = vpop.permute.xlu1 %1950 }
 0x395   : > { %v2001_v46 = vperm.slane %v1951_v63, %v5436_v42 }
 0x397   : > { %v2002_v18 = vsel %vm7045_vm8, %v2001_v46, %v2000_v39 }
 0x398   : > { %v2018_v59 = vsel %vm7027_vm14, %v2002_v18, %v2017_v33 }
 0x399   : > { %v2019_v4 = vsel %vm7024_vm15, %v2005_v54, %v2018_v59 }
 0x39a   : > { %v2025_v25 = vsel %vm7043_vm0, %v2019_v4, 0.0 }
 0x39b   : > { %2026 = vadd.xlane.f32.xlu0 %v2025_v25 }
 0x3e5   : > { %v2024_v10 = vpop.xlane.xlu1 %2023 }
 0x3e6   : > { %v5790_v11 = vperm.slane %v2024_v10, 0  ;;  %v5792_v35 = vperm.slane %v2024_v10, 1  ;;  %v5794_v19 = vperm.slane %v2024_v10, 2  ;;  %v5796_v1 = vperm.slane %v2024_v10, 3 }
 0x3e7   : > { %v5799_v40 = vperm.slane %v2024_v10, 5  ;;  %v5802_v27 = vperm.slane %v2024_v10, 6  ;;  %v5807_v8 = vperm.slane %v2024_v10, 4  ;;  %v5811_v53 = vperm.slane %v2024_v10, 7 }
 0x3e8   : > { %4684 = vrcp.f32 %v5790_v11  ;;  %v2105_v48 = vand.u32 2147483648, %v5794_v19  ;;  %v2073_v41 = vand.u32 2147483648, %v5790_v11  ;;  %v2071_v14 = vand.u32 2147483647, %v5790_v11 }
 0x3e9   : > { %4686 = vrcp.f32 %v5792_v35  ;;  %v2121_v57 = vand.u32 2147483648, %v5796_v1  ;;  %v2103_v36 = vand.u32 2147483647, %v5794_v19  ;;  %vm2067_vm1 = vweird.f32 %v5790_v11 }
 0x3ea   : > { %4688 = vrcp.f32 %v5794_v19  ;;  %v2153_v49 = vand.u32 2147483648, %v5799_v40  ;;  %vm2099_vm2 = vweird.f32 %v5794_v19  ;;  %v5820_v2 = vor.u32 1.1754944e-38, %v2105_v48 }
 0x3eb   : > { %4690 = vrcp.f32 %v5796_v1  ;;  %v2074_v63 = vor.u32 1.1754944e-38, %v2073_v41  ;;  %v2119_v39 = vand.u32 2147483647, %v5796_v1  ;;  %vm5827_vm3 = vcmp.eq.f32.partialorder %v2071_v14, 8.507059e+37 }
 0x3ec   : > { %4692 = vrcp.f32 %v5799_v40  ;;  %vm2115_vm4 = vweird.f32 %v5796_v1  ;;  %v5832_v30 = vor.u32 1.1754944e-38, %v2121_v57  ;;  %v2151_v18 = vand.u32 2147483647, %v5799_v40 }
 0x3ed   : > { %4694 = vrcp.f32 %v5802_v27  ;;  %v2167_v54 = vand.u32 2147483647, %v5802_v27  ;;  %v2169_v59 = vand.u32 2147483648, %v5802_v27  ;;  %vm5841_vm5 = vcmp.eq.f32.partialorder %v2103_v36, 8.507059e+37 }
 0x3ee   : > { %v4685_v52 = vpop.eup %4684  ;;  %4696 = vrcp.f32 %v5807_v8  ;;  %v2154_v14 = vor.u32 1.1754944e-38, %v2153_v49  ;;  %vm5846_vm15 = vcmp.eq.f32.partialorder %v2119_v39, 8.507059e+37  ;;  %vm2083_vm13 = vweird.f32 %v5792_v35 }
 0x3ef   : > { %v5823_v9 = vpop.eup %4686  ;;  %v2063_v46 = vmul.f32 %v4685_v52, %v5790_v11  ;;  %4698 = vrcp.f32 %v5811_v53  ;;  %vm2068_vm6 = vweird.f32 %v4685_v52  ;;  %vm5854_vm10 = vcmp.eq.f32.partialorder %v2151_v18, 8.507059e+37 }
 0x3f0   : > { %v4689_v33 = vpop.eup %4688  ;;  %v2079_v4 = vmul.f32 %v5823_v9, %v5792_v35  ;;  %vm2084_vm11 = vweird.f32 %v5823_v9  ;;  %v2170_v15 = vor.u32 1.1754944e-38, %v2169_v59  ;;  %v2089_v37 = vand.u32 2147483648, %v5792_v35  ;;  %vm2069_vm0 = vmor %vm2067_vm1, %vm2068_vm6 }
 0x3f1   : > { %v4691_v25 = vpop.eup %4690  ;;  %v2095_v10 = vmul.f32 %v4689_v33, %v5794_v19  ;;  %v2064_v41 = vsub.f32 1.0, %v2063_v46  ;;  %vm2100_vm7 = vweird.f32 %v4689_v33  ;;  %vm5869_vm8 = vcmp.eq.f32.partialorder %v2167_v54, 8.507059e+37 }
 0x3f2   : > { %v2111_v57 = vmul.f32 %v4691_v25, %v5796_v1  ;;  %v2080_v13 = vsub.f32 1.0, %v2079_v4  ;;  %v4693_v55 = vpop.eup %4692  ;;  %vm2116_vm12 = vweird.f32 %v4691_v25  ;;  %vm2101_vm9 = vmor %vm2099_vm2, %vm2100_vm7 }
 0x3f3   : > { %v2096_v36 = vsub.f32 1.0, %v2095_v10  ;;  %v2065_v16 = vmul.f32 %v4685_v52, %v2064_v41  ;;  %v4695_v46 = vpop.eup %4694  ;;  %v2143_v56 = vmul.f32 %v4693_v55, %v5799_v40  ;;  %vm2148_vm14 = vweird.f32 %v4693_v55  ;;  %vm2117_vm1 = vmor %vm2115_vm4, %vm2116_vm12 }
 0x3f4   : > { %v2112_v49 = vsub.f32 1.0, %v2111_v57  ;;  %v2081_v4 = vmul.f32 %v5823_v9, %v2080_v13  ;;  %v5860_v58 = vpop.eup %4696  ;;  %v2159_v31 = vmul.f32 %v4695_v46, %v5802_v27  ;;  %vm2164_vm6 = vweird.f32 %v4695_v46 }
 0x3f5   : > { %v2097_v10 = vmul.f32 %v4689_v33, %v2096_v36  ;;  %v2066_v41 = vadd.f32 %v4685_v52, %v2065_v16  ;;  %v5864_v57 = vpop.eup %4698  ;;  %v2144_v29 = vsub.f32 1.0, %v2143_v56  ;;  %v2087_v16 = vand.u32 2147483647, %v5792_v35 }
 0x3f6   : > { %v2113_v18 = vmul.f32 %v4691_v25, %v2112_v49  ;;  %v2082_v13 = vadd.f32 %v5823_v9, %v2081_v4  ;;  %v2160_v60 = vsub.f32 1.0, %v2159_v31  ;;  %v2127_v31 = vmul.f32 %v5860_v58, %v5807_v8 }
 0x3f7   : > { %v2098_v36 = vadd.f32 %v4689_v33, %v2097_v10  ;;  %v2070_v3 = vsel %vm2069_vm0, %v4685_v52, %v2066_v41  ;;  %v2145_v54 = vmul.f32 %v4693_v55, %v2144_v29  ;;  %vm5890_vm0 = vmor %vm2083_vm13, %vm2084_vm11  ;;  %vm2088_vm12 = vcmp.eq.f32.partialorder %v2087_v16, 8.507059e+37 }
 0x3f8   : > { %v2075_v11 = vsel %vm5827_vm3, %v2074_v63, %v2070_v3  ;;  %v2114_v56 = vadd.f32 %v4691_v25, %v2113_v18  ;;  %v2161_v10 = vmul.f32 %v4695_v46, %v2160_v60  ;;  %v2090_v3 = vor.u32 1.1754944e-38, %v2089_v37 }
 0x3f9   : > { %v2102_v49 = vsel %vm2101_vm9, %v4689_v33, %v2098_v36  ;;  %v5884_v4 = vmul.f32 %v5594_v50, %v2075_v11  ;;  %v2146_v1 = vadd.f32 %v4693_v55, %v2145_v54  ;;  %v2086_v50 = vsel %vm5890_vm0, %v5823_v9, %v2082_v13 }
 0x3fa   : > { %v2107_v19 = vsel %vm5841_vm5, %v5820_v2, %v2102_v49  ;;  %v2118_v29 = vsel %vm2117_vm1, %v4691_v25, %v2114_v56  ;;  %vm7137_vm9 = vweird.f32 %v5799_v40  ;;  %v5912_v52 = vmul.f32 %v5591_v45, %v2075_v11 }
 0x3fb   : > { %v5901_v60 = vmul.f32 %v5618_v23, %v2107_v19  ;;  %v2318_v35 = vpack.c.bf16 %v5884_v4, %v5884_v4  ;;  %v2123_v37 = vsel %vm5846_vm15, %v5832_v30, %v2118_v29  ;;  %vm2149_vm11 = vmor %vm7137_vm9, %vm2148_vm14  ;;  %v2162_v23 = vadd.f32 %v4695_v46, %v2161_v10 }
 0x3fc   : > { %v5915_v2 = vmul.f32 %v5629_v51, %v2123_v37  ;;  %v2150_v63 = vsel %vm2149_vm11, %v4693_v55, %v2146_v1  ;;  %vm7138_vm13 = vweird.f32 %v5802_v27  ;;  %v2091_v40 = vsel %vm2088_vm12, %v2090_v3, %v2086_v50 }
 0x3fd   : > { %v2323_v9 = vpack.c.bf16 %v5901_v60, %v5901_v60  ;;  %v2352_v28 = vunpack.c.l.b16 %v2318_v35  ;;  %v2155_v42 = vsel %vm5854_vm10, %v2154_v14, %v2150_v63  ;;  %vm2165_vm14 = vmor %vm7138_vm13, %vm2164_vm6  ;;  %v2319_v48 = vpack.c.bf16 %v5912_v52, %v5912_v52 }
 0x3fe   : > { %v2325_v45 = vpack.c.bf16 %v5915_v2, %v5915_v2  ;;  %v5927_v51 = vmul.f32 %v5644_v21, %v2155_v42  ;;  %v5930_v55 = vmul.f32 %v5646_v26, %v2155_v42  ;;  %v2166_v30 = vsel %vm2165_vm14, %v4695_v46, %v2162_v23 }
 0x3ff   : > { %v2431_v33 = vunpack.c.l.b16 %v2323_v9  ;;  %v4067_v25 = vunpack.i.l.s16 %v2352_v28  ;;  %v5936_v27 = vsel %vm5869_vm8, %v2170_v15, %v2166_v30  ;;  %v5941_v21 = vmul.f32 %v5597_v7, %v2091_v40 }
 0x400   : > { %v2470_v14 = vunpack.c.l.b16 %v2325_v45  ;;  %v2328_v39 = vpack.c.bf16 %v5927_v51, %v5927_v51  ;;  %v2175_v26 = vmul.f32 %v5864_v57, %v5811_v53  ;;  %v2329_v18 = vpack.c.bf16 %v5930_v55, %v5930_v55 }
 0x401   : > { %v4082_v41 = vunpack.i.l.s16 %v2431_v33  ;;  %2358 = vperm.xlu2 %4552, %v4067_v25   ;;  %v5949_v15 = vmul.f32 %v5655_v0, %v5936_v27  ;;  %v2353_v59 = vunpack.c.l.b16 %v2319_v48  ;;  %v2320_v7 = vpack.c.bf16 %v5941_v21, %v5941_v21 }
 0x402   : > { %v4089_v46 = vunpack.i.l.s16 %v2470_v14  ;;  %v2176_v13 = vsub.f32 1.0, %v2175_v26  ;;  %v2547_v16 = vunpack.c.l.b16 %v2328_v39  ;;  %v2183_v36 = vand.u32 2147483647, %v5811_v53 }
 0x403   : > { %2439 = vperm.xlu1 %4551, %v4082_v41   ;;  %v2185_v11 = vand.u32 2147483648, %v5811_v53  ;;  %vm2180_vm8 = vweird.f32 %v5864_v57  ;;  %v2548_v54 = vunpack.c.l.b16 %v2329_v18  ;;  %v2331_v0 = vpack.c.bf16 %v5949_v15, %v5949_v15 }
 0x404   : > { %2478 = vperm.xlu0 %4553, %v4089_v46   ;;  %v2177_v56 = vmul.f32 %v5864_v57, %v2176_v13  ;;  %v4068_v49 = vunpack.i.l.s16 %v2353_v59  ;;  %vm2179_vm10 = vweird.f32 %v5811_v53  ;;  %v4102_v3 = vunpack.i.l.s16 %v2547_v16  ;;  %v4379_v13 = vld [vmem:[%s7013_s3 + $0xf4] sm:$0xf] }
 0x405   : > { %v2391_v29 = vunpack.c.l.b16 %v2320_v7  ;;  %vm2181_vm15 = vmor %vm2179_vm10, %vm2180_vm8  ;;  %vm2184_vm2 = vcmp.eq.f32.partialorder %v2183_v36, 8.507059e+37  ;;  %v2186_v1 = vor.u32 1.1754944e-38, %v2185_v11  ;;  %v5965_v35 = vmul.f32 %v5604_v5, %v2091_v40 }
 0x406   : > { %v2178_v10 = vadd.f32 %v5864_v57, %v2177_v56  ;;  %v5968_v63 = vmul.f32 %v5607_v38, %v2107_v19  ;;  %v2128_v23 = vsub.f32 1.0, %v2127_v31  ;;  %v4103_v9 = vunpack.i.l.s16 %v2548_v54 }
 0x407   : > { %v2587_v53 = vunpack.c.l.b16 %v2331_v0  ;;  %v5973_v42 = vmul.f32 %v5620_v20, %v2123_v37  ;;  %v2321_v38 = vpack.c.bf16 %v5965_v35, %v5965_v35  ;;  %v4074_v37 = vunpack.i.l.s16 %v2391_v29 }
 0x408   : > { %v2182_v50 = vsel %vm2181_vm15, %v5864_v57, %v2178_v10  ;;  %v2129_v57 = vmul.f32 %v5860_v58, %v2128_v23  ;;  %v2322_v19 = vpack.c.bf16 %v5968_v63, %v5968_v63  ;;  %vm2132_vm3 = vweird.f32 %v5860_v58 }
 0x409   : > { %2361 = vperm.xlu2 %4552, %v4068_v49   ;;  %v5970_v28 = vsel %vm2184_vm2, %v2186_v1, %v2182_v50  ;;  %v4110_v20 = vunpack.i.l.s16 %v2587_v53  ;;  %vm2131_vm4 = vweird.f32 %v5807_v8  ;;  %v2135_v39 = vand.u32 2147483647, %v5807_v8  ;;  %v4011_v53 = vld [vmem:[%s7013_s3 + $0xdc] sm:$0xf0] }
 0x40a   : > { %v5977_v45 = vmul.f32 %v5657_v32, %v5970_v28  ;;  %v2324_v32 = vpack.c.bf16 %v5973_v42, %v5973_v42  ;;  %v2130_v48 = vadd.f32 %v5860_v58, %v2129_v57  ;;  %v2137_v41 = vand.u32 2147483648, %v5807_v8  ;;  %vm6015_vm5 = vmor %vm2131_vm4, %vm2132_vm3 }
 0x40b   : > { %2553 = vperm.xlu1 %4551, %v4102_v3   ;;  %v2392_v46 = vunpack.c.l.b16 %v2321_v38  ;;  %v6008_v18 = vunpack.c.l.b16 %v2322_v19  ;;  %vm2136_vm7 = vcmp.eq.f32.partialorder %v2135_v39, 8.507059e+37  ;;  %v6039_v3 = vmul.f32 %v5623_v6, %v5936_v27 }
 0x40c   : > { %2556 = vperm.xlu0 %4553, %v4103_v9   ;;  %v2332_v5 = vpack.c.bf16 %v5977_v45, %v5977_v45  ;;  %v6011_v59 = vunpack.c.l.b16 %v2324_v32  ;;  %v2134_v7 = vsel %vm6015_vm5, %v5860_v58, %v2130_v48  ;;  %v2138_v56 = vor.u32 1.1754944e-38, %v2137_v41 }
 0x40d   : > { %v4075_v0 = vunpack.i.l.s16 %v2392_v46  ;;  %v4081_v49 = vunpack.i.l.s16 %v6008_v18 }
 0x40e   : > { %v5986_v40 = vpop.xlane.xlu0 %2026  ;;  %v2625_v26 = vunpack.c.l.b16 %v2332_v5  ;;  %v4088_v10 = vunpack.i.l.s16 %v6011_v59  ;;  %v6034_v31 = vsel %vm2136_vm7, %v2138_v56, %v2134_v7 }
 0x40f   : > { %v5992_v30 = vperm.slane %v5986_v40, 0  ;;  %v5995_v33 = vperm.slane %v5986_v40, 1  ;;  %v5998_v25 = vperm.slane %v5986_v40, 2  ;;  %v6002_v14 = vperm.slane %v5986_v40, 3 }
 0x410   : > { %v6020_v16 = vperm.slane %v5986_v40, 5  ;;  %v4116_v8 = vunpack.i.l.s16 %v2625_v26  ;;  %v6030_v54 = vperm.slane %v5986_v40, 4  ;;  %v6042_v1 = vperm.slane %v5986_v40, 6 }
 0x411   : > { %4700 = vrcp.f32 %v5992_v30  ;;  %2397 = vperm.xlu2 %4552, %v4074_v37   ;;  %v2199_v36 = vand.u32 2147483647, %v5992_v30  ;;  %v2201_v11 = vand.u32 2147483648, %v5992_v30  ;;  %v2231_v58 = vand.u32 2147483647, %v5998_v25 }
 0x412   : > { %4702 = vrcp.f32 %v5995_v33  ;;  %vm2195_vm1 = vweird.f32 %v5992_v30  ;;  %v2233_v50 = vand.u32 2147483648, %v5998_v25  ;;  %vm2227_vm0 = vweird.f32 %v5998_v25  ;;  %v4051_v37 = vld [vmem:[%s7013_s3 + $0x12c] sm:$0xf0] }
 0x413   : > { %4704 = vrcp.f32 %v5998_v25  ;;  %2595 = vperm.xlu1 %4551, %v4110_v20   ;;  %vm6050_vm6 = vcmp.eq.f32.partialorder %v2199_v36, 8.507059e+37  ;;  %v2202_v6 = vor.u32 1.1754944e-38, %v2201_v11  ;;  %v2215_v27 = vand.u32 2147483647, %v5995_v33  ;;  %v4384_v20 = vld [vmem:[%s7013_s3 + $0x11c] sm:$0xf] }
 0x414   : > { %4706 = vrcp.f32 %v6002_v14  ;;  %2631 = vperm.xlu0 %4553, %v4116_v8   ;;  %v6059_v5 = vmul.f32 %v5631_v34, %v6034_v31  ;;  %v2217_v19 = vand.u32 2147483648, %v5995_v33  ;;  %vm6073_vm9 = vcmp.eq.f32.partialorder %v2231_v58, 8.507059e+37  ;;  %v4031_v8 = vld [vmem:[%s7013_s3 + $0x104] sm:$0xf0] }
 0x415   : > { %4708 = vrcp.f32 %v6020_v16  ;;  %vm2211_vm11 = vweird.f32 %v5995_v33  ;;  %v2234_v41 = vor.u32 1.1754944e-38, %v2233_v50  ;;  %v4054_v46 = vor.u32 %v4384_v20, %v4051_v37 }
 0x416   : > { %4710 = vrcp.f32 %v6030_v54  ;;  %vm6086_vm13 = vcmp.eq.f32.partialorder %v2215_v27, 8.507059e+37  ;;  %v2218_v58 = vor.u32 1.1754944e-38, %v2217_v19  ;;  %v4034_v20 = vor.u32 %v4379_v13, %v4031_v8 }
 0x417   : > { %v4701_v29 = vpop.eup %4700  ;;  %1280 = vmatpush.bf16.msra.mxu1 %v4054_v46  ;;  %vm2243_vm15 = vweird.f32 %v6002_v14  ;;  %v2249_v13 = vand.u32 2147483648, %v6002_v14  ;;  %4712 = vrcp.f32 %v6042_v1  ;;  %v2279_v59 = vand.u32 2147483647, %v6020_v16 }
 0x418   : > { %v6047_v23 = vpop.eup %4702  ;;  %v2191_v9 = vmul.f32 %v4701_v29, %v5992_v30  ;;  %vm2196_vm12 = vweird.f32 %v4701_v29  ;;  %v2247_v30 = vand.u32 2147483647, %v6002_v14 }
 0x419   : > { %v4705_v57 = vpop.eup %4704  ;;  %2400 = vperm.xlu2 %4552, %v4075_v0   ;;  %v2207_v38 = vmul.f32 %v6047_v23, %v5995_v33  ;;  %vm2212_vm14 = vweird.f32 %v6047_v23  ;;  %vm2197_vm10 = vmor %vm2195_vm1, %vm2196_vm12  ;;  %v2250_v11 = vor.u32 1.1754944e-38, %v2249_v13  ;;  %vm2259_vm12 = vweird.f32 %v6030_v54 }
 0x41a   : > { %v6070_v32 = vpop.eup %4706  ;;  %v2192_v48 = vsub.f32 1.0, %v2191_v9  ;;  %v2223_v39 = vmul.f32 %v4705_v57, %v5998_v25  ;;  %vm2228_vm8 = vweird.f32 %v4705_v57  ;;  %vm6106_vm3 = vmor %vm2211_vm11, %vm2212_vm14  ;;  %vm2248_vm7 = vcmp.eq.f32.partialorder %v2247_v30, 8.507059e+37  ;;  %v4359_v30 = vld [vmem:[%s7013_s3 + $0x54] sm:$0xf] }
 0x41b   : > { %v2208_v26 = vsub.f32 1.0, %v2207_v38  ;;  %v2239_v18 = vmul.f32 %v6070_v32, %v6002_v14  ;;  %v6090_v56 = vpop.eup %4708  ;;  %vm2244_vm2 = vweird.f32 %v6070_v32  ;;  %vm2229_vm4 = vmor %vm2227_vm0, %vm2228_vm8  ;;  %1281 = vmatpush.bf16.msra.mxu1 %v4034_v20  ;;  %v6169_v14 = vperm.slane %v5986_v40, 7 }
 0x41c   : > { %v2193_v7 = vmul.f32 %v4701_v29, %v2192_v48  ;;  %v2224_v36 = vsub.f32 1.0, %v2223_v39  ;;  %v6094_v37 = vpop.eup %4710  ;;  %v2271_v46 = vmul.f32 %v6090_v56, %v6020_v16  ;;  %vm6153_vm5 = vmor %vm2243_vm15, %vm2244_vm2  ;;  %vm2276_vm1 = vweird.f32 %v6090_v56 }
 0x41d   : > { %v2209_v0 = vmul.f32 %v6047_v23, %v2208_v26  ;;  %v2240_v50 = vsub.f32 1.0, %v2239_v18  ;;  %4714 = vrcp.f32 %v6169_v14  ;;  %vm2260_vm11 = vweird.f32 %v6094_v37 }
 0x41e   : > { %v2194_v9 = vadd.f32 %v4701_v29, %v2193_v7  ;;  %v2225_v38 = vmul.f32 %v4705_v57, %v2224_v36  ;;  %v2326_v7 = vpack.c.bf16 %v6059_v5, %v6059_v5 }
 0x41f   : > { %v2210_v27 = vadd.f32 %v6047_v23, %v2209_v0  ;;  %v2241_v48 = vmul.f32 %v6070_v32, %v2240_v50 }
 0x420   : > { %v2198_v19 = vsel %vm2197_vm10, %v4701_v29, %v2194_v9  ;;  %v2226_v39 = vadd.f32 %v4705_v57, %v2225_v38  ;;  %v6174_v38 = vmul.f32 %v5610_v12, %v6034_v31  ;;  %v2330_v12 = vpack.c.bf16 %v6039_v3, %v6039_v3 }
 0x421   : > { %2436 = vperm.xlu2 %4552, %v4081_v49   ;;  %v2203_v18 = vsel %vm6050_vm6, %v2202_v6, %v2198_v19  ;;  %v2214_v33 = vsel %vm6106_vm3, %v6047_v23, %v2210_v27  ;;  %v2242_v29 = vadd.f32 %v6070_v32, %v2241_v48  ;;  %v4374_v49 = vld [vmem:[%s7013_s3 + $0xcc] sm:$0xf]  ;;  %vm2275_vm6 = vweird.f32 %v6020_v16 }
 0x422   : > { %v6130_v25 = vmul.f32 %v5671_v24, %v2203_v18  ;;  %v6133_v6 = vmul.f32 %v5669_v47, %v2203_v18  ;;  %v2230_v23 = vsel %vm2229_vm4, %v4705_v57, %v2226_v39  ;;  %v6137_v8 = vsel %vm6086_vm13, %v2218_v58, %v2214_v33  ;;  %v4369_v39 = vld [vmem:[%s7013_s3 + $0xa4] sm:$0xf]  ;;  %vm6194_vm0 = vmor %vm2275_vm6, %vm2276_vm1  ;;  %v3991_v18 = vld [vmem:[%s7013_s3 + $0xb4] sm:$0xf0]  ;;  %v6205_v33 = vpop.eup %4712 }
 0x423   : > { %v6143_v36 = vsel %vm6073_vm9, %v2234_v41, %v2230_v23  ;;  %v6147_v0 = vmul.f32 %v5682_v61, %v6137_v8  ;;  %v4014_v24 = vor.u32 %v4374_v49, %v4011_v53  ;;  %v2246_v61 = vsel %vm6153_vm5, %v6070_v32, %v2242_v29  ;;  %v4057_v53 = vld [vmem:[%s7013_s3 + $0x120] sm:$0xf]  ;;  %v4387_v23 = vld [vmem:[%s7013_s3 + $0x130] sm:$0xf0]  ;;  %vm2261_vm13 = vmor %vm2259_vm12, %vm2260_vm11 }
 0x424   : > { %v2335_v57 = vpack.c.bf16 %v6130_v25, %v6130_v25  ;;  %v2334_v34 = vpack.c.bf16 %v6133_v6, %v6133_v6  ;;  %v6163_v41 = vmul.f32 %v5684_v22, %v6143_v36  ;;  %v2272_v58 = vsub.f32 1.0, %v2271_v46 }
 0x425   : > { %1282 = vmatpush.bf16.msra.mxu1 %v4014_v24  ;;  %v2508_v22 = vunpack.c.l.b16 %v2326_v7  ;;  %v2337_v20 = vpack.c.bf16 %v6147_v0, %v6147_v0  ;;  %v2251_v32 = vsel %vm2248_vm7, %v2250_v11, %v2246_v61  ;;  %v2327_v26 = vpack.c.bf16 %v6174_v38, %v6174_v38 }
 0x426   : > { %v2665_v50 = vunpack.c.l.b16 %v2335_v57  ;;  %v2664_v9 = vunpack.c.l.b16 %v2334_v34  ;;  %v2273_v40 = vmul.f32 %v6090_v56, %v2272_v58  ;;  %v2338_v19 = vpack.c.bf16 %v6163_v41, %v6163_v41 }
 0x427   : > { %v2255_v46 = vmul.f32 %v6094_v37, %v6030_v54  ;;  %v2704_v29 = vunpack.c.l.b16 %v2337_v20  ;;  %v6208_v13 = vmul.f32 %v5698_v17, %v2251_v32  ;;  %v6211_v49 = vmul.f32 %v5696_v62, %v2251_v32  ;;  %v4364_v62 = vld [vmem:[%s7013_s3 + $0x7c] sm:$0xf] }
 0x428   : > { %v4124_v27 = vunpack.i.l.s16 %v2665_v50  ;;  %v4123_v48 = vunpack.i.l.s16 %v2664_v9  ;;  %v2274_v31 = vadd.f32 %v6090_v56, %v2273_v40  ;;  %v4095_v7 = vunpack.i.l.s16 %v2508_v22  ;;  %v6234_v9 = vpop.eup %4714 }
 0x429   : > { %2475 = vperm.xlu2 %4552, %v4088_v10   ;;  %v2281_v10 = vand.u32 2147483648, %v6020_v16  ;;  %v2742_v47 = vunpack.c.l.b16 %v2338_v19  ;;  %v2256_v17 = vsub.f32 1.0, %v2255_v46  ;;  %vm2280_vm9 = vcmp.eq.f32.partialorder %v2279_v59, 8.507059e+37  ;;  %v3951_v59 = vld [vmem:[%s7013_s3 + $0x64] sm:$0xf0] }
 0x42a   : > { %2673 = vperm.xlu0 %4553, %v4124_v27   ;;  %2670 = vperm.xlu1 %4551, %v4123_v48   ;;  %v2278_v16 = vsel %vm6194_vm0, %v6090_v56, %v2274_v31  ;;  %v3971_v56 = vld [vmem:[%s7013_s3 + $0x8c] sm:$0xf0]  ;;  %v2263_v57 = vand.u32 2147483647, %v6030_v54  ;;  %v2265_v34 = vand.u32 2147483648, %v6030_v54  ;;  %v3994_v61 = vor.u32 %v4369_v39, %v3991_v18 }
 0x42b   : > { %v2282_v24 = vor.u32 1.1754944e-38, %v2281_v10  ;;  %v2257_v58 = vmul.f32 %v6094_v37, %v2256_v17  ;;  %v4058_v50 = vor.u32 %v4387_v23, %v4057_v53  ;;  %v4131_v22 = vunpack.i.l.s16 %v2704_v29  ;;  %v4037_v27 = vld [vmem:[%s7013_s3 + $0xf8] sm:$0xf]  ;;  %v4382_v48 = vld [vmem:[%s7013_s3 + $0x108] sm:$0xf0] }
 0x42c   : > { %v2341_v20 = vpack.c.bf16 %v6208_v13, %v6208_v13  ;;  %v2340_v32 = vpack.c.bf16 %v6211_v49, %v6211_v49  ;;  %1283 = vmatpush.bf16.msra.mxu1 %v3994_v61  ;;  %v3974_v40 = vor.u32 %v4364_v62, %v3971_v56  ;;  %v4137_v19 = vunpack.i.l.s16 %v2742_v47  ;;  %v4059_v61 = vld [vmem:[%s7013_s3 + $0x134] sm:$0xf0] }
 0x42d   : > { %v6230_v11 = vsel %vm2280_vm9, %v2282_v24, %v2278_v16  ;;  %v2258_v31 = vadd.f32 %v6094_v37, %v2257_v58  ;;  %1294 = vmatpush.bf16.msra.mxu2 %v4058_v50  ;;  %v2287_v39 = vmul.f32 %v6205_v33, %v6042_v1  ;;  %v2509_v10 = vunpack.c.l.b16 %v2327_v26  ;;  %v4017_v26 = vld [vmem:[%s7013_s3 + $0xd0] sm:$0xf]  ;;  %v4377_v24 = vld [vmem:[%s7013_s3 + $0xe0] sm:$0xf0] }
 0x42e   : > { %v6258_v46 = vmul.f32 %v5709_v43, %v6230_v11  ;;  %vm2264_vm14 = vcmp.eq.f32.partialorder %v2263_v57, 8.507059e+37  ;;  %v2266_v54 = vor.u32 1.1754944e-38, %v2265_v34  ;;  %v2295_v16 = vand.u32 2147483647, %v6042_v1  ;;  %v4354_v57 = vld [vmem:[%s7013_s3 + $0x2c] sm:$0xf] }
 0x42f   : > { %v2262_v18 = vsel %vm2261_vm13, %v6094_v37, %v2258_v31  ;;  %v2288_v29 = vsub.f32 1.0, %v2287_v39  ;;  %v4038_v53 = vor.u32 %v4382_v48, %v4037_v27  ;;  %v2782_v23 = vunpack.c.l.b16 %v2341_v20  ;;  %v4385_v37 = vld [vmem:[%s7013_s3 + $0x124] sm:$0xf]  ;;  %v3931_v34 = vld [vmem:[%s7013_s3 + $0x3c] sm:$0xf0]  ;;  %v7153_v20 = vld [vmem:[#allocation39_spill] sm:$0xff] }
 0x430   : > { %v6267_v43 = vsel %vm2264_vm14, %v2266_v54, %v2262_v18  ;;  %1284 = vmatpush.bf16.msra.mxu1 %v3974_v40  ;;  %v3954_v47 = vor.u32 %v4359_v30, %v3951_v59  ;;  %v2781_v17 = vunpack.c.l.b16 %v2340_v32  ;;  %vm2292_vm8 = vweird.f32 %v6205_v33  ;;  %v4349_v48 = vld [vmem:[%s7013_s3 + $0x4] sm:$0xf]  ;;  %v3997_v30 = vld [vmem:[%s7013_s3 + $0xa8] sm:$0xf]  ;;  %v4372_v59 = vld [vmem:[%s7013_s3 + $0xb8] sm:$0xf0] }
 0x431   : > { %2514 = vperm.xlu2 %4552, %v4095_v7   ;;  %v2297_v7 = vand.u32 2147483648, %v6042_v1  ;;  %v6278_v62 = vmul.f32 %v5707_v44, %v6267_v43  ;;  %v2289_v56 = vmul.f32 %v6205_v33, %v2288_v29  ;;  %1295 = vmatpush.bf16.msra.mxu2 %v4038_v53  ;;  %v2344_v44 = vpack.c.bf16 %v6258_v46, %v6258_v46  ;;  %v4380_v53 = vld [vmem:[%s7013_s3 + $0xfc] sm:$0xf] }
 0x432   : > { %2748 = vperm.xlu0 %4553, %v4137_v19   ;;  %2712 = vperm.xlu1 %4551, %v4131_v22   ;;  %v4018_v58 = vor.u32 %v4377_v24, %v4017_v26  ;;  %v4062_v50 = vor.u32 %v4385_v37, %v4059_v61  ;;  %v2303_v22 = vmul.f32 %v6234_v9, %v6169_v14  ;;  %vm2291_vm10 = vweird.f32 %v6042_v1  ;;  %v4039_v26 = vld [vmem:[%s7013_s3 + $0x10c] sm:$0xf0]  ;;  %v3977_v24 = vld [vmem:[%s7013_s3 + $0x80] sm:$0xf]  ;;  %v4367_v37 = vld [vmem:[%s7013_s3 + $0x90] sm:$0xf0] }
 0x433   : > { %v6297_v32 = vmul.f32 %v7153_v20, %v5970_v28  ;;  %v2290_v40 = vadd.f32 %v6205_v33, %v2289_v56  ;;  %vm6301_vm15 = vcmp.eq.f32.partialorder %v2295_v16, 8.507059e+37  ;;  %v4096_v19 = vunpack.i.l.s16 %v2509_v10  ;;  %vm6310_vm2 = vmor %vm2291_vm10, %vm2292_vm8  ;;  %v3911_v16 = vld [vmem:[%s7013_s3 + $0x14] sm:$0xf0]  ;;  %v4375_v56 = vld [vmem:[%s7013_s3 + $0xd4] sm:$0xf] }
 0x434   : > { %v2298_v28 = vor.u32 1.1754944e-38, %v2297_v7  ;;  %1285 = vmatpush.bf16.msra.mxu1 %v3954_v47  ;;  %v3934_v39 = vor.u32 %v4354_v57, %v3931_v34  ;;  %1308 = vmatpush.bf16.msra.mxu3 %v4062_v50  ;;  %v2304_v1 = vsub.f32 1.0, %v2303_v22  ;;  %v4145_v10 = vunpack.i.l.s16 %v2782_v23  ;;  %v4019_v57 = vld [vmem:[%s7013_s3 + $0xe4] sm:$0xf0]  ;;  %v7158_v22 = vld [vmem:[#allocation46_spill] sm:$0xff] }
 0x435   : > { %v4144_v54 = vunpack.i.l.s16 %v2781_v17  ;;  %v2343_v18 = vpack.c.bf16 %v6278_v62, %v6278_v62  ;;  %v2294_v29 = vsel %vm6310_vm2, %v6205_v33, %v2290_v40  ;;  %1296 = vmatpush.bf16.msra.mxu2 %v4018_v58  ;;  %v2586_v23 = vunpack.c.l.b16 %v2330_v12  ;;  %v7159_v40 = vld [vmem:[#allocation45_spill] sm:$0xff]  ;;  %v4360_v31 = vld [vmem:[%s7013_s3 + $0x5c] sm:$0xf] }
 0x436   : > { %v2859_v7 = vunpack.c.l.b16 %v2344_v44  ;;  %v2299_v33 = vsel %vm6301_vm15, %v2298_v28, %v2294_v29  ;;  %v2305_v47 = vmul.f32 %v6234_v9, %v2304_v1  ;;  %vm2307_vm3 = vweird.f32 %v6169_v14  ;;  %v3957_v28 = vld [vmem:[%s7013_s3 + $0x58] sm:$0xf] }
 0x437   : > { %vm2308_vm4 = vweird.f32 %v6234_v9  ;;  %v2311_v12 = vand.u32 2147483647, %v6169_v14  ;;  %v3998_v17 = vor.u32 %v4372_v59, %v3997_v30  ;;  %v2313_v61 = vand.u32 2147483648, %v6169_v14  ;;  %v4370_v30 = vld [vmem:[%s7013_s3 + $0xac] sm:$0xf] }
 0x438   : > { %1286 = vmatpush.bf16.msra.mxu1 %v3934_v39  ;;  %v2306_v34 = vadd.f32 %v6234_v9, %v2305_v47  ;;  %v3914_v44 = vor.u32 %v4349_v48, %v3911_v16  ;;  %v4042_v58 = vor.u32 %v4380_v53, %v4039_v26  ;;  %v2821_v50 = vunpack.c.l.b16 %v2343_v18  ;;  %vm6367_vm5 = vmor %vm2307_vm3, %vm2308_vm4  ;;  %v4362_v39 = vld [vmem:[%s7013_s3 + $0x68] sm:$0xf0]  ;;  %v3999_v59 = vld [vmem:[%s7013_s3 + $0xbc] sm:$0xf0] }
 0x439   : > { %2517 = vperm.xlu2 %4552, %v4096_v19   ;;  %v6358_v20 = vmul.f32 %v7158_v22, %v2299_v33  ;;  %v6361_v27 = vmul.f32 %v7159_v40, %v2299_v33  ;;  %1297 = vmatpush.bf16.msra.mxu2 %v3998_v17  ;;  %v3978_v19 = vor.u32 %v4367_v37, %v3977_v24  ;;  %vm2312_vm7 = vcmp.eq.f32.partialorder %v2311_v12, 8.507059e+37  ;;  %v4365_v47 = vld [vmem:[%s7013_s3 + $0x84] sm:$0xf]  ;;  %v3979_v24 = vld [vmem:[%s7013_s3 + $0x94] sm:$0xf0] }
 0x43a   : > { %2790 = vperm.xlu0 %4553, %v4145_v10   ;;  %2787 = vperm.xlu1 %4551, %v4144_v54   ;;  %v4022_v48 = vor.u32 %v4375_v56, %v4019_v57  ;;  %v2333_v1 = vpack.c.bf16 %v6297_v32, %v6297_v32  ;;  %v2310_v14 = vsel %vm6367_vm5, %v6234_v9, %v2306_v34  ;;  %v4109_v10 = vunpack.i.l.s16 %v2586_v23  ;;  %v3937_v23 = vld [vmem:[%s7013_s3 + $0x30] sm:$0xf]  ;;  %v7162_v12 = vld [vmem:[#allocation40_spill] sm:$0xff] }
 0x43b   : > { %1309 = vmatpush.bf16.msra.mxu3 %v4042_v58  ;;  %v4158_v54 = vunpack.i.l.s16 %v2859_v7  ;;  %v2314_v18 = vor.u32 1.1754944e-38, %v2313_v61  ;;  %v4152_v29 = vunpack.i.l.s16 %v2821_v50  ;;  %v2347_v16 = vpack.c.bf16 %v6358_v20, %v6358_v20  ;;  %v4357_v7 = vld [vmem:[%s7013_s3 + $0x40] sm:$0xf0]  ;;  %v7164_v61 = vld [vmem:[#allocation47_spill] sm:$0xff] }
 0x43c   : > { %1287 = vmatpush.bf16.msra.mxu1 %v3914_v44  ;;  %v2346_v9 = vpack.c.bf16 %v6361_v27, %v6361_v27  ;;  %v3958_v53 = vor.u32 %v4362_v39, %v3957_v28  ;;  %v4002_v33 = vor.u32 %v4370_v30, %v3999_v59  ;;  %v2626_v37 = vunpack.c.l.b16 %v2333_v1  ;;  %v7163_v56 = vld [vmem:[#allocation36_spill] sm:$0xff]  ;;  %v7166_v28 = vld [vmem:[#allocation5_spill] sm:$0xff] }
 0x43d   : > { %1298 = vmatpush.bf16.msra.mxu2 %v3978_v19  ;;  %v6392_v26 = vsel %vm2312_vm7, %v2314_v18, %v2310_v14  ;;  %v6408_v17 = vmul.f32 %v7162_v12, %v6137_v8  ;;  %v2899_v57 = vunpack.c.l.b16 %v2347_v16  ;;  %v3938_v58 = vor.u32 %v4357_v7, %v3937_v23  ;;  %v3917_v8 = vld [vmem:[%s7013_s3 + $0x8] sm:$0xf]  ;;  %v4352_v19 = vld [vmem:[%s7013_s3 + $0x18] sm:$0xf0]  ;;  %v4355_v18 = vld [vmem:[%s7013_s3 + $0x34] sm:$0xf] }
 0x43e   : > { %v2898_v34 = vunpack.c.l.b16 %v2346_v9  ;;  %v6413_v44 = vmul.f32 %v7164_v61, %v6392_v26  ;;  %v3982_v50 = vor.u32 %v4365_v47, %v3979_v24  ;;  %v4117_v22 = vunpack.i.l.s16 %v2626_v37  ;;  %v7167_v9 = vld [vmem:[#allocation41_spill] sm:$0xff]  ;;  %v3919_v47 = vld [vmem:[%s7013_s3 + $0x1c] sm:$0xf0] }
 0x43f   : > { %1310 = vmatpush.bf16.msra.mxu3 %v4022_v48  ;;  %1288 = vmatmul.bf16.vlgmr.msra.gmra.mxu1 %v7163_v56  ;;  %v2336_v40 = vpack.c.bf16 %v6408_v17, %v6408_v17  ;;  %v7165_v48 = vld [vmem:[#allocation4_spill] sm:$0xff]  ;;  %v4166_v1 = vunpack.i.l.s16 %v2899_v57  ;;  %v3918_v59 = vor.u32 %v4352_v19, %v3917_v8  ;;  %v4350_v7 = vld [vmem:[%s7013_s3 + $0xc] sm:$0xf]  ;;  %v4065_v57 = vld [vmem:[%s7013_s3 + $0x128] sm:$0xf]  ;;  %vm7177_vm1 = vcmask 130112  }
 0x440   : > { %v4072_v39 = vor.u32 %v7166_v28, %v7165_v48  ;;  %v4165_v14 = vunpack.i.l.s16 %v2898_v34  ;;  %v2349_v30 = vpack.c.bf16 %v6413_v44, %v6413_v44  ;;  %v3922_v12 = vor.u32 %v4350_v7, %v3919_v47  ;;  %v4388_v34 = vld [vmem:[%s7013_s3 + $0x138] sm:$0xf0]  ;;  %v4045_v19 = vld [vmem:[%s7013_s3 + $0x100] sm:$0xf]  ;;  %vm7183_vm0 = vmmov %vm7177_vm1 }
 0x441   : > { %2592 = vperm.xlu2 %4552, %v4109_v10   ;;  %1299 = vmatpush.bf16.msra.mxu2 %v3958_v53  ;;  %v3959_v10 = vld [vmem:[%s7013_s3 + $0x6c] sm:$0xf0]  ;;  %v2703_v16 = vunpack.c.l.b16 %v2336_v40  ;;  %v6441_v53 = vmul.f32 %v7167_v9, %v6143_v36  ;;  %v4066_v61 = vor.u32 %v4388_v34, %v4065_v57  ;;  %v7170_v48 = vld [vmem:[#allocation7_spill] sm:$0xff]  ;;  %v7174_v7 = vld [vmem:[#allocation44_spill] sm:$0xff]  ;;  %vm7180_vm6 = vcmask 130048  }
 0x442   : > { %2865 = vperm.xlu0 %4553, %v4158_v54   ;;  %2829 = vperm.xlu1 %4551, %v4152_v29   ;;  %v3962_v54 = vor.u32 %v4360_v31, %v3959_v10  ;;  %v3939_v29 = vld [vmem:[%s7013_s3 + $0x44] sm:$0xf0]  ;;  %v7169_v31 = vld [vmem:[#allocation6_spill] sm:$0xff]  ;;  %v6500_v47 = vmul.f32 %v7174_v7, %v6392_v26  ;;  %v4368_v57 = vld [vmem:[%s7013_s3 + $0x98] sm:$0xf0] }
 0x443   : > { %1311 = vmatpush.bf16.msra.mxu3 %v4002_v33  ;;  %2383 = vmatpush.bf16.msrb.mxu1 %v4072_v39  ;;  %v2938_v33 = vunpack.c.l.b16 %v2349_v30  ;;  %v3942_v23 = vor.u32 %v4355_v18, %v3939_v29  ;;  %v4130_v24 = vunpack.i.l.s16 %v2703_v16  ;;  %v2339_v37 = vpack.c.bf16 %v6441_v53, %v6441_v53  ;;  %v4025_v39 = vld [vmem:[%s7013_s3 + $0xd8] sm:$0xf]  ;;  %v7173_v16 = vld [vmem:[#allocation9_spill] sm:$0xff]  ;;  %vm7186_vm9 = vmmov %vm7180_vm6 }
 0x444   : > { %1322 = vmatpush.bf16.msrb.mxu0 %v4066_v61  ;;  %v4079_v28 = vor.u32 %v7170_v48, %v7169_v31  ;;  %vm7187_vm11 = vmmov %vm7183_vm0 }
 0x445   : > { %1300 = vmatpush.bf16.msra.mxu2 %v3938_v58  ;;  %v4173_v36 = vunpack.i.l.s16 %v2938_v33  ;;  %v2743_v58 = vunpack.c.l.b16 %v2339_v37  ;;  %v7176_v37 = vld [vmem:[#allocation38_spill] sm:$0xff]  ;;  %vm7190_vm12 = vmmov %vm7180_vm6 }
 0x446   : > { %vm7193_vm13 = vmmov %vm7183_vm0 }
 0x447   : > { %1312 = vmatpush.bf16.msra.mxu3 %v3982_v50  ;;  %v7168_v50 = vld [vmem:[#allocation42_spill] sm:$0xff]  ;;  %v4138_v40 = vunpack.i.l.s16 %v2743_v58  ;;  %v2348_v58 = vpack.c.bf16 %v6500_v47, %v6500_v47  ;;  %vm7198_vm14 = vmmov %vm7180_vm6 }
 0x448   : > { %vm7199_vm8 = vmmov %vm7183_vm0 }
 0x449   : > { %2634 = vperm.xlu2 %4552, %v4117_v22   ;;  %1301 = vmatpush.bf16.msra.mxu2 %v3918_v59  ;;  %v6461_v22 = vmul.f32 %v7168_v50, %v6267_v43  ;;  %v7171_v59 = vld [vmem:[#allocation43_spill] sm:$0xff]  ;;  %vm7202_vm10 = vmmov %vm7180_vm6 }
 0x44a   : > { %2907 = vperm.xlu0 %4553, %v4166_v1   ;;  %2904 = vperm.xlu1 %4551, %v4165_v14   ;;  %v4378_v1 = vld [vmem:[%s7013_s3 + $0xe8] sm:$0xf0]  ;;  %v6484_v10 = vmul.f32 %v7171_v59, %v6230_v11  ;;  %v7172_v11 = vld [vmem:[#allocation8_spill] sm:$0xff]  ;;  %vm7205_vm15 = vmmov %vm7183_vm0 }
 0x44b   : > { %1313 = vmatpush.bf16.msra.mxu3 %v3962_v54  ;;  %v2342_v8 = vpack.c.bf16 %v6461_v22, %v6461_v22  ;;  %v4026_v54 = vor.u32 %v4378_v1, %v4025_v39  ;;  %v4086_v9 = vor.u32 %v7173_v16, %v7172_v11  ;;  %v3945_v39 = vld [vmem:[%s7013_s3 + $0x38] sm:$0xf]  ;;  %v4358_v1 = vld [vmem:[%s7013_s3 + $0x48] sm:$0xf0]  ;;  %vm7208_vm2 = vmmov %vm7180_vm6 }
 0x44c   : > { %1302 = vmatmul.bf16.vlgmr.msra.gmra.mxu2 %v7163_v56  ;;  %v2345_v29 = vpack.c.bf16 %v6484_v10, %v6484_v10  ;;  %vm7211_vm3 = vmmov %vm7183_vm0 }
 0x44d   : > { %2422 = vmatpush.bf16.msrb.mxu2 %v4079_v28  ;;  %v2820_v30 = vunpack.c.l.b16 %v2342_v8  ;;  %v4363_v8 = vld [vmem:[%s7013_s3 + $0x70] sm:$0xf0]  ;;  %v2937_v28 = vunpack.c.l.b16 %v2348_v58  ;;  %vm7214_vm4 = vmmov %vm7208_vm2 }
 0x44e   : > { %vm7215_vm5 = vmmov %vm7183_vm0 }
 0x44f   : > { %1314 = vmatpush.bf16.msra.mxu3 %v3942_v23  ;;  %v4151_v18 = vunpack.i.l.s16 %v2820_v30  ;;  %v2860_v23 = vunpack.c.l.b16 %v2345_v29  ;;  %v7182_v30 = vld [vmem:[#allocation15_spill] sm:$0xff]  ;;  %vm7216_vm7 = vmmov %vm7183_vm0 }
 0x451   : > { %2709 = vperm.xlu2 %4552, %v4130_v24   ;;  %v7175_v24 = vld [vmem:[#allocation37_spill] sm:$0xff]  ;;  %v4159_v26 = vunpack.i.l.s16 %v2860_v23 }
 0x452   : > { %3491 = vperm.xlu0 %4553, %v5884_v4   ;;  %2946 = vperm.xlu1 %4551, %v4173_v36   ;;  %v4383_v4 = vld [vmem:[%s7013_s3 + $0x110] sm:$0xf0]  ;;  %v7185_v23 = vld [vmem:[#allocation13_spill] sm:$0xff] }
 0x453   : > { %1315 = vmatpush.bf16.msra.mxu3 %v3922_v12  ;;  %v4046_v43 = vor.u32 %v4383_v4, %v4045_v19  ;;  %v3985_v12 = vld [vmem:[%s7013_s3 + $0x88] sm:$0xf]  ;;  %v7178_v19 = vld [vmem:[#allocation10_spill] sm:$0xff]  ;;  %v7179_v4 = vld [vmem:[#allocation11_spill] sm:$0xff] }
 0x454   : > { %v3986_v50 = vor.u32 %v4368_v57, %v3985_v12  ;;  %v4093_v31 = vor.u32 %v7179_v4, %v7178_v19 }
 0x455   : > { %1323 = vmatpush.bf16.msrb.mxu0 %v4046_v43 }
 0x456   : > { %1316 = vmatmul.bf16.vlgmr.msra.gmra.mxu3 %v7163_v56  ;;  %2500 = vmatpush.bf16.msra.mxu1 %v4093_v31  ;;  %v7195_v31 = vld [vmem:[#allocation21_spill] sm:$0xff] }
 0x457   : > { %2461 = vmatpush.bf16.msrb.mxu3 %v4086_v9 }
 0x459   : > { %2751 = vperm.xlu2 %4552, %v4138_v40   ;;  %1324 = vmatpush.bf16.msrb.mxu0 %v4026_v54  ;;  %v3965_v40 = vld [vmem:[%s7013_s3 + $0x60] sm:$0xf]  ;;  %v3925_v54 = vld [vmem:[%s7013_s3 + $0x10] sm:$0xf] }
 0x45a   : > { %3500 = vperm.xlu0 %4553, %v5965_v35   ;;  %3497 = vperm.xlu1 %4551, %v5941_v21   ;;  %v4005_v21 = vld [vmem:[%s7013_s3 + $0xb0] sm:$0xf]  ;;  %v4373_v35 = vld [vmem:[%s7013_s3 + $0xc0] sm:$0xf0]  ;;  %v3966_v43 = vor.u32 %v4363_v8, %v3965_v40 }
 0x45b   : > { %v2359_v14 = vpop.permute.xlu2 %2358 }
 0x461   : > { %2826 = vperm.xlu2 %4552, %v4151_v18   ;;  %v4353_v18 = vld [vmem:[%s7013_s3 + $0x20] sm:$0xf0] }
 0x462   : > { %3509 = vperm.xlu0 %4553, %v5973_v42   ;;  %3506 = vperm.xlu1 %4551, %v5901_v60   ;;  %v4006_v42 = vor.u32 %v4373_v35, %v4005_v21  ;;  %v2363_v60 = vperm.slane %v2359_v14, %v7175_v24  ;;  %v7181_v14 = vld [vmem:[#allocation14_spill] sm:$0xff]  ;;  %v3926_v21 = vor.u32 %v4353_v18, %v3925_v54  ;;  %v7204_v54 = vld [vmem:[#allocation27_spill] sm:$0xff] }
 0x463   : > { %v2362_v33 = vpop.permute.xlu2 %2361  ;;  %v4107_v59 = vor.u32 %v7182_v30, %v7181_v14 }
 0x464   : > { %v2364_v36 = vperm.slane %v2362_v33, %v7176_v37  ;;  %1325 = vmatpush.bf16.msrb.mxu0 %v4006_v42  ;;  %v7184_v33 = vld [vmem:[#allocation12_spill] sm:$0xff] }
 0x465   : > { %2578 = vmatpush.bf16.msra.mxu3 %v4107_v59  ;;  %v4100_v7 = vor.u32 %v7185_v23, %v7184_v33  ;;  %v7200_v59 = vld [vmem:[#allocation24_spill] sm:$0xff] }
 0x466   : > { %v2365_v34 = vsel %vm7177_vm1, %v2364_v36, %v2363_v60  ;;  %vm7219_vm1 = vmmov %vm7208_vm2 }
 0x467   : > { %v2366_v61 = vpack.c.b16 %v2365_v34, %v2365_v34  ;;  %2539 = vmatpush.bf16.msra.mxu2 %v4100_v7  ;;  %v7188_v34 = vld [vmem:[#allocation16_spill] sm:$0xff] }
 0x468   : > { %1326 = vmatpush.bf16.msrb.mxu0 %v3986_v50 }
 0x469   : > { %4073 = vmatmul.msk.bf16.vlgmr.msrb.gmra.mxu1 %vm7180_vm6, %v2366_v61  ;;  %2868 = vperm.xlu2 %4552, %v4159_v26   ;;  %v7189_v61 = vld [vmem:[#allocation17_spill] sm:$0xff]  ;;  %vm7220_vm6 = vmmov %vm7219_vm1 }
 0x46a   : > { %3518 = vperm.xlu0 %4553, %v6174_v38   ;;  %3515 = vperm.xlu1 %4551, %v6059_v5   ;;  %v4172_v38 = vunpack.i.l.s16 %v2937_v28  ;;  %v3946_v5 = vor.u32 %v4358_v1, %v3945_v39  ;;  %v4114_v26 = vor.u32 %v7189_v61, %v7188_v34  ;;  %v7196_v28 = vld [vmem:[#allocation22_spill] sm:$0xff] }
 0x46b   : > { %v2398_v48 = vpop.permute.xlu2 %2397 }
 0x46c   : > { %1327 = vmatpush.bf16.msrb.mxu0 %v3966_v43  ;;  %v2402_v35 = vperm.slane %v2398_v48, %v7175_v24  ;;  %v7197_v43 = vld [vmem:[#allocation23_spill] sm:$0xff] }
 0x470   : > { %1328 = vmatpush.bf16.msrb.mxu0 %v3946_v5 }
 0x471   : > { %2943 = vperm.xlu2 %4552, %v4172_v38   ;;  %v7201_v38 = vld [vmem:[#allocation25_spill] sm:$0xff] }
 0x472   : > { %3527 = vperm.xlu0 %4553, %v6039_v3   ;;  %3524 = vperm.xlu1 %4551, %v5930_v55   ;;  %v4142_v5 = vor.u32 %v7201_v38, %v7200_v59 }
 0x473   : > { %v2401_v29 = vpop.permute.xlu2 %2400 }
 0x474   : > { %v2403_v11 = vperm.slane %v2401_v29, %v7176_v37  ;;  %1329 = vmatpush.bf16.msrb.mxu0 %v3926_v21 }
 0x475   : > { %v2440_v42 = vpop.permute.xlu1 %2439 }
 0x476   : > { %v2404_v16 = vsel %vm7183_vm0, %v2403_v11, %v2402_v35  ;;  %v2479_v55 = vpop.permute.xlu0 %2478  ;;  %v2442_v60 = vperm.slane %v2440_v42, %v7176_v37 }
 0x477   : > { %v2405_v9 = vpack.c.b16 %v2404_v16, %v2404_v16  ;;  %1330 = vmatmul.bf16.vlgmr.msrb.gmra.mxu0 %v7163_v56  ;;  %v2481_v58 = vperm.slane %v2479_v55, %v7176_v37  ;;  %v7206_v16 = vld [vmem:[#allocation28_spill] sm:$0xff] }
 0x478   : > { %2617 = vmatpush.bf16.msra.mxu0 %v4114_v26 }
 0x479   : > { %4080 = vmatmul.msk.bf16.vlgmr.msrb.gmra.mxu2 %vm7186_vm9, %v2405_v9  ;;  %3494 = vperm.xlu2 %4552, %v5912_v52   ;;  %v7191_v52 = vld [vmem:[#allocation18_spill] sm:$0xff]  ;;  %v7207_v9 = vld [vmem:[#allocation29_spill] sm:$0xff]  ;;  %vm7221_vm9 = vmmov %vm7219_vm1 }
 0x47a   : > { %3536 = vperm.xlu0 %4553, %v6297_v32   ;;  %3533 = vperm.xlu1 %4551, %v5977_v45   ;;  %v7192_v45 = vld [vmem:[#allocation19_spill] sm:$0xff]  ;;  %v4156_v33 = vor.u32 %v7207_v9, %v7206_v16 }
 0x47b   : > { %v2437_v3 = vpop.permute.xlu2 %2436  ;;  %v4121_v32 = vor.u32 %v7192_v45, %v7191_v52 }
 0x47c   : > { %v2441_v36 = vperm.slane %v2437_v3, %v7175_v24  ;;  %2773 = vmatpush.bf16.msrb.mxu0 %v4142_v5 }
 0x47d   : > { %2656 = vmatpush.bf16.msrb.mxu1 %v4121_v32  ;;  %v2554_v40 = vpop.permute.xlu1 %2553 }
 0x47e   : > { %v2443_v12 = vsel %vm7187_vm11, %v2442_v60, %v2441_v36  ;;  %v2557_v8 = vpop.permute.xlu0 %2556  ;;  %vm7222_vm11 = vmmov %vm7183_vm0 }
 0x47f   : > { %v2444_v57 = vpack.c.b16 %v2443_v12, %v2443_v12  ;;  %v2559_v39 = vperm.slane %v2557_v8, %v7176_v37 }
 0x481   : > { %4087 = vmatmul.msk.bf16.vlgmr.msrb.gmra.mxu3 %vm7190_vm12, %v2444_v57  ;;  %3503 = vperm.xlu2 %4552, %v5968_v63   ;;  %v7194_v63 = vld [vmem:[#allocation20_spill] sm:$0xff]  ;;  %v7213_v57 = vld [vmem:[#allocation33_spill] sm:$0xff]  ;;  %vm7223_vm12 = vmmov %vm7183_vm0 }
 0x482   : > { %3545 = vperm.xlu0 %4553, %v6408_v17   ;;  %3542 = vperm.xlu1 %4551, %v6130_v25   ;;  %v4128_v48 = vor.u32 %v7195_v31, %v7194_v63  ;;  %v4135_v17 = vor.u32 %v7197_v43, %v7196_v28  ;;  %v2558_v25 = vperm.slane %v2554_v40, %v7175_v24  ;;  %v7218_v40 = vld [vmem:[#allocation35_spill] sm:$0xff] }
 0x483   : > { %v2476_v56 = vpop.permute.xlu2 %2475 }
 0x484   : > { %v2480_v50 = vperm.slane %v2476_v56, %v7175_v24  ;;  %2695 = vmatpush.bf16.msrb.mxu2 %v4128_v48  ;;  %2734 = vmatpush.bf16.msrb.mxu3 %v4135_v17  ;;  %v2560_v14 = vsel %vm7199_vm8, %v2559_v39, %v2558_v25  ;;  %vm7226_vm8 = vmmov %vm7183_vm0 }
 0x485   : > { %v2561_v30 = vpack.c.b16 %v2560_v14, %v2560_v14 }
 0x486   : > { %v2482_v19 = vsel %vm7193_vm13, %v2481_v58, %v2480_v50  ;;  %v2632_v29 = vpop.permute.xlu0 %2631  ;;  %v7217_v50 = vld [vmem:[#allocation34_spill] sm:$0xff]  ;;  %vm7224_vm13 = vmmov %vm7219_vm1 }
 0x487   : > { %v2483_v4 = vpack.c.b16 %v2482_v19, %v2482_v19  ;;  %v2636_v26 = vperm.slane %v2632_v29, %v7175_v24  ;;  %v4177_v8 = vor.u32 %v7218_v40, %v7217_v50 }
 0x489   : > { %3512 = vperm.xlu2 %4552, %v5915_v2   ;;  %4094 = vmatmul.msk.bf16.vlgmr.msra.gmra.mxu1 %vm7198_vm14, %v2483_v4  ;;  %v7203_v2 = vld [vmem:[#allocation26_spill] sm:$0xff]  ;;  %vm7225_vm14 = vmmov %vm7219_vm1 }
 0x48a   : > { %3554 = vperm.xlu0 %4553, %v6441_v53   ;;  %3551 = vperm.xlu1 %4551, %v6163_v41   ;;  %v4149_v18 = vor.u32 %v7204_v54, %v7203_v2  ;;  %v2596_v53 = vpop.permute.xlu1 %2595 }
 0x48b   : > { %v2515_v1 = vpop.permute.xlu2 %2514  ;;  %v2598_v42 = vperm.slane %v2596_v53, %v7176_v37 }
 0x48c   : > { %2812 = vmatpush.bf16.msra.mxu1 %v4149_v18  ;;  %v2519_v21 = vperm.slane %v2515_v1, %v7175_v24 }
 0x491   : > { %3521 = vperm.xlu2 %4552, %v5927_v51   ;;  %4108 = vmatmul.msk.bf16.vlgmr.msra.gmra.mxu3 %vm7202_vm10, %v2561_v30  ;;  %vm7227_vm10 = vmmov %vm7219_vm1 }
 0x492   : > { %3563 = vperm.xlu0 %4553, %v6461_v22   ;;  %3560 = vperm.xlu1 %4551, %v6208_v13   ;;  %v7209_v13 = vld [vmem:[#allocation30_spill] sm:$0xff]  ;;  %v7210_v22 = vld [vmem:[#allocation31_spill] sm:$0xff] }
 0x493   : > { %v2518_v41 = vpop.permute.xlu2 %2517  ;;  %v4163_v23 = vor.u32 %v7210_v22, %v7209_v13 }
 0x494   : > { %v2520_v35 = vperm.slane %v2518_v41, %v7176_v37 }
 0x495   : > { %2890 = vmatpush.bf16.msra.mxu3 %v4163_v23 }
 0x496   : > { %v2521_v51 = vsel %vm7205_vm15, %v2520_v35, %v2519_v21  ;;  %vm7228_vm15 = vmmov %vm7183_vm0 }
 0x497   : > { %v2522_v11 = vpack.c.b16 %v2521_v51, %v2521_v51 }
 0x499   : > { %4101 = vmatmul.msk.bf16.vlgmr.msra.gmra.mxu2 %vm7208_vm2, %v2522_v11  ;;  %3530 = vperm.xlu2 %4552, %v5949_v15   ;;  %v7212_v15 = vld [vmem:[#allocation32_spill] sm:$0xff]  ;;  %vm7229_vm2 = vmmov %vm7183_vm0 }
 0x49a   : > { %3572 = vperm.xlu0 %4553, %v6484_v10   ;;  %3569 = vperm.xlu1 %4551, %v6258_v46   ;;  %v4170_v10 = vor.u32 %v7213_v57, %v7212_v15 }
 0x49b   : > { %v2593_v7 = vpop.permute.xlu2 %2592  ;;  %2851 = vmatpush.bf16.msra.mxu2 %v4156_v33 }
 0x49c   : > { %v2597_v55 = vperm.slane %v2593_v7, %v7175_v24  ;;  %v2671_v3 = vpop.permute.xlu1 %2670  ;;  %v2674_v60 = vpop.permute.xlu0 %2673 }
 0x49d   : > { %v2675_v46 = vperm.slane %v2671_v3, %v7175_v24  ;;  %v2676_v34 = vperm.slane %v2674_v60, %v7176_v37 }
 0x49e   : > { %v2599_v36 = vsel %vm7211_vm3, %v2598_v42, %v2597_v55  ;;  %vm7230_vm3 = vmmov %vm7219_vm1 }
 0x49f   : > { %v2600_v12 = vpack.c.b16 %v2599_v36, %v2599_v36  ;;  %v2677_v56 = vsel %vm7215_vm5, %v2676_v34, %v2675_v46  ;;  %vm7232_vm5 = vmmov %vm7183_vm0 }
 0x4a0   : > { %v2678_v19 = vpack.c.b16 %v2677_v56, %v2677_v56 }
 0x4a1   : > { %4115 = vmatmul.msk.bf16.vlgmr.msra.gmra.mxu0 %vm7214_vm4, %v2600_v12  ;;  %3539 = vperm.xlu2 %4552, %v6133_v6   ;;  %vm7231_vm4 = vmmov %vm7219_vm1 }
 0x4a2   : > { %3581 = vperm.xlu0 %4553, %v6500_v47   ;;  %3578 = vperm.xlu1 %4551, %v6358_v20  }
 0x4a3   : > { %v2635_v61 = vpop.permute.xlu2 %2634  ;;  %2929 = vmatpush.bf16.msra.mxu0 %v4170_v10 }
 0x4a4   : > { %v2637_v52 = vperm.slane %v2635_v61, %v7176_v37  ;;  %v2713_v45 = vpop.permute.xlu1 %2712  ;;  %v2749_v32 = vpop.permute.xlu0 %2748 }
 0x4a5   : > { %v2715_v47 = vperm.slane %v2713_v45, %v7176_v37  ;;  %v2753_v25 = vperm.slane %v2749_v32, %v7175_v24 }
 0x4a6   : > { %v2638_v58 = vsel %vm7216_vm7, %v2637_v52, %v2636_v26  ;;  %vm7233_vm7 = vmmov %vm7219_vm1 }
 0x4a7   : > { %v2639_v6 = vpack.c.b16 %v2638_v58, %v2638_v58 }
 0x4a9   : > { %3548 = vperm.xlu2 %4552, %v6147_v0   ;;  %4122 = vmatmul.msk.bf16.vlgmr.msrb.gmra.mxu1 %vm7219_vm1, %v2639_v6  ;;  %vm7234_vm1 = vmmov %vm7183_vm0 }
 0x4aa   : > { %4129 = vmatmul.msk.bf16.vlgmr.msrb.gmra.mxu2 %vm7220_vm6, %v2678_v19  ;;  %2968 = vmatpush.bf16.msrb.mxu1 %v4177_v8  ;;  %vm7235_vm6 = vmmov %vm7183_vm0 }
 0x4ab   : > { %v2710_v20 = vpop.permute.xlu2 %2709 }
 0x4ac   : > { %v2714_v4 = vperm.slane %v2710_v20, %v7175_v24  ;;  %v2788_v63 = vpop.permute.xlu1 %2787  ;;  %v2791_v31 = vpop.permute.xlu0 %2790 }
 0x4ad   : > { %v2792_v43 = vperm.slane %v2788_v63, %v7175_v24  ;;  %v2793_v17 = vperm.slane %v2791_v31, %v7176_v37 }
 0x4ae   : > { %v2716_v48 = vsel %vm7183_vm0, %v2715_v47, %v2714_v4 }
 0x4af   : > { %v2717_v28 = vpack.c.b16 %v2716_v48, %v2716_v48  ;;  %v2794_v30 = vsel %vm7222_vm11, %v2793_v17, %v2792_v43  ;;  %vm7237_vm11 = vcmask 1041409  }
 0x4b0   : > { %v2795_v5 = vpack.c.b16 %v2794_v30, %v2794_v30 }
 0x4b1   : > { %3557 = vperm.xlu2 %4552, %v6211_v49   ;;  %4136 = vmatmul.msk.bf16.vlgmr.msrb.gmra.mxu3 %vm7221_vm9, %v2717_v28  ;;  %vm7236_vm9 = vmmov %vm7183_vm0 }
 0x4b3   : > { %v2752_v0 = vpop.permute.xlu2 %2751 }
 0x4b4   : > { %v2754_v39 = vperm.slane %v2752_v0, %v7176_v37  ;;  %v2830_v1 = vpop.permute.xlu1 %2829  ;;  %v2866_v14 = vpop.permute.xlu0 %2865 }
 0x4b5   : > { %v2832_v2 = vperm.slane %v2830_v1, %v7176_v37  ;;  %v2870_v51 = vperm.slane %v2866_v14, %v7175_v24 }
 0x4b6   : > { %v2755_v59 = vsel %vm7223_vm12, %v2754_v39, %v2753_v25  ;;  %vm7238_vm12 = vcmask 1042434  }
 0x4b7   : > { %v2756_v38 = vpack.c.b16 %v2755_v59, %v2755_v59 }
 0x4b9   : > { %3566 = vperm.xlu2 %4552, %v6278_v62   ;;  %4143 = vmatmul.msk.bf16.vlgmr.msrb.gmra.mxu0 %vm7224_vm13, %v2756_v38  ;;  %vm7239_vm13 = vcmask 1043459  }
 0x4ba   : > { %4150 = vmatmul.msk.bf16.vlgmr.msra.gmra.mxu1 %vm7225_vm14, %v2795_v5  ;;  %vm7240_vm14 = vmmov %vm7183_vm0 }
 0x4bb   : > { %v2827_v49 = vpop.permute.xlu2 %2826 }
 0x4bc   : > { %v2831_v54 = vperm.slane %v2827_v49, %v7175_v24  ;;  %v2905_v18 = vpop.permute.xlu1 %2904  ;;  %v2908_v41 = vpop.permute.xlu0 %2907 }
 0x4bd   : > { %v2909_v21 = vperm.slane %v2905_v18, %v7175_v24  ;;  %v2910_v35 = vperm.slane %v2908_v41, %v7176_v37  ;;  %v6646_v12 = vpop.f32.mrf.mxu1 }
 0x4be   : > { %v2833_v53 = vsel %vm7226_vm8, %v2832_v2, %v2831_v54  ;;  %vm7241_vm8 = vmmov %vm7183_vm0 }
 0x4bf   : > { %v2834_v29 = vpack.c.b16 %v2833_v53, %v2833_v53  ;;  %v2911_v33 = vsel %vm7228_vm15, %v2910_v35, %v2909_v21  ;;  %vm7243_vm15 = vcmask 1045509  }
 0x4c0   : > { %v2912_v23 = vpack.c.b16 %v2911_v33, %v2911_v33 }
 0x4c1   : > { %3575 = vperm.xlu2 %4552, %v6361_v27   ;;  %4157 = vmatmul.msk.bf16.vlgmr.msra.gmra.mxu2 %vm7227_vm10, %v2834_v29  ;;  %vm7242_vm10 = vcmask 1044484  }
 0x4c3   : > { %v2869_v62 = vpop.permute.xlu2 %2868 }
 0x4c4   : > { %v2871_v11 = vperm.slane %v2869_v62, %v7176_v37  ;;  %v2947_v16 = vpop.permute.xlu1 %2946  ;;  %v3492_v9 = vpop.permute.xlu0 %3491 }
 0x4c5   : > { %v2949_v7 = vperm.slane %v2947_v16, %v7176_v37  ;;  %v6648_v46 = vpop.f32.mrf.mxu1  ;;  %v3586_v40 = vperm.slane %v3492_v9, %v7175_v24 }
 0x4c6   : > { %v2872_v13 = vsel %vm7229_vm2, %v2871_v11, %v2870_v51  ;;  %vm7244_vm2 = vmmov %vm7183_vm0 }
 0x4c7   : > { %v2873_v22 = vpack.c.b16 %v2872_v13, %v2872_v13 }
 0x4c9   : > { %3584 = vperm.xlu2 %4552, %v6413_v44   ;;  %4164 = vmatmul.msk.bf16.vlgmr.msra.gmra.mxu3 %vm7230_vm3, %v2873_v22  ;;  %vm7245_vm3 = vmmov %vm7183_vm0 }
 0x4ca   : > { %4171 = vmatmul.msk.bf16.vlgmr.msra.gmra.mxu0 %vm7231_vm4, %v2912_v23  ;;  %vm7246_vm4 = vcmask 1046534  }
 0x4cb   : > { %v2944_v27 = vpop.permute.xlu2 %2943 }
 0x4cc   : > { %v2948_v42 = vperm.slane %v2944_v27, %v7175_v24  ;;  %v3498_v55 = vpop.permute.xlu1 %3497  ;;  %v3501_v3 = vpop.permute.xlu0 %3500 }
 0x4cd   : > { %v3589_v8 = vperm.slane %v3498_v55, %v7175_v24  ;;  %v3590_v6 = vperm.slane %v3501_v3, %v7176_v37 }
 0x4ce   : > { %v2950_v60 = vsel %vm7232_vm5, %v2949_v7, %v2948_v42  ;;  %vm7247_vm5 = vcmask 1047559  }
 0x4cf   : > { %v2951_v36 = vpack.c.b16 %v2950_v60, %v2950_v60  ;;  %v6650_v56 = vpop.f32.mrf.mxu2  ;;  %v3591_v43 = vsel %vm7183_vm0, %v3590_v6, %v3589_v8  ;;  %vm7250_vm0 = vmmov %vm7239_vm13 }
 0x4d1   : > { %4178 = vmatmul.msk.bf16.vlgmr.msrb.gmra.mxu1 %vm7233_vm7, %v2951_v36 }
 0x4d3   : > { %v3495_v15 = vpop.permute.xlu2 %3494 }
 0x4d4   : > { %v3507_v44 = vpop.permute.xlu1 %3506  ;;  %v3510_v57 = vpop.permute.xlu0 %3509  ;;  %v3587_v58 = vperm.slane %v3495_v15, %v7176_v37 }
 0x4d5   : > { %v3593_v47 = vperm.slane %v3507_v44, %v7176_v37  ;;  %v3595_v31 = vperm.slane %v3510_v57, %v7175_v24 }
 0x4d6   : > { %v3588_v63 = vsel %vm7234_vm1, %v3587_v58, %v3586_v40  ;;  %vm7248_vm1 = vmmov %vm7237_vm11 }
 0x4d7   : > { %v3634_v39 = vsel %vm7237_vm11, %v3591_v43, %v3588_v63  ;;  %v6673_v49 = vpop.f32.mrf.mxu2  ;;  %vm7252_vm11 = vmmov %vm7244_vm2 }
 0x4d9   : > { %v6668_v30 = vpop.f32.mrf.mxu3 }
 0x4db   : > { %v3504_v10 = vpop.permute.xlu2 %3503 }
 0x4dc   : > { %v3516_v34 = vpop.permute.xlu1 %3515  ;;  %v3519_v61 = vpop.permute.xlu0 %3518  ;;  %v3592_v50 = vperm.slane %v3504_v10, %v7175_v24 }
 0x4dd   : > { %v3598_v1 = vperm.slane %v3516_v34, %v7175_v24  ;;  %v3599_v14 = vperm.slane %v3519_v61, %v7176_v37 }
 0x4de   : > { %v3594_v48 = vsel %vm7235_vm6, %v3593_v47, %v3592_v50  ;;  %vm7249_vm6 = vmmov %vm7238_vm12 }
 0x4df   : > { %v3635_v59 = vsel %vm7238_vm12, %v3594_v48, %v3634_v39  ;;  %v3600_v53 = vsel %vm7241_vm8, %v3599_v14, %v3598_v1  ;;  %vm7253_vm12 = vmmov %vm7248_vm1 }
 0x4e0   : > { %vm7256_vm8 = vmmov %vm7244_vm2 }
 0x4e1   : > { %v6689_v23 = vpop.f32.mrf.mxu3 }
 0x4e3   : > { %v3513_v26 = vpop.permute.xlu2 %3512 }
 0x4e4   : > { %v3525_v52 = vpop.permute.xlu1 %3524  ;;  %v3528_v45 = vpop.permute.xlu0 %3527  ;;  %v3596_v19 = vperm.slane %v3513_v26, %v7176_v37 }
 0x4e5   : > { %v3602_v38 = vperm.slane %v3525_v52, %v7176_v37  ;;  %v3604_v29 = vperm.slane %v3528_v45, %v7175_v24 }
 0x4e6   : > { %v2385_v32 = vpop.f32.mrf.mxu1  ;;  %v3597_v17 = vsel %vm7236_vm9, %v3596_v19, %v3595_v31  ;;  %vm7251_vm9 = vmmov %vm7244_vm2 }
 0x4e7   : > { %v3636_v5 = vsel %vm7239_vm13, %v3597_v17, %v3635_v59  ;;  %v2982_v42 = vpack.c.bf16 %v2385_v32, %v2385_v32  ;;  %vm7254_vm13 = vmmov %vm7244_vm2 }
 0x4e8   : > { %v3637_v35 = vsel %vm7242_vm10, %v3600_v53, %v3636_v5  ;;  %vm7257_vm10 = vmmov %vm7249_vm6 }
 0x4e9   : > { %v3046_v36 = vunpack.c.l.b16 %v2982_v42 }
 0x4eb   : > { %v3522_v20 = vpop.permute.xlu2 %3521 }
 0x4ec   : > { %v3534_v4 = vpop.permute.xlu1 %3533  ;;  %v3601_v0 = vperm.slane %v3522_v20, %v7175_v24  ;;  %v3537_v25 = vpop.permute.xlu0 %3536 }
 0x4ed   : > { %v3607_v54 = vperm.slane %v3534_v4, %v7175_v24  ;;  %v3608_v18 = vperm.slane %v3537_v25, %v7176_v37 }
 0x4ee   : > { %v2387_v28 = vpop.f32.mrf.mxu1  ;;  %v3603_v2 = vsel %vm7240_vm14, %v3602_v38, %v3601_v0  ;;  %vm7255_vm14 = vmmov %vm7244_vm2 }
 0x4ef   : > { %v3638_v51 = vsel %vm7243_vm15, %v3603_v2, %v3637_v35  ;;  %v3609_v16 = vsel %vm7245_vm3, %v3608_v18, %v3607_v54  ;;  %vm7258_vm15 = vmmov %vm7250_vm0 }
 0x4f3   : > { %v3531_v41 = vpop.permute.xlu2 %3530 }
 0x4f4   : > { %v3605_v21 = vperm.slane %v3531_v41, %v7176_v37  ;;  %v3543_v62 = vpop.permute.xlu1 %3542  ;;  %v3546_v22 = vpop.permute.xlu0 %3545 }
 0x4f5   : > { %v6692_v6 = vpop.f32.mrf.mxu0  ;;  %v3613_v25 = vperm.slane %v3546_v22, %v7175_v24  ;;  %v3611_v14 = vperm.slane %v3543_v62, %v7176_v37  ;;  %v4293_v22 = vld [vmem:[%s7020_s10 + $0xe0] sm:$0xf] }
 0x4f6   : > { %v3606_v11 = vsel %vm7244_vm2, %v3605_v21, %v3604_v29  ;;  %vm7259_vm2 = vcmask 1044484  }
 0x4f7   : > { %v3639_v9 = vsel %vm7246_vm4, %v3606_v11, %v3638_v51  ;;  %vm7260_vm4 = vmmov %vm7245_vm3 }
 0x4f8   : > { %v3640_v33 = vsel %vm7247_vm5, %v3609_v16, %v3639_v9  ;;  %vm7261_vm5 = vcmask 1045509  }
 0x4f9   : > { %v3650_v13 = vsel %vm7233_vm7, %v3640_v33, 0.0  ;;  %vm7262_vm7 = vcmask 1046534  }
 0x4fa   : > { %3652 = vst [vmem:[%s4966_s13] sm:$0xff] %v3650_v13 }
 0x4fb   : > { %v3540_v27 = vpop.permute.xlu2 %3539 }
 0x4fc   : > { %v2424_v7 = vpop.f32.mrf.mxu2  ;;  %v3552_v60 = vpop.permute.xlu1 %3551  ;;  %v3610_v39 = vperm.slane %v3540_v27, %v7175_v24  ;;  %v4419_v27 = vld [vmem:[%s7020_s10 + $0xec] sm:$0xf0] }
 0x4fd   : > { %v2983_v55 = vpack.c.bf16 %v2424_v7, %v2424_v7  ;;  %v3555_v57 = vpop.permute.xlu0 %3554  ;;  %v6700_v17 = vpop.f32.mrf.mxu0  ;;  %v3616_v5 = vperm.slane %v3552_v60, %v7175_v24  ;;  %v4417_v7 = vld [vmem:[%s7020_s10 + $0xe4] sm:$0xf]  ;;  %v4294_v60 = vor.u32 %v4419_v27, %v4293_v22  ;;  %v4271_v22 = vld [vmem:[%s7020_s10 + $0xb8] sm:$0xf0] }
 0x4fe   : > { %v3617_v2 = vperm.slane %v3555_v57, %v7176_v37  ;;  %v3612_v18 = vsel %vm7252_vm11, %v3611_v14, %v3610_v39  ;;  %v4414_v39 = vld [vmem:[%s7020_s10 + $0xcc] sm:$0xf]  ;;  %vm7267_vm11 = vmmov %vm7259_vm2 }
 0x4ff   : > { %v3047_v3 = vunpack.c.l.b16 %v2983_v55  ;;  %3252 = vmatpush.bf16.msrb.mxu2 %v4294_v60 }
 0x500   : > { %v3618_v16 = vsel %vm7255_vm14, %v3617_v2, %v3616_v5  ;;  %vm7270_vm14 = vmmov %vm7258_vm15 }
 0x501   : > { %v3062_v15 = vrot.slane %v3047_v3, 7 }
 0x503   : > { %v3063_v44 = vsel %vm7248_vm1, %v3062_v15, %v3046_v36  ;;  %v3549_v10 = vpop.permute.xlu2 %3548  ;;  %v4295_v36 = vld [vmem:[%s7020_s10 + $0xf0] sm:$0xf0]  ;;  %v4301_v15 = vld [vmem:[%s7020_s10 + $0xe8] sm:$0xf]  ;;  %vm7263_vm1 = vmmov %vm7245_vm3 }
 0x504   : > { %v2426_v34 = vpop.f32.mrf.mxu2  ;;  %v2463_v61 = vpop.f32.mrf.mxu3  ;;  %v3614_v0 = vperm.slane %v3549_v10, %v7176_v37 }
 0x505   : > { %v2984_v26 = vpack.c.bf16 %v2463_v61, %v2463_v61  ;;  %v3561_v40 = vpop.permute.xlu1 %3560  ;;  %v3564_v4 = vpop.permute.xlu0 %3563  ;;  %v4298_v34 = vor.u32 %v4417_v7, %v4295_v36  ;;  %v4405_v36 = vld [vmem:[%s7020_s10 + $0x84] sm:$0xf] }
 0x506   : > { %v2502_v52 = vpop.f32.mrf.mxu1  ;;  %v3615_v59 = vsel %vm7251_vm9, %v3614_v0, %v3613_v25  ;;  %v3620_v41 = vperm.slane %v3561_v40, %v7176_v37  ;;  %v3622_v21 = vperm.slane %v3564_v4, %v7175_v24  ;;  %v4285_v4 = vld [vmem:[%s7020_s10 + $0xc8] sm:$0xf]  ;;  %vm7266_vm9 = vmmov %vm7253_vm12 }
 0x507   : > { %v3048_v45 = vunpack.c.l.b16 %v2984_v26  ;;  %v2985_v58 = vpack.c.bf16 %v2502_v52, %v2502_v52  ;;  %v3641_v29 = vsel %vm7253_vm12, %v3615_v59, %v3612_v18  ;;  %v4418_v26 = vld [vmem:[%s7020_s10 + $0xec] sm:$0xf]  ;;  %v4303_v52 = vld [vmem:[%s7020_s10 + $0xf8] sm:$0xf0]  ;;  %3266 = vmatpush.bf16.msrb.mxu3 %v4298_v34  ;;  %v4411_v18 = vld [vmem:[%s7020_s10 + $0xac] sm:$0xf0] }
 0x508   : > { %v3642_v42 = vsel %vm7257_vm10, %v3618_v16, %v3641_v29  ;;  %v4306_v40 = vor.u32 %v4418_v26, %v4303_v52  ;;  %v4269_v29 = vld [vmem:[%s7020_s10 + $0xa8] sm:$0xf]  ;;  %v4408_v34 = vld [vmem:[%s7020_s10 + $0x94] sm:$0xf0]  ;;  %v4255_v26 = vld [vmem:[%s7020_s10 + $0x98] sm:$0xf0] }
 0x509   : > { %v3064_v50 = vrot.slane %v3048_v45, 6  ;;  %v3049_v8 = vunpack.c.l.b16 %v2985_v58  ;;  %v4277_v45 = vld [vmem:[%s7020_s10 + $0xc0] sm:$0xf]  ;;  %vm7268_vm12 = vmmov %vm7257_vm10 }
 0x50a   : > { %3294 = vmatpush.bf16.msra.mxu1 %v4306_v40  ;;  %v4403_v40 = vld [vmem:[%s7020_s10 + $0x6c] sm:$0xf0]  ;;  %vm7272_vm10 = vmmov %vm7261_vm5 }
 0x50b   : > { %v3065_v32 = vsel %vm7249_vm6, %v3064_v50, %v3063_v44  ;;  %v3066_v19 = vrot.slane %v3049_v8, 5  ;;  %v3558_v20 = vpop.permute.xlu2 %3557  ;;  %v4420_v44 = vld [vmem:[%s7020_s10 + $0xf4] sm:$0xf0]  ;;  %v4415_v8 = vld [vmem:[%s7020_s10 + $0xcc] sm:$0xf0]  ;;  %vm7264_vm6 = vcmask 1047559  }
 0x50c   : > { %v2465_v47 = vpop.f32.mrf.mxu3  ;;  %v3619_v38 = vperm.slane %v3558_v20, %v7175_v24  ;;  %v4302_v61 = vor.u32 %v4420_v44, %v4301_v15  ;;  %v4278_v20 = vor.u32 %v4415_v8, %v4277_v45  ;;  %v4247_v15 = vld [vmem:[%s7020_s10 + $0x90] sm:$0xf0]  ;;  %v4253_v44 = vld [vmem:[%s7020_s10 + $0x88] sm:$0xf]  ;;  %v4401_v8 = vld [vmem:[%s7020_s10 + $0x64] sm:$0xf] }
 0x50d   : > { %v6696_v63 = vsel %vm7250_vm0, %v3066_v19, %v3065_v32  ;;  %v3570_v48 = vpop.permute.xlu1 %3569  ;;  %v3573_v1 = vpop.permute.xlu0 %3572  ;;  %v4413_v32 = vld [vmem:[%s7020_s10 + $0xc4] sm:$0xf]  ;;  %v4279_v47 = vld [vmem:[%s7020_s10 + $0xd0] sm:$0xf0]  ;;  %vm7265_vm0 = vcmask 130048   ;;  %v4254_v45 = vor.u32 %v4408_v34, %v4253_v44 }
 0x50e   : > { %v2504_v31 = vpop.f32.mrf.mxu1  ;;  %v3621_v51 = vsel %vm7254_vm13, %v3620_v41, %v3619_v38  ;;  %v3625_v55 = vperm.slane %v3570_v48, %v7175_v24  ;;  %v3626_v3 = vperm.slane %v3573_v1, %v7176_v37  ;;  %3280 = vmatpush.bf16.msrb.mxu0 %v4302_v61  ;;  %v4282_v0 = vor.u32 %v4413_v32, %v4279_v47  ;;  %v4287_v1 = vld [vmem:[%s7020_s10 + $0xd8] sm:$0xf0]  ;;  %v4409_v41 = vld [vmem:[%s7020_s10 + $0xa4] sm:$0xf]  ;;  %v4406_v61 = vld [vmem:[%s7020_s10 + $0x8c] sm:$0xf] }
 0x50f   : > { %v3643_v57 = vsel %vm7258_vm15, %v3621_v51, %v3642_v42  ;;  %v4416_v31 = vld [vmem:[%s7020_s10 + $0xd4] sm:$0xf0]  ;;  %v4290_v2 = vor.u32 %v4414_v39, %v4287_v1  ;;  %3253 = vmatpush.bf16.msrb.mxu2 %v4278_v20  ;;  %v4237_v20 = vld [vmem:[%s7020_s10 + $0x68] sm:$0xf]  ;;  %v4399_v39 = vld [vmem:[%s7020_s10 + $0x4c] sm:$0xf0] }
 0x510   : > { %v3627_v48 = vsel %vm7260_vm4, %v3626_v3, %v3625_v55  ;;  %v4286_v25 = vor.u32 %v4416_v31, %v4285_v4  ;;  %3267 = vmatpush.bf16.msrb.mxu3 %v4282_v0  ;;  %v4245_v55 = vld [vmem:[%s7020_s10 + $0x80] sm:$0xf]  ;;  %v4407_v3 = vld [vmem:[%s7020_s10 + $0x8c] sm:$0xf0]  ;;  %v4404_v47 = vld [vmem:[%s7020_s10 + $0x74] sm:$0xf0] }
 0x511   : > { %3295 = vmatpush.bf16.msra.mxu1 %v4290_v2  ;;  %v4246_v60 = vor.u32 %v4407_v3, %v4245_v55  ;;  %v4238_v31 = vor.u32 %v4404_v47, %v4237_v20  ;;  %v4397_v1 = vld [vmem:[%s7020_s10 + $0x44] sm:$0xf]  ;;  %v4400_v2 = vld [vmem:[%s7020_s10 + $0x54] sm:$0xf0]  ;;  %v4394_v55 = vld [vmem:[%s7020_s10 + $0x2c] sm:$0xf] }
 0x512   : > { %3281 = vmatpush.bf16.msrb.mxu0 %v4286_v25  ;;  %v4213_v25 = vld [vmem:[%s7020_s10 + $0x40] sm:$0xf]  ;;  %v4207_v3 = vld [vmem:[%s7020_s10 + $0x38] sm:$0xf0]  ;;  %v4389_v44 = vld [vmem:[%s7020_s10 + $0x4] sm:$0xf] }
 0x513   : > { %v3567_v28 = vpop.permute.xlu2 %3566  ;;  %v4183_v34 = vld [vmem:[%s7020_s10 + $0x10] sm:$0xf0]  ;;  %vm7269_vm13 = vmmov %vm7261_vm5 }
 0x514   : > { %v6698_v43 = vpop.f32.mrf.mxu3  ;;  %v3623_v54 = vperm.slane %v3567_v28, %v7176_v37  ;;  %vm7273_vm15 = vmmov %vm7262_vm7 }
 0x515   : > { %v3579_v11 = vpop.permute.xlu1 %3578  ;;  %v3582_v50 = vpop.permute.xlu0 %3581 }
 0x516   : > { %v3624_v9 = vsel %vm7256_vm8, %v3623_v54, %v3622_v21  ;;  %v3629_v10 = vperm.slane %v3579_v11, %v7176_v37  ;;  %v3631_v14 = vperm.slane %v3582_v50, %v7175_v24  ;;  %v4261_v54 = vld [vmem:[%s7020_s10 + $0xa0] sm:$0xf]  ;;  %v4412_v21 = vld [vmem:[%s7020_s10 + $0xb4] sm:$0xf0]  ;;  %vm7271_vm8 = vmmov %vm7259_vm2 }
 0x517   : > { %v3644_v58 = vsel %vm7259_vm2, %v3624_v9, %v3643_v57  ;;  %v4270_v9 = vor.u32 %v4412_v21, %v4269_v29  ;;  %v4229_v50 = vld [vmem:[%s7020_s10 + $0x60] sm:$0xf]  ;;  %vm7274_vm2 = vmmov %vm7262_vm7 }
 0x518   : > { %v3645_v59 = vsel %vm7261_vm5, %v3627_v48, %v3644_v58  ;;  %v4258_v58 = vor.u32 %v4406_v61, %v4255_v26  ;;  %v4230_v32 = vor.u32 %v4403_v40, %v4229_v50  ;;  %v4402_v48 = vld [vmem:[%s7020_s10 + $0x6c] sm:$0xf]  ;;  %v4197_v21 = vld [vmem:[%s7020_s10 + $0x20] sm:$0xf]  ;;  %v4189_v61 = vld [vmem:[%s7020_s10 + $0x8] sm:$0xf] }
 0x519   : > { %3282 = vmatpush.bf16.msrb.mxu0 %v4270_v9  ;;  %v4392_v26 = vld [vmem:[%s7020_s10 + $0x14] sm:$0xf0] }
 0x51a   : > { %v4190_v40 = vor.u32 %v4392_v26, %v4189_v61 }
 0x51b   : > { %v3576_v53 = vpop.permute.xlu2 %3575 }
 0x51c   : > { %v6715_v35 = vpop.f32.mrf.mxu2  ;;  %v2582_v62 = vpop.f32.mrf.mxu3  ;;  %v3628_v33 = vperm.slane %v3576_v53, %v7175_v24  ;;  %v4262_v53 = vor.u32 %v4411_v18, %v4261_v54 }
 0x51d   : > { %3283 = vmatpush.bf16.msrb.mxu0 %v4254_v45  ;;  %v4390_v45 = vld [vmem:[%s7020_s10 + $0xc] sm:$0xf]  ;;  %v2986_v47 = vpack.c.bf16 %v6715_v35, %v6715_v35 }
 0x51e   : > { %v6721_v13 = vpop.f32.mrf.mxu0  ;;  %v3630_v19 = vsel %vm7245_vm3, %v3629_v10, %v3628_v33  ;;  %v4410_v33 = vld [vmem:[%s7020_s10 + $0xac] sm:$0xf]  ;;  %3254 = vmatpush.bf16.msrb.mxu2 %v4262_v53  ;;  %v4250_v10 = vor.u32 %v4405_v36, %v4247_v15  ;;  %v4223_v53 = vld [vmem:[%s7020_s10 + $0x58] sm:$0xf0]  ;;  %v4210_v36 = vor.u32 %v4394_v55, %v4207_v3  ;;  %v4391_v15 = vld [vmem:[%s7020_s10 + $0xc] sm:$0xf0] }
 0x51f   : > { %v3646_v24 = vsel %vm7262_vm7, %v3630_v19, %v3645_v59  ;;  %v4274_v7 = vor.u32 %v4410_v33, %v4271_v22  ;;  %v4231_v19 = vld [vmem:[%s7020_s10 + $0x70] sm:$0xf0]  ;;  %v4214_v59 = vor.u32 %v4399_v39, %v4213_v25  ;;  %v4205_v22 = vld [vmem:[%s7020_s10 + $0x28] sm:$0xf]  ;;  %v2987_v39 = vpack.c.bf16 %v6698_v43, %v6698_v43  ;;  %vm7275_vm3 = vmmov %vm7264_vm6 }
 0x520   : > { %v4234_v4 = vor.u32 %v4401_v8, %v4231_v19  ;;  %v4199_v33 = vld [vmem:[%s7020_s10 + $0x30] sm:$0xf0]  ;;  %vm7276_vm4 = vmmov %vm7275_vm3 }
 0x521   : > { %3296 = vmatpush.bf16.msra.mxu1 %v4274_v7  ;;  %3284 = vmatpush.bf16.msrb.mxu0 %v4238_v31 }
 0x522   : > { %3255 = vmatpush.bf16.msrb.mxu2 %v4246_v60  ;;  %v4181_v60 = vld [vmem:[%s7020_s10] sm:$0xf] }
 0x523   : > { %v3585_v28 = vpop.permute.xlu2 %3584 }
 0x524   : > { %v3632_v38 = vperm.slane %v3585_v28, %v7176_v37  ;;  %v2543_v5 = vpop.f32.mrf.mxu2  ;;  %v4263_v37 = vld [vmem:[%s7020_s10 + $0xb0] sm:$0xf0]  ;;  %v4239_v28 = vld [vmem:[%s7020_s10 + $0x78] sm:$0xf0] }
 0x525   : > { %v4266_v16 = vor.u32 %v4409_v41, %v4263_v37  ;;  %3297 = vmatpush.bf16.msra.mxu1 %v4258_v58  ;;  %v4242_v0 = vor.u32 %v4402_v48, %v4239_v28  ;;  %v4221_v5 = vld [vmem:[%s7020_s10 + $0x48] sm:$0xf]  ;;  %v4191_v58 = vld [vmem:[%s7020_s10 + $0x18] sm:$0xf0]  ;;  %v3050_v28 = vunpack.c.l.b16 %v2986_v47 }
 0x526   : > { %v3633_v62 = vsel %vm7263_vm1, %v3632_v38, %v3631_v14  ;;  %v2621_v51 = vpop.f32.mrf.mxu0  ;;  %v6802_v11 = vpop.f32.mrf.mxu1  ;;  %3256 = vmatpush.bf16.msrb.mxu2 %v4230_v32  ;;  %v4215_v38 = vld [vmem:[%s7020_s10 + $0x50] sm:$0xf0]  ;;  %v4222_v41 = vor.u32 %v4400_v2, %v4221_v5  ;;  %v4194_v8 = vor.u32 %v4390_v45, %v4191_v58  ;;  %v2988_v5 = vpack.c.bf16 %v6721_v13, %v6721_v13 }
 0x527   : > { %v3647_v27 = vsel %vm7264_vm6, %v3633_v62, %v3646_v24  ;;  %3268 = vmatpush.bf16.msrb.mxu3 %v4266_v16  ;;  %v4218_v18 = vor.u32 %v4397_v1, %v4215_v38  ;;  %v4398_v24 = vld [vmem:[%s7020_s10 + $0x4c] sm:$0xf]  ;;  %v4395_v62 = vld [vmem:[%s7020_s10 + $0x2c] sm:$0xf0]  ;;  %v4393_v51 = vld [vmem:[%s7020_s10 + $0x24] sm:$0xf]  ;;  %v2989_v35 = vpack.c.bf16 %v6802_v11, %v6802_v11 }
 0x528   : > { %v3651_v42 = vsel %vm7265_vm0, %v3647_v27, 0.0  ;;  %v4226_v29 = vor.u32 %v4398_v24, %v4223_v53  ;;  %v4198_v9 = vor.u32 %v4395_v62, %v4197_v21  ;;  %v4396_v27 = vld [vmem:[%s7020_s10 + $0x34] sm:$0xf0]  ;;  %3285 = vmatpush.bf16.msrb.mxu0 %v4222_v41  ;;  %v4202_v7 = vor.u32 %v4393_v51, %v4199_v33 }
 0x529   : > { %3653 = vst [vmem:[%s4966_s13 + $0x8] sm:$0xff] %v3651_v42  ;;  %3298 = vmatpush.bf16.msra.mxu1 %v4242_v0  ;;  %v4206_v42 = vor.u32 %v4396_v27, %v4205_v22  ;;  %v3068_v2 = vrot.slane %v3050_v28, 4  ;;  %v3051_v41 = vunpack.c.l.b16 %v2987_v39  ;;  %v3052_v43 = vunpack.c.l.b16 %v2988_v5 }
 0x52a   : > { %3257 = vmatpush.bf16.msrb.mxu2 %v4214_v59  ;;  %v3053_v51 = vunpack.c.l.b16 %v2989_v35 }
 0x52b   : > { %3269 = vmatpush.bf16.msrb.mxu3 %v4250_v10  ;;  %v4182_v10 = vor.u32 %v4391_v15, %v4181_v60  ;;  %v3069_v62 = vsel %vm7267_vm11, %v3068_v2, %v6696_v63  ;;  %v3072_v60 = vrot.slane %v3052_v43, 2 }
 0x52c   : > { %3286 = vmatpush.bf16.msrb.mxu0 %v4206_v42 }
 0x52d   : > { %v6828_v57 = vpop.f32.mrf.mxu2  ;;  %3299 = vmatpush.bf16.msra.mxu1 %v4226_v29 }
 0x52e   : > { %v2660_v52 = vpop.f32.mrf.mxu1  ;;  %3258 = vmatpush.bf16.msrb.mxu2 %v4198_v9  ;;  %v2990_v0 = vpack.c.bf16 %v6828_v57, %v6828_v57  ;;  %v3070_v9 = vrot.slane %v3051_v41, 3 }
 0x52f   : > { %3270 = vmatpush.bf16.msrb.mxu3 %v4234_v4  ;;  %v4186_v52 = vor.u32 %v4389_v44, %v4183_v34 }
 0x530   : > { %3287 = vmatpush.bf16.msrb.mxu0 %v4190_v40  ;;  %v3071_v3 = vsel %vm7269_vm13, %v3070_v9, %v3069_v62 }
 0x531   : > { %3300 = vmatpush.bf16.msra.mxu1 %v4210_v36  ;;  %v3074_v36 = vrot.slane %v3053_v51, 1  ;;  %v2979_v51 = vld [vmem:[%s4952_s22 + $0x28] sm:$0xff] }
 0x532   : > { %3259 = vmatpush.bf16.msrb.mxu2 %v4182_v10 }
 0x533   : > { %3271 = vmatpush.bf16.msrb.mxu3 %v4218_v18 }
 0x534   : > { %v2736_v14 = vpop.f32.mrf.mxu3 }
 0x535   : > { %v2699_v54 = vpop.f32.mrf.mxu2  ;;  %v2991_v19 = vpack.c.bf16 %v2736_v14, %v2736_v14  ;;  %3301 = vmatpush.bf16.msra.mxu1 %v4194_v8 }
 0x536   : > { %v2775_v37 = vpop.f32.mrf.mxu0  ;;  %v3054_v54 = vunpack.c.l.b16 %v2990_v0 }
 0x537   : > { %v2814_v16 = vpop.f32.mrf.mxu1  ;;  %3272 = vmatpush.bf16.msrb.mxu3 %v4202_v7  ;;  %v2992_v4 = vpack.c.bf16 %v2775_v37, %v2775_v37  ;;  %v3055_v31 = vunpack.c.l.b16 %v2991_v19  ;;  %v2977_v19 = vld [vmem:[%s4952_s22 + $0x18] sm:$0xff] }
 0x538   : > { %v2993_v25 = vpack.c.bf16 %v2814_v16, %v2814_v16 }
 0x539   : > { %v3056_v1 = vunpack.c.l.b16 %v2992_v4  ;;  %v3076_v59 = vrot.slane %v3055_v31, 7  ;;  %v2974_v31 = vld [vmem:[%s4952_s22] sm:$0xff] }
 0x53a   : > { %v3057_v18 = vunpack.c.l.b16 %v2993_v25  ;;  %v2975_v25 = vld [vmem:[%s4952_s22 + $0x8] sm:$0xff] }
 0x53b   : > { %3273 = vmatpush.bf16.msrb.mxu3 %v4186_v52  ;;  %v3078_v24 = vrot.slane %v3056_v1, 6  ;;  %v3077_v37 = vsel %vm7266_vm9, %v3076_v59, %v3054_v54  ;;  %v3073_v52 = vsel %vm7273_vm15, %v3072_v60, %v3071_v3  ;;  %v2976_v54 = vld [vmem:[%s4952_s22 + $0x10] sm:$0xff] }
 0x53c   : > { %v2738_v50 = vpop.f32.mrf.mxu3  ;;  %v3080_v13 = vrot.slane %v3057_v18, 5 }
 0x53d   : > { %v3079_v11 = vsel %vm7268_vm12, %v3078_v24, %v3077_v37  ;;  %v3075_v50 = vsel %vm7275_vm3, %v3074_v36, %v3073_v52  ;;  %v2978_v37 = vld [vmem:[%s4952_s22 + $0x20] sm:$0xff] }
 0x53e   : > { %v2777_v32 = vpop.f32.mrf.mxu0  ;;  %v3081_v15 = vsel %vm7270_vm14, %v3080_v13, %v3079_v11 }
 0x53f   : > { %v2816_v20 = vpop.f32.mrf.mxu1 }
 0x544   : > { %v2853_v48 = vpop.f32.mrf.mxu2 }
 0x545   : > { %v2994_v14 = vpack.c.bf16 %v2853_v48, %v2853_v48 }
 0x547   : > { %v2931_v38 = vpop.f32.mrf.mxu0  ;;  %v3058_v57 = vunpack.c.l.b16 %v2994_v14 }
 0x548   : > { %v2996_v53 = vpack.c.bf16 %v2931_v38, %v2931_v38 }
 0x549   : > { %v3082_v33 = vrot.slane %v3058_v57, 4 }
 0x54a   : > { %v3060_v22 = vunpack.c.l.b16 %v2996_v53 }
 0x54b   : > { %v3083_v10 = vsel %vm7271_vm8, %v3082_v33, %v3081_v15 }
 0x54c   : > { %v2855_v29 = vpop.f32.mrf.mxu2  ;;  %v2892_v21 = vpop.f32.mrf.mxu3  ;;  %v3086_v34 = vrot.slane %v3060_v22, 2 }
 0x54d   : > { %v2995_v16 = vpack.c.bf16 %v2892_v21, %v2892_v21 }
 0x54e   : > { %v2970_v27 = vpop.f32.mrf.mxu1 }
 0x54f   : > { %v3059_v7 = vunpack.c.l.b16 %v2995_v16  ;;  %v2933_v42 = vpop.f32.mrf.mxu0  ;;  %v2997_v55 = vpack.c.bf16 %v2970_v27, %v2970_v27 }
 0x551   : > { %v3084_v44 = vrot.slane %v3059_v7, 3  ;;  %v3061_v63 = vunpack.c.l.b16 %v2997_v55 }
 0x553   : > { %v3085_v61 = vsel %vm7272_vm10, %v3084_v44, %v3083_v10  ;;  %v3088_v26 = vrot.slane %v3061_v63, 1 }
 0x554   : > { %v3087_v45 = vsel %vm7274_vm2, %v3086_v34, %v3085_v61  ;;  %v2894_v58 = vpop.f32.mrf.mxu3 }
 0x555   : > { %v3089_v40 = vsel %vm7276_vm4, %v3088_v26, %v3087_v45 }
 0x556   : > { %v3090_v8 = vpack.c.b16 %v3089_v40, %v3075_v50  ;;  %v2972_v32 = vpop.f32.mrf.mxu1 }
 0x558   : > { %3260 = vmatmul.bf16.vlgmr.msrb.gmra.mxu2 %v3090_v8  ;;  %3274 = vmatmul.bf16.vlgmr.msrb.gmra.mxu3 %v3090_v8 }
 0x559   : > { %3288 = vmatmul.bf16.vlgmr.msrb.gmra.mxu0 %v3090_v8  ;;  %3302 = vmatmul.bf16.vlgmr.msra.gmra.mxu1 %v3090_v8  ;;  %v1007_v8 = vld [vmem:[#allocation3 + $0x8] sm:$0xff] }
 0x5d6   : > { %v3303_v20 = vpop.f32.mrf.mxu1  ;;  %v3289_v18 = vpop.f32.mrf.mxu0 }
 0x5d7   : > { %v3311_v47 = vadd.f32 %v3303_v20, %v2977_v19  ;;  %v3310_v57 = vadd.f32 %v3289_v18, %v2976_v54 }
 0x5d9   : > { %v3319_v4 = vadd.f32 %v3311_v47, %v6692_v6  ;;  %v3318_v21 = vadd.f32 %v3310_v57, %v6668_v30 }
 0x5db   : > { %v4311_v48 = vmul.f32 -1.442695, %v3319_v4  ;;  %v3261_v28 = vpop.f32.mrf.mxu2  ;;  %v3275_v39 = vpop.f32.mrf.mxu3 }
 0x5dc   : > { %v3308_v0 = vadd.f32 %v3261_v28, %v2974_v31  ;;  %v3309_v1 = vadd.f32 %v3275_v39, %v2975_v25 }
 0x5dd   : > { %4716 = vpow2.f32 %v4311_v48 }
 0x5de   : > { %v3316_v14 = vadd.f32 %v3308_v0, %v6646_v12  ;;  %v3317_v59 = vadd.f32 %v3309_v1, %v6650_v56  ;;  %v2981_v56 = vld [vmem:[%s4952_s22 + $0x38] sm:$0xff]  ;;  %v3305_v53 = vpop.f32.mrf.mxu1 }
 0x5df   : > { %v3315_v29 = vadd.f32 %v3305_v53, %v2981_v56 }
 0x5e0   : > { %v4307_v38 = vmul.f32 -1.442695, %v3316_v14  ;;  %v4309_v5 = vmul.f32 -1.442695, %v3317_v59  ;;  %v2980_v14 = vld [vmem:[%s4952_s22 + $0x30] sm:$0xff]  ;;  %v3291_v59 = vpop.f32.mrf.mxu0 }
 0x5e1   : > { %v3323_v9 = vadd.f32 %v3315_v29, %v6700_v17  ;;  %v3314_v54 = vadd.f32 %v3291_v59, %v2980_v14 }
 0x5e2   : > { %4718 = vpow2.f32 %v4307_v38 }
 0x5e3   : > { %v4717_v2 = vpop.eup %4716  ;;  %4720 = vpow2.f32 %v4309_v5  ;;  %v3263_v43 = vpop.f32.mrf.mxu2  ;;  %v4312_v42 = vmul.f32 -1.442695, %v3323_v9  ;;  %v3322_v56 = vadd.f32 %v3314_v54, %v6689_v23 }
 0x5e4   : > { %v6963_v6 = vadd.f32 1.0, %v4717_v2  ;;  %v3312_v62 = vadd.f32 %v3263_v43, %v2978_v37  ;;  %v3277_v13 = vpop.f32.mrf.mxu3 }
 0x5e5   : > { %v3313_v11 = vadd.f32 %v3277_v13, %v2979_v51 }
 0x5e6   : > { %4722 = vrcp.f32 %v6963_v6  ;;  %v3320_v22 = vadd.f32 %v3312_v62, %v6648_v46  ;;  %v3421_v2 = vand.u32 2147483648, %v6963_v6  ;;  %vm3415_vm14 = vweird.f32 %v6963_v6 }
 0x5e7   : > { %v3321_v36 = vadd.f32 %v3313_v11, %v6673_v49 }
 0x5e8   : > { %v4719_v35 = vpop.eup %4718  ;;  %v4308_v30 = vmul.f32 -1.442695, %v3320_v22 }
 0x5e9   : > { %v4721_v41 = vpop.eup %4720  ;;  %v3330_v24 = vadd.f32 1.0, %v4719_v35  ;;  %v4310_v10 = vmul.f32 -1.442695, %v3321_v36  ;;  %v3419_v35 = vand.u32 2147483647, %v6963_v6 }
 0x5ea   : > { %v3368_v12 = vadd.f32 1.0, %v4721_v41 }
 0x5eb   : > { %4724 = vrcp.f32 %v3330_v24  ;;  %v3341_v15 = vand.u32 2147483647, %v3330_v24  ;;  %v3343_v44 = vand.u32 2147483648, %v3330_v24  ;;  %vm3337_vm1 = vweird.f32 %v3330_v24 }
 0x5ec   : > { %4726 = vrcp.f32 %v3368_v12  ;;  %v6971_v16 = vpop.eup %4722  ;;  %v3381_v46 = vand.u32 2147483648, %v3368_v12  ;;  %v3379_v26 = vand.u32 2147483647, %v3368_v12  ;;  %vm3375_vm0 = vweird.f32 %v3368_v12 }
 0x5ed   : > { %4728 = vtanh.f32 %v3318_v21  ;;  %v3411_v55 = vmul.f32 %v6971_v16, %v6963_v6  ;;  %v3344_v58 = vor.u32 1.1754944e-38, %v3343_v44  ;;  %vm3342_vm9 = vcmp.eq.f32.partialorder %v3341_v15, 8.507059e+37 }
 0x5ee   : > { %4730 = vpow2.f32 %v4312_v42  ;;  %v3382_v32 = vor.u32 1.1754944e-38, %v3381_v46  ;;  %vm3380_vm12 = vcmp.eq.f32.partialorder %v3379_v26, 8.507059e+37  ;;  %vm3416_vm13 = vweird.f32 %v6971_v16 }
 0x5ef   : > { %4732 = vpow2.f32 %v4308_v30  ;;  %v3412_v34 = vsub.f32 1.0, %v3411_v55  ;;  %vm3417_vm8 = vmor %vm3415_vm14, %vm3416_vm13  ;;  %vm3420_vm10 = vcmp.eq.f32.partialorder %v3419_v35, 8.507059e+37 }
 0x5f0   : > { %4734 = vpow2.f32 %v4310_v10 }
 0x5f1   : > { %v4725_v33 = vpop.eup %4724  ;;  %v3413_v20 = vmul.f32 %v6971_v16, %v3412_v34 }
 0x5f2   : > { %v4727_v27 = vpop.eup %4726  ;;  %v3333_v7 = vmul.f32 %v4725_v33, %v3330_v24  ;;  %vm3338_vm5 = vweird.f32 %v4725_v33  ;;  %v3422_v24 = vor.u32 1.1754944e-38, %v3421_v2 }
 0x5f3   : > { %v3371_v3 = vmul.f32 %v4727_v27, %v3368_v12  ;;  %vm3376_vm7 = vweird.f32 %v4727_v27  ;;  %v4729_v45 = vpop.eup %4728  ;;  %vm3339_vm6 = vmor %vm3337_vm1, %vm3338_vm5  ;;  %v3414_v5 = vadd.f32 %v6971_v16, %v3413_v20 }
 0x5f4   : > { %v3334_v60 = vsub.f32 1.0, %v3333_v7  ;;  %v4731_v49 = vpop.eup %4730  ;;  %vm3377_vm11 = vmor %vm3375_vm0, %vm3376_vm7 }
 0x5f5   : > { %v3372_v17 = vsub.f32 1.0, %v3371_v3  ;;  %v4733_v19 = vpop.eup %4732  ;;  %v6979_v28 = vadd.f32 1.0, %v4731_v49  ;;  %v3418_v41 = vsel %vm3417_vm8, %v6971_v16, %v3414_v5 }
 0x5f6   : > { %v3335_v63 = vmul.f32 %v4725_v33, %v3334_v60  ;;  %v3331_v0 = vadd.f32 1.0, %v4733_v19  ;;  %v4735_v39 = vpop.eup %4734  ;;  %v3423_v37 = vsel %vm3420_vm10, %v3422_v24, %v3418_v41  ;;  %v1008_v60 = vld [vmem:[#allocation3] sm:$0xff] }
 0x5f7   : > { %v3373_v61 = vmul.f32 %v4727_v27, %v3372_v17  ;;  %v3369_v38 = vadd.f32 1.0, %v4735_v39  ;;  %v3434_v26 = vand.u32 2147483647, %v6979_v28 }
 0x5f8   : > { %v3336_v52 = vadd.f32 %v4725_v33, %v3335_v63  ;;  %4736 = vrcp.f32 %v3331_v0  ;;  %v3356_v62 = vand.u32 2147483647, %v3331_v0  ;;  %v3358_v51 = vand.u32 2147483648, %v3331_v0 }
 0x5f9   : > { %v3374_v50 = vadd.f32 %v4727_v27, %v3373_v61  ;;  %4738 = vrcp.f32 %v6979_v28  ;;  %vm3352_vm2 = vweird.f32 %v3331_v0  ;;  %v3394_v7 = vand.u32 2147483647, %v3369_v38 }
 0x5fa   : > { %v3340_v40 = vsel %vm3339_vm6, %v4725_v33, %v3336_v52  ;;  %vm3357_vm4 = vcmp.eq.f32.partialorder %v3356_v62, 8.507059e+37  ;;  %v3359_v23 = vor.u32 1.1754944e-38, %v3358_v51  ;;  %v3396_v33 = vand.u32 2147483648, %v3369_v38 }
 0x5fb   : > { %v3345_v47 = vsel %vm3342_vm9, %v3344_v58, %v3340_v40  ;;  %v3378_v4 = vsel %vm3377_vm11, %v4727_v27, %v3374_v50  ;;  %vm3390_vm7 = vweird.f32 %v3369_v38  ;;  %vm3395_vm6 = vcmp.eq.f32.partialorder %v3394_v7, 8.507059e+37 }
 0x5fc   : > { %v3442_v31 = vmul.f32 %v4729_v45, %v3345_v47  ;;  %v3383_v48 = vsel %vm3380_vm12, %v3382_v32, %v3378_v4  ;;  %v3397_v36 = vor.u32 1.1754944e-38, %v3396_v33  ;;  %v3436_v61 = vand.u32 2147483648, %v6979_v28 }
 0x5fd   : > { %v3440_v25 = vmul.f32 %v3383_v48, %v1007_v8  ;;  %vm3430_vm9 = vweird.f32 %v6979_v28  ;;  %vm3435_vm12 = vcmp.eq.f32.partialorder %v3434_v26, 8.507059e+37 }
 0x5fe   : > { %v4737_v18 = vpop.eup %4736  ;;  %v3437_v45 = vor.u32 1.1754944e-38, %v3436_v61 }
 0x5ff   : > { %v3444_v1 = vadd.f32 %v3442_v31, %v3440_v25  ;;  %v3348_v12 = vmul.f32 %v4737_v18, %v3331_v0  ;;  %v4739_v57 = vpop.eup %4738  ;;  %vm3353_vm15 = vweird.f32 %v4737_v18 }
 0x600   : > { %v3426_v16 = vmul.f32 %v4739_v57, %v6979_v28  ;;  %vm3354_vm3 = vmor %vm3352_vm2, %vm3353_vm15  ;;  %vm3431_vm0 = vweird.f32 %v4739_v57 }
 0x601   : > { %4740 = vtanh.f32 %v3444_v1  ;;  %3452 = vst [vmem:[#allocation3 + $0x8] sm:$0xff] %v3444_v1  ;;  %v3349_v43 = vsub.f32 1.0, %v3348_v12  ;;  %vm3432_vm11 = vmor %vm3430_vm9, %vm3431_vm0 }
 0x602   : > { %4742 = vrcp.f32 %v3369_v38  ;;  %v3427_v42 = vsub.f32 1.0, %v3426_v16 }
 0x603   : > { %v3350_v6 = vmul.f32 %v4737_v18, %v3349_v43  ;;  %4744 = vtanh.f32 %v3322_v56 }
 0x604   : > { %v3428_v17 = vmul.f32 %v4739_v57, %v3427_v42 }
 0x605   : > { %v3351_v9 = vadd.f32 %v4737_v18, %v3350_v6 }
 0x606   : > { %v3429_v34 = vadd.f32 %v4739_v57, %v3428_v17 }
 0x607   : > { %v4741_v53 = vpop.eup %4740  ;;  %v3355_v22 = vsel %vm3354_vm3, %v4737_v18, %v3351_v9 }
 0x608   : > { %v4743_v29 = vpop.eup %4742  ;;  %v3448_v21 = vmul.f32 %v4741_v53, %v3423_v37  ;;  %v3360_v55 = vsel %vm3357_vm4, %v3359_v23, %v3355_v22  ;;  %v3433_v52 = vsel %vm3432_vm11, %v4739_v57, %v3429_v34 }
 0x609   : > { %v3386_v13 = vmul.f32 %v4743_v29, %v3369_v38  ;;  %vm3391_vm5 = vweird.f32 %v4743_v29  ;;  %v4745_v30 = vpop.eup %4744  ;;  %v3438_v50 = vsel %vm3435_vm12, %v3437_v45, %v3433_v52 }
 0x60a   : > { %3450 = vst [vmem:[#allocation2] sm:$0xff] %v3448_v21  ;;  %vm3392_vm1 = vmor %vm3390_vm7, %vm3391_vm5  ;;  %v3443_v15 = vmul.f32 %v4745_v30, %v3360_v55 }
 0x60b   : > { %v3387_v11 = vsub.f32 1.0, %v3386_v13 }
 0x60d   : > { %v3388_v27 = vmul.f32 %v4743_v29, %v3387_v11 }
 0x60f   : > { %v3389_v3 = vadd.f32 %v4743_v29, %v3388_v27 }
 0x611   : > { %v3393_v44 = vsel %vm3392_vm1, %v4743_v29, %v3389_v3 }
 0x612   : > { %v3398_v63 = vsel %vm3395_vm6, %v3397_v36, %v3393_v44 }
 0x613   : > { %v3441_v46 = vmul.f32 %v3398_v63, %v1008_v60 }
 0x615   : > { %v3445_v10 = vadd.f32 %v3443_v15, %v3441_v46 }
 0x617   : > { %4746 = vtanh.f32 %v3445_v10  ;;  %3453 = vst [vmem:[#allocation3] sm:$0xff] %v3445_v10 }
 0x61d   : > { %v4747_v58 = vpop.eup %4746 }
 0x61e   : > { %v3449_v49 = vmul.f32 %v4747_v58, %v3438_v50 }
 0x620   : > { %3451 = vst [vmem:[#allocation2 + $0x8] sm:$0xff] %v3449_v49  ;;  %v4488_v40 = vpack.c.bf16 %v3449_v49, %v3448_v21 }
 0x622   : > { %4489 = vst [vmem:[%s4938_s18] sm:$0xff] %v4488_v40  }
 0x623 PF: > { %s23_s25 = sadd.s32 1, %s4786_s25   ;;  %s7277_s21 = smov %s4778_s23 }
 0x624   : > { %p20_p9 = scmp.ge.s32.totalorder %s23_s25, 18   ;;  %s7278_s22 = smov %s4782_s24 }
 0x625   : > { %s7279_s23 = smov %s7282_s26  ;;  %s7280_s24 = smov %s7286_s27 }
 0x626   :  { %22 = sbr.rel (!%p20_p9) target bundleno = 3 (0x3), region = 116 }

</bundles_post_ra>
